<compile_context>
chip_gen: v7x
topology: tpu7x:2x2x1
jax: 0.10.0
libtpu: 0.0.40
codegen_flags: <defaults>
</compile_context>

<pallas_src>
import numpy as np

import jax
import jax.numpy as jnp
from jax.experimental import pallas as pl
from jax.experimental.pallas import tpu as pltpu

BN_EPS = 1e-5


# ---------------------------------------------------------------------------
# Static geometry + constant selection/mask tensors (built once, with numpy)
# ---------------------------------------------------------------------------
def _make_geometry(batch, c_in, h_in, n_filters):
    """Per-block sizes. Layout per block: channels-major flat padded spatial axis,
    column index = S + n*Hp*Wp + a*Wp + b for padded coords (a, b), with S slack
    columns on both ends so all 9 conv tap windows are in-bounds."""
    geoms = []
    H = W = h_in
    cin = c_in
    for _ in range(4):
        Hp, Wp = H + 2, W + 2
        Mp = batch * Hp * Wp
        S = Wp + 1
        geoms.append(dict(H=H, W=W, Hp=Hp, Wp=Wp, Mp=Mp, S=S,
                          L=Mp + 2 * S,          # total width incl. slack
                          Mred=Mp - Wp - 1,      # width needed for pooling windows
                          Hn=H // 2, Wn=W // 2,  # spatial after 2x2 floor-pool
                          Cin=cin, count=batch * H * W))
        H, W, cin = H // 2, W // 2, n_filters
    return geoms


def _make_selectors(geoms, batch, hw_final):
    """Interior masks (for BN stats) and 0/1 pooling-selection matrices.

    sel_i (i<4): row p (flat conv-output index of the top-left of a 2x2 window,
    already max-reduced) -> column = that pooled value's position inside block
    i+1's zero-padded, slack-padded input layout.  sel_4 maps to the FC layout
    (column = s*batch + n with s = h'*W5 + w')."""
    masks, sels = [], []
    for i, g in enumerate(geoms):
        m = np.zeros((1, g['Mp']), np.float32)
        for n in range(batch):
            for a in range(1, g['H'] + 1):
                base = n * g['Hp'] * g['Wp'] + a * g['Wp']
                m[0, base + 1: base + g['W'] + 1] = 1.0
        masks.append(jnp.asarray(m))

        if i < 3:
            gn = geoms[i + 1]
            sel = np.zeros((g['Mred'], gn['L']), np.float32)
            for n in range(batch):
                for hp in range(g['Hn']):
                    for wp in range(g['Wn']):
                        p = n * g['Hp'] * g['Wp'] + (2 * hp + 1) * g['Wp'] + (2 * wp + 1)
                        col = (gn['S'] + n * gn['Hp'] * gn['Wp']
                               + (hp + 1) * gn['Wp'] + (wp + 1))
                        sel[p, col] = 1.0
        else:
            sel = np.zeros((g['Mred'], hw_final * batch), np.float32)
            for n in range(batch):
                for hp in range(g['Hn']):
                    for wp in range(g['Wn']):
                        p = n * g['Hp'] * g['Wp'] + (2 * hp + 1) * g['Wp'] + (2 * wp + 1)
                        s = hp * g['Wn'] + wp
                        sel[p, s * batch + n] = 1.0
        sels.append(jnp.asarray(sel))
    return masks, sels


# ---------------------------------------------------------------------------
# The fused Pallas kernel (whole forward pass)
# ---------------------------------------------------------------------------
def _make_kernel(geoms, batch, n_filters, hw_final):
    def kernel(x_ref, *refs):
        block_refs = refs[0:16]          # 4 blocks x (w9, gamma_beta, mask, sel)
        fcw_ref = refs[16]               # (hw_final, F, n_way)
        fcb_ref = refs[17]               # (1, n_way)
        o_ref = refs[18]                 # (batch, n_way)
        act_scr = refs[19]               # VMEM scratch: blocks 2-4 input layout
        y_scr = refs[20]                 # VMEM scratch: conv+BN+ReLU output

        src = x_ref
        final = None
        for i, g in enumerate(geoms):
            w_ref, gb_ref, m_ref, s_ref = block_refs[4 * i: 4 * i + 4]
            Wp, Mp, S, Mred = g['Wp'], g['Mp'], g['S'], g['Mred']

            # ---- conv3x3 (stride 1, pad 1): 9 shifted lane windows, accumulated dots.
            y = None
            for kh in range(3):
                for kw in range(3):
                    lo = S + (kh - 1) * Wp + (kw - 1)
                    tap = src[:, lo:lo + Mp]                  # (Cin, Mp)
                    wk = w_ref[kh * 3 + kw]                   # (Cout, Cin)
                    if g['Cin'] == 1:
                        t = wk * tap                          # rank-1: broadcast multiply
                    else:
                        t = jnp.dot(wk, tap, preferred_element_type=jnp.float32)
                    y = t if y is None else y + t

            # ---- batch-norm (training stats over interior positions only) + ReLU.
            mask = m_ref[...]                                 # (1, Mp), 1.0 on interior
            inv_n = 1.0 / g['count']
            mean = jnp.sum(y * mask, axis=1, keepdims=True) * inv_n
            cen = y - mean
            var = jnp.sum(cen * cen * mask, axis=1, keepdims=True) * inv_n
            gamma = gb_ref[:, 0:1]
            beta = gb_ref[:, 1:2]
            yr = jnp.maximum(cen * jax.lax.rsqrt(var + BN_EPS) * gamma + beta, 0.0)

            # ---- 2x2 max-pool (floor) fused: max of 4 shifted windows, then a 0/1
            # selection matmul that decimates and writes straight into the next
            # block's zero-padded layout (or the FC layout for block 4).
            y_scr[:, 0:Mp] = yr
            ymax = jnp.maximum(
                jnp.maximum(y_scr[:, 0:Mred], y_scr[:, 1:1 + Mred]),
                jnp.maximum(y_scr[:, Wp:Wp + Mred], y_scr[:, Wp + 1:Wp + 1 + Mred]))
            out = jnp.dot(ymax, s_ref[...], preferred_element_type=jnp.float32)

            if i < 3:
                act_scr[:, 0:geoms[i + 1]['L']] = out
                src = act_scr
            else:
                final = out                                   # (F, hw_final * batch)

        # ---- fully-connected head: logits[n, o] = sum_{c,s} final[c, s*N+n]*fcw[s, c, o]
        logits = None
        for s in range(hw_final):
            f_s = final if hw_final == 1 else final[:, s * batch:(s + 1) * batch]
            t = jax.lax.dot_general(f_s, fcw_ref[s],
                                    (((0,), (0,)), ((), ())),
                                    preferred_element_type=jnp.float32)   # (batch, n_way)
            logits = t if logits is None else logits + t
        o_ref[...] = logits + fcb_ref[...]

    return kernel


# ---------------------------------------------------------------------------
# Builder: pallas_call wrapper + one-time parameter preparation
# ---------------------------------------------------------------------------
def build_maml_forward(batch, c_in, h_in, n_filters, n_way):
    geoms = _make_geometry(batch, c_in, h_in, n_filters)
    hw_final = geoms[-1]['Hn'] * geoms[-1]['Wn']
    assert hw_final >= 1, "input spatial size too small for 4 max-pools"
    masks, sels = _make_selectors(geoms, batch, hw_final)
    kernel = _make_kernel(geoms, batch, n_filters, hw_final)
    s1 = geoms[0]['S']

    n_inputs = 1 + 16 + 2
    fused_call = pl.pallas_call(
        kernel,
        out_shape=jax.ShapeDtypeStruct((batch, n_way), jnp.float32),
        in_specs=[pl.BlockSpec(memory_space=pltpu.MemorySpace.VMEM)] * n_inputs,
        out_specs=pl.BlockSpec(memory_space=pltpu.MemorySpace.VMEM),
        scratch_shapes=[
            pltpu.VMEM((n_filters, geoms[1]['L']), jnp.float32),   # block 2-4 input layout
            pltpu.VMEM((n_filters, geoms[0]['Mp']), jnp.float32),  # conv+BN+ReLU output
        ],
    )

    def prepare_params(params):
        """One-time repack of PyTorch-layout params (outside the per-forward hot path)."""
        prep = {}
        cin = c_in
        for i in range(1, 5):
            w = params[f"block{i}.conv.weight"]                       # (F, cin, 3, 3)
            prep[f"w9_{i}"] = jnp.transpose(
                w.reshape(n_filters, cin, 9), (2, 0, 1))              # (9, F, cin)
            prep[f"gb_{i}"] = jnp.stack(
                [params[f"block{i}.bn.weight"],
                 params[f"block{i}.bn.bias"]], axis=1)                # (F, 2)
            # block{i}.conv.bias is intentionally unused: a per-channel constant is
            # exactly cancelled by the batch-norm mean subtraction (same as PyTorch).
            cin = n_filters
        fcw = params["fc.weight"]                                     # (n_way, F*hw_final)
        prep["fcw"] = jnp.transpose(
            fcw.reshape(n_way, n_filters, hw_final), (2, 1, 0))       # (hw_final, F, n_way)
        prep["fcb"] = params["fc.bias"].reshape(1, n_way)
        for i in range(4):
            prep[f"mask_{i + 1}"] = masks[i]
            prep[f"sel_{i + 1}"] = sels[i]
        return prep

    @jax.jit
    def forward(x_nchw, prep):
        # NCHW -> channels-major, zero-ring-padded, slack-padded flat layout (C, L1).
        xt = jnp.transpose(x_nchw, (1, 0, 2, 3))
        xp = jnp.pad(xt, ((0, 0), (0, 0), (1, 1), (1, 1)))
        xin = jnp.pad(xp.reshape(c_in, -1), ((0, 0), (s1, s1)))
        args = [xin]
        for i in range(1, 5):
            args += [prep[f"w9_{i}"], prep[f"gb_{i}"],
                     prep[f"mask_{i}"], prep[f"sel_{i}"]]
        args += [prep["fcw"], prep["fcb"]]
        return fused_call(*args)

    return forward, prepare_params


# ---------------------------------------------------------------------------
# Deterministic parameter construction (PyTorch layout / names)
# ---------------------------------------------------------------------------
def init_params(key, n_way, n_filters, c_in, fc_in):
    params = {}
    chans = [c_in, n_filters, n_filters, n_filters]
    for i in range(1, 5):
        key, k1, k2 = jax.random.split(key, 3)
        ci = chans[i - 1]
        params[f"block{i}.conv.weight"] = (
            0.1 * jax.random.normal(k1, (n_filters, ci, 3, 3), jnp.float32))
        params[f"block{i}.conv.bias"] = (
            0.01 * jax.random.normal(k2, (n_filters,), jnp.float32))
        params[f"block{i}.bn.weight"] = jnp.ones((n_filters,), jnp.float32)
        params[f"block{i}.bn.bias"] = jnp.zeros((n_filters,), jnp.float32)
    key, k1, k2 = jax.random.split(key, 3)
    params["fc.weight"] = 0.1 * jax.random.normal(k1, (n_way, fc_in), jnp.float32)
    params["fc.bias"] = 0.01 * jax.random.normal(k2, (n_way,), jnp.float32)
    return params


if __name__ == "__main__":
    # Small shapes consistent with the module: Omniglot-style 1-channel 26x26 input
    # (exercises the odd-size floor pooling 26 -> 13 -> 6 -> 3 -> 1), tiny filter count.
    batch, c_in, h_in, n_filters, n_way = 2, 1, 26, 8, 5

    h = h_in
    for _ in range(4):
        h = h // 2
    fc_in = n_filters * h * h

    forward, prepare_params = build_maml_forward(batch, c_in, h_in, n_filters, n_way)

    key = jax.random.PRNGKey(0)
    key, kx = jax.random.split(key)
    x = jax.random.normal(kx, (batch, c_in, h_in, h_in), jnp.float32)   # NCHW
    params = init_params(key, n_way, n_filters, c_in, fc_in)
    prep = prepare_params(params)

    logits = forward(x, prep)
    jax.block_until_ready(logits)
    assert logits.shape == (batch, n_way)
    print("KERNEL_OK")
</pallas_src>

<mosaic_0001>
module attributes {stable_mosaic.version = 11 : i64} {
  func.func @kernel(%arg0: memref<1x1626xf32, #tpu.memory_space<vmem>>, %arg1: memref<9x8x1xf32, #tpu.memory_space<vmem>>, %arg2: memref<8x2xf32, #tpu.memory_space<vmem>>, %arg3: memref<1x1568xf32, #tpu.memory_space<vmem>>, %arg4: memref<1539x482xf32, #tpu.memory_space<vmem>>, %arg5: memref<9x8x8xf32, #tpu.memory_space<vmem>>, %arg6: memref<8x2xf32, #tpu.memory_space<vmem>>, %arg7: memref<1x450xf32, #tpu.memory_space<vmem>>, %arg8: memref<434x146xf32, #tpu.memory_space<vmem>>, %arg9: memref<9x8x8xf32, #tpu.memory_space<vmem>>, %arg10: memref<8x2xf32, #tpu.memory_space<vmem>>, %arg11: memref<1x128xf32, #tpu.memory_space<vmem>>, %arg12: memref<119x62xf32, #tpu.memory_space<vmem>>, %arg13: memref<9x8x8xf32, #tpu.memory_space<vmem>>, %arg14: memref<8x2xf32, #tpu.memory_space<vmem>>, %arg15: memref<1x50xf32, #tpu.memory_space<vmem>>, %arg16: memref<44x2xf32, #tpu.memory_space<vmem>>, %arg17: memref<1x8x5xf32, #tpu.memory_space<vmem>>, %arg18: memref<1x5xf32, #tpu.memory_space<vmem>>, %arg19: memref<2x5xf32, #tpu.memory_space<vmem>>, %arg20: memref<8x482xf32, #tpu.memory_space<vmem>>, %arg21: memref<8x1568xf32, #tpu.memory_space<vmem>>) attributes {dimension_semantics = [], scalar_prefetch = 0 : i64, scratch_operands = 2 : i64, tpu.core_type = #tpu.core_type<tc>} {
    %c0 = arith.constant 0 : index
    %c0_0 = arith.constant 0 : index
    %0 = vector.load %arg0[%c0, %c0_0] : memref<1x1626xf32, #tpu.memory_space<vmem>>, vector<1x1568xf32>
    %c0_1 = arith.constant 0 : index
    %c0_2 = arith.constant 0 : index
    %c0_3 = arith.constant 0 : index
    %1 = vector.load %arg1[%c0_1, %c0_2, %c0_3] : memref<9x8x1xf32, #tpu.memory_space<vmem>>, vector<1x8x1xf32>
    %2 = vector.shape_cast %1 : vector<1x8x1xf32> to vector<8x1xf32>
    %3 = vector.broadcast %2 : vector<8x1xf32> to vector<8x1568xf32>
    %4 = vector.broadcast %0 : vector<1x1568xf32> to vector<8x1568xf32>
    %5 = arith.mulf %3, %4 : vector<8x1568xf32>
    %c0_4 = arith.constant 0 : index
    %c1 = arith.constant 1 : index
    %6 = vector.load %arg0[%c0_4, %c1] : memref<1x1626xf32, #tpu.memory_space<vmem>>, vector<1x1568xf32>
    %c1_5 = arith.constant 1 : index
    %c0_6 = arith.constant 0 : index
    %c0_7 = arith.constant 0 : index
    %7 = vector.load %arg1[%c1_5, %c0_6, %c0_7] : memref<9x8x1xf32, #tpu.memory_space<vmem>>, vector<1x8x1xf32>
    %8 = vector.shape_cast %7 : vector<1x8x1xf32> to vector<8x1xf32>
    %9 = vector.broadcast %8 : vector<8x1xf32> to vector<8x1568xf32>
    %10 = vector.broadcast %6 : vector<1x1568xf32> to vector<8x1568xf32>
    %11 = arith.mulf %9, %10 : vector<8x1568xf32>
    %12 = arith.addf %5, %11 : vector<8x1568xf32>
    %c0_8 = arith.constant 0 : index
    %c2 = arith.constant 2 : index
    %13 = vector.load %arg0[%c0_8, %c2] : memref<1x1626xf32, #tpu.memory_space<vmem>>, vector<1x1568xf32>
    %c2_9 = arith.constant 2 : index
    %c0_10 = arith.constant 0 : index
    %c0_11 = arith.constant 0 : index
    %14 = vector.load %arg1[%c2_9, %c0_10, %c0_11] : memref<9x8x1xf32, #tpu.memory_space<vmem>>, vector<1x8x1xf32>
    %15 = vector.shape_cast %14 : vector<1x8x1xf32> to vector<8x1xf32>
    %16 = vector.broadcast %15 : vector<8x1xf32> to vector<8x1568xf32>
    %17 = vector.broadcast %13 : vector<1x1568xf32> to vector<8x1568xf32>
    %18 = arith.mulf %16, %17 : vector<8x1568xf32>
    %19 = arith.addf %12, %18 : vector<8x1568xf32>
    %c0_12 = arith.constant 0 : index
    %c28 = arith.constant 28 : index
    %20 = vector.load %arg0[%c0_12, %c28] : memref<1x1626xf32, #tpu.memory_space<vmem>>, vector<1x1568xf32>
    %c3 = arith.constant 3 : index
    %c0_13 = arith.constant 0 : index
    %c0_14 = arith.constant 0 : index
    %21 = vector.load %arg1[%c3, %c0_13, %c0_14] : memref<9x8x1xf32, #tpu.memory_space<vmem>>, vector<1x8x1xf32>
    %22 = vector.shape_cast %21 : vector<1x8x1xf32> to vector<8x1xf32>
    %23 = vector.broadcast %22 : vector<8x1xf32> to vector<8x1568xf32>
    %24 = vector.broadcast %20 : vector<1x1568xf32> to vector<8x1568xf32>
    %25 = arith.mulf %23, %24 : vector<8x1568xf32>
    %26 = arith.addf %19, %25 : vector<8x1568xf32>
    %c0_15 = arith.constant 0 : index
    %c29 = arith.constant 29 : index
    %27 = vector.load %arg0[%c0_15, %c29] : memref<1x1626xf32, #tpu.memory_space<vmem>>, vector<1x1568xf32>
    %c4 = arith.constant 4 : index
    %c0_16 = arith.constant 0 : index
    %c0_17 = arith.constant 0 : index
    %28 = vector.load %arg1[%c4, %c0_16, %c0_17] : memref<9x8x1xf32, #tpu.memory_space<vmem>>, vector<1x8x1xf32>
    %29 = vector.shape_cast %28 : vector<1x8x1xf32> to vector<8x1xf32>
    %30 = vector.broadcast %29 : vector<8x1xf32> to vector<8x1568xf32>
    %31 = vector.broadcast %27 : vector<1x1568xf32> to vector<8x1568xf32>
    %32 = arith.mulf %30, %31 : vector<8x1568xf32>
    %33 = arith.addf %26, %32 : vector<8x1568xf32>
    %c0_18 = arith.constant 0 : index
    %c30 = arith.constant 30 : index
    %34 = vector.load %arg0[%c0_18, %c30] : memref<1x1626xf32, #tpu.memory_space<vmem>>, vector<1x1568xf32>
    %c5 = arith.constant 5 : index
    %c0_19 = arith.constant 0 : index
    %c0_20 = arith.constant 0 : index
    %35 = vector.load %arg1[%c5, %c0_19, %c0_20] : memref<9x8x1xf32, #tpu.memory_space<vmem>>, vector<1x8x1xf32>
    %36 = vector.shape_cast %35 : vector<1x8x1xf32> to vector<8x1xf32>
    %37 = vector.broadcast %36 : vector<8x1xf32> to vector<8x1568xf32>
    %38 = vector.broadcast %34 : vector<1x1568xf32> to vector<8x1568xf32>
    %39 = arith.mulf %37, %38 : vector<8x1568xf32>
    %40 = arith.addf %33, %39 : vector<8x1568xf32>
    %c0_21 = arith.constant 0 : index
    %c56 = arith.constant 56 : index
    %41 = vector.load %arg0[%c0_21, %c56] : memref<1x1626xf32, #tpu.memory_space<vmem>>, vector<1x1568xf32>
    %c6 = arith.constant 6 : index
    %c0_22 = arith.constant 0 : index
    %c0_23 = arith.constant 0 : index
    %42 = vector.load %arg1[%c6, %c0_22, %c0_23] : memref<9x8x1xf32, #tpu.memory_space<vmem>>, vector<1x8x1xf32>
    %43 = vector.shape_cast %42 : vector<1x8x1xf32> to vector<8x1xf32>
    %44 = vector.broadcast %43 : vector<8x1xf32> to vector<8x1568xf32>
    %45 = vector.broadcast %41 : vector<1x1568xf32> to vector<8x1568xf32>
    %46 = arith.mulf %44, %45 : vector<8x1568xf32>
    %47 = arith.addf %40, %46 : vector<8x1568xf32>
    %c0_24 = arith.constant 0 : index
    %c57 = arith.constant 57 : index
    %48 = vector.load %arg0[%c0_24, %c57] : memref<1x1626xf32, #tpu.memory_space<vmem>>, vector<1x1568xf32>
    %c7 = arith.constant 7 : index
    %c0_25 = arith.constant 0 : index
    %c0_26 = arith.constant 0 : index
    %49 = vector.load %arg1[%c7, %c0_25, %c0_26] : memref<9x8x1xf32, #tpu.memory_space<vmem>>, vector<1x8x1xf32>
    %50 = vector.shape_cast %49 : vector<1x8x1xf32> to vector<8x1xf32>
    %51 = vector.broadcast %50 : vector<8x1xf32> to vector<8x1568xf32>
    %52 = vector.broadcast %48 : vector<1x1568xf32> to vector<8x1568xf32>
    %53 = arith.mulf %51, %52 : vector<8x1568xf32>
    %54 = arith.addf %47, %53 : vector<8x1568xf32>
    %c0_27 = arith.constant 0 : index
    %c58 = arith.constant 58 : index
    %55 = vector.load %arg0[%c0_27, %c58] : memref<1x1626xf32, #tpu.memory_space<vmem>>, vector<1x1568xf32>
    %c8 = arith.constant 8 : index
    %c0_28 = arith.constant 0 : index
    %c0_29 = arith.constant 0 : index
    %56 = vector.load %arg1[%c8, %c0_28, %c0_29] : memref<9x8x1xf32, #tpu.memory_space<vmem>>, vector<1x8x1xf32>
    %57 = vector.shape_cast %56 : vector<1x8x1xf32> to vector<8x1xf32>
    %58 = vector.broadcast %57 : vector<8x1xf32> to vector<8x1568xf32>
    %59 = vector.broadcast %55 : vector<1x1568xf32> to vector<8x1568xf32>
    %60 = arith.mulf %58, %59 : vector<8x1568xf32>
    %61 = arith.addf %54, %60 : vector<8x1568xf32>
    %c0_30 = arith.constant 0 : index
    %c0_31 = arith.constant 0 : index
    %62 = vector.load %arg3[%c0_30, %c0_31] : memref<1x1568xf32, #tpu.memory_space<vmem>>, vector<1x1568xf32>
    %63 = vector.broadcast %62 : vector<1x1568xf32> to vector<8x1568xf32>
    %64 = arith.mulf %61, %63 : vector<8x1568xf32>
    %cst = arith.constant dense<0.000000e+00> : vector<8xf32>
    %65 = vector.multi_reduction <add>, %64, %cst [1] : vector<8x1568xf32> to vector<8xf32>
    %66 = vector.shape_cast %65 : vector<8xf32> to vector<8x1xf32>
    %cst_32 = arith.constant 7.396450e-04 : f32
    %67 = vector.broadcast %cst_32 : f32 to vector<8x1xf32>
    %68 = arith.mulf %66, %67 : vector<8x1xf32>
    %69 = vector.broadcast %68 : vector<8x1xf32> to vector<8x1568xf32>
    %70 = arith.subf %61, %69 : vector<8x1568xf32>
    %71 = arith.mulf %70, %70 : vector<8x1568xf32>
    %72 = vector.broadcast %62 : vector<1x1568xf32> to vector<8x1568xf32>
    %73 = arith.mulf %71, %72 : vector<8x1568xf32>
    %cst_33 = arith.constant dense<0.000000e+00> : vector<8xf32>
    %74 = vector.multi_reduction <add>, %73, %cst_33 [1] : vector<8x1568xf32> to vector<8xf32>
    %75 = vector.shape_cast %74 : vector<8xf32> to vector<8x1xf32>
    %cst_34 = arith.constant 7.396450e-04 : f32
    %76 = vector.broadcast %cst_34 : f32 to vector<8x1xf32>
    %77 = arith.mulf %75, %76 : vector<8x1xf32>
    %c0_35 = arith.constant 0 : index
    %c0_36 = arith.constant 0 : index
    %78 = vector.load %arg2[%c0_35, %c0_36] : memref<8x2xf32, #tpu.memory_space<vmem>>, vector<8x1xf32>
    %c0_37 = arith.constant 0 : index
    %c1_38 = arith.constant 1 : index
    %79 = vector.load %arg2[%c0_37, %c1_38] : memref<8x2xf32, #tpu.memory_space<vmem>>, vector<8x1xf32>
    %cst_39 = arith.constant 9.99999974E-6 : f32
    %80 = vector.broadcast %cst_39 : f32 to vector<8x1xf32>
    %81 = arith.addf %77, %80 : vector<8x1xf32>
    %82 = math.rsqrt %81 : vector<8x1xf32>
    %83 = vector.broadcast %82 : vector<8x1xf32> to vector<8x1568xf32>
    %84 = arith.mulf %70, %83 : vector<8x1568xf32>
    %85 = vector.broadcast %78 : vector<8x1xf32> to vector<8x1568xf32>
    %86 = arith.mulf %84, %85 : vector<8x1568xf32>
    %87 = vector.broadcast %79 : vector<8x1xf32> to vector<8x1568xf32>
    %88 = arith.addf %86, %87 : vector<8x1568xf32>
    %cst_40 = arith.constant 0.000000e+00 : f32
    %89 = vector.broadcast %cst_40 : f32 to vector<8x1568xf32>
    %90 = arith.maximumf %88, %89 : vector<8x1568xf32>
    %c0_41 = arith.constant 0 : index
    %c0_42 = arith.constant 0 : index
    %91 = vector.load %arg21[%c0_41, %c0_42] : memref<8x1568xf32, #tpu.memory_space<vmem>>, vector<8x1568xf32>
    tpu.vector_store %arg21[%c0_41, %c0_42], %90 {strides = array<i32>} : memref<8x1568xf32, #tpu.memory_space<vmem>>, vector<8x1568xf32>,
    %c0_43 = arith.constant 0 : index
    %c0_44 = arith.constant 0 : index
    %92 = vector.load %arg21[%c0_43, %c0_44] : memref<8x1568xf32, #tpu.memory_space<vmem>>, vector<8x1539xf32>
    %c0_45 = arith.constant 0 : index
    %c1_46 = arith.constant 1 : index
    %93 = vector.load %arg21[%c0_45, %c1_46] : memref<8x1568xf32, #tpu.memory_space<vmem>>, vector<8x1539xf32>
    %94 = arith.maximumf %92, %93 : vector<8x1539xf32>
    %c0_47 = arith.constant 0 : index
    %c28_48 = arith.constant 28 : index
    %95 = vector.load %arg21[%c0_47, %c28_48] : memref<8x1568xf32, #tpu.memory_space<vmem>>, vector<8x1539xf32>
    %c0_49 = arith.constant 0 : index
    %c29_50 = arith.constant 29 : index
    %96 = vector.load %arg21[%c0_49, %c29_50] : memref<8x1568xf32, #tpu.memory_space<vmem>>, vector<8x1539xf32>
    %97 = arith.maximumf %95, %96 : vector<8x1539xf32>
    %98 = arith.maximumf %94, %97 : vector<8x1539xf32>
    %c0_51 = arith.constant 0 : index
    %c0_52 = arith.constant 0 : index
    %99 = vector.load %arg4[%c0_51, %c0_52] : memref<1539x482xf32, #tpu.memory_space<vmem>>, vector<1539x482xf32>
    %cst_53 = arith.constant dense<0.000000e+00> : vector<8x482xf32>
    %100 = tpu.matmul %98, %99, %cst_53 {dimension_numbers = #tpu.dot_dimension_numbers<[1], [0], [0], [1], [0, 0, 1, 1], [], []>} : vector<8x1539xf32>, vector<1539x482xf32>, vector<8x482xf32> -> vector<8x482xf32>
    %c0_54 = arith.constant 0 : index
    %c0_55 = arith.constant 0 : index
    %101 = vector.load %arg20[%c0_54, %c0_55] : memref<8x482xf32, #tpu.memory_space<vmem>>, vector<8x482xf32>
    tpu.vector_store %arg20[%c0_54, %c0_55], %100 {strides = array<i32>} : memref<8x482xf32, #tpu.memory_space<vmem>>, vector<8x482xf32>,
    %c0_56 = arith.constant 0 : index
    %c0_57 = arith.constant 0 : index
    %102 = vector.load %arg20[%c0_56, %c0_57] : memref<8x482xf32, #tpu.memory_space<vmem>>, vector<8x450xf32>
    %c0_58 = arith.constant 0 : index
    %c0_59 = arith.constant 0 : index
    %c0_60 = arith.constant 0 : index
    %103 = vector.load %arg5[%c0_58, %c0_59, %c0_60] : memref<9x8x8xf32, #tpu.memory_space<vmem>>, vector<1x8x8xf32>
    %104 = vector.shape_cast %103 : vector<1x8x8xf32> to vector<8x8xf32>
    %cst_61 = arith.constant dense<0.000000e+00> : vector<8x450xf32>
    %105 = tpu.matmul %104, %102, %cst_61 {dimension_numbers = #tpu.dot_dimension_numbers<[1], [0], [0], [1], [0, 0, 1, 1], [], []>} : vector<8x8xf32>, vector<8x450xf32>, vector<8x450xf32> -> vector<8x450xf32>
    %c0_62 = arith.constant 0 : index
    %c1_63 = arith.constant 1 : index
    %106 = vector.load %arg20[%c0_62, %c1_63] : memref<8x482xf32, #tpu.memory_space<vmem>>, vector<8x450xf32>
    %c1_64 = arith.constant 1 : index
    %c0_65 = arith.constant 0 : index
    %c0_66 = arith.constant 0 : index
    %107 = vector.load %arg5[%c1_64, %c0_65, %c0_66] : memref<9x8x8xf32, #tpu.memory_space<vmem>>, vector<1x8x8xf32>
    %108 = vector.shape_cast %107 : vector<1x8x8xf32> to vector<8x8xf32>
    %cst_67 = arith.constant dense<0.000000e+00> : vector<8x450xf32>
    %109 = tpu.matmul %108, %106, %cst_67 {dimension_numbers = #tpu.dot_dimension_numbers<[1], [0], [0], [1], [0, 0, 1, 1], [], []>} : vector<8x8xf32>, vector<8x450xf32>, vector<8x450xf32> -> vector<8x450xf32>
    %110 = arith.addf %105, %109 : vector<8x450xf32>
    %c0_68 = arith.constant 0 : index
    %c2_69 = arith.constant 2 : index
    %111 = vector.load %arg20[%c0_68, %c2_69] : memref<8x482xf32, #tpu.memory_space<vmem>>, vector<8x450xf32>
    %c2_70 = arith.constant 2 : index
    %c0_71 = arith.constant 0 : index
    %c0_72 = arith.constant 0 : index
    %112 = vector.load %arg5[%c2_70, %c0_71, %c0_72] : memref<9x8x8xf32, #tpu.memory_space<vmem>>, vector<1x8x8xf32>
    %113 = vector.shape_cast %112 : vector<1x8x8xf32> to vector<8x8xf32>
    %cst_73 = arith.constant dense<0.000000e+00> : vector<8x450xf32>
    %114 = tpu.matmul %113, %111, %cst_73 {dimension_numbers = #tpu.dot_dimension_numbers<[1], [0], [0], [1], [0, 0, 1, 1], [], []>} : vector<8x8xf32>, vector<8x450xf32>, vector<8x450xf32> -> vector<8x450xf32>
    %115 = arith.addf %110, %114 : vector<8x450xf32>
    %c0_74 = arith.constant 0 : index
    %c15 = arith.constant 15 : index
    %116 = vector.load %arg20[%c0_74, %c15] : memref<8x482xf32, #tpu.memory_space<vmem>>, vector<8x450xf32>
    %c3_75 = arith.constant 3 : index
    %c0_76 = arith.constant 0 : index
    %c0_77 = arith.constant 0 : index
    %117 = vector.load %arg5[%c3_75, %c0_76, %c0_77] : memref<9x8x8xf32, #tpu.memory_space<vmem>>, vector<1x8x8xf32>
    %118 = vector.shape_cast %117 : vector<1x8x8xf32> to vector<8x8xf32>
    %cst_78 = arith.constant dense<0.000000e+00> : vector<8x450xf32>
    %119 = tpu.matmul %118, %116, %cst_78 {dimension_numbers = #tpu.dot_dimension_numbers<[1], [0], [0], [1], [0, 0, 1, 1], [], []>} : vector<8x8xf32>, vector<8x450xf32>, vector<8x450xf32> -> vector<8x450xf32>
    %120 = arith.addf %115, %119 : vector<8x450xf32>
    %c0_79 = arith.constant 0 : index
    %c16 = arith.constant 16 : index
    %121 = vector.load %arg20[%c0_79, %c16] : memref<8x482xf32, #tpu.memory_space<vmem>>, vector<8x450xf32>
    %c4_80 = arith.constant 4 : index
    %c0_81 = arith.constant 0 : index
    %c0_82 = arith.constant 0 : index
    %122 = vector.load %arg5[%c4_80, %c0_81, %c0_82] : memref<9x8x8xf32, #tpu.memory_space<vmem>>, vector<1x8x8xf32>
    %123 = vector.shape_cast %122 : vector<1x8x8xf32> to vector<8x8xf32>
    %cst_83 = arith.constant dense<0.000000e+00> : vector<8x450xf32>
    %124 = tpu.matmul %123, %121, %cst_83 {dimension_numbers = #tpu.dot_dimension_numbers<[1], [0], [0], [1], [0, 0, 1, 1], [], []>} : vector<8x8xf32>, vector<8x450xf32>, vector<8x450xf32> -> vector<8x450xf32>
    %125 = arith.addf %120, %124 : vector<8x450xf32>
    %c0_84 = arith.constant 0 : index
    %c17 = arith.constant 17 : index
    %126 = vector.load %arg20[%c0_84, %c17] : memref<8x482xf32, #tpu.memory_space<vmem>>, vector<8x450xf32>
    %c5_85 = arith.constant 5 : index
    %c0_86 = arith.constant 0 : index
    %c0_87 = arith.constant 0 : index
    %127 = vector.load %arg5[%c5_85, %c0_86, %c0_87] : memref<9x8x8xf32, #tpu.memory_space<vmem>>, vector<1x8x8xf32>
    %128 = vector.shape_cast %127 : vector<1x8x8xf32> to vector<8x8xf32>
    %cst_88 = arith.constant dense<0.000000e+00> : vector<8x450xf32>
    %129 = tpu.matmul %128, %126, %cst_88 {dimension_numbers = #tpu.dot_dimension_numbers<[1], [0], [0], [1], [0, 0, 1, 1], [], []>} : vector<8x8xf32>, vector<8x450xf32>, vector<8x450xf32> -> vector<8x450xf32>
    %130 = arith.addf %125, %129 : vector<8x450xf32>
    %c0_89 = arith.constant 0 : index
    %c30_90 = arith.constant 30 : index
    %131 = vector.load %arg20[%c0_89, %c30_90] : memref<8x482xf32, #tpu.memory_space<vmem>>, vector<8x450xf32>
    %c6_91 = arith.constant 6 : index
    %c0_92 = arith.constant 0 : index
    %c0_93 = arith.constant 0 : index
    %132 = vector.load %arg5[%c6_91, %c0_92, %c0_93] : memref<9x8x8xf32, #tpu.memory_space<vmem>>, vector<1x8x8xf32>
    %133 = vector.shape_cast %132 : vector<1x8x8xf32> to vector<8x8xf32>
    %cst_94 = arith.constant dense<0.000000e+00> : vector<8x450xf32>
    %134 = tpu.matmul %133, %131, %cst_94 {dimension_numbers = #tpu.dot_dimension_numbers<[1], [0], [0], [1], [0, 0, 1, 1], [], []>} : vector<8x8xf32>, vector<8x450xf32>, vector<8x450xf32> -> vector<8x450xf32>
    %135 = arith.addf %130, %134 : vector<8x450xf32>
    %c0_95 = arith.constant 0 : index
    %c31 = arith.constant 31 : index
    %136 = vector.load %arg20[%c0_95, %c31] : memref<8x482xf32, #tpu.memory_space<vmem>>, vector<8x450xf32>
    %c7_96 = arith.constant 7 : index
    %c0_97 = arith.constant 0 : index
    %c0_98 = arith.constant 0 : index
    %137 = vector.load %arg5[%c7_96, %c0_97, %c0_98] : memref<9x8x8xf32, #tpu.memory_space<vmem>>, vector<1x8x8xf32>
    %138 = vector.shape_cast %137 : vector<1x8x8xf32> to vector<8x8xf32>
    %cst_99 = arith.constant dense<0.000000e+00> : vector<8x450xf32>
    %139 = tpu.matmul %138, %136, %cst_99 {dimension_numbers = #tpu.dot_dimension_numbers<[1], [0], [0], [1], [0, 0, 1, 1], [], []>} : vector<8x8xf32>, vector<8x450xf32>, vector<8x450xf32> -> vector<8x450xf32>
    %140 = arith.addf %135, %139 : vector<8x450xf32>
    %c0_100 = arith.constant 0 : index
    %c32 = arith.constant 32 : index
    %141 = vector.load %arg20[%c0_100, %c32] : memref<8x482xf32, #tpu.memory_space<vmem>>, vector<8x450xf32>
    %c8_101 = arith.constant 8 : index
    %c0_102 = arith.constant 0 : index
    %c0_103 = arith.constant 0 : index
    %142 = vector.load %arg5[%c8_101, %c0_102, %c0_103] : memref<9x8x8xf32, #tpu.memory_space<vmem>>, vector<1x8x8xf32>
    %143 = vector.shape_cast %142 : vector<1x8x8xf32> to vector<8x8xf32>
    %cst_104 = arith.constant dense<0.000000e+00> : vector<8x450xf32>
    %144 = tpu.matmul %143, %141, %cst_104 {dimension_numbers = #tpu.dot_dimension_numbers<[1], [0], [0], [1], [0, 0, 1, 1], [], []>} : vector<8x8xf32>, vector<8x450xf32>, vector<8x450xf32> -> vector<8x450xf32>
    %145 = arith.addf %140, %144 : vector<8x450xf32>
    %c0_105 = arith.constant 0 : index
    %c0_106 = arith.constant 0 : index
    %146 = vector.load %arg7[%c0_105, %c0_106] : memref<1x450xf32, #tpu.memory_space<vmem>>, vector<1x450xf32>
    %147 = vector.broadcast %146 : vector<1x450xf32> to vector<8x450xf32>
    %148 = arith.mulf %145, %147 : vector<8x450xf32>
    %cst_107 = arith.constant dense<0.000000e+00> : vector<8xf32>
    %149 = vector.multi_reduction <add>, %148, %cst_107 [1] : vector<8x450xf32> to vector<8xf32>
    %150 = vector.shape_cast %149 : vector<8xf32> to vector<8x1xf32>
    %cst_108 = arith.constant 2.958580e-03 : f32
    %151 = vector.broadcast %cst_108 : f32 to vector<8x1xf32>
    %152 = arith.mulf %150, %151 : vector<8x1xf32>
    %153 = vector.broadcast %152 : vector<8x1xf32> to vector<8x450xf32>
    %154 = arith.subf %145, %153 : vector<8x450xf32>
    %155 = arith.mulf %154, %154 : vector<8x450xf32>
    %156 = vector.broadcast %146 : vector<1x450xf32> to vector<8x450xf32>
    %157 = arith.mulf %155, %156 : vector<8x450xf32>
    %cst_109 = arith.constant dense<0.000000e+00> : vector<8xf32>
    %158 = vector.multi_reduction <add>, %157, %cst_109 [1] : vector<8x450xf32> to vector<8xf32>
    %159 = vector.shape_cast %158 : vector<8xf32> to vector<8x1xf32>
    %cst_110 = arith.constant 2.958580e-03 : f32
    %160 = vector.broadcast %cst_110 : f32 to vector<8x1xf32>
    %161 = arith.mulf %159, %160 : vector<8x1xf32>
    %c0_111 = arith.constant 0 : index
    %c0_112 = arith.constant 0 : index
    %162 = vector.load %arg6[%c0_111, %c0_112] : memref<8x2xf32, #tpu.memory_space<vmem>>, vector<8x1xf32>
    %c0_113 = arith.constant 0 : index
    %c1_114 = arith.constant 1 : index
    %163 = vector.load %arg6[%c0_113, %c1_114] : memref<8x2xf32, #tpu.memory_space<vmem>>, vector<8x1xf32>
    %cst_115 = arith.constant 9.99999974E-6 : f32
    %164 = vector.broadcast %cst_115 : f32 to vector<8x1xf32>
    %165 = arith.addf %161, %164 : vector<8x1xf32>
    %166 = math.rsqrt %165 : vector<8x1xf32>
    %167 = vector.broadcast %166 : vector<8x1xf32> to vector<8x450xf32>
    %168 = arith.mulf %154, %167 : vector<8x450xf32>
    %169 = vector.broadcast %162 : vector<8x1xf32> to vector<8x450xf32>
    %170 = arith.mulf %168, %169 : vector<8x450xf32>
    %171 = vector.broadcast %163 : vector<8x1xf32> to vector<8x450xf32>
    %172 = arith.addf %170, %171 : vector<8x450xf32>
    %cst_116 = arith.constant 0.000000e+00 : f32
    %173 = vector.broadcast %cst_116 : f32 to vector<8x450xf32>
    %174 = arith.maximumf %172, %173 : vector<8x450xf32>
    %c0_117 = arith.constant 0 : index
    %c0_118 = arith.constant 0 : index
    %175 = vector.load %arg21[%c0_117, %c0_118] : memref<8x1568xf32, #tpu.memory_space<vmem>>, vector<8x450xf32>
    tpu.vector_store %arg21[%c0_117, %c0_118], %174 {strides = array<i32>} : memref<8x1568xf32, #tpu.memory_space<vmem>>, vector<8x450xf32>,
    %c0_119 = arith.constant 0 : index
    %c0_120 = arith.constant 0 : index
    %176 = vector.load %arg21[%c0_119, %c0_120] : memref<8x1568xf32, #tpu.memory_space<vmem>>, vector<8x434xf32>
    %c0_121 = arith.constant 0 : index
    %c1_122 = arith.constant 1 : index
    %177 = vector.load %arg21[%c0_121, %c1_122] : memref<8x1568xf32, #tpu.memory_space<vmem>>, vector<8x434xf32>
    %178 = arith.maximumf %176, %177 : vector<8x434xf32>
    %c0_123 = arith.constant 0 : index
    %c15_124 = arith.constant 15 : index
    %179 = vector.load %arg21[%c0_123, %c15_124] : memref<8x1568xf32, #tpu.memory_space<vmem>>, vector<8x434xf32>
    %c0_125 = arith.constant 0 : index
    %c16_126 = arith.constant 16 : index
    %180 = vector.load %arg21[%c0_125, %c16_126] : memref<8x1568xf32, #tpu.memory_space<vmem>>, vector<8x434xf32>
    %181 = arith.maximumf %179, %180 : vector<8x434xf32>
    %182 = arith.maximumf %178, %181 : vector<8x434xf32>
    %c0_127 = arith.constant 0 : index
    %c0_128 = arith.constant 0 : index
    %183 = vector.load %arg8[%c0_127, %c0_128] : memref<434x146xf32, #tpu.memory_space<vmem>>, vector<434x146xf32>
    %cst_129 = arith.constant dense<0.000000e+00> : vector<8x146xf32>
    %184 = tpu.matmul %182, %183, %cst_129 {dimension_numbers = #tpu.dot_dimension_numbers<[1], [0], [0], [1], [0, 0, 1, 1], [], []>} : vector<8x434xf32>, vector<434x146xf32>, vector<8x146xf32> -> vector<8x146xf32>
    %c0_130 = arith.constant 0 : index
    %c0_131 = arith.constant 0 : index
    %185 = vector.load %arg20[%c0_130, %c0_131] : memref<8x482xf32, #tpu.memory_space<vmem>>, vector<8x146xf32>
    tpu.vector_store %arg20[%c0_130, %c0_131], %184 {strides = array<i32>} : memref<8x482xf32, #tpu.memory_space<vmem>>, vector<8x146xf32>,
    %c0_132 = arith.constant 0 : index
    %c0_133 = arith.constant 0 : index
    %186 = vector.load %arg20[%c0_132, %c0_133] : memref<8x482xf32, #tpu.memory_space<vmem>>, vector<8x128xf32>
    %c0_134 = arith.constant 0 : index
    %c0_135 = arith.constant 0 : index
    %c0_136 = arith.constant 0 : index
    %187 = vector.load %arg9[%c0_134, %c0_135, %c0_136] : memref<9x8x8xf32, #tpu.memory_space<vmem>>, vector<1x8x8xf32>
    %188 = vector.shape_cast %187 : vector<1x8x8xf32> to vector<8x8xf32>
    %cst_137 = arith.constant dense<0.000000e+00> : vector<8x128xf32>
    %189 = tpu.matmul %188, %186, %cst_137 {dimension_numbers = #tpu.dot_dimension_numbers<[1], [0], [0], [1], [0, 0, 1, 1], [], []>} : vector<8x8xf32>, vector<8x128xf32>, vector<8x128xf32> -> vector<8x128xf32>
    %c0_138 = arith.constant 0 : index
    %c1_139 = arith.constant 1 : index
    %190 = vector.load %arg20[%c0_138, %c1_139] : memref<8x482xf32, #tpu.memory_space<vmem>>, vector<8x128xf32>
    %c1_140 = arith.constant 1 : index
    %c0_141 = arith.constant 0 : index
    %c0_142 = arith.constant 0 : index
    %191 = vector.load %arg9[%c1_140, %c0_141, %c0_142] : memref<9x8x8xf32, #tpu.memory_space<vmem>>, vector<1x8x8xf32>
    %192 = vector.shape_cast %191 : vector<1x8x8xf32> to vector<8x8xf32>
    %cst_143 = arith.constant dense<0.000000e+00> : vector<8x128xf32>
    %193 = tpu.matmul %192, %190, %cst_143 {dimension_numbers = #tpu.dot_dimension_numbers<[1], [0], [0], [1], [0, 0, 1, 1], [], []>} : vector<8x8xf32>, vector<8x128xf32>, vector<8x128xf32> -> vector<8x128xf32>
    %194 = arith.addf %189, %193 : vector<8x128xf32>
    %c0_144 = arith.constant 0 : index
    %c2_145 = arith.constant 2 : index
    %195 = vector.load %arg20[%c0_144, %c2_145] : memref<8x482xf32, #tpu.memory_space<vmem>>, vector<8x128xf32>
    %c2_146 = arith.constant 2 : index
    %c0_147 = arith.constant 0 : index
    %c0_148 = arith.constant 0 : index
    %196 = vector.load %arg9[%c2_146, %c0_147, %c0_148] : memref<9x8x8xf32, #tpu.memory_space<vmem>>, vector<1x8x8xf32>
    %197 = vector.shape_cast %196 : vector<1x8x8xf32> to vector<8x8xf32>
    %cst_149 = arith.constant dense<0.000000e+00> : vector<8x128xf32>
    %198 = tpu.matmul %197, %195, %cst_149 {dimension_numbers = #tpu.dot_dimension_numbers<[1], [0], [0], [1], [0, 0, 1, 1], [], []>} : vector<8x8xf32>, vector<8x128xf32>, vector<8x128xf32> -> vector<8x128xf32>
    %199 = arith.addf %194, %198 : vector<8x128xf32>
    %c0_150 = arith.constant 0 : index
    %c8_151 = arith.constant 8 : index
    %200 = vector.load %arg20[%c0_150, %c8_151] : memref<8x482xf32, #tpu.memory_space<vmem>>, vector<8x128xf32>
    %c3_152 = arith.constant 3 : index
    %c0_153 = arith.constant 0 : index
    %c0_154 = arith.constant 0 : index
    %201 = vector.load %arg9[%c3_152, %c0_153, %c0_154] : memref<9x8x8xf32, #tpu.memory_space<vmem>>, vector<1x8x8xf32>
    %202 = vector.shape_cast %201 : vector<1x8x8xf32> to vector<8x8xf32>
    %cst_155 = arith.constant dense<0.000000e+00> : vector<8x128xf32>
    %203 = tpu.matmul %202, %200, %cst_155 {dimension_numbers = #tpu.dot_dimension_numbers<[1], [0], [0], [1], [0, 0, 1, 1], [], []>} : vector<8x8xf32>, vector<8x128xf32>, vector<8x128xf32> -> vector<8x128xf32>
    %204 = arith.addf %199, %203 : vector<8x128xf32>
    %c0_156 = arith.constant 0 : index
    %c9 = arith.constant 9 : index
    %205 = vector.load %arg20[%c0_156, %c9] : memref<8x482xf32, #tpu.memory_space<vmem>>, vector<8x128xf32>
    %c4_157 = arith.constant 4 : index
    %c0_158 = arith.constant 0 : index
    %c0_159 = arith.constant 0 : index
    %206 = vector.load %arg9[%c4_157, %c0_158, %c0_159] : memref<9x8x8xf32, #tpu.memory_space<vmem>>, vector<1x8x8xf32>
    %207 = vector.shape_cast %206 : vector<1x8x8xf32> to vector<8x8xf32>
    %cst_160 = arith.constant dense<0.000000e+00> : vector<8x128xf32>
    %208 = tpu.matmul %207, %205, %cst_160 {dimension_numbers = #tpu.dot_dimension_numbers<[1], [0], [0], [1], [0, 0, 1, 1], [], []>} : vector<8x8xf32>, vector<8x128xf32>, vector<8x128xf32> -> vector<8x128xf32>
    %209 = arith.addf %204, %208 : vector<8x128xf32>
    %c0_161 = arith.constant 0 : index
    %c10 = arith.constant 10 : index
    %210 = vector.load %arg20[%c0_161, %c10] : memref<8x482xf32, #tpu.memory_space<vmem>>, vector<8x128xf32>
    %c5_162 = arith.constant 5 : index
    %c0_163 = arith.constant 0 : index
    %c0_164 = arith.constant 0 : index
    %211 = vector.load %arg9[%c5_162, %c0_163, %c0_164] : memref<9x8x8xf32, #tpu.memory_space<vmem>>, vector<1x8x8xf32>
    %212 = vector.shape_cast %211 : vector<1x8x8xf32> to vector<8x8xf32>
    %cst_165 = arith.constant dense<0.000000e+00> : vector<8x128xf32>
    %213 = tpu.matmul %212, %210, %cst_165 {dimension_numbers = #tpu.dot_dimension_numbers<[1], [0], [0], [1], [0, 0, 1, 1], [], []>} : vector<8x8xf32>, vector<8x128xf32>, vector<8x128xf32> -> vector<8x128xf32>
    %214 = arith.addf %209, %213 : vector<8x128xf32>
    %c0_166 = arith.constant 0 : index
    %c16_167 = arith.constant 16 : index
    %215 = vector.load %arg20[%c0_166, %c16_167] : memref<8x482xf32, #tpu.memory_space<vmem>>, vector<8x128xf32>
    %c6_168 = arith.constant 6 : index
    %c0_169 = arith.constant 0 : index
    %c0_170 = arith.constant 0 : index
    %216 = vector.load %arg9[%c6_168, %c0_169, %c0_170] : memref<9x8x8xf32, #tpu.memory_space<vmem>>, vector<1x8x8xf32>
    %217 = vector.shape_cast %216 : vector<1x8x8xf32> to vector<8x8xf32>
    %cst_171 = arith.constant dense<0.000000e+00> : vector<8x128xf32>
    %218 = tpu.matmul %217, %215, %cst_171 {dimension_numbers = #tpu.dot_dimension_numbers<[1], [0], [0], [1], [0, 0, 1, 1], [], []>} : vector<8x8xf32>, vector<8x128xf32>, vector<8x128xf32> -> vector<8x128xf32>
    %219 = arith.addf %214, %218 : vector<8x128xf32>
    %c0_172 = arith.constant 0 : index
    %c17_173 = arith.constant 17 : index
    %220 = vector.load %arg20[%c0_172, %c17_173] : memref<8x482xf32, #tpu.memory_space<vmem>>, vector<8x128xf32>
    %c7_174 = arith.constant 7 : index
    %c0_175 = arith.constant 0 : index
    %c0_176 = arith.constant 0 : index
    %221 = vector.load %arg9[%c7_174, %c0_175, %c0_176] : memref<9x8x8xf32, #tpu.memory_space<vmem>>, vector<1x8x8xf32>
    %222 = vector.shape_cast %221 : vector<1x8x8xf32> to vector<8x8xf32>
    %cst_177 = arith.constant dense<0.000000e+00> : vector<8x128xf32>
    %223 = tpu.matmul %222, %220, %cst_177 {dimension_numbers = #tpu.dot_dimension_numbers<[1], [0], [0], [1], [0, 0, 1, 1], [], []>} : vector<8x8xf32>, vector<8x128xf32>, vector<8x128xf32> -> vector<8x128xf32>
    %224 = arith.addf %219, %223 : vector<8x128xf32>
    %c0_178 = arith.constant 0 : index
    %c18 = arith.constant 18 : index
    %225 = vector.load %arg20[%c0_178, %c18] : memref<8x482xf32, #tpu.memory_space<vmem>>, vector<8x128xf32>
    %c8_179 = arith.constant 8 : index
    %c0_180 = arith.constant 0 : index
    %c0_181 = arith.constant 0 : index
    %226 = vector.load %arg9[%c8_179, %c0_180, %c0_181] : memref<9x8x8xf32, #tpu.memory_space<vmem>>, vector<1x8x8xf32>
    %227 = vector.shape_cast %226 : vector<1x8x8xf32> to vector<8x8xf32>
    %cst_182 = arith.constant dense<0.000000e+00> : vector<8x128xf32>
    %228 = tpu.matmul %227, %225, %cst_182 {dimension_numbers = #tpu.dot_dimension_numbers<[1], [0], [0], [1], [0, 0, 1, 1], [], []>} : vector<8x8xf32>, vector<8x128xf32>, vector<8x128xf32> -> vector<8x128xf32>
    %229 = arith.addf %224, %228 : vector<8x128xf32>
    %c0_183 = arith.constant 0 : index
    %c0_184 = arith.constant 0 : index
    %230 = vector.load %arg11[%c0_183, %c0_184] : memref<1x128xf32, #tpu.memory_space<vmem>>, vector<1x128xf32>
    %231 = vector.broadcast %230 : vector<1x128xf32> to vector<8x128xf32>
    %232 = arith.mulf %229, %231 : vector<8x128xf32>
    %cst_185 = arith.constant dense<0.000000e+00> : vector<8xf32>
    %233 = vector.multi_reduction <add>, %232, %cst_185 [1] : vector<8x128xf32> to vector<8xf32>
    %234 = vector.shape_cast %233 : vector<8xf32> to vector<8x1xf32>
    %cst_186 = arith.constant 0.013888889 : f32
    %235 = vector.broadcast %cst_186 : f32 to vector<8x1xf32>
    %236 = arith.mulf %234, %235 : vector<8x1xf32>
    %237 = vector.broadcast %236 : vector<8x1xf32> to vector<8x128xf32>
    %238 = arith.subf %229, %237 : vector<8x128xf32>
    %239 = arith.mulf %238, %238 : vector<8x128xf32>
    %240 = vector.broadcast %230 : vector<1x128xf32> to vector<8x128xf32>
    %241 = arith.mulf %239, %240 : vector<8x128xf32>
    %cst_187 = arith.constant dense<0.000000e+00> : vector<8xf32>
    %242 = vector.multi_reduction <add>, %241, %cst_187 [1] : vector<8x128xf32> to vector<8xf32>
    %243 = vector.shape_cast %242 : vector<8xf32> to vector<8x1xf32>
    %cst_188 = arith.constant 0.013888889 : f32
    %244 = vector.broadcast %cst_188 : f32 to vector<8x1xf32>
    %245 = arith.mulf %243, %244 : vector<8x1xf32>
    %c0_189 = arith.constant 0 : index
    %c0_190 = arith.constant 0 : index
    %246 = vector.load %arg10[%c0_189, %c0_190] : memref<8x2xf32, #tpu.memory_space<vmem>>, vector<8x1xf32>
    %c0_191 = arith.constant 0 : index
    %c1_192 = arith.constant 1 : index
    %247 = vector.load %arg10[%c0_191, %c1_192] : memref<8x2xf32, #tpu.memory_space<vmem>>, vector<8x1xf32>
    %cst_193 = arith.constant 9.99999974E-6 : f32
    %248 = vector.broadcast %cst_193 : f32 to vector<8x1xf32>
    %249 = arith.addf %245, %248 : vector<8x1xf32>
    %250 = math.rsqrt %249 : vector<8x1xf32>
    %251 = vector.broadcast %250 : vector<8x1xf32> to vector<8x128xf32>
    %252 = arith.mulf %238, %251 : vector<8x128xf32>
    %253 = vector.broadcast %246 : vector<8x1xf32> to vector<8x128xf32>
    %254 = arith.mulf %252, %253 : vector<8x128xf32>
    %255 = vector.broadcast %247 : vector<8x1xf32> to vector<8x128xf32>
    %256 = arith.addf %254, %255 : vector<8x128xf32>
    %cst_194 = arith.constant 0.000000e+00 : f32
    %257 = vector.broadcast %cst_194 : f32 to vector<8x128xf32>
    %258 = arith.maximumf %256, %257 : vector<8x128xf32>
    %c0_195 = arith.constant 0 : index
    %c0_196 = arith.constant 0 : index
    %259 = vector.load %arg21[%c0_195, %c0_196] : memref<8x1568xf32, #tpu.memory_space<vmem>>, vector<8x128xf32>
    tpu.vector_store %arg21[%c0_195, %c0_196], %258 {strides = array<i32>} : memref<8x1568xf32, #tpu.memory_space<vmem>>, vector<8x128xf32>,
    %c0_197 = arith.constant 0 : index
    %c0_198 = arith.constant 0 : index
    %260 = vector.load %arg21[%c0_197, %c0_198] : memref<8x1568xf32, #tpu.memory_space<vmem>>, vector<8x119xf32>
    %c0_199 = arith.constant 0 : index
    %c1_200 = arith.constant 1 : index
    %261 = vector.load %arg21[%c0_199, %c1_200] : memref<8x1568xf32, #tpu.memory_space<vmem>>, vector<8x119xf32>
    %262 = arith.maximumf %260, %261 : vector<8x119xf32>
    %c0_201 = arith.constant 0 : index
    %c8_202 = arith.constant 8 : index
    %263 = vector.load %arg21[%c0_201, %c8_202] : memref<8x1568xf32, #tpu.memory_space<vmem>>, vector<8x119xf32>
    %c0_203 = arith.constant 0 : index
    %c9_204 = arith.constant 9 : index
    %264 = vector.load %arg21[%c0_203, %c9_204] : memref<8x1568xf32, #tpu.memory_space<vmem>>, vector<8x119xf32>
    %265 = arith.maximumf %263, %264 : vector<8x119xf32>
    %266 = arith.maximumf %262, %265 : vector<8x119xf32>
    %c0_205 = arith.constant 0 : index
    %c0_206 = arith.constant 0 : index
    %267 = vector.load %arg12[%c0_205, %c0_206] : memref<119x62xf32, #tpu.memory_space<vmem>>, vector<119x62xf32>
    %cst_207 = arith.constant dense<0.000000e+00> : vector<8x62xf32>
    %268 = tpu.matmul %266, %267, %cst_207 {dimension_numbers = #tpu.dot_dimension_numbers<[1], [0], [0], [1], [0, 0, 1, 1], [], []>} : vector<8x119xf32>, vector<119x62xf32>, vector<8x62xf32> -> vector<8x62xf32>
    %c0_208 = arith.constant 0 : index
    %c0_209 = arith.constant 0 : index
    %269 = vector.load %arg20[%c0_208, %c0_209] : memref<8x482xf32, #tpu.memory_space<vmem>>, vector<8x62xf32>
    tpu.vector_store %arg20[%c0_208, %c0_209], %268 {strides = array<i32>} : memref<8x482xf32, #tpu.memory_space<vmem>>, vector<8x62xf32>,
    %c0_210 = arith.constant 0 : index
    %c0_211 = arith.constant 0 : index
    %270 = vector.load %arg20[%c0_210, %c0_211] : memref<8x482xf32, #tpu.memory_space<vmem>>, vector<8x50xf32>
    %c0_212 = arith.constant 0 : index
    %c0_213 = arith.constant 0 : index
    %c0_214 = arith.constant 0 : index
    %271 = vector.load %arg13[%c0_212, %c0_213, %c0_214] : memref<9x8x8xf32, #tpu.memory_space<vmem>>, vector<1x8x8xf32>
    %272 = vector.shape_cast %271 : vector<1x8x8xf32> to vector<8x8xf32>
    %cst_215 = arith.constant dense<0.000000e+00> : vector<8x50xf32>
    %273 = tpu.matmul %272, %270, %cst_215 {dimension_numbers = #tpu.dot_dimension_numbers<[1], [0], [0], [1], [0, 0, 1, 1], [], []>} : vector<8x8xf32>, vector<8x50xf32>, vector<8x50xf32> -> vector<8x50xf32>
    %c0_216 = arith.constant 0 : index
    %c1_217 = arith.constant 1 : index
    %274 = vector.load %arg20[%c0_216, %c1_217] : memref<8x482xf32, #tpu.memory_space<vmem>>, vector<8x50xf32>
    %c1_218 = arith.constant 1 : index
    %c0_219 = arith.constant 0 : index
    %c0_220 = arith.constant 0 : index
    %275 = vector.load %arg13[%c1_218, %c0_219, %c0_220] : memref<9x8x8xf32, #tpu.memory_space<vmem>>, vector<1x8x8xf32>
    %276 = vector.shape_cast %275 : vector<1x8x8xf32> to vector<8x8xf32>
    %cst_221 = arith.constant dense<0.000000e+00> : vector<8x50xf32>
    %277 = tpu.matmul %276, %274, %cst_221 {dimension_numbers = #tpu.dot_dimension_numbers<[1], [0], [0], [1], [0, 0, 1, 1], [], []>} : vector<8x8xf32>, vector<8x50xf32>, vector<8x50xf32> -> vector<8x50xf32>
    %278 = arith.addf %273, %277 : vector<8x50xf32>
    %c0_222 = arith.constant 0 : index
    %c2_223 = arith.constant 2 : index
    %279 = vector.load %arg20[%c0_222, %c2_223] : memref<8x482xf32, #tpu.memory_space<vmem>>, vector<8x50xf32>
    %c2_224 = arith.constant 2 : index
    %c0_225 = arith.constant 0 : index
    %c0_226 = arith.constant 0 : index
    %280 = vector.load %arg13[%c2_224, %c0_225, %c0_226] : memref<9x8x8xf32, #tpu.memory_space<vmem>>, vector<1x8x8xf32>
    %281 = vector.shape_cast %280 : vector<1x8x8xf32> to vector<8x8xf32>
    %cst_227 = arith.constant dense<0.000000e+00> : vector<8x50xf32>
    %282 = tpu.matmul %281, %279, %cst_227 {dimension_numbers = #tpu.dot_dimension_numbers<[1], [0], [0], [1], [0, 0, 1, 1], [], []>} : vector<8x8xf32>, vector<8x50xf32>, vector<8x50xf32> -> vector<8x50xf32>
    %283 = arith.addf %278, %282 : vector<8x50xf32>
    %c0_228 = arith.constant 0 : index
    %c5_229 = arith.constant 5 : index
    %284 = vector.load %arg20[%c0_228, %c5_229] : memref<8x482xf32, #tpu.memory_space<vmem>>, vector<8x50xf32>
    %c3_230 = arith.constant 3 : index
    %c0_231 = arith.constant 0 : index
    %c0_232 = arith.constant 0 : index
    %285 = vector.load %arg13[%c3_230, %c0_231, %c0_232] : memref<9x8x8xf32, #tpu.memory_space<vmem>>, vector<1x8x8xf32>
    %286 = vector.shape_cast %285 : vector<1x8x8xf32> to vector<8x8xf32>
    %cst_233 = arith.constant dense<0.000000e+00> : vector<8x50xf32>
    %287 = tpu.matmul %286, %284, %cst_233 {dimension_numbers = #tpu.dot_dimension_numbers<[1], [0], [0], [1], [0, 0, 1, 1], [], []>} : vector<8x8xf32>, vector<8x50xf32>, vector<8x50xf32> -> vector<8x50xf32>
    %288 = arith.addf %283, %287 : vector<8x50xf32>
    %c0_234 = arith.constant 0 : index
    %c6_235 = arith.constant 6 : index
    %289 = vector.load %arg20[%c0_234, %c6_235] : memref<8x482xf32, #tpu.memory_space<vmem>>, vector<8x50xf32>
    %c4_236 = arith.constant 4 : index
    %c0_237 = arith.constant 0 : index
    %c0_238 = arith.constant 0 : index
    %290 = vector.load %arg13[%c4_236, %c0_237, %c0_238] : memref<9x8x8xf32, #tpu.memory_space<vmem>>, vector<1x8x8xf32>
    %291 = vector.shape_cast %290 : vector<1x8x8xf32> to vector<8x8xf32>
    %cst_239 = arith.constant dense<0.000000e+00> : vector<8x50xf32>
    %292 = tpu.matmul %291, %289, %cst_239 {dimension_numbers = #tpu.dot_dimension_numbers<[1], [0], [0], [1], [0, 0, 1, 1], [], []>} : vector<8x8xf32>, vector<8x50xf32>, vector<8x50xf32> -> vector<8x50xf32>
    %293 = arith.addf %288, %292 : vector<8x50xf32>
    %c0_240 = arith.constant 0 : index
    %c7_241 = arith.constant 7 : index
    %294 = vector.load %arg20[%c0_240, %c7_241] : memref<8x482xf32, #tpu.memory_space<vmem>>, vector<8x50xf32>
    %c5_242 = arith.constant 5 : index
    %c0_243 = arith.constant 0 : index
    %c0_244 = arith.constant 0 : index
    %295 = vector.load %arg13[%c5_242, %c0_243, %c0_244] : memref<9x8x8xf32, #tpu.memory_space<vmem>>, vector<1x8x8xf32>
    %296 = vector.shape_cast %295 : vector<1x8x8xf32> to vector<8x8xf32>
    %cst_245 = arith.constant dense<0.000000e+00> : vector<8x50xf32>
    %297 = tpu.matmul %296, %294, %cst_245 {dimension_numbers = #tpu.dot_dimension_numbers<[1], [0], [0], [1], [0, 0, 1, 1], [], []>} : vector<8x8xf32>, vector<8x50xf32>, vector<8x50xf32> -> vector<8x50xf32>
    %298 = arith.addf %293, %297 : vector<8x50xf32>
    %c0_246 = arith.constant 0 : index
    %c10_247 = arith.constant 10 : index
    %299 = vector.load %arg20[%c0_246, %c10_247] : memref<8x482xf32, #tpu.memory_space<vmem>>, vector<8x50xf32>
    %c6_248 = arith.constant 6 : index
    %c0_249 = arith.constant 0 : index
    %c0_250 = arith.constant 0 : index
    %300 = vector.load %arg13[%c6_248, %c0_249, %c0_250] : memref<9x8x8xf32, #tpu.memory_space<vmem>>, vector<1x8x8xf32>
    %301 = vector.shape_cast %300 : vector<1x8x8xf32> to vector<8x8xf32>
    %cst_251 = arith.constant dense<0.000000e+00> : vector<8x50xf32>
    %302 = tpu.matmul %301, %299, %cst_251 {dimension_numbers = #tpu.dot_dimension_numbers<[1], [0], [0], [1], [0, 0, 1, 1], [], []>} : vector<8x8xf32>, vector<8x50xf32>, vector<8x50xf32> -> vector<8x50xf32>
    %303 = arith.addf %298, %302 : vector<8x50xf32>
    %c0_252 = arith.constant 0 : index
    %c11 = arith.constant 11 : index
    %304 = vector.load %arg20[%c0_252, %c11] : memref<8x482xf32, #tpu.memory_space<vmem>>, vector<8x50xf32>
    %c7_253 = arith.constant 7 : index
    %c0_254 = arith.constant 0 : index
    %c0_255 = arith.constant 0 : index
    %305 = vector.load %arg13[%c7_253, %c0_254, %c0_255] : memref<9x8x8xf32, #tpu.memory_space<vmem>>, vector<1x8x8xf32>
    %306 = vector.shape_cast %305 : vector<1x8x8xf32> to vector<8x8xf32>
    %cst_256 = arith.constant dense<0.000000e+00> : vector<8x50xf32>
    %307 = tpu.matmul %306, %304, %cst_256 {dimension_numbers = #tpu.dot_dimension_numbers<[1], [0], [0], [1], [0, 0, 1, 1], [], []>} : vector<8x8xf32>, vector<8x50xf32>, vector<8x50xf32> -> vector<8x50xf32>
    %308 = arith.addf %303, %307 : vector<8x50xf32>
    %c0_257 = arith.constant 0 : index
    %c12 = arith.constant 12 : index
    %309 = vector.load %arg20[%c0_257, %c12] : memref<8x482xf32, #tpu.memory_space<vmem>>, vector<8x50xf32>
    %c8_258 = arith.constant 8 : index
    %c0_259 = arith.constant 0 : index
    %c0_260 = arith.constant 0 : index
    %310 = vector.load %arg13[%c8_258, %c0_259, %c0_260] : memref<9x8x8xf32, #tpu.memory_space<vmem>>, vector<1x8x8xf32>
    %311 = vector.shape_cast %310 : vector<1x8x8xf32> to vector<8x8xf32>
    %cst_261 = arith.constant dense<0.000000e+00> : vector<8x50xf32>
    %312 = tpu.matmul %311, %309, %cst_261 {dimension_numbers = #tpu.dot_dimension_numbers<[1], [0], [0], [1], [0, 0, 1, 1], [], []>} : vector<8x8xf32>, vector<8x50xf32>, vector<8x50xf32> -> vector<8x50xf32>
    %313 = arith.addf %308, %312 : vector<8x50xf32>
    %c0_262 = arith.constant 0 : index
    %c0_263 = arith.constant 0 : index
    %314 = vector.load %arg15[%c0_262, %c0_263] : memref<1x50xf32, #tpu.memory_space<vmem>>, vector<1x50xf32>
    %315 = vector.broadcast %314 : vector<1x50xf32> to vector<8x50xf32>
    %316 = arith.mulf %313, %315 : vector<8x50xf32>
    %cst_264 = arith.constant dense<0.000000e+00> : vector<8xf32>
    %317 = vector.multi_reduction <add>, %316, %cst_264 [1] : vector<8x50xf32> to vector<8xf32>
    %318 = vector.shape_cast %317 : vector<8xf32> to vector<8x1xf32>
    %cst_265 = arith.constant 0.055555556 : f32
    %319 = vector.broadcast %cst_265 : f32 to vector<8x1xf32>
    %320 = arith.mulf %318, %319 : vector<8x1xf32>
    %321 = vector.broadcast %320 : vector<8x1xf32> to vector<8x50xf32>
    %322 = arith.subf %313, %321 : vector<8x50xf32>
    %323 = arith.mulf %322, %322 : vector<8x50xf32>
    %324 = vector.broadcast %314 : vector<1x50xf32> to vector<8x50xf32>
    %325 = arith.mulf %323, %324 : vector<8x50xf32>
    %cst_266 = arith.constant dense<0.000000e+00> : vector<8xf32>
    %326 = vector.multi_reduction <add>, %325, %cst_266 [1] : vector<8x50xf32> to vector<8xf32>
    %327 = vector.shape_cast %326 : vector<8xf32> to vector<8x1xf32>
    %cst_267 = arith.constant 0.055555556 : f32
    %328 = vector.broadcast %cst_267 : f32 to vector<8x1xf32>
    %329 = arith.mulf %327, %328 : vector<8x1xf32>
    %c0_268 = arith.constant 0 : index
    %c0_269 = arith.constant 0 : index
    %330 = vector.load %arg14[%c0_268, %c0_269] : memref<8x2xf32, #tpu.memory_space<vmem>>, vector<8x1xf32>
    %c0_270 = arith.constant 0 : index
    %c1_271 = arith.constant 1 : index
    %331 = vector.load %arg14[%c0_270, %c1_271] : memref<8x2xf32, #tpu.memory_space<vmem>>, vector<8x1xf32>
    %cst_272 = arith.constant 9.99999974E-6 : f32
    %332 = vector.broadcast %cst_272 : f32 to vector<8x1xf32>
    %333 = arith.addf %329, %332 : vector<8x1xf32>
    %334 = math.rsqrt %333 : vector<8x1xf32>
    %335 = vector.broadcast %334 : vector<8x1xf32> to vector<8x50xf32>
    %336 = arith.mulf %322, %335 : vector<8x50xf32>
    %337 = vector.broadcast %330 : vector<8x1xf32> to vector<8x50xf32>
    %338 = arith.mulf %336, %337 : vector<8x50xf32>
    %339 = vector.broadcast %331 : vector<8x1xf32> to vector<8x50xf32>
    %340 = arith.addf %338, %339 : vector<8x50xf32>
    %cst_273 = arith.constant 0.000000e+00 : f32
    %341 = vector.broadcast %cst_273 : f32 to vector<8x50xf32>
    %342 = arith.maximumf %340, %341 : vector<8x50xf32>
    %c0_274 = arith.constant 0 : index
    %c0_275 = arith.constant 0 : index
    %343 = vector.load %arg21[%c0_274, %c0_275] : memref<8x1568xf32, #tpu.memory_space<vmem>>, vector<8x50xf32>
    tpu.vector_store %arg21[%c0_274, %c0_275], %342 {strides = array<i32>} : memref<8x1568xf32, #tpu.memory_space<vmem>>, vector<8x50xf32>,
    %c0_276 = arith.constant 0 : index
    %c0_277 = arith.constant 0 : index
    %344 = vector.load %arg21[%c0_276, %c0_277] : memref<8x1568xf32, #tpu.memory_space<vmem>>, vector<8x44xf32>
    %c0_278 = arith.constant 0 : index
    %c1_279 = arith.constant 1 : index
    %345 = vector.load %arg21[%c0_278, %c1_279] : memref<8x1568xf32, #tpu.memory_space<vmem>>, vector<8x44xf32>
    %346 = arith.maximumf %344, %345 : vector<8x44xf32>
    %c0_280 = arith.constant 0 : index
    %c5_281 = arith.constant 5 : index
    %347 = vector.load %arg21[%c0_280, %c5_281] : memref<8x1568xf32, #tpu.memory_space<vmem>>, vector<8x44xf32>
    %c0_282 = arith.constant 0 : index
    %c6_283 = arith.constant 6 : index
    %348 = vector.load %arg21[%c0_282, %c6_283] : memref<8x1568xf32, #tpu.memory_space<vmem>>, vector<8x44xf32>
    %349 = arith.maximumf %347, %348 : vector<8x44xf32>
    %350 = arith.maximumf %346, %349 : vector<8x44xf32>
    %c0_284 = arith.constant 0 : index
    %c0_285 = arith.constant 0 : index
    %351 = vector.load %arg16[%c0_284, %c0_285] : memref<44x2xf32, #tpu.memory_space<vmem>>, vector<44x2xf32>
    %cst_286 = arith.constant dense<0.000000e+00> : vector<8x2xf32>
    %352 = tpu.matmul %350, %351, %cst_286 {dimension_numbers = #tpu.dot_dimension_numbers<[1], [0], [0], [1], [0, 0, 1, 1], [], []>} : vector<8x44xf32>, vector<44x2xf32>, vector<8x2xf32> -> vector<8x2xf32>
    %c0_287 = arith.constant 0 : index
    %c0_288 = arith.constant 0 : index
    %c0_289 = arith.constant 0 : index
    %353 = vector.load %arg17[%c0_287, %c0_288, %c0_289] : memref<1x8x5xf32, #tpu.memory_space<vmem>>, vector<1x8x5xf32>
    %354 = vector.shape_cast %353 : vector<1x8x5xf32> to vector<8x5xf32>
    %cst_290 = arith.constant dense<0.000000e+00> : vector<2x5xf32>
    %355 = tpu.matmul %352, %354, %cst_290 {dimension_numbers = #tpu.dot_dimension_numbers<[0], [0], [1], [1], [0, 1, 1, 1], [], []>} : vector<8x2xf32>, vector<8x5xf32>, vector<2x5xf32> -> vector<2x5xf32>
    %c0_291 = arith.constant 0 : index
    %c0_292 = arith.constant 0 : index
    %356 = vector.load %arg18[%c0_291, %c0_292] : memref<1x5xf32, #tpu.memory_space<vmem>>, vector<1x5xf32>
    %357 = vector.broadcast %356 : vector<1x5xf32> to vector<2x5xf32>
    %358 = arith.addf %355, %357 : vector<2x5xf32>
    %c0_293 = arith.constant 0 : index
    %c0_294 = arith.constant 0 : index
    %359 = vector.load %arg19[%c0_293, %c0_294] : memref<2x5xf32, #tpu.memory_space<vmem>>, vector<2x5xf32>
    tpu.vector_store %arg19[%c0_293, %c0_294], %358 {strides = array<i32>} : memref<2x5xf32, #tpu.memory_space<vmem>>, vector<2x5xf32>,
    return
  }
}

</mosaic_0001>

<bundles_post_ra>
// kernel: forward.1
= control target key start
LH: loop header
LB: loop body
LE: loop exit
PB: predicated region body
PF: predicated region fallthrough
CT: control target
= control target key end

     0   :  { %s10799_s0 = inlined_call_operand.vmem [shape: f32[1,1626], index: 0, kind: input, shape index: {}]   ;;  %s10800_s1 = inlined_call_operand.vmem [shape: f32[9,8,1], index: 1, kind: input, shape index: {}]   ;;  %s10801_s2 = inlined_call_operand.vmem [shape: f32[8,2], index: 2, kind: input, shape index: {}]   ;;  %s10802_s3 = inlined_call_operand.hbm [shape: f32[1,1568], index: 3, kind: input, shape index: {}]   ;;  %s10803_s4 = inlined_call_operand.hbm [shape: f32[1539,482], index: 4, kind: input, shape index: {}]   ;;  %s10804_s5 = inlined_call_operand.vmem [shape: f32[9,8,8], index: 5, kind: input, shape index: {}]   ;;  %s10805_s6 = inlined_call_operand.vmem [shape: f32[8,2], index: 6, kind: input, shape index: {}]   ;;  %s10806_s7 = inlined_call_operand.hbm [shape: f32[1,450], index: 7, kind: input, shape index: {}]   ;;  %s10807_s8 = inlined_call_operand.vmem [shape: f32[434,146], index: 8, kind: input, shape index: {}]   ;;  %s10808_s9 = inlined_call_operand.vmem [shape: f32[9,8,8], index: 9, kind: input, shape index: {}]   ;;  %s10809_s10 = inlined_call_operand.vmem [shape: f32[8,2], index: 10, kind: input, shape index: {}]   ;;  %s10810_s11 = inlined_call_operand.hbm [shape: f32[1,128], index: 11, kind: input, shape index: {}]   ;;  %s10811_s12 = inlined_call_operand.vmem [shape: f32[119,62], index: 12, kind: input, shape index: {}]   ;;  %s10812_s13 = inlined_call_operand.vmem [shape: f32[9,8,8], index: 13, kind: input, shape index: {}]   ;;  %s10813_s14 = inlined_call_operand.vmem [shape: f32[8,2], index: 14, kind: input, shape index: {}]   ;;  %s10814_s15 = inlined_call_operand.hbm [shape: f32[1,50], index: 15, kind: input, shape index: {}]   ;;  %s10815_s16 = inlined_call_operand.vmem [shape: f32[44,2], index: 16, kind: input, shape index: {}]   ;;  %s10816_s17 = inlined_call_operand.vmem [shape: f32[1,8,5], index: 17, kind: input, shape index: {}]   ;;  %s10817_s18 = inlined_call_operand.hbm [shape: f32[1,5], index: 18, kind: input, shape index: {}]   ;;  %s10818_s19 = inlined_call_operand.hbm [shape: f32[2,5], index: 19, kind: output, shape index: {}]  }
   0x1   :  { %10876 = sst [smem:[#allocation71_spill]] %s10799_s0 }
   0x2   :  { %10877 = sst [smem:[#allocation72_spill]] %s10800_s1 }
   0x3   :  { %10878 = sst [smem:[#allocation73_spill]] %s10801_s2 }
   0x4   :  { %10879 = sst [smem:[#allocation74_spill]] %s10802_s3 }
   0x5   :  { %10880 = sst [smem:[#allocation75_spill]] %s10818_s19 }
   0x6   :  { %24 = vsyncpa [#allocation5], 0 }
   0x7   :  { %25 = vsyncpa [#allocation8], 0 }
   0x8   :  { %26 = vsyncpa [#allocation11], 0 }
   0x9   :  { %27 = vsyncpa [#allocation14], 0 }
   0xa   :  { %28 = vsyncpa [#allocation6], 0  ;;  %s8488_s0 = smov [#allocation7]   ;;  %s8324_s1 = scalar_lea.hbm %s10803_s4, 98816 }
   0xb   :  { %s50_s30 = sshll.u32 %s8488_s0, 4  ;;  %p8325_p0 = scmp.ne.s32.totalorder %s10803_s4, %s8324_s1  ;;  %s51_s30 = int_to_ptr.vmem [resolvable:$true] %s50_s30 }
   0xc   :  { %p8328_p1 = scmp.lt.u32.totalorder %s8324_s1, %s10803_s4 }
   0xe   :  { %p8330_p2 = pnand %p8328_p1, %p8325_p0 }
  0x10   :  { %8333 = shalt.err (!%p8330_p2)
}
  0x11   :  { %s8334_s25 = scalar_lea.vmem %s51_s30, 98816  ;;  %p8339_p4 = scmp.lt.s32.totalorder %s51_s30, %s51_s30 }
  0x12   :  { %p8335_p3 = scmp.ne.s32.totalorder %s51_s30, %s8334_s25  ;;  %p8340_p5 = scmp.lt.s32.totalorder %s8334_s25, %s8334_s25 }
  0x14   :  { %p8341_p6 = por %p8340_p5, %p8339_p4 }
  0x16   :  { %p8342_p7 = pnand %p8341_p6, %p8335_p3 }
  0x18   :  { %8345 = shalt.err (!%p8342_p7)
}
  0x19   :  { %s8489_s3 = smov 512   ;;  %s8490_s26 = smov 32  }
  0x1a   :  { %56 = dma.hbm_to_vmem [thread:$0]  %s10803_s4, 98816, %s51_s30, [#allocation8], %s8489_s3, %s8489_s3, %s8490_s26  }
  0x1b   :  { %s8491_s29 = smov [#allocation10]   ;;  %s8492_s20 = smov [#allocation4]  }
  0x1c   :  { %s83_s0 = sshll.u32 %s8491_s29, 4  ;;  %s41_s21 = sshll.u32 %s8492_s20, 4  ;;  %s84_s0 = int_to_ptr.vmem [resolvable:$true] %s83_s0  ;;  %s42_s21 = int_to_ptr.vmem [resolvable:$true] %s41_s21 }
  0x1d   :  { %s8346_s2 = scalar_lea.hbm %s10810_s11, 16 }
  0x1e   :  { %p8347_p8 = scmp.ne.s32.totalorder %s10810_s11, %s8346_s2  ;;  %p8350_p9 = scmp.lt.u32.totalorder %s8346_s2, %s10810_s11 }
  0x20   :  { %p8352_p10 = pnand %p8350_p9, %p8347_p8 }
  0x22   :  { %8355 = shalt.err (!%p8352_p10)
}
  0x23   :  { %s8356_s4 = scalar_lea.vmem %s84_s0, 16  ;;  %s8360_s30 = scalar_lea.vmem %s84_s0, 32 }
  0x24   :  { %p8357_p11 = scmp.ne.s32.totalorder %s84_s0, %s8356_s4  ;;  %p8361_p12 = scmp.lt.s32.totalorder %s84_s0, %s84_s0 }
  0x25   :  { %p8362_p13 = scmp.lt.s32.totalorder %s8360_s30, %s8356_s4 }
  0x27   :  { %p8363_p0 = por %p8362_p13, %p8361_p12 }
  0x29   :  { %p8364_p1 = pnand %p8363_p0, %p8357_p11 }
  0x2b   :  { %8367 = shalt.err (!%p8364_p1)
}
  0x2c   :  { %86 = dma.hbm_to_vmem [thread:$0]  %s10810_s11, 16, %s84_s0, [#allocation11]  }
  0x2d   :  { %s10881_s29 = sld [smem:[#allocation74_spill]] }
  0x33   :  { %s8368_s19 = scalar_lea.hbm %s10881_s29, 208 }
  0x34   :  { %p8369_p2 = scmp.ne.s32.totalorder %s10881_s29, %s8368_s19  ;;  %p8372_p3 = scmp.lt.u32.totalorder %s8368_s19, %s10881_s29 }
  0x36   :  { %p8374_p4 = pnand %p8372_p3, %p8369_p2 }
  0x38   :  { %8377 = shalt.err (!%p8374_p4)
}
  0x39   :  { %s8378_s23 = scalar_lea.vmem %s42_s21, 208  ;;  %s8382_s24 = scalar_lea.vmem %s42_s21, 224 }
  0x3a   :  { %p8379_p5 = scmp.ne.s32.totalorder %s42_s21, %s8378_s23  ;;  %p8383_p6 = scmp.lt.s32.totalorder %s42_s21, %s42_s21 }
  0x3b   :  { %p8384_p7 = scmp.lt.s32.totalorder %s8382_s24, %s8378_s23 }
  0x3d   :  { %p8385_p8 = por %p8384_p7, %p8383_p6 }
  0x3f   :  { %p8386_p9 = pnand %p8385_p8, %p8379_p5 }
  0x41   :  { %8389 = shalt.err (!%p8386_p9)
}
  0x42   :  { %44 = dma.hbm_to_vmem [thread:$0]  %s10881_s29, 208, %s42_s21, [#allocation5]  }
  0x43   :  { %s8493_s25 = smov [#allocation9]   ;;  %s8494_s30 = smov [#allocation12]  }
  0x44   :  { %s67_s4 = sshll.u32 %s8493_s25, 4  ;;  %s99_s3 = sshll.u32 %s8494_s30, 4  ;;  %s68_s4 = int_to_ptr.vmem [resolvable:$true] %s67_s4  ;;  %s100_s3 = int_to_ptr.vmem [resolvable:$true] %s99_s3 }
  0x45   :  { %s8390_s28 = scalar_lea.hbm %s10806_s7, 64 }
  0x46   :  { %p8391_p10 = scmp.ne.s32.totalorder %s10806_s7, %s8390_s28  ;;  %p8394_p11 = scmp.lt.u32.totalorder %s8390_s28, %s10806_s7 }
  0x48   :  { %p8396_p12 = pnand %p8394_p11, %p8391_p10 }
  0x4a   :  { %8399 = shalt.err (!%p8396_p12)
}
  0x4b   :  { %s8400_s21 = scalar_lea.vmem %s68_s4, 64  ;;  %p8405_p0 = scmp.lt.s32.totalorder %s68_s4, %s68_s4 }
  0x4c   :  { %p8401_p13 = scmp.ne.s32.totalorder %s68_s4, %s8400_s21  ;;  %p8406_p1 = scmp.lt.s32.totalorder %s8400_s21, %s8400_s21 }
  0x4e   :  { %p8407_p2 = por %p8406_p1, %p8405_p0 }
  0x50   :  { %p8408_p3 = pnand %p8407_p2, %p8401_p13 }
  0x52   :  { %8411 = shalt.err (!%p8408_p3)
}
  0x53   :  { %70 = dma.hbm_to_vmem [thread:$0]  %s10806_s7, 64, %s68_s4, [#allocation8]  }
  0x54   :  { %s8412_s11 = scalar_lea.hbm %s10814_s15, 16 }
  0x55   :  { %p8413_p4 = scmp.ne.s32.totalorder %s10814_s15, %s8412_s11  ;;  %p8416_p5 = scmp.lt.u32.totalorder %s8412_s11, %s10814_s15 }
  0x57   :  { %p8418_p6 = pnand %p8416_p5, %p8413_p4 }
  0x59   :  { %8421 = shalt.err (!%p8418_p6)
}
  0x5a   :  { %s8422_s27 = scalar_lea.vmem %s100_s3, 16  ;;  %s8426_s28 = scalar_lea.vmem %s100_s3, 32 }
  0x5b   :  { %p8423_p7 = scmp.ne.s32.totalorder %s100_s3, %s8422_s27  ;;  %p8427_p8 = scmp.lt.s32.totalorder %s100_s3, %s100_s3 }
  0x5c   :  { %p8428_p9 = scmp.lt.s32.totalorder %s8426_s28, %s8422_s27 }
  0x5e   :  { %p8429_p10 = por %p8428_p9, %p8427_p8 }
  0x60   :  { %p8430_p11 = pnand %p8429_p10, %p8423_p7 }
  0x62   :  { %8433 = shalt.err (!%p8430_p11)
}
  0x63   :  { %102 = dma.hbm_to_vmem [thread:$0]  %s10814_s15, 16, %s100_s3, [#allocation11]  }
  0x64   :  { %s8495_s19 = smov [#allocation13]   ;;  %s8434_s21 = scalar_lea.hbm %s10817_s18, 16 }
  0x65   :  { %s113_s20 = sshll.u32 %s8495_s19, 4  ;;  %p8435_p12 = scmp.ne.s32.totalorder %s10817_s18, %s8434_s21  ;;  %s114_s20 = int_to_ptr.vmem [resolvable:$true] %s113_s20 }
  0x66   :  { %p8438_p13 = scmp.lt.u32.totalorder %s8434_s21, %s10817_s18 }
  0x68   :  { %p8440_p0 = pnand %p8438_p13, %p8435_p12 }
  0x6a   :  { %8443 = shalt.err (!%p8440_p0)
}
  0x6b   :  { %s8444_s11 = scalar_lea.vmem %s114_s20, 16  ;;  %s8448_s15 = scalar_lea.vmem %s114_s20, 32 }
  0x6c   :  { %p8445_p1 = scmp.ne.s32.totalorder %s114_s20, %s8444_s11  ;;  %p8449_p2 = scmp.lt.s32.totalorder %s114_s20, %s114_s20 }
  0x6d   :  { %p8450_p3 = scmp.lt.s32.totalorder %s8448_s15, %s8444_s11 }
  0x6f   :  { %p8451_p4 = por %p8450_p3, %p8449_p2 }
  0x71   :  { %p8452_p5 = pnand %p8451_p4, %p8445_p1 }
  0x73   :  { %8455 = shalt.err (!%p8452_p5)
}
  0x74   :  { %116 = dma.hbm_to_vmem [thread:$0]  %s10817_s18, 16, %s114_s20, [#allocation14]  }
  0x75   :  { %8478 = dma.done.wait [#allocation5], 208  }
  0x76   :  { %8479 = vsyncadd [#allocation5], 4294967088 }
  0x77   :  { %8480 = dma.done.wait [#allocation8], 98880  }
  0x78   :  { %8481 = vsyncadd [#allocation8], 4294868416 }
  0x79   :  { %8482 = dma.done.wait [#allocation11], 32  }
  0x7a   :  { %8483 = vsyncadd [#allocation11], 4294967264 }
  0x7b   :  { %8484 = dma.done.wait [#allocation14], 16  }
  0x7c   :  { %8485 = vsyncadd [#allocation14], 4294967280  ;;  %v8496_v0 = vmov 0   ;;  %s10882_s26 = sld [smem:[#allocation72_spill]]  ;;  %v145_v10 = vlaneseq  ;;  %s10885_s25 = sld [smem:[#allocation71_spill]]  ;;  %vm282_vm0 = vcmask 1039360  }
  0x7d   :  { %8247 = vset.pattern.permute.xlu0 %v8496_v0  ;;  %8248 = vset.pattern.permute.xlu1 %v8496_v0  ;;  %s8497_s30 = smov 127   ;;  %s8499_s27 = smov 100   ;;  %vm380_vm1 = vcmask 1031168   ;;  %vm478_vm2 = vcmask 818176   ;;  %vm576_vm3 = vcmask 809984   ;;  %vm674_vm4 = vcmask 801792  }
  0x7e   :  { %v8724_v11 = vshrl.u32 %v145_v10, 7  ;;  %s8500_s28 = smov 99   ;;  %s8501_s18 = smov 98   ;;  %vm772_vm5 = vcmask 588800   ;;  %vm870_vm6 = vcmask 580608   ;;  %vm968_vm7 = vcmask 572416  }
  0x7f   :  { %s8502_s19 = smov 72   ;;  %s8503_s20 = smov 71   ;;  %vm1100_vm8 = vcmask 261120   ;;  %vm2181_vm9 = vcmask 1042432   ;;  %vm2177_vm10 = vcmask 23552   ;;  %vm3218_vm11 = vcmask 64512  }
  0x80   :  { %v8727_v12 = vsub.s32 1, %v8724_v11  ;;  %v8730_v13 = vsub.s32 0, %v8724_v11  ;;  %v8746_v17 = vsub.s32 3, %v8724_v11  ;;  %v8749_v18 = vsub.s32 2, %v8724_v11  ;;  %s8504_s1 = smov 70   ;;  %s10984_s29 = sld [smem:[#allocation73_spill]] }
  0x81   :  { %v8772_v26 = vsub.s32 4, %v8724_v11  ;;  %v10825_v36 = vsub.s32 5, %v8724_v11  ;;  %v10824_v45 = vsub.s32 6, %v8724_v11  ;;  %v10823_v53 = vsub.s32 7, %v8724_v11  ;;  %s8507_s2 = smov 113   ;;  %s8508_s23 = smov 112  }
  0x82   :  { %v6924_v1 = vld [vmem:[%s10882_s26 + $0x8] sm:$0xff]  ;;  %v6926_v2 = vld [vmem:[%s10882_s26 + $0x18] sm:$0xff]  ;;  %v6925_v3 = vld [vmem:[%s10882_s26 + $0x10] sm:$0xff]  ;;  %10883 = vst [vmem:[#allocation21_spill] sm:$0xff] %v8727_v12  ;;  %s8509_s24 = smov 111   ;;  %s8510_s11 = smov 97  }
  0x83   :  { %227 = vperm.xlu0 %8247, %v6924_v1   ;;  %423 = vperm.xlu1 %8248, %v6926_v2   ;;  %v6927_v4 = vld [vmem:[%s10882_s26 + $0x20] sm:$0xff]  ;;  %v6928_v5 = vld [vmem:[%s10882_s26 + $0x28] sm:$0xff]  ;;  %v6929_v6 = vld [vmem:[%s10882_s26 + $0x30] sm:$0xff]  ;;  %10884 = vst [vmem:[#allocation22_spill] sm:$0xff] %v8730_v13  ;;  %s8511_s15 = smov 96   ;;  %vm3685_vm12 = vcmask 924672  }
  0x84   :  { %v6930_v7 = vld [vmem:[%s10882_s26 + $0x38] sm:$0xff]  ;;  %v6931_v8 = vld [vmem:[%s10882_s26 + $0x40] sm:$0xff]  ;;  %10886 = vst [vmem:[#allocation23_spill] sm:$0xff] %v8746_v17  ;;  %10887 = vst [vmem:[#allocation24_spill] sm:$0xff] %v8749_v18  ;;  %vm3852_vm13 = vcmask 916480   ;;  %vm4019_vm14 = vcmask 908288  }
  0x85   :  { %v137_v9 = vld [vmem:[%s10882_s26] sm:$0xff]  ;;  %10888 = vst [vmem:[#allocation25_spill] sm:$0xff] %v8772_v26  ;;  %s8498_s26 = smov 126   ;;  %v8885_v0 = vld [vmem:[%s10885_s25 + $0x8] sm:$0x1f]  ;;  %vm4352_vm15 = vcmask 793600  }
  0x86   :  { %v8735_v14 = vld [vmem:[%s10885_s25] sm:$0xff]  ;;  %s8514_s25 = smov 119  }
  0x87   :  { %325 = vperm.xlu0 %8247, %v6925_v3   ;;  %521 = vperm.xlu1 %8248, %v6927_v4   ;;  %v8739_v15 = vrot.slane %v8735_v14, %v8727_v12  ;;  %v8743_v16 = vrot.slane %v8735_v14, %v8730_v13  ;;  %v8759_v22 = vrot.slane %v8735_v14, %v8746_v17 }
  0x88   :  { %v8763_v23 = vrot.slane %v8735_v14, %v8749_v18  ;;  %v8784_v30 = vrot.slane %v8735_v14, %v8772_v26  ;;  %v8810_v39 = vrot.slane %v8735_v14, %v10825_v36  ;;  %v8836_v48 = vrot.slane %v8735_v14, %v10824_v45 }
  0x89   :  { %v8862_v57 = vrot.slane %v8735_v14, %v10823_v53  ;;  %v8897_v4 = vrot.slane %v8885_v0, %v8730_v13 }
  0x8b   :  { %619 = vperm.xlu0 %8247, %v6928_v5   ;;  %717 = vperm.xlu1 %8248, %v6929_v6  }
  0x8f   :  { %815 = vperm.xlu0 %8247, %v6930_v7   ;;  %913 = vperm.xlu1 %8248, %v6931_v8  }
  0x93   :  { %140 = vperm.xlu0 %8247, %v137_v9  }
 0x102   :  { %v8751_v19 = vpop.permute.xlu0 %227  ;;  %v8792_v33 = vpop.permute.xlu1 %423 }
 0x103   :  { %v231_v20 = vmul.f32 %v8751_v19, %v8739_v15  ;;  %v230_v21 = vmul.f32 %v8751_v19, %v8743_v16  ;;  %v233_v24 = vmul.f32 %v8751_v19, %v8759_v22  ;;  %v232_v25 = vmul.f32 %v8751_v19, %v8763_v23 }
 0x104   :  { %v234_v31 = vmul.f32 %v8751_v19, %v8784_v30  ;;  %v426_v34 = vmul.f32 %v8792_v33, %v8743_v16  ;;  %v428_v37 = vmul.f32 %v8792_v33, %v8763_v23  ;;  %v427_v38 = vmul.f32 %v8792_v33, %v8739_v15 }
 0x105   :  { %258 = vrot.lane.b32.xlu0 %v231_v20, %s8497_s30  ;;  %256 = vrot.lane.b32.xlu1 %v230_v21, %s8497_s30  ;;  %v235_v41 = vmul.f32 %v8751_v19, %v8810_v39  ;;  %v429_v44 = vmul.f32 %v8792_v33, %v8759_v22  ;;  %v236_v50 = vmul.f32 %v8751_v19, %v8836_v48 }
 0x106   :  { %v8774_v27 = vpop.permute.xlu0 %325  ;;  %v8820_v42 = vpop.permute.xlu1 %521  ;;  %v430_v52 = vmul.f32 %v8792_v33, %v8784_v30  ;;  %v237_v58 = vmul.f32 %v8751_v19, %v8862_v57  ;;  %v431_v60 = vmul.f32 %v8792_v33, %v8810_v39  ;;  %v238_v5 = vmul.f32 %v8751_v19, %v8897_v4 }
 0x107   :  { %v329_v28 = vmul.f32 %v8774_v27, %v8739_v15  ;;  %v328_v29 = vmul.f32 %v8774_v27, %v8743_v16  ;;  %v330_v32 = vmul.f32 %v8774_v27, %v8763_v23  ;;  %v331_v35 = vmul.f32 %v8774_v27, %v8759_v22 }
 0x108   :  { %v332_v40 = vmul.f32 %v8774_v27, %v8784_v30  ;;  %v524_v43 = vmul.f32 %v8820_v42, %v8743_v16  ;;  %v526_v46 = vmul.f32 %v8820_v42, %v8763_v23  ;;  %v525_v47 = vmul.f32 %v8820_v42, %v8739_v15 }
 0x109   :  { %262 = vrot.lane.b32.xlu0 %v233_v24, %s8497_s30  ;;  %260 = vrot.lane.b32.xlu1 %v232_v25, %s8497_s30  ;;  %v333_v49 = vmul.f32 %v8774_v27, %v8810_v39  ;;  %v527_v51 = vmul.f32 %v8820_v42, %v8759_v22  ;;  %v334_v61 = vmul.f32 %v8774_v27, %v8836_v48 }
 0x10a   :  { %v8851_v54 = vpop.permute.xlu0 %619  ;;  %v528_v63 = vmul.f32 %v8820_v42, %v8784_v30  ;;  %v8889_v1 = vpop.permute.xlu1 %717  ;;  %v432_v7 = vmul.f32 %v8792_v33, %v8836_v48  ;;  %v335_v8 = vmul.f32 %v8774_v27, %v8862_v57  ;;  %v529_v10 = vmul.f32 %v8820_v42, %v8810_v39 }
 0x10b   :  { %v623_v55 = vmul.f32 %v8851_v54, %v8739_v15  ;;  %v622_v56 = vmul.f32 %v8851_v54, %v8743_v16  ;;  %v624_v59 = vmul.f32 %v8851_v54, %v8763_v23  ;;  %v625_v62 = vmul.f32 %v8851_v54, %v8759_v22 }
 0x10c   :  { %v721_v2 = vmul.f32 %v8889_v1, %v8739_v15  ;;  %v720_v3 = vmul.f32 %v8889_v1, %v8743_v16  ;;  %v722_v6 = vmul.f32 %v8889_v1, %v8763_v23  ;;  %v626_v9 = vmul.f32 %v8851_v54, %v8784_v30 }
 0x10d   :  { %356 = vrot.lane.b32.xlu0 %v329_v28, %s8498_s26  ;;  %354 = vrot.lane.b32.xlu1 %v328_v29, %s8498_s26  ;;  %v723_v21 = vmul.f32 %v8889_v1, %v8759_v22  ;;  %v8933_v28 = vrot.slane %v8885_v0, %v8727_v12  ;;  %v336_v29 = vmul.f32 %v8774_v27, %v8897_v4 }
 0x10e   :  { %v8917_v14 = vpop.permute.xlu0 %815 }
 0x10f   :  { %v818_v20 = vmul.f32 %v8917_v14, %v8743_v16  ;;  %v820_v24 = vmul.f32 %v8917_v14, %v8763_v23  ;;  %v819_v25 = vmul.f32 %v8917_v14, %v8739_v15 }
 0x111   :  { %264 = vrot.lane.b32.xlu0 %v234_v31, %s8497_s30  ;;  %358 = vrot.lane.b32.xlu1 %v330_v32, %s8498_s26  ;;  %v239_v31 = vmul.f32 %v8751_v19, %v8933_v28  ;;  %v530_v32 = vmul.f32 %v8820_v42, %v8836_v48 }
 0x115   :  { %452 = vrot.lane.b32.xlu0 %v426_v34, %s8499_s27  ;;  %360 = vrot.lane.b32.xlu1 %v331_v35, %s8498_s26  ;;  %v433_v34 = vmul.f32 %v8792_v33, %v8862_v57  ;;  %v724_v35 = vmul.f32 %v8889_v1, %v8784_v30 }
 0x119   :  { %456 = vrot.lane.b32.xlu0 %v428_v37, %s8499_s27  ;;  %454 = vrot.lane.b32.xlu1 %v427_v38, %s8499_s27  ;;  %v627_v37 = vmul.f32 %v8851_v54, %v8810_v39  ;;  %v8953_v38 = vpop.permute.xlu1 %913 }
 0x11d   :  { %362 = vrot.lane.b32.xlu0 %v332_v40, %s8498_s26  ;;  %266 = vrot.lane.b32.xlu1 %v235_v41, %s8497_s30  ;;  %v916_v40 = vmul.f32 %v8953_v38, %v8743_v16  ;;  %v821_v41 = vmul.f32 %v8917_v14, %v8759_v22 }
 0x121   :  { %550 = vrot.lane.b32.xlu0 %v524_v43, %s8500_s28  ;;  %458 = vrot.lane.b32.xlu1 %v429_v44, %s8499_s27  ;;  %v918_v43 = vmul.f32 %v8953_v38, %v8763_v23  ;;  %v917_v44 = vmul.f32 %v8953_v38, %v8739_v15 }
 0x125   :  { %554 = vrot.lane.b32.xlu0 %v526_v46, %s8500_s28  ;;  %552 = vrot.lane.b32.xlu1 %v525_v47, %s8500_s28  ;;  %v8969_v46 = vrot.slane %v8885_v0, %v8749_v18  ;;  %v337_v47 = vmul.f32 %v8774_v27, %v8933_v28 }
 0x129   :  { %364 = vrot.lane.b32.xlu0 %v333_v49, %s8498_s26  ;;  %268 = vrot.lane.b32.xlu1 %v236_v50, %s8497_s30  ;;  %v240_v49 = vmul.f32 %v8751_v19, %v8969_v46  ;;  %v531_v50 = vmul.f32 %v8820_v42, %v8862_v57 }
 0x12d   :  { %556 = vrot.lane.b32.xlu0 %v527_v51, %s8500_s28  ;;  %460 = vrot.lane.b32.xlu1 %v430_v52, %s8499_s27  ;;  %v434_v51 = vmul.f32 %v8792_v33, %v8897_v4  ;;  %v8985_v52 = vpop.permute.xlu0 %140 }
 0x131   :  { %650 = vrot.lane.b32.xlu0 %v623_v55, %s8501_s18  ;;  %648 = vrot.lane.b32.xlu1 %v622_v56, %s8501_s18  ;;  %v725_v55 = vmul.f32 %v8889_v1, %v8810_v39  ;;  %v628_v56 = vmul.f32 %v8851_v54, %v8836_v48 }
 0x135   :  { %270 = vrot.lane.b32.xlu0 %v237_v58, %s8497_s30  ;;  %652 = vrot.lane.b32.xlu1 %v624_v59, %s8501_s18 }
 0x139   :  { %462 = vrot.lane.b32.xlu0 %v431_v60, %s8499_s27  ;;  %366 = vrot.lane.b32.xlu1 %v334_v61, %s8498_s26  ;;  %v919_v60 = vmul.f32 %v8953_v38, %v8759_v22  ;;  %v822_v61 = vmul.f32 %v8917_v14, %v8784_v30 }
 0x13d   :  { %654 = vrot.lane.b32.xlu0 %v625_v62, %s8501_s18  ;;  %558 = vrot.lane.b32.xlu1 %v528_v63, %s8500_s28  ;;  %v9003_v62 = vrot.slane %v8885_v0, %v8746_v17 }
 0x141   :  { %748 = vrot.lane.b32.xlu0 %v721_v2, %s8502_s19  ;;  %746 = vrot.lane.b32.xlu1 %v720_v3, %s8502_s19  ;;  %v338_v3 = vmul.f32 %v8774_v27, %v8969_v46 }
 0x145   :  { %272 = vrot.lane.b32.xlu0 %v238_v5, %s8497_s30  ;;  %750 = vrot.lane.b32.xlu1 %v722_v6, %s8502_s19  ;;  %v241_v5 = vmul.f32 %v8751_v19, %v9003_v62 }
 0x149   :  { %464 = vrot.lane.b32.xlu0 %v432_v7, %s8499_s27  ;;  %368 = vrot.lane.b32.xlu1 %v335_v8, %s8498_s26  ;;  %v532_v8 = vmul.f32 %v8820_v42, %v8897_v4 }
 0x14d   :  { %656 = vrot.lane.b32.xlu0 %v626_v9, %s8501_s18  ;;  %560 = vrot.lane.b32.xlu1 %v529_v10, %s8500_s28  ;;  %v435_v9 = vmul.f32 %v8792_v33, %v8933_v28 }
 0x151   :  { %844 = vrot.lane.b32.xlu0 %v818_v20, %s8503_s20  ;;  %752 = vrot.lane.b32.xlu1 %v723_v21, %s8502_s19  ;;  %v726_v21 = vmul.f32 %v8889_v1, %v8836_v48 }
 0x155   :  { %848 = vrot.lane.b32.xlu0 %v820_v24, %s8503_s20  ;;  %846 = vrot.lane.b32.xlu1 %v819_v25, %s8503_s20  ;;  %v629_v24 = vmul.f32 %v8851_v54, %v8862_v57 }
 0x159   :  { %370 = vrot.lane.b32.xlu0 %v336_v29, %s8498_s26  ;;  %274 = vrot.lane.b32.xlu1 %v239_v31, %s8497_s30  ;;  %v920_v31 = vmul.f32 %v8953_v38, %v8784_v30 }
 0x15d   :  { %562 = vrot.lane.b32.xlu0 %v530_v32, %s8500_s28  ;;  %466 = vrot.lane.b32.xlu1 %v433_v34, %s8499_s27  ;;  %v823_v32 = vmul.f32 %v8917_v14, %v8810_v39  ;;  %v9047_v34 = vrot.slane %v8885_v0, %v8772_v26 }
 0x161   :  { %754 = vrot.lane.b32.xlu0 %v724_v35, %s8502_s19  ;;  %658 = vrot.lane.b32.xlu1 %v627_v37, %s8501_s18 }
 0x165   :  { %942 = vrot.lane.b32.xlu0 %v916_v40, %s8504_s1  ;;  %850 = vrot.lane.b32.xlu1 %v821_v41, %s8503_s20  ;;  %v339_v40 = vmul.f32 %v8774_v27, %v9003_v62  ;;  %v242_v41 = vmul.f32 %v8751_v19, %v9047_v34 }
 0x169   :  { %946 = vrot.lane.b32.xlu0 %v918_v43, %s8504_s1  ;;  %944 = vrot.lane.b32.xlu1 %v917_v44, %s8504_s1  ;;  %v533_v44 = vmul.f32 %v8820_v42, %v8933_v28 }
 0x16d   :  { %372 = vrot.lane.b32.xlu0 %v337_v47, %s8498_s26  ;;  %276 = vrot.lane.b32.xlu1 %v240_v49, %s8497_s30  ;;  %v436_v47 = vmul.f32 %v8792_v33, %v8969_v46 }
 0x171   :  { %564 = vrot.lane.b32.xlu0 %v531_v50, %s8500_s28  ;;  %468 = vrot.lane.b32.xlu1 %v434_v51, %s8499_s27  ;;  %v727_v50 = vmul.f32 %v8889_v1, %v8862_v57  ;;  %v630_v51 = vmul.f32 %v8851_v54, %v8897_v4 }
 0x175   :  { %756 = vrot.lane.b32.xlu0 %v725_v55, %s8502_s19  ;;  %660 = vrot.lane.b32.xlu1 %v628_v56, %s8501_s18 }
 0x177   :  { %v8993_v58 = vpop.permute.xlu0 %258  ;;  %v8995_v59 = vpop.permute.xlu1 %256 }
 0x179   :  { %948 = vrot.lane.b32.xlu0 %v919_v60, %s8504_s1  ;;  %852 = vrot.lane.b32.xlu1 %v822_v61, %s8503_s20  ;;  %v921_v60 = vmul.f32 %v8953_v38, %v8810_v39  ;;  %v824_v61 = vmul.f32 %v8917_v14, %v8836_v48 }
 0x17b   :  { %v9007_v63 = vpop.permute.xlu0 %262  ;;  %v9009_v2 = vpop.permute.xlu1 %260 }
 0x17d   :  { %374 = vrot.lane.b32.xlu0 %v338_v3, %s8498_s26  ;;  %278 = vrot.lane.b32.xlu1 %v241_v5, %s8497_s30 }
 0x17f   :  { %v9017_v6 = vpop.permute.xlu0 %356  ;;  %v9019_v7 = vpop.permute.xlu1 %354 }
 0x181   :  { %566 = vrot.lane.b32.xlu0 %v532_v8, %s8500_s28  ;;  %470 = vrot.lane.b32.xlu1 %v435_v9, %s8499_s27  ;;  %v437_v8 = vmul.f32 %v8792_v33, %v9003_v62  ;;  %v340_v9 = vmul.f32 %v8774_v27, %v9047_v34 }
 0x183   :  { %v9027_v10 = vpop.permute.xlu0 %264  ;;  %v9029_v20 = vpop.permute.xlu1 %358 }
 0x185   :  { %758 = vrot.lane.b32.xlu0 %v726_v21, %s8502_s19  ;;  %662 = vrot.lane.b32.xlu1 %v629_v24, %s8501_s18 }
 0x187   :  { %v9037_v25 = vpop.permute.xlu0 %452  ;;  %v9039_v29 = vpop.permute.xlu1 %360 }
 0x189   :  { %950 = vrot.lane.b32.xlu0 %v920_v31, %s8504_s1  ;;  %854 = vrot.lane.b32.xlu1 %v823_v32, %s8503_s20  ;;  %v631_v31 = vmul.f32 %v8851_v54, %v8933_v28  ;;  %v534_v32 = vmul.f32 %v8820_v42, %v8969_v46 }
 0x18b   :  { %v9051_v35 = vpop.permute.xlu0 %456  ;;  %v9053_v37 = vpop.permute.xlu1 %454 }
 0x18d   :  { %376 = vrot.lane.b32.xlu0 %v339_v40, %s8498_s26  ;;  %280 = vrot.lane.b32.xlu1 %v242_v41, %s8497_s30  ;;  %v825_v41 = vmul.f32 %v8917_v14, %v8862_v57 }
 0x18f   :  { %v9061_v0 = vpop.permute.xlu0 %362  ;;  %v9063_v43 = vpop.permute.xlu1 %266 }
 0x191   :  { %568 = vrot.lane.b32.xlu0 %v533_v44, %s8500_s28  ;;  %472 = vrot.lane.b32.xlu1 %v436_v47, %s8499_s27  ;;  %v728_v44 = vmul.f32 %v8889_v1, %v8897_v4 }
 0x193   :  { %v9071_v49 = vpop.permute.xlu0 %550  ;;  %v9073_v19 = vpop.permute.xlu1 %458 }
 0x195   :  { %760 = vrot.lane.b32.xlu0 %v727_v50, %s8502_s19  ;;  %664 = vrot.lane.b32.xlu1 %v630_v51, %s8501_s18  ;;  %v438_v51 = vmul.f32 %v8792_v33, %v9047_v34 }
 0x197   :  { %v9081_v55 = vpop.permute.xlu0 %554  ;;  %v9083_v56 = vpop.permute.xlu1 %552 }
 0x199   :  { %952 = vrot.lane.b32.xlu0 %v921_v60, %s8504_s1  ;;  %856 = vrot.lane.b32.xlu1 %v824_v61, %s8503_s20  ;;  %v922_v60 = vmul.f32 %v8953_v38, %v8836_v48 }
 0x19b   :  { %v9091_v3 = vpop.permute.xlu0 %364  ;;  %v9093_v5 = vpop.permute.xlu1 %268 }
 0x19d   :  { %474 = vrot.lane.b32.xlu0 %v437_v8, %s8499_s27  ;;  %378 = vrot.lane.b32.xlu1 %v340_v9, %s8498_s26  ;;  %v632_v9 = vmul.f32 %v8851_v54, %v8969_v46 }
 0x19f   :  { %v9101_v21 = vpop.permute.xlu0 %556  ;;  %v9103_v24 = vpop.permute.xlu1 %460 }
 0x1a1   :  { %666 = vrot.lane.b32.xlu0 %v631_v31, %s8501_s18  ;;  %570 = vrot.lane.b32.xlu1 %v534_v32, %s8500_s28  ;;  %v535_v31 = vmul.f32 %v8820_v42, %v9003_v62 }
 0x1a3   :  { %v9111_v40 = vpop.permute.xlu0 %650  ;;  %v9113_v27 = vpop.permute.xlu1 %648 }
 0x1a5   :  { %858 = vrot.lane.b32.xlu0 %v825_v41, %s8503_s20  ;;  %762 = vrot.lane.b32.xlu1 %v728_v44, %s8502_s19  ;;  %v826_v41 = vmul.f32 %v8917_v14, %v8897_v4  ;;  %v729_v44 = vmul.f32 %v8889_v1, %v8933_v28 }
 0x1a7   :  { %v9121_v47 = vpop.permute.xlu0 %270  ;;  %v9123_v50 = vpop.permute.xlu1 %652 }
 0x1a9   :  { %476 = vrot.lane.b32.xlu0 %v438_v51, %s8499_s27  ;;  %954 = vrot.lane.b32.xlu1 %v922_v60, %s8504_s1 }
 0x1ab   :  { %v9131_v61 = vpop.permute.xlu0 %462  ;;  %v9133_v8 = vpop.permute.xlu1 %366 }
 0x1ad   :  { %668 = vrot.lane.b32.xlu0 %v632_v9, %s8501_s18  ;;  %572 = vrot.lane.b32.xlu1 %v535_v31, %s8500_s28  ;;  %v536_v9 = vmul.f32 %v8820_v42, %v9047_v34  ;;  %v923_v31 = vmul.f32 %v8953_v38, %v8862_v57 }
 0x1af   :  { %v9141_v33 = vpop.permute.xlu0 %654  ;;  %v9143_v32 = vpop.permute.xlu1 %558 }
 0x1b0   :  { %10889 = vst [vmem:[#allocation26_spill] sm:$0xff] %v9143_v32 }
 0x1b1   :  { %860 = vrot.lane.b32.xlu0 %v826_v41, %s8503_s20  ;;  %764 = vrot.lane.b32.xlu1 %v729_v44, %s8502_s19  ;;  %v730_v41 = vmul.f32 %v8889_v1, %v8969_v46  ;;  %v633_v44 = vmul.f32 %v8851_v54, %v9003_v62 }
 0x1b3   :  { %v9151_v51 = vpop.permute.xlu0 %748  ;;  %v9153_v60 = vpop.permute.xlu1 %746 }
 0x1b5   :  { %574 = vrot.lane.b32.xlu0 %v536_v9, %s8500_s28  ;;  %956 = vrot.lane.b32.xlu1 %v923_v31, %s8504_s1  ;;  %v924_v9 = vmul.f32 %v8953_v38, %v8897_v4  ;;  %v827_v31 = vmul.f32 %v8917_v14, %v8933_v28 }
 0x1b7   :  { %v9161_v53 = vpop.permute.xlu0 %272  ;;  %v9163_v45 = vpop.permute.xlu1 %750 }
 0x1b8   :  { %10890 = vst [vmem:[#allocation27_spill] sm:$0xff] %v9161_v53 }
 0x1b9   :  { %766 = vrot.lane.b32.xlu0 %v730_v41, %s8502_s19  ;;  %670 = vrot.lane.b32.xlu1 %v633_v44, %s8501_s18  ;;  %v731_v41 = vmul.f32 %v8889_v1, %v9003_v62  ;;  %v634_v44 = vmul.f32 %v8851_v54, %v9047_v34 }
 0x1bb   :  { %v9171_v42 = vpop.permute.xlu0 %464  ;;  %v9173_v36 = vpop.permute.xlu1 %368 }
 0x1bc   :  { %10891 = vst [vmem:[#allocation28_spill] sm:$0xff] %v9171_v42  ;;  %10892 = vst [vmem:[#allocation29_spill] sm:$0xff] %v9173_v36 }
 0x1bd   :  { %958 = vrot.lane.b32.xlu0 %v924_v9, %s8504_s1  ;;  %862 = vrot.lane.b32.xlu1 %v827_v31, %s8503_s20  ;;  %v925_v9 = vmul.f32 %v8953_v38, %v8933_v28  ;;  %v828_v31 = vmul.f32 %v8917_v14, %v8969_v46 }
 0x1bf   :  { %v9181_v53 = vpop.permute.xlu0 %656  ;;  %v9183_v32 = vpop.permute.xlu1 %560 }
 0x1c0   :  { %10893 = vst [vmem:[#allocation30_spill] sm:$0xff] %v9181_v53  ;;  %10894 = vst [vmem:[#allocation31_spill] sm:$0xff] %v9183_v32 }
 0x1c1   :  { %768 = vrot.lane.b32.xlu0 %v731_v41, %s8502_s19  ;;  %672 = vrot.lane.b32.xlu1 %v634_v44, %s8501_s18  ;;  %v829_v41 = vmul.f32 %v8917_v14, %v9003_v62  ;;  %v732_v44 = vmul.f32 %v8889_v1, %v9047_v34 }
 0x1c3   :  { %v9191_v36 = vpop.permute.xlu0 %844  ;;  %v9193_v42 = vpop.permute.xlu1 %752 }
 0x1c4   :  { %10895 = vst [vmem:[#allocation32_spill] sm:$0xff] %v9191_v36  ;;  %10896 = vst [vmem:[#allocation33_spill] sm:$0xff] %v9193_v42 }
 0x1c5   :  { %960 = vrot.lane.b32.xlu0 %v925_v9, %s8504_s1  ;;  %864 = vrot.lane.b32.xlu1 %v828_v31, %s8503_s20  ;;  %v830_v9 = vmul.f32 %v8917_v14, %v9047_v34  ;;  %v926_v31 = vmul.f32 %v8953_v38, %v8969_v46 }
 0x1c7   :  { %v9201_v32 = vpop.permute.xlu0 %848  ;;  %v9203_v54 = vpop.permute.xlu1 %846 }
 0x1c8   :  { %10897 = vst [vmem:[#allocation34_spill] sm:$0xff] %v9201_v32 }
 0x1c9   :  { %866 = vrot.lane.b32.xlu0 %v829_v41, %s8503_s20  ;;  %770 = vrot.lane.b32.xlu1 %v732_v44, %s8502_s19  ;;  %v928_v41 = vmul.f32 %v8953_v38, %v9047_v34  ;;  %v927_v44 = vmul.f32 %v8953_v38, %v9003_v62  ;;  %s8519_s19 = smov 123  }
 0x1cb   :  { %v9211_v42 = vpop.permute.xlu0 %370  ;;  %v9213_v53 = vpop.permute.xlu1 %274 }
 0x1cc   :  { %10898 = vst [vmem:[#allocation35_spill] sm:$0xff] %v9211_v42  ;;  %10899 = vst [vmem:[#allocation36_spill] sm:$0xff] %v9213_v53 }
 0x1cd   :  { %868 = vrot.lane.b32.xlu0 %v830_v9, %s8503_s20  ;;  %962 = vrot.lane.b32.xlu1 %v926_v31, %s8504_s1  ;;  %s8521_s20 = smov 116  }
 0x1cf   :  { %v9221_v32 = vpop.permute.xlu0 %562  ;;  %v9223_v1 = vpop.permute.xlu1 %466 }
 0x1d0   :  { %10900 = vst [vmem:[#allocation37_spill] sm:$0xff] %v9221_v32  ;;  %10901 = vst [vmem:[#allocation38_spill] sm:$0xff] %v9223_v1 }
 0x1d1   :  { %966 = vrot.lane.b32.xlu0 %v928_v41, %s8504_s1  ;;  %964 = vrot.lane.b32.xlu1 %v927_v44, %s8504_s1  ;;  %s8522_s1 = smov 117  }
 0x1d3   :  { %v9231_v14 = vpop.permute.xlu0 %754  ;;  %v9233_v53 = vpop.permute.xlu1 %658 }
 0x1d4   :  { %10902 = vst [vmem:[#allocation39_spill] sm:$0xff] %v9231_v14  ;;  %10903 = vst [vmem:[#allocation40_spill] sm:$0xff] %v9233_v53 }
 0x1d7   :  { %v9235_v9 = vpop.permute.xlu0 %942  ;;  %v9237_v31 = vpop.permute.xlu1 %850 }
 0x1d8   :  { %10904 = vst [vmem:[#allocation41_spill] sm:$0xff] %v9235_v9  ;;  %10905 = vst [vmem:[#allocation42_spill] sm:$0xff] %v9237_v31 }
 0x1db   :  { %v9239_v32 = vpop.permute.xlu0 %946  ;;  %v9241_v1 = vpop.permute.xlu1 %944 }
 0x1dc   :  { %10906 = vst [vmem:[#allocation43_spill] sm:$0xff] %v9239_v32  ;;  %10907 = vst [vmem:[#allocation44_spill] sm:$0xff] %v9241_v1 }
 0x1df   :  { %v9243_v42 = vpop.permute.xlu0 %372  ;;  %v9245_v36 = vpop.permute.xlu1 %276 }
 0x1e0   :  { %10908 = vst [vmem:[#allocation45_spill] sm:$0xff] %v9243_v42  ;;  %10909 = vst [vmem:[#allocation46_spill] sm:$0xff] %v9245_v36 }
 0x1e3   :  { %v9247_v38 = vpop.permute.xlu0 %564  ;;  %v9249_v41 = vpop.permute.xlu1 %468 }
 0x1e4   :  { %10910 = vst [vmem:[#allocation47_spill] sm:$0xff] %v9247_v38  ;;  %10911 = vst [vmem:[#allocation48_spill] sm:$0xff] %v9249_v41 }
 0x1e7   :  { %v9251_v44 = vpop.permute.xlu0 %756  ;;  %v9253_v14 = vpop.permute.xlu1 %660 }
 0x1e8   :  { %10912 = vst [vmem:[#allocation49_spill] sm:$0xff] %v9251_v44  ;;  %10913 = vst [vmem:[#allocation50_spill] sm:$0xff] %v9253_v14 }
 0x1eb   :  { %v9255_v53 = vpop.permute.xlu0 %948  ;;  %v9257_v9 = vpop.permute.xlu1 %852 }
 0x1ec   :  { %10914 = vst [vmem:[#allocation51_spill] sm:$0xff] %v9255_v53  ;;  %10915 = vst [vmem:[#allocation52_spill] sm:$0xff] %v9257_v9 }
 0x1ef   :  { %v9259_v31 = vpop.permute.xlu0 %374  ;;  %v9261_v32 = vpop.permute.xlu1 %278 }
 0x1f0   :  { %10916 = vst [vmem:[#allocation53_spill] sm:$0xff] %v9259_v31 }
 0x1f3   :  { %v9263_v1 = vpop.permute.xlu0 %566  ;;  %v9265_v42 = vpop.permute.xlu1 %470 }
 0x1f4   :  { %10917 = vst [vmem:[#allocation54_spill] sm:$0xff] %v9263_v1  ;;  %10918 = vst [vmem:[#allocation55_spill] sm:$0xff] %v9265_v42  ;;  %v211_v1 = vmul.f32 %v8739_v15, %v8985_v52  ;;  %v283_v15 = vsel %vm282_vm0, %v8995_v59, %v8993_v58 }
 0x1f7   :  { %v9267_v36 = vpop.permute.xlu0 %758  ;;  %v9269_v38 = vpop.permute.xlu1 %662 }
 0x1f8   :  { %10919 = vst [vmem:[#allocation56_spill] sm:$0xff] %v9267_v36  ;;  %10920 = vst [vmem:[#allocation57_spill] sm:$0xff] %v9269_v38  ;;  %v210_v38 = vmul.f32 %v8743_v16, %v8985_v52  ;;  %v9303_v16 = vld [vmem:[#allocation4] sm:$0xff] }
 0x1fb   :  { %v9271_v41 = vpop.permute.xlu0 %950  ;;  %v9273_v44 = vpop.permute.xlu1 %854 }
 0x1ff   :  { %v9275_v14 = vpop.permute.xlu0 %376  ;;  %v9277_v53 = vpop.permute.xlu1 %280 }
 0x200   :  { %10921 = vst [vmem:[#allocation58_spill] sm:$0xff] %v9277_v53  ;;  %v212_v53 = vmul.f32 %v8763_v23, %v8985_v52  ;;  %v9314_v23 = vmul.f32 %v8897_v4, %v8985_v52  ;;  %v9333_v4 = vmul.f32 %v9047_v34, %v8985_v52  ;;  %v9354_v34 = vrot.slane %v9303_v16, %v8727_v12 }
 0x202   :  { %10927 = vst [vmem:[#allocation64_spill] sm:$0xff] %v9333_v4  ;;  %10930 = vst [vmem:[#allocation67_spill] sm:$0xff] %v9354_v34  ;;  %v286_v4 = vsel %vm282_vm0, %v9007_v63, %v9027_v10 }
 0x203   :  { %v9279_v9 = vpop.permute.xlu0 %568  ;;  %v9281_v31 = vpop.permute.xlu1 %472 }
 0x204   :  { %10922 = vst [vmem:[#allocation59_spill] sm:$0xff] %v9279_v9  ;;  %10923 = vst [vmem:[#allocation60_spill] sm:$0xff] %v9281_v31  ;;  %v213_v9 = vmul.f32 %v8759_v22, %v8985_v52  ;;  %v214_v31 = vmul.f32 %v8784_v30, %v8985_v52  ;;  %v9310_v22 = vmul.f32 %v8862_v57, %v8985_v52 }
 0x205   :  { %v9318_v30 = vmul.f32 %v8933_v28, %v8985_v52  ;;  %v9329_v57 = vmul.f32 %v9003_v62, %v8985_v52  ;;  %v9347_v62 = vrot.slane %v9303_v16, %v8730_v13 }
 0x207   :  { %v9283_v42 = vpop.permute.xlu0 %760  ;;  %v9285_v36 = vpop.permute.xlu1 %664  ;;  %10926 = vst [vmem:[#allocation63_spill] sm:$0xff] %v9329_v57  ;;  %10929 = vst [vmem:[#allocation66_spill] sm:$0xff] %v9347_v62  ;;  %v308_v57 = vadd.f32 %v283_v15, %v210_v38  ;;  %v383_v38 = vsel %vm380_vm1, %v9029_v20, %v9039_v29 }
 0x208   :  { %10924 = vst [vmem:[#allocation61_spill] sm:$0xff] %v9283_v42  ;;  %10925 = vst [vmem:[#allocation62_spill] sm:$0xff] %v9285_v36  ;;  %v215_v42 = vmul.f32 %v8810_v39, %v8985_v52  ;;  %v9301_v36 = vmul.f32 %v8836_v48, %v8985_v52  ;;  %v284_v39 = vsel %vm282_vm0, %v8993_v58, %v9009_v2 }
 0x209   :  { %v9325_v48 = vmul.f32 %v8969_v46, %v8985_v52  ;;  %v285_v58 = vsel %vm282_vm0, %v9009_v2, %v9007_v63  ;;  %v381_v46 = vsel %vm380_vm1, %v9019_v7, %v9017_v6  ;;  %v382_v52 = vsel %vm380_vm1, %v9017_v6, %v9029_v20 }
 0x20a   :  { %v9358_v2 = vrot.slane %v9303_v16, %v8749_v18  ;;  %v309_v7 = vadd.f32 %v284_v39, %v211_v1  ;;  %v9368_v6 = vrot.slane %v9303_v16, %v8746_v17  ;;  %v310_v15 = vadd.f32 %v285_v58, %v212_v53 }
 0x20b   :  { %v9335_v59 = vpop.permute.xlu0 %952  ;;  %v9337_v28 = vpop.permute.xlu1 %856  ;;  %v479_v18 = vsel %vm478_vm2, %v9037_v25, %v9053_v37  ;;  %v480_v1 = vsel %vm478_vm2, %v9053_v37, %v9051_v35  ;;  %v384_v17 = vsel %vm380_vm1, %v9039_v29, %v9061_v0  ;;  %v287_v53 = vsel %vm282_vm0, %v9027_v10, %v9063_v43 }
 0x20c   :  { %10928 = vst [vmem:[#allocation65_spill] sm:$0xff] %v9337_v28  ;;  %10931 = vst [vmem:[#allocation68_spill] sm:$0xff] %v9368_v6  ;;  %v406_v28 = vadd.f32 %v381_v46, %v308_v57  ;;  %v407_v20 = vadd.f32 %v382_v52, %v309_v7  ;;  %v481_v25 = vsel %vm478_vm2, %v9051_v35, %v9073_v19 }
 0x20d   :  { %v311_v57 = vadd.f32 %v286_v4, %v213_v9  ;;  %v408_v37 = vadd.f32 %v383_v38, %v310_v15  ;;  %v577_v58 = vsel %vm576_vm3, %v9071_v49, %v9083_v56  ;;  %v9394_v46 = vrot.slane %v9303_v16, %v8772_v26 }
 0x20e   :  { %v504_v29 = vadd.f32 %v479_v18, %v406_v28  ;;  %v505_v52 = vadd.f32 %v480_v1, %v407_v20  ;;  %v578_v10 = vsel %vm576_vm3, %v9083_v56, %v9081_v55  ;;  %v385_v35 = vsel %vm380_vm1, %v9061_v0, %v9091_v3 }
 0x20f   :  { %v9376_v63 = vpop.permute.xlu0 %474  ;;  %v9378_v39 = vpop.permute.xlu1 %378  ;;  %v409_v9 = vadd.f32 %v384_v17, %v311_v57  ;;  %v312_v4 = vadd.f32 %v287_v53, %v214_v31  ;;  %v506_v7 = vadd.f32 %v481_v25, %v408_v37  ;;  %v288_v49 = vsel %vm282_vm0, %v9063_v43, %v9093_v5 }
 0x210   :  { %v602_v18 = vadd.f32 %v577_v58, %v504_v29  ;;  %v579_v56 = vsel %vm576_vm3, %v9081_v55, %v9101_v21  ;;  %v482_v0 = vsel %vm478_vm2, %v9073_v19, %v9103_v24  ;;  %v675_v17 = vsel %vm674_vm4, %v9113_v27, %v9111_v40 }
 0x211   :  { %v603_v31 = vadd.f32 %v578_v10, %v505_v52  ;;  %v410_v28 = vadd.f32 %v385_v35, %v312_v4  ;;  %v289_v43 = vsel %vm282_vm0, %v9093_v5, %v9121_v47  ;;  %v676_v1 = vsel %vm674_vm4, %v9111_v40, %v9123_v50 }
 0x212   :  { %v313_v20 = vadd.f32 %v288_v49, %v215_v42  ;;  %v483_v55 = vsel %vm478_vm2, %v9103_v24, %v9131_v61  ;;  %v386_v19 = vsel %vm380_vm1, %v9091_v3, %v9133_v8  ;;  %v10932_v27 = vsub.s32 5, %v8724_v11  ;;  %v10938_v49 = vld [vmem:[#allocation32_spill] sm:$0xff] }
 0x213   :  { %v9405_v38 = vpop.permute.xlu0 %666  ;;  %v9407_v15 = vpop.permute.xlu1 %570  ;;  %v604_v25 = vadd.f32 %v579_v56, %v506_v7  ;;  %v507_v5 = vadd.f32 %v482_v0, %v409_v9  ;;  %v700_v57 = vadd.f32 %v675_v17, %v602_v18  ;;  %v677_v40 = vsel %vm674_vm4, %v9123_v50, %v9141_v33  ;;  %v10937_v7 = vld [vmem:[#allocation26_spill] sm:$0xff]  ;;  %v10940_v17 = vld [vmem:[#allocation27_spill] sm:$0xff] }
 0x214   :  { %v9433_v53 = vrot.slane %v9303_v16, %v10932_v27  ;;  %v314_v24 = vadd.f32 %v289_v43, %v9301_v36  ;;  %v701_v58 = vadd.f32 %v676_v1, %v603_v31  ;;  %v773_v3 = vsel %vm772_vm5, %v9153_v60, %v9151_v51  ;;  %v10939_v18 = vld [vmem:[#allocation34_spill] sm:$0xff]  ;;  %v10941_v31 = vld [vmem:[#allocation28_spill] sm:$0xff]  ;;  %v10945_v27 = vld [vmem:[#allocation41_spill] sm:$0xff] }
 0x215   :  { %v774_v29 = vsel %vm772_vm5, %v9151_v51, %v9163_v45  ;;  %v508_v52 = vadd.f32 %v483_v55, %v410_v28  ;;  %v411_v10 = vadd.f32 %v386_v19, %v313_v20  ;;  %v10933_v35 = vsub.s32 6, %v8724_v11  ;;  %v9478_v1 = vld [vmem:[#allocation4 + $0x8] sm:$0x1f]  ;;  %v10942_v20 = vld [vmem:[#allocation29_spill] sm:$0xff] }
 0x216   :  { %v10935_v9 = vsub.s32 7, %v8724_v11  ;;  %v702_v4 = vadd.f32 %v677_v40, %v604_v25  ;;  %v580_v60 = vsel %vm576_vm3, %v9101_v21, %v10937_v7  ;;  %v871_v51 = vsel %vm870_vm6, %v10938_v49, %v9203_v54  ;;  %v10943_v55 = vld [vmem:[#allocation30_spill] sm:$0xff]  ;;  %v10947_v40 = vld [vmem:[#allocation31_spill] sm:$0xff] }
 0x217   :  { %v9438_v42 = vpop.permute.xlu0 %858  ;;  %v9440_v37 = vpop.permute.xlu1 %762  ;;  %v9452_v50 = vrot.slane %v9303_v16, %v10933_v35  ;;  %v872_v56 = vsel %vm870_vm6, %v9203_v54, %v10939_v18  ;;  %v798_v0 = vadd.f32 %v773_v3, %v700_v57  ;;  %v290_v11 = vsel %vm282_vm0, %v9121_v47, %v10940_v17  ;;  %v10944_v47 = vld [vmem:[#allocation44_spill] sm:$0xff]  ;;  %v10946_v57 = vld [vmem:[#allocation43_spill] sm:$0xff]  ;;  %v10948_v3 = vld [vmem:[#allocation33_spill] sm:$0xff] }
 0x218   :  { %v9457_v36 = vrot.slane %v9303_v16, %v10935_v9  ;;  %v799_v16 = vadd.f32 %v774_v29, %v701_v58  ;;  %v484_v28 = vsel %vm478_vm2, %v9131_v61, %v10941_v31  ;;  %v387_v54 = vsel %vm380_vm1, %v9133_v8, %v10942_v20 }
 0x219   :  { %10934 = vst [vmem:[#allocation69_spill] sm:$0xff] %v9452_v50  ;;  %v678_v19 = vsel %vm674_vm4, %v9141_v33, %v10943_v55  ;;  %v969_v25 = vsel %vm968_vm7, %v10945_v27, %v10944_v47  ;;  %v970_v61 = vsel %vm968_vm7, %v10944_v47, %v10946_v57  ;;  %v581_v58 = vsel %vm576_vm3, %v10937_v7, %v10947_v40  ;;  %v10949_v47 = vld [vmem:[#allocation42_spill] sm:$0xff] }
 0x21a   :  { %10936 = vst [vmem:[#allocation70_spill] sm:$0xff] %v9457_v36  ;;  %v775_v8 = vsel %vm772_vm5, %v9163_v45, %v10948_v3  ;;  %v896_v29 = vadd.f32 %v871_v51, %v798_v0  ;;  %v897_v35 = vadd.f32 %v872_v56, %v799_v16  ;;  %v605_v9 = vadd.f32 %v580_v60, %v507_v5  ;;  %v10952_v60 = vld [vmem:[#allocation39_spill] sm:$0xff] }
 0x21b   :  { %v9474_v43 = vpop.permute.xlu0 %476  ;;  %v9476_v21 = vpop.permute.xlu1 %954  ;;  %v315_v33 = vadd.f32 %v290_v11, %v9310_v22  ;;  %v509_v49 = vadd.f32 %v484_v28, %v411_v10  ;;  %v9501_v27 = vrot.slane %v9478_v1, %v8730_v13  ;;  %v412_v26 = vadd.f32 %v387_v54, %v314_v24  ;;  %v10953_v24 = vld [vmem:[#allocation35_spill] sm:$0xff] }
 0x21c   :  { %v873_v36 = vsel %vm870_vm6, %v10939_v18, %v10949_v47  ;;  %v9506_v7 = vadd.f32 %v969_v25, %v896_v29  ;;  %v9508_v50 = vadd.f32 %v970_v61, %v897_v35  ;;  %v703_v5 = vadd.f32 %v678_v19, %v605_v9  ;;  %v10954_v18 = vld [vmem:[#allocation36_spill] sm:$0xff]  ;;  %v10955_v16 = vld [vmem:[#allocation51_spill] sm:$0xff]  ;;  %v10957_v19 = vld [vmem:[#allocation38_spill] sm:$0xff] }
 0x21d   :  { %v606_v22 = vadd.f32 %v581_v58, %v508_v52  ;;  %v800_v10 = vadd.f32 %v775_v8, %v702_v4  ;;  %v776_v56 = vsel %vm772_vm5, %v10948_v3, %v10952_v60  ;;  %v388_v0 = vsel %vm380_vm1, %v10942_v20, %v10953_v24  ;;  %v10956_v4 = vld [vmem:[#allocation37_spill] sm:$0xff]  ;;  %v10958_v61 = vld [vmem:[#allocation52_spill] sm:$0xff] }
 0x21e   :  { %10950 = vst [vmem:[#allocation26_spill] sm:$0xff] %v9506_v7  ;;  %10951 = vst [vmem:[#allocation32_spill] sm:$0xff] %v9508_v50  ;;  %v291_v11 = vsel %vm282_vm0, %v10940_v17, %v10954_v18  ;;  %v971_v28 = vsel %vm968_vm7, %v10946_v57, %v10955_v16  ;;  %v9528_v52 = vrot.slane %v9478_v1, %v8727_v12  ;;  %v10959_v3 = vld [vmem:[#allocation40_spill] sm:$0xff]  ;;  %v10962_v12 = vld [vmem:[#allocation47_spill] sm:$0xff] }
 0x21f   :  { %v9510_v45 = vpop.permute.xlu0 %668  ;;  %v9512_v51 = vpop.permute.xlu1 %572  ;;  %v582_v54 = vsel %vm576_vm3, %v10947_v40, %v10956_v4  ;;  %v485_v20 = vsel %vm478_vm2, %v10941_v31, %v10957_v19  ;;  %v898_v25 = vadd.f32 %v873_v36, %v800_v10  ;;  %v874_v17 = vsel %vm870_vm6, %v10949_v47, %v10958_v61  ;;  %v10960_v31 = vld [vmem:[#allocation45_spill] sm:$0xff]  ;;  %v10961_v10 = vld [vmem:[#allocation46_spill] sm:$0xff] }
 0x220   :  { %v801_v58 = vadd.f32 %v776_v56, %v703_v5  ;;  %v679_v57 = vsel %vm674_vm4, %v10943_v55, %v10959_v3  ;;  %v1076_v8 = vmul.f32 %v9347_v62, %v9506_v7  ;;  %v1077_v40 = vmul.f32 %v9354_v34, %v9508_v50  ;;  %v10964_v50 = vld [vmem:[#allocation48_spill] sm:$0xff] }
 0x221   :  { %v413_v36 = vadd.f32 %v388_v0, %v315_v33  ;;  %v389_v9 = vsel %vm380_vm1, %v10953_v24, %v10960_v31  ;;  %v9553_v47 = vadd.f32 %v971_v28, %v898_v25  ;;  %v972_v55 = vsel %vm968_vm7, %v10955_v16, %v9271_v41  ;;  %v10963_v28 = vld [vmem:[#allocation49_spill] sm:$0xff] }
 0x222   :  { %v316_v5 = vadd.f32 %v291_v11, %v9314_v23  ;;  %v292_v56 = vsel %vm282_vm0, %v10954_v18, %v10961_v10  ;;  %v583_v33 = vsel %vm576_vm3, %v10956_v4, %v10962_v12  ;;  %v899_v0 = vadd.f32 %v874_v17, %v801_v58  ;;  %v10967_v58 = vld [vmem:[#allocation54_spill] sm:$0xff] }
 0x223   :  { %v9546_v29 = vpop.permute.xlu0 %860  ;;  %v9548_v35 = vpop.permute.xlu1 %764  ;;  %v607_v13 = vadd.f32 %v582_v54, %v509_v49  ;;  %v510_v34 = vadd.f32 %v485_v20, %v412_v26  ;;  %v704_v24 = vadd.f32 %v679_v57, %v606_v22  ;;  %v777_v25 = vsel %vm772_vm5, %v10952_v60, %v10963_v28  ;;  %v10965_v54 = vld [vmem:[#allocation50_spill] sm:$0xff]  ;;  %v10966_v20 = vld [vmem:[#allocation53_spill] sm:$0xff] }
 0x224   :  { %v1089_v62 = vadd.f32 %v1077_v40, %v1076_v8  ;;  %v414_v16 = vadd.f32 %v389_v9, %v316_v5  ;;  %v486_v23 = vsel %vm478_vm2, %v10957_v19, %v10964_v50  ;;  %v9571_v11 = vadd.f32 %v972_v55, %v899_v0  ;;  %v10968_v8 = vld [vmem:[#allocation55_spill] sm:$0xff]  ;;  %v10969_v40 = vld [vmem:[#allocation56_spill] sm:$0xff]  ;;  %v10970_v9 = vld [vmem:[#allocation57_spill] sm:$0xff] }
 0x225   :  { %v317_v49 = vadd.f32 %v292_v56, %v9318_v30  ;;  %v608_v26 = vadd.f32 %v583_v33, %v510_v34  ;;  %v1078_v22 = vmul.f32 %v9358_v2, %v9553_v47  ;;  %v875_v60 = vsel %vm870_vm6, %v10958_v61, %v9273_v44 }
 0x226   :  { %v802_v4 = vadd.f32 %v777_v25, %v704_v24  ;;  %v680_v19 = vsel %vm674_vm4, %v10959_v3, %v10965_v54  ;;  %v390_v17 = vsel %vm380_vm1, %v10960_v31, %v10966_v20  ;;  %v293_v30 = vsel %vm282_vm0, %v10961_v10, %v9261_v32 }
 0x227   :  { %v9573_v18 = vpop.permute.xlu0 %574  ;;  %v9575_v7 = vpop.permute.xlu1 %956  ;;  %v511_v34 = vadd.f32 %v486_v23, %v413_v36  ;;  %v584_v57 = vsel %vm576_vm3, %v10962_v12, %v10967_v58  ;;  %v487_v61 = vsel %vm478_vm2, %v10964_v50, %v10968_v8  ;;  %v973_v3 = vsel %vm968_vm7, %v9271_v41, %v9335_v59 }
 0x228   :  { %v778_v31 = vsel %vm772_vm5, %v10963_v28, %v10969_v40  ;;  %v681_v36 = vsel %vm674_vm4, %v10965_v54, %v10970_v9  ;;  %v1079_v55 = vmul.f32 %v9368_v6, %v9571_v11  ;;  %v900_v12 = vadd.f32 %v875_v60, %v802_v4  ;;  %v10971_v60 = vld [vmem:[#allocation58_spill] sm:$0xff]  ;;  %v10972_v6 = vld [vmem:[#allocation65_spill] sm:$0xff] }
 0x229   :  { %v705_v50 = vadd.f32 %v680_v19, %v607_v13  ;;  %v1090_v56 = vadd.f32 %v1089_v62, %v1078_v22  ;;  %v415_v33 = vadd.f32 %v390_v17, %v317_v49  ;;  %v318_v41 = vadd.f32 %v293_v30, %v9325_v48  ;;  %v10973_v48 = vld [vmem:[#allocation64_spill] sm:$0xff]  ;;  %v10974_v49 = vld [vmem:[#allocation59_spill] sm:$0xff]  ;;  %v10975_v19 = vld [vmem:[#allocation61_spill] sm:$0xff] }
 0x22a   :  { %v609_v0 = vadd.f32 %v584_v57, %v511_v34  ;;  %v512_v24 = vadd.f32 %v487_v61, %v414_v16  ;;  %v391_v28 = vsel %vm380_vm1, %v10966_v20, %v9275_v14  ;;  %v9617_v25 = vadd.f32 %v973_v3, %v900_v12 }
 0x22b   :  { %v9609_v5 = vpop.permute.xlu0 %766  ;;  %v9611_v10 = vpop.permute.xlu1 %670  ;;  %v803_v23 = vadd.f32 %v778_v31, %v705_v50  ;;  %v706_v54 = vadd.f32 %v681_v36, %v608_v26  ;;  %v294_v4 = vsel %vm282_vm0, %v9261_v32, %v10971_v60  ;;  %v876_v13 = vsel %vm870_vm6, %v9273_v44, %v10972_v6  ;;  %v10976_v32 = vld [vmem:[#allocation60_spill] sm:$0xff]  ;;  %v10977_v44 = vld [vmem:[#allocation62_spill] sm:$0xff] }
 0x22c   :  { %v1091_v62 = vadd.f32 %v1090_v56, %v1079_v55  ;;  %v320_v16 = vadd.f32 %v10971_v60, %v10973_v48  ;;  %v585_v22 = vsel %vm576_vm3, %v10967_v58, %v10974_v49  ;;  %v779_v26 = vsel %vm772_vm5, %v10969_v40, %v10975_v19  ;;  %v10978_v58 = vld [vmem:[#allocation63_spill] sm:$0xff] }
 0x22d   :  { %v416_v30 = vadd.f32 %v391_v28, %v318_v41  ;;  %v488_v34 = vsel %vm478_vm2, %v10968_v8, %v10976_v32  ;;  %v682_v57 = vsel %vm674_vm4, %v10970_v9, %v10977_v44  ;;  %v974_v61 = vsel %vm968_vm7, %v9335_v59, %v9476_v21 }
 0x22e   :  { %v319_v3 = vadd.f32 %v294_v4, %v10978_v58  ;;  %v1080_v40 = vmul.f32 %v9394_v46, %v9617_v25  ;;  %v901_v31 = vadd.f32 %v876_v13, %v803_v23  ;;  %v877_v36 = vsel %vm870_vm6, %v10972_v6, %v9438_v42 }
 0x22f   :  { %v959_v20 = vpop.permute.xlu0 %958  ;;  %v863_v17 = vpop.permute.xlu1 %862  ;;  %v610_v55 = vadd.f32 %v585_v22, %v512_v24  ;;  %v804_v8 = vadd.f32 %v779_v26, %v706_v54  ;;  %v489_v9 = vsel %vm478_vm2, %v10976_v32, %v9376_v63  ;;  %v392_v59 = vsel %vm380_vm1, %v9275_v14, %v9378_v39 }
 0x230   :  { %v513_v12 = vadd.f32 %v488_v34, %v415_v33  ;;  %v707_v50 = vadd.f32 %v682_v57, %v609_v0  ;;  %v9654_v56 = vadd.f32 %v974_v61, %v901_v31  ;;  %v975_v41 = vsel %vm968_vm7, %v9476_v21, %v9575_v7  ;;  %v10979_v61 = vld [vmem:[#allocation69_spill] sm:$0xff] }
 0x231   :  { %v683_v24 = vsel %vm674_vm4, %v10977_v44, %v9405_v38  ;;  %v586_v23 = vsel %vm576_vm3, %v10974_v49, %v9407_v15  ;;  %v902_v54 = vadd.f32 %v877_v36, %v804_v8  ;;  %v780_v14 = vsel %vm772_vm5, %v10975_v19, %v9440_v37 }
 0x232   :  { %v1092_v33 = vadd.f32 %v1091_v62, %v1080_v40  ;;  %v514_v0 = vadd.f32 %v489_v9, %v416_v30  ;;  %v417_v60 = vadd.f32 %v392_v59, %v319_v3  ;;  %v418_v21 = vadd.f32 %v9378_v39, %v320_v16 }
 0x233   :  { %v769_v28 = vpop.permute.xlu0 %768  ;;  %v673_v6 = vpop.permute.xlu1 %672  ;;  %v490_v4 = vsel %vm478_vm2, %v9376_v63, %v9474_v43  ;;  %v878_v13 = vsel %vm870_vm6, %v9438_v42, %v9546_v29  ;;  %v781_v48 = vsel %vm772_vm5, %v9440_v37, %v9548_v35  ;;  %v9678_v49 = vadd.f32 %v975_v41, %v902_v54 }
 0x234   :  { %v708_v22 = vadd.f32 %v683_v24, %v610_v55  ;;  %v611_v62 = vadd.f32 %v586_v23, %v513_v12  ;;  %v805_v19 = vadd.f32 %v780_v14, %v707_v50  ;;  %v1081_v39 = vmul.f32 %v9433_v53, %v9654_v56 }
 0x235   :  { %v516_v63 = vadd.f32 %v9474_v43, %v418_v21  ;;  %v684_v42 = vsel %vm674_vm4, %v9405_v38, %v9510_v45  ;;  %v976_v30 = vsel %vm968_vm7, %v9575_v7, %v959_v20  ;;  %v879_v37 = vsel %vm870_vm6, %v9546_v29, %v863_v17 }
 0x236   :  { %v515_v32 = vadd.f32 %v490_v4, %v417_v60  ;;  %v587_v34 = vsel %vm576_vm3, %v9407_v15, %v9512_v51  ;;  %v903_v44 = vadd.f32 %v878_v13, %v805_v19  ;;  %v806_v57 = vadd.f32 %v781_v48, %v708_v22  ;;  %v10981_v22 = vld [vmem:[#allocation24_spill] sm:$0xff] }
 0x237   :  { %v961_v16 = vpop.permute.xlu0 %960  ;;  %v865_v26 = vpop.permute.xlu1 %864  ;;  %v588_v43 = vsel %vm576_vm3, %v9512_v51, %v9573_v18  ;;  %v1082_v38 = vmul.f32 %v10979_v61, %v9678_v49  ;;  %v782_v7 = vsel %vm772_vm5, %v9548_v35, %v9609_v5  ;;  %v1093_v58 = vadd.f32 %v1092_v33, %v1081_v39 }
 0x238   :  { %v977_v29 = vsel %vm968_vm7, %v959_v20, %v961_v16  ;;  %v709_v3 = vadd.f32 %v684_v42, %v611_v62  ;;  %v9702_v40 = vadd.f32 %v976_v30, %v903_v44  ;;  %v904_v15 = vadd.f32 %v879_v37, %v806_v57  ;;  %v10982_v37 = vld [vmem:[#allocation25_spill] sm:$0xff] }
 0x239   :  { %v614_v55 = vadd.f32 %v9573_v18, %v516_v63  ;;  %v685_v51 = vsel %vm674_vm4, %v9510_v45, %v9611_v10  ;;  %v686_v8 = vsel %vm674_vm4, %v9611_v10, %v673_v6  ;;  %v880_v35 = vsel %vm870_vm6, %v863_v17, %v865_v26  ;;  %v10980_v45 = vld [vmem:[#allocation70_spill] sm:$0xff] }
 0x23a   :  { %v612_v9 = vadd.f32 %v587_v34, %v514_v0  ;;  %v613_v20 = vadd.f32 %v588_v43, %v515_v32  ;;  %v807_v59 = vadd.f32 %v782_v7, %v709_v3  ;;  %v9711_v12 = vadd.f32 %v977_v29, %v904_v15  ;;  %v10983_v43 = vld [vmem:[#allocation23_spill] sm:$0xff] }
 0x23b   :  { %v867_v31 = vpop.permute.xlu0 %866  ;;  %v771_v36 = vpop.permute.xlu1 %770  ;;  %v1094_v50 = vadd.f32 %v1093_v58, %v1082_v38  ;;  %v783_v41 = vsel %vm772_vm5, %v9609_v5, %v769_v28  ;;  %v712_v24 = vadd.f32 %v673_v6, %v614_v55  ;;  %v1083_v54 = vmul.f32 %v10980_v45, %v9702_v40 }
 0x23c   :  { %v784_v18 = vsel %vm772_vm5, %v769_v28, %v771_v36  ;;  %v710_v23 = vadd.f32 %v685_v51, %v612_v9  ;;  %v711_v14 = vadd.f32 %v686_v8, %v613_v20  ;;  %v905_v10 = vadd.f32 %v880_v35, %v807_v59  ;;  %v10985_v59 = vld [vmem:[#allocation26_spill] sm:$0xff] }
 0x23d   :  { %v881_v0 = vsel %vm870_vm6, %v865_v26, %v867_v31  ;;  %v810_v60 = vadd.f32 %v771_v36, %v712_v24  ;;  %v1084_v5 = vmul.f32 %v9501_v27, %v9711_v12  ;;  %v9725_v62 = vrot.slane %v9478_v1, %v10981_v22 }
 0x23e   :  { %v808_v13 = vadd.f32 %v783_v41, %v710_v23  ;;  %v809_v28 = vadd.f32 %v784_v18, %v711_v14  ;;  %v1095_v19 = vadd.f32 %v1094_v50, %v1083_v54  ;;  %v9736_v38 = vrot.slane %v9478_v1, %v10983_v43  ;;  %v10986_v41 = vld [vmem:[#allocation32_spill] sm:$0xff] }
 0x23f   :  { %v869_v33 = vpop.permute.xlu0 %868  ;;  %v963_v17 = vpop.permute.xlu1 %962  ;;  %v8505_v35 = vmov 1   ;;  %vm4704_vm3 = vcmask 539648   ;;  %vm4925_vm5 = vcmask 1041408  }
 0x240   :  { %v882_v21 = vsel %vm870_vm6, %v867_v31, %v869_v33  ;;  %v978_v4 = vsel %vm968_vm7, %v961_v16, %v963_v17  ;;  %v908_v48 = vadd.f32 %v869_v33, %v810_v60  ;;  %v906_v39 = vadd.f32 %v881_v0, %v808_v13  ;;  %8249 = vset.pattern.permute.xlu1 %v8505_v35  ;;  %v10988_v60 = vld [vmem:[#allocation67_spill] sm:$0xff] }
 0x241   :  { %v1003_v6 = vadd.f32 %v978_v4, %v905_v10  ;;  %v907_v63 = vadd.f32 %v882_v21, %v809_v28  ;;  %v9730_v16 = vrot.slane %v9478_v1, %v10982_v37  ;;  %v1096_v57 = vadd.f32 %v1095_v19, %v1084_v5  ;;  %v1161_v1 = vld [vmem:[%s10984_s29] sm:$0xff] }
 0x242   :  { %vm5075_vm6 = vcmask 146432  }
 0x243   :  { %v1085_v26 = vmul.f32 %v9528_v52, %v1003_v6  ;;  %v967_v42 = vpop.permute.xlu0 %966  ;;  %v965_v30 = vpop.permute.xlu1 %964 }
 0x244   :  { %v1006_v32 = vadd.f32 %v967_v42, %v908_v48  ;;  %v979_v34 = vsel %vm968_vm7, %v963_v17, %v965_v30  ;;  %v980_v44 = vsel %vm968_vm7, %v965_v30, %v967_v42  ;;  %v10987_v17 = vld [vmem:[#allocation66_spill] sm:$0xff]  ;;  %vm8512_vm7 = vmmov 0  }
 0x245   :  { %v1004_v7 = vadd.f32 %v979_v34, %v906_v39  ;;  %v1005_v29 = vadd.f32 %v980_v44, %v907_v63  ;;  %v1097_v58 = vadd.f32 %v1096_v57, %v1085_v26  ;;  %v10989_v39 = vld [vmem:[#allocation68_spill] sm:$0xff] }
 0x246   :  { %v1088_v15 = vmul.f32 %v9730_v16, %v1006_v32 }
 0x247   :  { %v1086_v3 = vmul.f32 %v9725_v62, %v1004_v7  ;;  %v1087_v31 = vmul.f32 %v9736_v38, %v1005_v29 }
 0x248   :  { %v1101_v51 = vsel %vm1100_vm8, %v1088_v15, 0.0 }
 0x249   :  { %v1098_v36 = vadd.f32 %v1097_v58, %v1086_v3 }
 0x24b   :  { %v1099_v55 = vadd.f32 %v1098_v36, %v1087_v31 }
 0x24d   :  { %v1102_v8 = vadd.f32 %v1101_v51, %v1099_v55 }
 0x24f   :  { %1103 = vadd.xlane.f32.xlu1 %v1102_v8 }
 0x260   :  { %1196 = vperm.xlu1 %8249, %v1161_v1  }
 0x2dc   :  { %v1104_v9 = vpop.xlane.xlu1 %1103 }
 0x2dd   :  { %v1105_v20 = vmul.f32 0.000739645, %v1104_v9 }
 0x2df   :  { %v1106_v50 = vsub.f32 %v10985_v59, %v1105_v20  ;;  %v1107_v24 = vsub.f32 %v10986_v41, %v1105_v20  ;;  %v1108_v18 = vsub.f32 %v9553_v47, %v1105_v20  ;;  %v1109_v23 = vsub.f32 %v9571_v11, %v1105_v20 }
 0x2e0   :  { %v1110_v10 = vsub.f32 %v9617_v25, %v1105_v20  ;;  %v1111_v4 = vsub.f32 %v9654_v56, %v1105_v20  ;;  %v1112_v5 = vsub.f32 %v9678_v49, %v1105_v20  ;;  %v1113_v11 = vsub.f32 %v9702_v40, %v1105_v20 }
 0x2e1   :  { %v1119_v54 = vmul.f32 %v1106_v50, %v1106_v50  ;;  %v1120_v14 = vmul.f32 %v1107_v24, %v1107_v24  ;;  %v1121_v33 = vmul.f32 %v1108_v18, %v1108_v18  ;;  %v1122_v13 = vmul.f32 %v1109_v23, %v1109_v23 }
 0x2e2   :  { %v1123_v28 = vmul.f32 %v1110_v10, %v1110_v10  ;;  %v1124_v19 = vmul.f32 %v1111_v4, %v1111_v4  ;;  %v9759_v26 = vsub.f32 %v9711_v12, %v1105_v20  ;;  %v1125_v42 = vmul.f32 %v1112_v5, %v1112_v5 }
 0x2e3   :  { %v1132_v0 = vmul.f32 %v1119_v54, %v10987_v17  ;;  %v1133_v21 = vmul.f32 %v1120_v14, %v10988_v60  ;;  %v1134_v48 = vmul.f32 %v1121_v33, %v9358_v2  ;;  %v1135_v63 = vmul.f32 %v1122_v13, %v10989_v39 }
 0x2e4   :  { %v1136_v30 = vmul.f32 %v1123_v28, %v9394_v46  ;;  %v9762_v37 = vsub.f32 %v1003_v6, %v1105_v20  ;;  %v1126_v49 = vmul.f32 %v1113_v11, %v1113_v11  ;;  %v1137_v34 = vmul.f32 %v1124_v19, %v9433_v53 }
 0x2e5   :  { %v1145_v47 = vadd.f32 %v1133_v21, %v1132_v0  ;;  %v9765_v44 = vsub.f32 %v1004_v7, %v1105_v20  ;;  %v1127_v40 = vmul.f32 %v9759_v26, %v9759_v26  ;;  %v1138_v57 = vmul.f32 %v1125_v42, %v10979_v61 }
 0x2e6   :  { %v9770_v12 = vsub.f32 %v1006_v32, %v1105_v20  ;;  %v9772_v3 = vsub.f32 %v1005_v29, %v1105_v20  ;;  %v1128_v46 = vmul.f32 %v9762_v37, %v9762_v37  ;;  %v1139_v6 = vmul.f32 %v1126_v49, %v10980_v45 }
 0x2e7   :  { %v1146_v25 = vadd.f32 %v1145_v47, %v1134_v48  ;;  %v1129_v53 = vmul.f32 %v9765_v44, %v9765_v44  ;;  %v1140_v7 = vmul.f32 %v1127_v40, %v9501_v27 }
 0x2e8   :  { %v1131_v61 = vmul.f32 %v9770_v12, %v9770_v12  ;;  %v1130_v32 = vmul.f32 %v9772_v3, %v9772_v3  ;;  %v1141_v29 = vmul.f32 %v1128_v46, %v9528_v52 }
 0x2e9   :  { %v1147_v56 = vadd.f32 %v1146_v25, %v1135_v63  ;;  %v1142_v55 = vmul.f32 %v1129_v53, %v9725_v62 }
 0x2ea   :  { %v1144_v45 = vmul.f32 %v1131_v61, %v9730_v16  ;;  %v1143_v8 = vmul.f32 %v1130_v32, %v9736_v38  ;;  %v1197_v16 = vpop.permute.xlu1 %1196 }
 0x2eb   :  { %v1148_v2 = vadd.f32 %v1147_v56, %v1136_v30 }
 0x2ec   :  { %v1156_v27 = vsel %vm1100_vm8, %v1144_v45, 0.0 }
 0x2ed   :  { %v1149_v58 = vadd.f32 %v1148_v2, %v1137_v34 }
 0x2ef   :  { %v1150_v15 = vadd.f32 %v1149_v58, %v1138_v57 }
 0x2f1   :  { %v1151_v31 = vadd.f32 %v1150_v15, %v1139_v6 }
 0x2f3   :  { %v1152_v36 = vadd.f32 %v1151_v31, %v1140_v7 }
 0x2f5   :  { %v1153_v51 = vadd.f32 %v1152_v36, %v1141_v29 }
 0x2f7   :  { %v1154_v9 = vadd.f32 %v1153_v51, %v1142_v55 }
 0x2f9   :  { %v1155_v20 = vadd.f32 %v1154_v9, %v1143_v8 }
 0x2fb   :  { %v1157_v59 = vadd.f32 %v1156_v27, %v1155_v20 }
 0x2fd   :  { %1158 = vadd.xlane.f32.xlu0 %v1157_v59  ;;  %v1406_v59 = vld [vmem:[#allocation7 + $0x8] sm:$0xff] }
 0x313   :  { %1179 = vperm.xlu0 %8247, %v1161_v1  }
 0x38a   :  { %v1159_v41 = vpop.xlane.xlu0 %1158 }
 0x38b   :  { %v1160_v54 = vmul.f32 0.000739645, %v1159_v41  ;;  %v1410_v41 = vld [vmem:[#allocation7 + $0x28] sm:$0xff] }
 0x38d   :  { %v1162_v14 = vadd.f32 1e-05, %v1160_v54  ;;  %v1408_v54 = vld [vmem:[#allocation7 + $0x18] sm:$0xff] }
 0x38f   :  { %8316 = vrsqrt.f32 %v1162_v14  ;;  %v7213_v14 = vpack.c.bf16 %v1410_v41, %v1406_v59  ;;  %v1432_v59 = vld [vmem:[#allocation7 + $0xd8] sm:$0xff] }
 0x390   :  { %v1436_v41 = vld [vmem:[#allocation7 + $0xf8] sm:$0xff] }
 0x391   :  { %7214 = vmatprep.subr.bf16.mxu0 %v7213_v14 }
 0x392   :  { %v1180_v60 = vpop.permute.xlu0 %1179 }
 0x399   :  { %v8317_v52 = vpop.eup %8316 }
 0x39a   :  { %v1165_v33 = vmul.f32 %v8317_v52, %v1107_v24  ;;  %v1166_v17 = vmul.f32 %v8317_v52, %v1108_v18  ;;  %v1164_v62 = vmul.f32 %v8317_v52, %v1106_v50  ;;  %v1167_v0 = vmul.f32 %v8317_v52, %v1109_v23 }
 0x39b   :  { %v1168_v21 = vmul.f32 %v8317_v52, %v1110_v10  ;;  %v1169_v38 = vmul.f32 %v8317_v52, %v1111_v4  ;;  %v1170_v13 = vmul.f32 %v8317_v52, %v1112_v5  ;;  %v1171_v28 = vmul.f32 %v8317_v52, %v1113_v11 }
 0x39c   :  { %v1183_v48 = vmul.f32 %v1180_v60, %v1165_v33  ;;  %v1184_v47 = vmul.f32 %v1180_v60, %v1166_v17  ;;  %v1182_v19 = vmul.f32 %v1180_v60, %v1164_v62  ;;  %v1185_v39 = vmul.f32 %v1180_v60, %v1167_v0  ;;  %v1405_v33 = vld [vmem:[#allocation7] sm:$0xff]  ;;  %v1407_v0 = vld [vmem:[#allocation7 + $0x10] sm:$0xff] }
 0x39d   :  { %v1186_v1 = vmul.f32 %v1180_v60, %v1168_v21  ;;  %v1187_v63 = vmul.f32 %v1180_v60, %v1169_v38  ;;  %v1188_v25 = vmul.f32 %v1180_v60, %v1170_v13  ;;  %v1189_v42 = vmul.f32 %v1180_v60, %v1171_v28  ;;  %v1409_v62 = vld [vmem:[#allocation7 + $0x20] sm:$0xff]  ;;  %v1414_v38 = vld [vmem:[#allocation7 + $0x48] sm:$0xff]  ;;  %v1416_v28 = vld [vmem:[#allocation7 + $0x58] sm:$0xff] }
 0x39e   :  { %v9789_v30 = vadd.f32 %v1197_v16, %v1183_v48  ;;  %v9791_v24 = vadd.f32 %v1197_v16, %v1184_v47  ;;  %v9793_v50 = vadd.f32 %v1197_v16, %v1182_v19  ;;  %v1202_v18 = vadd.f32 %v1197_v16, %v1185_v39  ;;  %v1418_v13 = vld [vmem:[#allocation7 + $0x68] sm:$0xff]  ;;  %v1420_v47 = vld [vmem:[#allocation7 + $0x78] sm:$0xff]  ;;  %v1413_v19 = vld [vmem:[#allocation7 + $0x40] sm:$0xff] }
 0x39f   :  { %v9795_v23 = vadd.f32 %v1197_v16, %v1186_v1  ;;  %v9797_v10 = vadd.f32 %v1197_v16, %v1187_v63  ;;  %v9799_v4 = vadd.f32 %v1197_v16, %v1188_v25  ;;  %v9801_v5 = vadd.f32 %v1197_v16, %v1189_v42  ;;  %v1417_v39 = vld [vmem:[#allocation7 + $0x60] sm:$0xff]  ;;  %v1415_v25 = vld [vmem:[#allocation7 + $0x50] sm:$0xff] }
 0x3a0   :  { %v1213_v11 = vmax.f32 %v9789_v30, 0.0  ;;  %v1214_v56 = vmax.f32 %v9791_v24, 0.0  ;;  %v1212_v49 = vmax.f32 %v9793_v50, 0.0  ;;  %v9806_v34 = vmax.f32 %v1202_v18, 0.0  ;;  %v1419_v42 = vld [vmem:[#allocation7 + $0x70] sm:$0xff]  ;;  %v1422_v18 = vld [vmem:[#allocation7 + $0x88] sm:$0xff] }
 0x3a1   :  { %v1216_v2 = vmax.f32 %v9795_v23, 0.0  ;;  %v1217_v40 = vmax.f32 %v9797_v10, 0.0  ;;  %v1218_v57 = vmax.f32 %v9799_v4, 0.0  ;;  %v1219_v58 = vmax.f32 %v9801_v5, 0.0  ;;  %v1555_v23 = vld [vmem:[#allocation7 + $0x4b0] sm:$0xff] }
 0x3a2   :  { %v8250_v46 = vpack.i.bf16 %v1214_v56, %v1213_v11  ;;  %1228 = vst [vmem:[#allocation3 + $0x18] sm:$0xff] %v9806_v34  ;;  %v8255_v6 = vpack.i.bf16 %v1212_v49, %v9806_v34  ;;  %v1172_v15 = vmul.f32 %v8317_v52, %v9759_v26  ;;  %v1173_v53 = vmul.f32 %v8317_v52, %v9762_v37  ;;  %v1559_v10 = vld [vmem:[#allocation7 + $0x4d0] sm:$0xff] }
 0x3a3   :  { %v1174_v7 = vmul.f32 %v8317_v52, %v9765_v44  ;;  %v1175_v31 = vmul.f32 %v8317_v52, %v9772_v3  ;;  %v1176_v29 = vmul.f32 %v8317_v52, %v9770_v12  ;;  %v1412_v52 = vld [vmem:[#allocation7 + $0x38] sm:$0xff]  ;;  %v7215_v21 = vpack.c.bf16 %v1409_v62, %v1405_v33  ;;  %v1433_v33 = vld [vmem:[#allocation7 + $0xe0] sm:$0xff]  ;;  %v1435_v62 = vld [vmem:[#allocation7 + $0xf0] sm:$0xff] }
 0x3a4   :  { %8251 = vrot.lane.b32.xlu1 %v8250_v46, %s8497_s30  ;;  %8256 = vrot.lane.b32.xlu0 %v8255_v6, %s8497_s30  ;;  %v1190_v61 = vmul.f32 %v1180_v60, %v1172_v15  ;;  %v1191_v32 = vmul.f32 %v1180_v60, %v1173_v53  ;;  %v7597_v17 = vpack.c.bf16 %v1412_v52, %v1408_v54  ;;  %v1426_v6 = vld [vmem:[#allocation7 + $0xa8] sm:$0xff]  ;;  %v1424_v15 = vld [vmem:[#allocation7 + $0x98] sm:$0xff]  ;;  %v1429_v54 = vld [vmem:[#allocation7 + $0xc0] sm:$0xff] }
 0x3a5   :  { %v1192_v36 = vmul.f32 %v1180_v60, %v1174_v7  ;;  %v1193_v55 = vmul.f32 %v1180_v60, %v1175_v31  ;;  %v1194_v26 = vmul.f32 %v1180_v60, %v1176_v29  ;;  %v1411_v60 = vld [vmem:[#allocation7 + $0x30] sm:$0xff]  ;;  %v7217_v48 = vpack.c.bf16 %v1418_v13, %v1414_v38  ;;  %7216 = vmatpush1.bf16.msra.mxu0 %v7215_v21  ;;  %v1428_v53 = vld [vmem:[#allocation7 + $0xb8] sm:$0xff] }
 0x3a6   :  { %v9827_v51 = vadd.f32 %v1197_v16, %v1190_v61  ;;  %v9829_v45 = vadd.f32 %v1197_v16, %v1191_v32  ;;  %7598 = vmatprep.subr.bf16.mxu1 %v7597_v17  ;;  %v7601_v1 = vpack.c.bf16 %v1420_v47, %v1416_v28  ;;  %v7219_v63 = vpack.c.bf16 %v1417_v39, %v1413_v19  ;;  %v1421_v61 = vld [vmem:[#allocation7 + $0x80] sm:$0xff]  ;;  %v1423_v29 = vld [vmem:[#allocation7 + $0x90] sm:$0xff]  ;;  %v1440_v21 = vld [vmem:[#allocation7 + $0x118] sm:$0xff] }
 0x3a7   :  { %v9831_v37 = vadd.f32 %v1197_v16, %v1192_v36  ;;  %v9833_v44 = vadd.f32 %v1197_v16, %v1193_v55  ;;  %v1211_v9 = vadd.f32 %v1197_v16, %v1194_v26  ;;  %v7599_v16 = vpack.c.bf16 %v1411_v60, %v1407_v0  ;;  %7218 = vmatprep.subr.bf16.mxu0 %v7217_v48  ;;  %v1425_v32 = vld [vmem:[#allocation7 + $0xa0] sm:$0xff]  ;;  %v1427_v36 = vld [vmem:[#allocation7 + $0xb0] sm:$0xff]  ;;  %v1430_v55 = vld [vmem:[#allocation7 + $0xc8] sm:$0xff] }
 0x3a8   :  { %v1220_v3 = vmax.f32 %v9827_v51, 0.0  ;;  %v1221_v8 = vmax.f32 %v9829_v45, 0.0  ;;  %v7603_v46 = vpack.c.bf16 %v1419_v42, %v1415_v25  ;;  %v7221_v7 = vpack.c.bf16 %v1426_v6, %v1422_v18  ;;  %v1434_v26 = vld [vmem:[#allocation7 + $0xe8] sm:$0xff]  ;;  %v1431_v17 = vld [vmem:[#allocation7 + $0xd0] sm:$0xff]  ;;  %v1437_v28 = vld [vmem:[#allocation7 + $0x100] sm:$0xff] }
 0x3a9   :  { %v1222_v20 = vmax.f32 %v9831_v37, 0.0  ;;  %v1223_v12 = vmax.f32 %v9833_v44, 0.0  ;;  %v1224_v27 = vmax.f32 %v1211_v9, 0.0  ;;  %7600 = vmatpush1.bf16.msra.mxu1 %v7599_v16  ;;  %v7605_v31 = vpack.c.bf16 %v1428_v53, %v1424_v15  ;;  %7220 = vmatpush1.bf16.msra.mxu0 %v7219_v63  ;;  %v1438_v0 = vld [vmem:[#allocation7 + $0x108] sm:$0xff]  ;;  %v1444_v16 = vld [vmem:[#allocation7 + $0x138] sm:$0xff]  ;;  %v1441_v48 = vld [vmem:[#allocation7 + $0x120] sm:$0xff] }
 0x3aa   :  { %7602 = vmatprep.subr.bf16.mxu1 %v7601_v1  ;;  %v7223_v9 = vpack.c.bf16 %v1425_v32, %v1421_v61  ;;  %7222 = vmatprep.subr.bf16.mxu0 %v7221_v7  ;;  %v7225_v14 = vpack.c.bf16 %v1434_v26, %v1430_v55  ;;  %v7609_v52 = vpack.c.bf16 %v1436_v41, %v1432_v59  ;;  %v1442_v60 = vld [vmem:[#allocation7 + $0x128] sm:$0xff]  ;;  %v1439_v39 = vld [vmem:[#allocation7 + $0x110] sm:$0xff]  ;;  %v1448_v42 = vld [vmem:[#allocation7 + $0x158] sm:$0xff] }
 0x3ab   :  { %1237 = vst.msk [vmem:[#allocation3 + $0x60] sm:$0xff] %vm1100_vm8, %v1224_v27  ;;  %v7607_v27 = vpack.c.bf16 %v1427_v36, %v1423_v29  ;;  %v7227_v38 = vpack.c.bf16 %v1433_v33, %v1429_v54  ;;  %v7611_v13 = vpack.c.bf16 %v1435_v62, %v1431_v17  ;;  %v7229_v47 = vpack.c.bf16 %v1442_v60, %v1438_v0  ;;  %v1443_v1 = vld [vmem:[#allocation7 + $0x130] sm:$0xff]  ;;  %v1446_v63 = vld [vmem:[#allocation7 + $0x148] sm:$0xff]  ;;  %v1452_v18 = vld [vmem:[#allocation7 + $0x178] sm:$0xff] }
 0x3ac   :  { %v7613_v19 = vpack.c.bf16 %v1444_v16, %v1440_v21  ;;  %v1450_v25 = vld [vmem:[#allocation7 + $0x168] sm:$0xff]  ;;  %v7615_v6 = vpack.c.bf16 %v1443_v1, %v1439_v39  ;;  %v1445_v15 = vld [vmem:[#allocation7 + $0x140] sm:$0xff]  ;;  %v1447_v61 = vld [vmem:[#allocation7 + $0x150] sm:$0xff]  ;;  %v8275_v30 = vpack.i.bf16 %v1219_v58, %v1218_v57  ;;  %v8285_v24 = vpack.i.bf16 %v1221_v8, %v1220_v3 }
 0x3ad   :  { %7604 = vmatpush1.bf16.msra.mxu1 %v7603_v46  ;;  %7224 = vmatpush1.bf16.msra.mxu0 %v7223_v9  ;;  %v7231_v46 = vpack.c.bf16 %v1441_v48, %v1437_v28  ;;  %v1449_v53 = vld [vmem:[#allocation7 + $0x160] sm:$0xff]  ;;  %v7233_v7 = vpack.c.bf16 %v1450_v25, %v1446_v63  ;;  %v1451_v32 = vld [vmem:[#allocation7 + $0x170] sm:$0xff]  ;;  %v1454_v29 = vld [vmem:[#allocation7 + $0x188] sm:$0xff]  ;;  %v8295_v50 = vpack.i.bf16 %v1223_v12, %v1222_v20  ;;  %vm5490_vm8 = vcmask 965632  }
 0x3ae   :  { %7606 = vmatprep.subr.bf16.mxu1 %v7605_v31  ;;  %7226 = vmatprep.subr.bf16.mxu0 %v7225_v14  ;;  %v7617_v31 = vpack.c.bf16 %v1452_v18, %v1448_v42  ;;  %v1458_v36 = vld [vmem:[#allocation7 + $0x1a8] sm:$0xff]  ;;  %v1456_v55 = vld [vmem:[#allocation7 + $0x198] sm:$0xff]  ;;  %v7235_v9 = vpack.c.bf16 %v1449_v53, %v1445_v15  ;;  %v1453_v59 = vld [vmem:[#allocation7 + $0x180] sm:$0xff] }
 0x3af   :  { %v1460_v26 = vld [vmem:[#allocation7 + $0x1b8] sm:$0xff]  ;;  %v1457_v41 = vld [vmem:[#allocation7 + $0x1a0] sm:$0xff]  ;;  %v7237_v54 = vpack.c.bf16 %v1458_v36, %v1454_v29  ;;  %v1459_v33 = vld [vmem:[#allocation7 + $0x1b0] sm:$0xff] }
 0x3b0   :  { %v7621_v14 = vpack.c.bf16 %v1460_v26, %v1456_v55  ;;  %v1462_v17 = vld [vmem:[#allocation7 + $0x1c8] sm:$0xff]  ;;  %v1464_v0 = vld [vmem:[#allocation7 + $0x1d8] sm:$0xff]  ;;  %v7239_v21 = vpack.c.bf16 %v1457_v41, %v1453_v59  ;;  %v1567_v5 = vld [vmem:[#allocation7 + $0x510] sm:$0xff] }
 0x3b1   :  { %7608 = vmatpush1.bf16.msra.mxu1 %v7607_v27  ;;  %7228 = vmatpush1.bf16.msra.mxu0 %v7227_v38  ;;  %v7619_v27 = vpack.c.bf16 %v1451_v32, %v1447_v61  ;;  %v1466_v62 = vld [vmem:[#allocation7 + $0x1e8] sm:$0xff]  ;;  %v1468_v60 = vld [vmem:[#allocation7 + $0x1f8] sm:$0xff]  ;;  %v1461_v38 = vld [vmem:[#allocation7 + $0x1c0] sm:$0xff] }
 0x3b2   :  { %7610 = vmatprep.subr.bf16.mxu1 %v7609_v52  ;;  %7230 = vmatprep.subr.bf16.mxu0 %v7229_v47  ;;  %v1455_v52 = vld [vmem:[#allocation7 + $0x190] sm:$0xff]  ;;  %v7241_v28 = vpack.c.bf16 %v1466_v62, %v1462_v17  ;;  %v7625_v48 = vpack.c.bf16 %v1468_v60, %v1464_v0  ;;  %v1470_v39 = vld [vmem:[#allocation7 + $0x208] sm:$0xff]  ;;  %v1472_v63 = vld [vmem:[#allocation7 + $0x218] sm:$0xff] }
 0x3b3   :  { %v7623_v16 = vpack.c.bf16 %v1459_v33, %v1455_v52  ;;  %v1463_v47 = vld [vmem:[#allocation7 + $0x1d0] sm:$0xff]  ;;  %v1474_v1 = vld [vmem:[#allocation7 + $0x228] sm:$0xff]  ;;  %v1476_v25 = vld [vmem:[#allocation7 + $0x238] sm:$0xff] }
 0x3b4   :  { %v7245_v15 = vpack.c.bf16 %v1474_v1, %v1470_v39  ;;  %v7629_v53 = vpack.c.bf16 %v1476_v25, %v1472_v63  ;;  %v1478_v61 = vld [vmem:[#allocation7 + $0x248] sm:$0xff]  ;;  %v1480_v29 = vld [vmem:[#allocation7 + $0x258] sm:$0xff]  ;;  %v1577_v45 = vld [vmem:[#allocation7 + $0x560] sm:$0xff] }
 0x3b5   :  { %7612 = vmatpush1.bf16.msra.mxu1 %v7611_v13  ;;  %7232 = vmatpush1.bf16.msra.mxu0 %v7231_v46  ;;  %v1465_v13 = vld [vmem:[#allocation7 + $0x1e0] sm:$0xff]  ;;  %v1482_v32 = vld [vmem:[#allocation7 + $0x268] sm:$0xff]  ;;  %v1484_v36 = vld [vmem:[#allocation7 + $0x278] sm:$0xff] }
 0x3b6   :  { %7614 = vmatprep.subr.bf16.mxu1 %v7613_v19  ;;  %7234 = vmatprep.subr.bf16.mxu0 %v7233_v7  ;;  %v1467_v19 = vld [vmem:[#allocation7 + $0x1f0] sm:$0xff]  ;;  %v7243_v42 = vpack.c.bf16 %v1465_v13, %v1461_v38  ;;  %v1469_v46 = vld [vmem:[#allocation7 + $0x200] sm:$0xff]  ;;  %v7249_v59 = vpack.c.bf16 %v1482_v32, %v1478_v61  ;;  %v7633_v41 = vpack.c.bf16 %v1484_v36, %v1480_v29  ;;  %v1486_v52 = vld [vmem:[#allocation7 + $0x288] sm:$0xff] }
 0x3b7   :  { %v7627_v18 = vpack.c.bf16 %v1467_v19, %v1463_v47  ;;  %v1471_v7 = vld [vmem:[#allocation7 + $0x210] sm:$0xff]  ;;  %v1490_v33 = vld [vmem:[#allocation7 + $0x2a8] sm:$0xff]  ;;  %v1488_v17 = vld [vmem:[#allocation7 + $0x298] sm:$0xff] }
 0x3b8   :  { %v1492_v62 = vld [vmem:[#allocation7 + $0x2b8] sm:$0xff]  ;;  %v7253_v38 = vpack.c.bf16 %v1490_v33, %v1486_v52  ;;  %v1494_v47 = vld [vmem:[#allocation7 + $0x2c8] sm:$0xff]  ;;  %v1593_v44 = vld [vmem:[#allocation7 + $0x5e0] sm:$0xff] }
 0x3b9   :  { %7616 = vmatpush1.bf16.msra.mxu1 %v7615_v6  ;;  %7236 = vmatpush1.bf16.msra.mxu0 %v7235_v9  ;;  %v1473_v6 = vld [vmem:[#allocation7 + $0x220] sm:$0xff]  ;;  %v7637_v13 = vpack.c.bf16 %v1492_v62, %v1488_v17  ;;  %v1498_v19 = vld [vmem:[#allocation7 + $0x2e8] sm:$0xff]  ;;  %v1496_v39 = vld [vmem:[#allocation7 + $0x2d8] sm:$0xff] }
 0x3ba   :  { %7618 = vmatprep.subr.bf16.mxu1 %v7617_v31  ;;  %7238 = vmatprep.subr.bf16.mxu0 %v7237_v54  ;;  %v1475_v31 = vld [vmem:[#allocation7 + $0x230] sm:$0xff]  ;;  %v7247_v55 = vpack.c.bf16 %v1473_v6, %v1469_v46  ;;  %v1477_v9 = vld [vmem:[#allocation7 + $0x240] sm:$0xff]  ;;  %v1500_v1 = vld [vmem:[#allocation7 + $0x2f8] sm:$0xff]  ;;  %v7257_v46 = vpack.c.bf16 %v1498_v19, %v1494_v47 }
 0x3bb   :  { %v7631_v26 = vpack.c.bf16 %v1475_v31, %v1471_v7  ;;  %v1479_v54 = vld [vmem:[#allocation7 + $0x250] sm:$0xff]  ;;  %v7641_v6 = vpack.c.bf16 %v1500_v1, %v1496_v39  ;;  %v1502_v7 = vld [vmem:[#allocation7 + $0x308] sm:$0xff]  ;;  %v1504_v61 = vld [vmem:[#allocation7 + $0x318] sm:$0xff] }
 0x3bc   :  { %v1506_v31 = vld [vmem:[#allocation7 + $0x328] sm:$0xff]  ;;  %v1508_v32 = vld [vmem:[#allocation7 + $0x338] sm:$0xff] }
 0x3bd   :  { %7620 = vmatpush1.bf16.msra.mxu1 %v7619_v27  ;;  %7240 = vmatpush1.bf16.msra.mxu0 %v7239_v21  ;;  %v1481_v27 = vld [vmem:[#allocation7 + $0x260] sm:$0xff]  ;;  %v1512_v52 = vld [vmem:[#allocation7 + $0x358] sm:$0xff]  ;;  %v1518_v47 = vld [vmem:[#allocation7 + $0x388] sm:$0xff] }
 0x3be   :  { %7622 = vmatprep.subr.bf16.mxu1 %v7621_v14  ;;  %7242 = vmatprep.subr.bf16.mxu0 %v7241_v28  ;;  %v1483_v14 = vld [vmem:[#allocation7 + $0x270] sm:$0xff]  ;;  %v7251_v0 = vpack.c.bf16 %v1481_v27, %v1477_v9  ;;  %v1485_v21 = vld [vmem:[#allocation7 + $0x280] sm:$0xff]  ;;  %v7261_v9 = vpack.c.bf16 %v1506_v31, %v1502_v7  ;;  %v7645_v27 = vpack.c.bf16 %v1508_v32, %v1504_v61  ;;  %v1516_v33 = vld [vmem:[#allocation7 + $0x378] sm:$0xff] }
 0x3bf   :  { %v7635_v60 = vpack.c.bf16 %v1483_v14, %v1479_v54  ;;  %v1487_v28 = vld [vmem:[#allocation7 + $0x290] sm:$0xff]  ;;  %v1510_v54 = vld [vmem:[#allocation7 + $0x348] sm:$0xff]  ;;  %v1520_v39 = vld [vmem:[#allocation7 + $0x398] sm:$0xff] }
 0x3c0   :  { %v1514_v14 = vld [vmem:[#allocation7 + $0x368] sm:$0xff]  ;;  %v1528_v61 = vld [vmem:[#allocation7 + $0x3d8] sm:$0xff] }
 0x3c1   :  { %7624 = vmatpush1.bf16.msra.mxu1 %v7623_v16  ;;  %7244 = vmatpush1.bf16.msra.mxu0 %v7243_v42  ;;  %v1489_v16 = vld [vmem:[#allocation7 + $0x2a0] sm:$0xff]  ;;  %v1522_v19 = vld [vmem:[#allocation7 + $0x3a8] sm:$0xff] }
 0x3c2   :  { %7626 = vmatprep.subr.bf16.mxu1 %v7625_v48  ;;  %7246 = vmatprep.subr.bf16.mxu0 %v7245_v15  ;;  %v1491_v48 = vld [vmem:[#allocation7 + $0x2b0] sm:$0xff]  ;;  %v7255_v63 = vpack.c.bf16 %v1489_v16, %v1485_v21  ;;  %v1493_v42 = vld [vmem:[#allocation7 + $0x2c0] sm:$0xff]  ;;  %v7649_v21 = vpack.c.bf16 %v1516_v33, %v1512_v52  ;;  %v7269_v1 = vpack.c.bf16 %v1522_v19, %v1518_v47  ;;  %v1526_v7 = vld [vmem:[#allocation7 + $0x3c8] sm:$0xff] }
 0x3c3   :  { %v7639_v25 = vpack.c.bf16 %v1491_v48, %v1487_v28  ;;  %v1495_v15 = vld [vmem:[#allocation7 + $0x2d0] sm:$0xff]  ;;  %v1513_v16 = vld [vmem:[#allocation7 + $0x360] sm:$0xff]  ;;  %v1530_v31 = vld [vmem:[#allocation7 + $0x3e8] sm:$0xff] }
 0x3c4   :  { %v7273_v32 = vpack.c.bf16 %v1530_v31, %v1526_v7  ;;  %v1540_v19 = vld [vmem:[#allocation7 + $0x438] sm:$0xff]  ;;  %v1546_v31 = vld [vmem:[#allocation7 + $0x468] sm:$0xff] }
 0x3c5   :  { %7628 = vmatpush1.bf16.msra.mxu1 %v7627_v18  ;;  %7248 = vmatpush1.bf16.msra.mxu0 %v7247_v55  ;;  %v1497_v18 = vld [vmem:[#allocation7 + $0x2e0] sm:$0xff] }
 0x3c6   :  { %7630 = vmatprep.subr.bf16.mxu1 %v7629_v53  ;;  %7250 = vmatprep.subr.bf16.mxu0 %v7249_v59  ;;  %v1499_v53 = vld [vmem:[#allocation7 + $0x2f0] sm:$0xff]  ;;  %v7259_v29 = vpack.c.bf16 %v1497_v18, %v1493_v42  ;;  %v1501_v55 = vld [vmem:[#allocation7 + $0x300] sm:$0xff] }
 0x3c7   :  { %v7643_v36 = vpack.c.bf16 %v1499_v53, %v1495_v15  ;;  %v1503_v59 = vld [vmem:[#allocation7 + $0x310] sm:$0xff]  ;;  %v1521_v42 = vld [vmem:[#allocation7 + $0x3a0] sm:$0xff] }
 0x3c8   :  { %v1523_v15 = vld [vmem:[#allocation7 + $0x3b0] sm:$0xff] }
 0x3c9   :  { %7632 = vmatpush1.bf16.msra.mxu1 %v7631_v26  ;;  %7252 = vmatpush1.bf16.msra.mxu0 %v7251_v0  ;;  %v1505_v26 = vld [vmem:[#allocation7 + $0x320] sm:$0xff] }
 0x3ca   :  { %7634 = vmatprep.subr.bf16.mxu1 %v7633_v41  ;;  %7254 = vmatprep.subr.bf16.mxu0 %v7253_v38  ;;  %v1507_v41 = vld [vmem:[#allocation7 + $0x330] sm:$0xff]  ;;  %v7263_v17 = vpack.c.bf16 %v1505_v26, %v1501_v55  ;;  %v1509_v0 = vld [vmem:[#allocation7 + $0x340] sm:$0xff] }
 0x3cb   :  { %v7647_v62 = vpack.c.bf16 %v1507_v41, %v1503_v59  ;;  %v1511_v38 = vld [vmem:[#allocation7 + $0x350] sm:$0xff]  ;;  %v7267_v28 = vpack.c.bf16 %v1513_v16, %v1509_v0  ;;  %v1529_v55 = vld [vmem:[#allocation7 + $0x3e0] sm:$0xff] }
 0x3cc   :  { %v1531_v59 = vld [vmem:[#allocation7 + $0x3f0] sm:$0xff] }
 0x3cd   :  { %7636 = vmatpush1.bf16.msra.mxu1 %v7635_v60  ;;  %7256 = vmatpush1.bf16.msra.mxu0 %v7255_v63  ;;  %v7265_v60 = vpack.c.bf16 %v1514_v14, %v1510_v54  ;;  %v1524_v63 = vld [vmem:[#allocation7 + $0x3b8] sm:$0xff] }
 0x3ce   :  { %7638 = vmatprep.subr.bf16.mxu1 %v7637_v13  ;;  %7258 = vmatprep.subr.bf16.mxu0 %v7257_v46  ;;  %v1515_v13 = vld [vmem:[#allocation7 + $0x370] sm:$0xff]  ;;  %v7653_v18 = vpack.c.bf16 %v1524_v63, %v1520_v39 }
 0x3cf   :  { %v7651_v48 = vpack.c.bf16 %v1515_v13, %v1511_v38 }
 0x3d1   :  { %7640 = vmatpush1.bf16.msra.mxu1 %v7639_v25  ;;  %7260 = vmatpush1.bf16.msra.mxu0 %v7259_v29  ;;  %v1517_v25 = vld [vmem:[#allocation7 + $0x380] sm:$0xff]  ;;  %v1532_v29 = vld [vmem:[#allocation7 + $0x3f8] sm:$0xff] }
 0x3d2   :  { %7642 = vmatprep.subr.bf16.mxu1 %v7641_v6  ;;  %7262 = vmatprep.subr.bf16.mxu0 %v7261_v9  ;;  %v7271_v46 = vpack.c.bf16 %v1521_v42, %v1517_v25  ;;  %v1519_v6 = vld [vmem:[#allocation7 + $0x390] sm:$0xff]  ;;  %v7657_v26 = vpack.c.bf16 %v1532_v29, %v1528_v61  ;;  %v1533_v25 = vld [vmem:[#allocation7 + $0x400] sm:$0xff]  ;;  %v1544_v61 = vld [vmem:[#allocation7 + $0x458] sm:$0xff] }
 0x3d3   :  { %v7655_v53 = vpack.c.bf16 %v1523_v15, %v1519_v6  ;;  %v1537_v42 = vld [vmem:[#allocation7 + $0x420] sm:$0xff]  ;;  %v1535_v6 = vld [vmem:[#allocation7 + $0x410] sm:$0xff] }
 0x3d4   :  { %v1539_v15 = vld [vmem:[#allocation7 + $0x430] sm:$0xff] }
 0x3d5   :  { %7644 = vmatpush1.bf16.msra.mxu1 %v7643_v36  ;;  %7264 = vmatpush1.bf16.msra.mxu0 %v7263_v17  ;;  %v1525_v36 = vld [vmem:[#allocation7 + $0x3c0] sm:$0xff] }
 0x3d6   :  { %7646 = vmatprep.subr.bf16.mxu1 %v7645_v27  ;;  %7266 = vmatprep.subr.bf16.mxu0 %v7265_v60  ;;  %v7275_v9 = vpack.c.bf16 %v1529_v55, %v1525_v36  ;;  %v1527_v27 = vld [vmem:[#allocation7 + $0x3d0] sm:$0xff] }
 0x3d7   :  { %v7659_v41 = vpack.c.bf16 %v1531_v59, %v1527_v27  ;;  %v7279_v27 = vpack.c.bf16 %v1537_v42, %v1533_v25  ;;  %v7663_v59 = vpack.c.bf16 %v1539_v15, %v1535_v6  ;;  %v1553_v25 = vld [vmem:[#allocation7 + $0x4a0] sm:$0xff]  ;;  %v1551_v42 = vld [vmem:[#allocation7 + $0x490] sm:$0xff]  ;;  %v1562_v6 = vld [vmem:[#allocation7 + $0x4e8] sm:$0xff] }
 0x3d9   :  { %7648 = vmatpush1.bf16.msra.mxu1 %v7647_v62  ;;  %7268 = vmatpush1.bf16.msra.mxu0 %v7267_v28 }
 0x3da   :  { %7650 = vmatprep.subr.bf16.mxu1 %v7649_v21  ;;  %7270 = vmatprep.subr.bf16.mxu0 %v7269_v1  ;;  %v9878_v1 = vld [vmem:[#allocation3 + $0x60] sm:$0xff] }
 0x3dd   :  { %7652 = vmatpush1.bf16.msra.mxu1 %v7651_v48  ;;  %7272 = vmatpush1.bf16.msra.mxu0 %v7271_v46  ;;  %v8265_v48 = vpack.i.bf16 %v1217_v40, %v1216_v2 }
 0x3de   :  { %7654 = vmatprep.subr.bf16.mxu1 %v7653_v18  ;;  %7274 = vmatprep.subr.bf16.mxu0 %v7273_v32  ;;  %v1548_v32 = vld [vmem:[#allocation7 + $0x478] sm:$0xff] }
 0x3e1   :  { %7656 = vmatpush1.bf16.msra.mxu1 %v7655_v53  ;;  %7276 = vmatpush1.bf16.msra.mxu0 %v7275_v9  ;;  %v1542_v53 = vld [vmem:[#allocation7 + $0x448] sm:$0xff] }
 0x3e2   :  { %7658 = vmatprep.subr.bf16.mxu1 %v7657_v26 }
 0x3e5   :  { %7660 = vmatpush1.bf16.msra.mxu1 %v7659_v41 }
 0x416   :  { %v8252_v54 = vpop.permute.xlu1 %8251  ;;  %v9840_v14 = vpop.permute.xlu0 %8256 }
 0x417   :  { %v8254_v52 = vunpack.i.h.bf16 %v8252_v54  ;;  %v8253_v33 = vunpack.i.l.bf16 %v8252_v54  ;;  %v8259_v17 = vunpack.i.h.bf16 %v9840_v14  ;;  %v8258_v62 = vunpack.i.l.bf16 %v9840_v14 }
 0x418   :  { %v7281_v14 = vpack.c.bf16 %v1546_v31, %v1542_v53  ;;  %v1564_v31 = vld [vmem:[#allocation7 + $0x4f8] sm:$0xff] }
 0x419   :  { %v1291_v0 = vsel %vm282_vm0, %v8253_v33, %v8254_v52  ;;  %v1290_v60 = vsel %vm282_vm0, %v8259_v17, %v8253_v33  ;;  %v1292_v21 = vsel %vm282_vm0, %v8254_v52, %v8258_v62  ;;  %v7665_v52 = vpack.c.bf16 %v1548_v32, %v1544_v61  ;;  %v1541_v33 = vld [vmem:[#allocation7 + $0x440] sm:$0xff] }
 0x41a   :  { %v1316_v16 = vmax.f32 %v1213_v11, %v1291_v0  ;;  %v1315_v38 = vmax.f32 %v1212_v49, %v1290_v60  ;;  %v9853_v13 = vmax.f32 %v1214_v56, %v1292_v21  ;;  %v1534_v11 = vld [vmem:[#allocation7 + $0x408] sm:$0xff]  ;;  %v1536_v49 = vld [vmem:[#allocation7 + $0x418] sm:$0xff]  ;;  %v1545_v17 = vld [vmem:[#allocation7 + $0x460] sm:$0xff] }
 0x41b   :  { %v1538_v56 = vld [vmem:[#allocation7 + $0x428] sm:$0xff]  ;;  %v7661_v39 = vpack.c.bf16 %v1540_v19, %v1536_v49  ;;  %v1543_v0 = vld [vmem:[#allocation7 + $0x450] sm:$0xff] }
 0x41c   :  { %1341 = vrot.lane.b32.xlu0 %v1315_v38, %s8499_s27  ;;  %v8260_v28 = vpack.i.bf16 %v9853_v13, %v1316_v16  ;;  %v7277_v47 = vpack.c.bf16 %v1538_v56, %v1534_v11  ;;  %v1547_v60 = vld [vmem:[#allocation7 + $0x470] sm:$0xff]  ;;  %v1550_v21 = vld [vmem:[#allocation7 + $0x488] sm:$0xff]  ;;  %v7283_v56 = vpack.c.bf16 %v1545_v17, %v1541_v33  ;;  %v1568_v17 = vld [vmem:[#allocation7 + $0x518] sm:$0xff] }
 0x41d   :  { %7662 = vmatprep.subr.bf16.mxu1 %v7661_v39  ;;  %v1549_v39 = vld [vmem:[#allocation7 + $0x480] sm:$0xff] }
 0x41e   :  { %8261 = vrot.lane.b32.xlu1 %v8260_v28, %s8499_s27  ;;  %7278 = vmatprep.subr.bf16.mxu0 %v7277_v47  ;;  %v1554_v28 = vld [vmem:[#allocation7 + $0x4a8] sm:$0xff] }
 0x41f   :  { %v7285_v19 = vpack.c.bf16 %v1554_v28, %v1550_v21 }
 0x422   :  { %8266 = vrot.lane.b32.xlu1 %v8265_v48, %s8497_s30 }
 0x426   :  { %8276 = vrot.lane.b32.xlu1 %v8275_v30, %s8497_s30 }
 0x42a   :  { %8286 = vrot.lane.b32.xlu1 %v8285_v24, %s8497_s30 }
 0x42e   :  { %8296 = vrot.lane.b32.xlu1 %v8295_v50, %s8497_s30 }
 0x432   :  { %1288 = vrot.lane.b32.xlu1 %v9878_v1, %s8497_s30 }
 0x48e   :  { %v1342_v7 = vpop.permute.xlu0 %1341 }
 0x490   :  { %v9882_v63 = vpop.permute.xlu1 %8261 }
 0x491   :  { %v8264_v18 = vunpack.i.h.bf16 %v9882_v63  ;;  %v8263_v46 = vunpack.i.l.bf16 %v9882_v63 }
 0x493   :  { %v1368_v29 = vsel %vm478_vm2, %v8263_v46, %v8264_v18  ;;  %v1367_v36 = vsel %vm478_vm2, %v1342_v7, %v8263_v46  ;;  %v1560_v7 = vld [vmem:[#allocation7 + $0x4d8] sm:$0xff] }
 0x494   :  { %v8267_v55 = vpop.permute.xlu1 %8266  ;;  %v1393_v26 = vmax.f32 %v1316_v16, %v1368_v29  ;;  %v1392_v9 = vmax.f32 %v1315_v38, %v1367_v36  ;;  %v1552_v16 = vld [vmem:[#allocation7 + $0x498] sm:$0xff]  ;;  %v7287_v36 = vpack.c.bf16 %v1553_v25, %v1549_v39  ;;  %v7673_v4 = vpack.c.bf16 %v1564_v31, %v1560_v7  ;;  %v1573_v7 = vld [vmem:[#allocation7 + $0x540] sm:$0xff]  ;;  %v1579_v31 = vld [vmem:[#allocation7 + $0x570] sm:$0xff] }
 0x495   :  { %v8269_v41 = vunpack.i.h.bf16 %v8267_v55  ;;  %v8268_v54 = vunpack.i.l.bf16 %v8267_v55  ;;  %v1556_v38 = vld [vmem:[#allocation7 + $0x4b8] sm:$0xff] }
 0x496   :  { %2258 = vmatprep.mubr.f32.mxu0 %v1393_v26  ;;  %2755 = vmatprep.mubr.f32.mxu1 %v1393_v26  ;;  %v7669_v46 = vpack.c.bf16 %v1556_v38, %v1552_v16  ;;  %v1576_v25 = vld [vmem:[#allocation7 + $0x558] sm:$0xff] }
 0x497   :  { %v1293_v48 = vsel %vm282_vm0, %v8258_v62, %v8268_v54  ;;  %v1294_v30 = vsel %vm282_vm0, %v8268_v54, %v8269_v41  ;;  %2259 = vmatmul.mubr.f32.vlgmr.msra.gmra.mrb[0].mxu0 %v1392_v9  ;;  %2756 = vmatmul.mubr.f32.vlgmr.msra.gmra.mrb[0].mxu1 %v1392_v9  ;;  %v7667_v62 = vpack.c.bf16 %v1547_v60, %v1543_v0  ;;  %v1566_v54 = vld [vmem:[#allocation7 + $0x508] sm:$0xff]  ;;  %v1572_v0 = vld [vmem:[#allocation7 + $0x538] sm:$0xff] }
 0x498   :  { %v9893_v24 = vmax.f32 %v9806_v34, %v1293_v48  ;;  %v9897_v50 = vmax.f32 %v1216_v2, %v1294_v30  ;;  %v8277_v11 = vpop.permute.xlu1 %8276  ;;  %7280 = vmatpush1.bf16.msra.mxu0 %v7279_v27  ;;  %7664 = vmatpush1.bf16.msra.mxu1 %v7663_v59  ;;  %v1558_v2 = vld [vmem:[#allocation7 + $0x4c8] sm:$0xff]  ;;  %v7671_v9 = vpack.c.bf16 %v1555_v23, %v1551_v42  ;;  %v1557_v59 = vld [vmem:[#allocation7 + $0x4c0] sm:$0xff]  ;;  %v1580_v42 = vld [vmem:[#allocation7 + $0x578] sm:$0xff] }
 0x499   :  { %v8279_v49 = vunpack.i.h.bf16 %v8277_v11  ;;  %v8278_v47 = vunpack.i.l.bf16 %v8277_v11  ;;  %7282 = vmatprep.subr.bf16.mxu0 %v7281_v14  ;;  %7666 = vmatprep.subr.bf16.mxu1 %v7665_v52  ;;  %v7289_v27 = vpack.c.bf16 %v1562_v6, %v1558_v2  ;;  %v1570_v14 = vld [vmem:[#allocation7 + $0x528] sm:$0xff]  ;;  %v7677_v51 = vpack.c.bf16 %v1572_v0, %v1568_v17  ;;  %v1596_v17 = vld [vmem:[#allocation7 + $0x5f8] sm:$0xff] }
 0x49a   :  { %v8270_v34 = vpack.i.bf16 %v9897_v50, %v9893_v24  ;;  %v7293_v11 = vpack.c.bf16 %v1570_v14, %v1566_v54  ;;  %v1587_v54 = vld [vmem:[#allocation7 + $0x5b0] sm:$0xff]  ;;  %v1590_v14 = vld [vmem:[#allocation7 + $0x5c8] sm:$0xff] }
 0x49b   :  { %v1295_v15 = vsel %vm282_vm0, %v8269_v41, %v8278_v47  ;;  %v1296_v53 = vsel %vm282_vm0, %v8278_v47, %v8279_v49  ;;  %v1561_v41 = vld [vmem:[#allocation7 + $0x4e0] sm:$0xff]  ;;  %v1574_v47 = vld [vmem:[#allocation7 + $0x548] sm:$0xff] }
 0x49c   :  { %v9905_v61 = vmax.f32 %v1217_v40, %v1295_v15  ;;  %v9909_v32 = vmax.f32 %v1218_v57, %v1296_v53  ;;  %v8287_v29 = vpop.permute.xlu1 %8286  ;;  %8271 = vrot.lane.b32.xlu0 %v8270_v34, %s8499_s27  ;;  %7284 = vmatpush1.bf16.msra.mxu0 %v7283_v56  ;;  %v1563_v57 = vld [vmem:[#allocation7 + $0x4f0] sm:$0xff]  ;;  %v7291_v48 = vpack.c.bf16 %v1561_v41, %v1557_v59  ;;  %v1565_v56 = vld [vmem:[#allocation7 + $0x500] sm:$0xff] }
 0x49d   :  { %v8289_v55 = vunpack.i.h.bf16 %v8287_v29  ;;  %v8288_v26 = vunpack.i.l.bf16 %v8287_v29  ;;  %7668 = vmatpush1.bf16.msra.mxu1 %v7667_v62  ;;  %7286 = vmatprep.subr.bf16.mxu0 %v7285_v19  ;;  %v7675_v38 = vpack.c.bf16 %v1563_v57, %v1559_v10  ;;  %v1578_v62 = vld [vmem:[#allocation7 + $0x568] sm:$0xff]  ;;  %v1581_v41 = vld [vmem:[#allocation7 + $0x580] sm:$0xff] }
 0x49e   :  { %v8280_v40 = vpack.i.bf16 %v9909_v32, %v9905_v61  ;;  %7670 = vmatprep.subr.bf16.mxu1 %v7669_v46  ;;  %v7297_v53 = vpack.c.bf16 %v1578_v62, %v1574_v47  ;;  %v1582_v29 = vld [vmem:[#allocation7 + $0x588] sm:$0xff]  ;;  %v1585_v10 = vld [vmem:[#allocation7 + $0x5a0] sm:$0xff] }
 0x49f   :  { %v1297_v52 = vsel %vm282_vm0, %v8279_v49, %v8288_v26  ;;  %v1298_v33 = vsel %vm282_vm0, %v8288_v26, %v8289_v55  ;;  %v1569_v49 = vld [vmem:[#allocation7 + $0x520] sm:$0xff]  ;;  %v1588_v26 = vld [vmem:[#allocation7 + $0x5b8] sm:$0xff]  ;;  %v7303_v0 = vpack.c.bf16 %v1585_v10, %v1581_v41 }
 0x4a0   :  { %v9918_v60 = vmax.f32 %v1219_v58, %v1297_v52  ;;  %v9922_v21 = vmax.f32 %v1220_v3, %v1298_v33  ;;  %v8297_v28 = vpop.permute.xlu1 %8296  ;;  %8281 = vrot.lane.b32.xlu0 %v8280_v40, %s8499_s27  ;;  %7288 = vmatpush1.bf16.msra.mxu0 %v7287_v36  ;;  %v1571_v3 = vld [vmem:[#allocation7 + $0x530] sm:$0xff]  ;;  %v7295_v2 = vpack.c.bf16 %v1569_v49, %v1565_v56  ;;  %v1586_v36 = vld [vmem:[#allocation7 + $0x5a8] sm:$0xff]  ;;  %v1592_v33 = vld [vmem:[#allocation7 + $0x5d8] sm:$0xff] }
 0x4a1   :  { %v8299_v30 = vunpack.i.h.bf16 %v8297_v28  ;;  %v8298_v16 = vunpack.i.l.bf16 %v8297_v28  ;;  %7672 = vmatpush1.bf16.msra.mxu1 %v7671_v9  ;;  %7290 = vmatprep.subr.bf16.mxu0 %v7289_v27  ;;  %v7679_v15 = vpack.c.bf16 %v1571_v3, %v1567_v5  ;;  %v7299_v9 = vpack.c.bf16 %v1577_v45, %v1573_v7  ;;  %v1583_v40 = vld [vmem:[#allocation7 + $0x590] sm:$0xff]  ;;  %v1594_v52 = vld [vmem:[#allocation7 + $0x5e8] sm:$0xff]  ;;  %v1600_v49 = vld [vmem:[#allocation7 + $0x618] sm:$0xff] }
 0x4a2   :  { %v8290_v58 = vpack.i.bf16 %v9922_v21, %v9918_v60  ;;  %7674 = vmatprep.subr.bf16.mxu1 %v7673_v4  ;;  %v7301_v59 = vpack.c.bf16 %v1586_v36, %v1582_v29  ;;  %v7687_v28 = vpack.c.bf16 %v1587_v54, %v1583_v40  ;;  %v1602_v56 = vld [vmem:[#allocation7 + $0x628] sm:$0xff]  ;;  %v1604_v5 = vld [vmem:[#allocation7 + $0x638] sm:$0xff]  ;;  %v1597_v47 = vld [vmem:[#allocation7 + $0x600] sm:$0xff] }
 0x4a3   :  { %v1299_v19 = vsel %vm282_vm0, %v8289_v55, %v8298_v16  ;;  %v1300_v39 = vsel %vm282_vm0, %v8298_v16, %v8299_v30  ;;  %v7689_v16 = vpack.c.bf16 %v1596_v17, %v1592_v33  ;;  %v1601_v62 = vld [vmem:[#allocation7 + $0x620] sm:$0xff]  ;;  %v1611_v29 = vld [vmem:[#allocation7 + $0x670] sm:$0xff]  ;;  %v1614_v36 = vld [vmem:[#allocation7 + $0x688] sm:$0xff] }
 0x4a4   :  { %v9931_v34 = vmax.f32 %v1221_v8, %v1299_v19  ;;  %v9935_v46 = vmax.f32 %v1222_v20, %v1300_v39  ;;  %v1289_v23 = vpop.permute.xlu1 %1288  ;;  %8291 = vrot.lane.b32.xlu0 %v8290_v58, %s8499_s27  ;;  %7292 = vmatpush1.bf16.msra.mxu0 %v7291_v48  ;;  %v1575_v8 = vld [vmem:[#allocation7 + $0x550] sm:$0xff]  ;;  %v7681_v20 = vpack.c.bf16 %v1580_v42, %v1576_v25  ;;  %v1606_v42 = vld [vmem:[#allocation7 + $0x648] sm:$0xff]  ;;  %v1613_v41 = vld [vmem:[#allocation7 + $0x680] sm:$0xff] }
 0x4a5   :  { %v9939_v6 = vmax.f32 %v9878_v1, %v1289_v23  ;;  %7676 = vmatpush1.bf16.msra.mxu1 %v7675_v38  ;;  %7294 = vmatprep.subr.bf16.mxu0 %v7293_v11  ;;  %v1301_v55 = vsel %vm282_vm0, %v8299_v30, %v1289_v23  ;;  %v1584_v1 = vld [vmem:[#allocation7 + $0x598] sm:$0xff]  ;;  %v7683_v27 = vpack.c.bf16 %v1579_v31, %v1575_v8  ;;  %v1589_v30 = vld [vmem:[#allocation7 + $0x5c0] sm:$0xff]  ;;  %v1595_v38 = vld [vmem:[#allocation7 + $0x5f0] sm:$0xff] }
 0x4a6   :  { %v8300_v37 = vpack.i.bf16 %v9935_v46, %v9931_v34  ;;  %7678 = vmatprep.subr.bf16.mxu1 %v7677_v51  ;;  %v9949_v4 = vmax.f32 %v1223_v12, %v1301_v55  ;;  %v7685_v57 = vpack.c.bf16 %v1588_v26, %v1584_v1  ;;  %v7305_v48 = vpack.c.bf16 %v1594_v52, %v1590_v14  ;;  %v1591_v12 = vld [vmem:[#allocation7 + $0x5d0] sm:$0xff]  ;;  %v1598_v11 = vld [vmem:[#allocation7 + $0x608] sm:$0xff]  ;;  %v1605_v8 = vld [vmem:[#allocation7 + $0x640] sm:$0xff] }
 0x4a7   :  { %1365 = vrot.lane.b32.xlu1 %v9939_v6, %s8499_s27  ;;  %v7307_v58 = vpack.c.bf16 %v1593_v44, %v1589_v30  ;;  %v7691_v51 = vpack.c.bf16 %v1595_v38, %v1591_v12  ;;  %v7309_v3 = vpack.c.bf16 %v1602_v56, %v1598_v11  ;;  %v1599_v19 = vld [vmem:[#allocation7 + $0x610] sm:$0xff]  ;;  %v7693_v39 = vpack.c.bf16 %v1604_v5, %v1600_v49  ;;  %v1610_v23 = vld [vmem:[#allocation7 + $0x668] sm:$0xff]  ;;  %v1616_v1 = vld [vmem:[#allocation7 + $0x698] sm:$0xff] }
 0x4a8   :  { %8301 = vrot.lane.b32.xlu0 %v8300_v37, %s8499_s27  ;;  %7296 = vmatpush1.bf16.msra.mxu0 %v7295_v2  ;;  %v1603_v25 = vld [vmem:[#allocation7 + $0x630] sm:$0xff]  ;;  %v1608_v2 = vld [vmem:[#allocation7 + $0x658] sm:$0xff]  ;;  %v7313_v45 = vpack.c.bf16 %v1610_v23, %v1606_v42  ;;  %v1609_v37 = vld [vmem:[#allocation7 + $0x660] sm:$0xff] }
 0x4a9   :  { %7680 = vmatpush1.bf16.msra.mxu1 %v7679_v15  ;;  %7298 = vmatprep.subr.bf16.mxu0 %v7297_v53  ;;  %v1612_v15 = vld [vmem:[#allocation7 + $0x678] sm:$0xff]  ;;  %v7311_v53 = vpack.c.bf16 %v1601_v62, %v1597_v47  ;;  %v7695_v7 = vpack.c.bf16 %v1603_v25, %v1599_v19  ;;  %v1618_v55 = vld [vmem:[#allocation7 + $0x6a8] sm:$0xff]  ;;  %v1617_v10 = vld [vmem:[#allocation7 + $0x6a0] sm:$0xff] }
 0x4aa   :  { %7682 = vmatprep.subr.bf16.mxu1 %v7681_v20  ;;  %v1607_v20 = vld [vmem:[#allocation7 + $0x650] sm:$0xff]  ;;  %v7697_v31 = vpack.c.bf16 %v1612_v15, %v1608_v2  ;;  %v1620_v26 = vld [vmem:[#allocation7 + $0x6b8] sm:$0xff]  ;;  %v1622_v14 = vld [vmem:[#allocation7 + $0x6c8] sm:$0xff] }
 0x4ab   :  { %v1615_v40 = vld [vmem:[#allocation7 + $0x690] sm:$0xff]  ;;  %v1626_v52 = vld [vmem:[#allocation7 + $0x6e8] sm:$0xff]  ;;  %v1624_v33 = vld [vmem:[#allocation7 + $0x6d8] sm:$0xff] }
 0x4ac   :  { %1363 = vrot.lane.b32.xlu0 %v9949_v4, %s8499_s27  ;;  %7300 = vmatpush1.bf16.msra.mxu0 %v7299_v9  ;;  %v7315_v9 = vpack.c.bf16 %v1609_v37, %v1605_v8  ;;  %v1619_v54 = vld [vmem:[#allocation7 + $0x6b0] sm:$0xff]  ;;  %v1628_v17 = vld [vmem:[#allocation7 + $0x6f8] sm:$0xff]  ;;  %v1621_v30 = vld [vmem:[#allocation7 + $0x6c0] sm:$0xff]  ;;  %s8516_s27 = smov 110  }
 0x4ad   :  { %7684 = vmatpush1.bf16.msra.mxu1 %v7683_v27  ;;  %7302 = vmatprep.subr.bf16.mxu0 %v7301_v59  ;;  %v7699_v27 = vpack.c.bf16 %v1611_v29, %v1607_v20  ;;  %v7317_v59 = vpack.c.bf16 %v1618_v55, %v1614_v36  ;;  %v1625_v44 = vld [vmem:[#allocation7 + $0x6e0] sm:$0xff]  ;;  %v1623_v12 = vld [vmem:[#allocation7 + $0x6d0] sm:$0xff]  ;;  %v1630_v11 = vld [vmem:[#allocation7 + $0x708] sm:$0xff] }
 0x4ae   :  { %7686 = vmatprep.subr.bf16.mxu1 %v7685_v57  ;;  %v7701_v57 = vpack.c.bf16 %v1620_v26, %v1616_v1  ;;  %v1627_v38 = vld [vmem:[#allocation7 + $0x6f0] sm:$0xff]  ;;  %v1634_v56 = vld [vmem:[#allocation7 + $0x728] sm:$0xff]  ;;  %v1632_v49 = vld [vmem:[#allocation7 + $0x718] sm:$0xff] }
 0x4af   :  { %v1636_v5 = vld [vmem:[#allocation7 + $0x738] sm:$0xff]  ;;  %v1629_v47 = vld [vmem:[#allocation7 + $0x700] sm:$0xff]  ;;  %v1631_v19 = vld [vmem:[#allocation7 + $0x710] sm:$0xff] }
 0x4b0   :  { %7304 = vmatpush1.bf16.msra.mxu0 %v7303_v0  ;;  %v7319_v0 = vpack.c.bf16 %v1617_v10, %v1613_v41  ;;  %v1633_v62 = vld [vmem:[#allocation7 + $0x720] sm:$0xff]  ;;  %v1635_v25 = vld [vmem:[#allocation7 + $0x730] sm:$0xff]  ;;  %v1638_v42 = vld [vmem:[#allocation7 + $0x748] sm:$0xff] }
 0x4b1   :  { %7688 = vmatpush1.bf16.msra.mxu1 %v7687_v28  ;;  %7306 = vmatprep.subr.bf16.mxu0 %v7305_v48  ;;  %v7703_v28 = vpack.c.bf16 %v1619_v54, %v1615_v40  ;;  %v7321_v48 = vpack.c.bf16 %v1626_v52, %v1622_v14  ;;  %v1642_v23 = vld [vmem:[#allocation7 + $0x768] sm:$0xff]  ;;  %v1640_v2 = vld [vmem:[#allocation7 + $0x758] sm:$0xff]  ;;  %v1637_v8 = vld [vmem:[#allocation7 + $0x740] sm:$0xff] }
 0x4b2   :  { %7690 = vmatprep.subr.bf16.mxu1 %v7689_v16  ;;  %v7705_v16 = vpack.c.bf16 %v1628_v17, %v1624_v33  ;;  %v1644_v15 = vld [vmem:[#allocation7 + $0x778] sm:$0xff]  ;;  %v1641_v37 = vld [vmem:[#allocation7 + $0x760] sm:$0xff]  ;;  %v1639_v20 = vld [vmem:[#allocation7 + $0x750] sm:$0xff] }
 0x4b3   :  { %v1643_v29 = vld [vmem:[#allocation7 + $0x770] sm:$0xff]  ;;  %v1646_v36 = vld [vmem:[#allocation7 + $0x788] sm:$0xff]  ;;  %v1648_v1 = vld [vmem:[#allocation7 + $0x798] sm:$0xff] }
 0x4b4   :  { %7308 = vmatpush1.bf16.msra.mxu0 %v7307_v58  ;;  %v7323_v58 = vpack.c.bf16 %v1625_v44, %v1621_v30  ;;  %v1650_v55 = vld [vmem:[#allocation7 + $0x7a8] sm:$0xff]  ;;  %v1652_v26 = vld [vmem:[#allocation7 + $0x7b8] sm:$0xff]  ;;  %v1645_v41 = vld [vmem:[#allocation7 + $0x780] sm:$0xff] }
 0x4b5   :  { %7692 = vmatpush1.bf16.msra.mxu1 %v7691_v51  ;;  %7310 = vmatprep.subr.bf16.mxu0 %v7309_v3  ;;  %v7707_v51 = vpack.c.bf16 %v1627_v38, %v1623_v12  ;;  %v7325_v3 = vpack.c.bf16 %v1634_v56, %v1630_v11  ;;  %v1649_v10 = vld [vmem:[#allocation7 + $0x7a0] sm:$0xff]  ;;  %v1647_v40 = vld [vmem:[#allocation7 + $0x790] sm:$0xff]  ;;  %v1654_v14 = vld [vmem:[#allocation7 + $0x7c8] sm:$0xff] }
 0x4b6   :  { %7694 = vmatprep.subr.bf16.mxu1 %v7693_v39  ;;  %v7709_v39 = vpack.c.bf16 %v1636_v5, %v1632_v49  ;;  %v1651_v54 = vld [vmem:[#allocation7 + $0x7b0] sm:$0xff]  ;;  %v1658_v52 = vld [vmem:[#allocation7 + $0x7e8] sm:$0xff]  ;;  %v1656_v33 = vld [vmem:[#allocation7 + $0x7d8] sm:$0xff] }
 0x4b7   :  { %v1660_v17 = vld [vmem:[#allocation7 + $0x7f8] sm:$0xff]  ;;  %v1653_v30 = vld [vmem:[#allocation7 + $0x7c0] sm:$0xff]  ;;  %v1655_v12 = vld [vmem:[#allocation7 + $0x7d0] sm:$0xff] }
 0x4b8   :  { %7312 = vmatpush1.bf16.msra.mxu0 %v7311_v53  ;;  %v7327_v53 = vpack.c.bf16 %v1633_v62, %v1629_v47  ;;  %v1657_v44 = vld [vmem:[#allocation7 + $0x7e0] sm:$0xff]  ;;  %v1659_v38 = vld [vmem:[#allocation7 + $0x7f0] sm:$0xff]  ;;  %v1662_v11 = vld [vmem:[#allocation7 + $0x808] sm:$0xff] }
 0x4b9   :  { %7696 = vmatpush1.bf16.msra.mxu1 %v7695_v7  ;;  %7314 = vmatprep.subr.bf16.mxu0 %v7313_v45  ;;  %v7711_v7 = vpack.c.bf16 %v1635_v25, %v1631_v19  ;;  %v7329_v45 = vpack.c.bf16 %v1642_v23, %v1638_v42  ;;  %v1666_v56 = vld [vmem:[#allocation7 + $0x828] sm:$0xff]  ;;  %v1664_v49 = vld [vmem:[#allocation7 + $0x818] sm:$0xff]  ;;  %v1661_v19 = vld [vmem:[#allocation7 + $0x800] sm:$0xff] }
 0x4ba   :  { %7698 = vmatprep.subr.bf16.mxu1 %v7697_v31  ;;  %v7713_v31 = vpack.c.bf16 %v1644_v15, %v1640_v2  ;;  %v1668_v5 = vld [vmem:[#allocation7 + $0x838] sm:$0xff]  ;;  %v1663_v23 = vld [vmem:[#allocation7 + $0x810] sm:$0xff]  ;;  %v1670_v15 = vld [vmem:[#allocation7 + $0x848] sm:$0xff] }
 0x4bb   :  { %v7725_v47 = vpack.c.bf16 %v1668_v5, %v1664_v49  ;;  %v1667_v2 = vld [vmem:[#allocation7 + $0x830] sm:$0xff] }
 0x4bc   :  { %7316 = vmatpush1.bf16.msra.mxu0 %v7315_v9  ;;  %v7331_v9 = vpack.c.bf16 %v1641_v37, %v1637_v8 }
 0x4bd   :  { %7700 = vmatpush1.bf16.msra.mxu1 %v7699_v27  ;;  %7318 = vmatprep.subr.bf16.mxu0 %v7317_v59  ;;  %v7715_v27 = vpack.c.bf16 %v1643_v29, %v1639_v20  ;;  %v7333_v59 = vpack.c.bf16 %v1650_v55, %v1646_v36  ;;  %v7727_v55 = vpack.c.bf16 %v1667_v2, %v1663_v23  ;;  %v1698_v23 = vld [vmem:[#allocation7 + $0x928] sm:$0xff]  ;;  %v1696_v2 = vld [vmem:[#allocation7 + $0x918] sm:$0xff] }
 0x4be   :  { %7702 = vmatprep.subr.bf16.mxu1 %v7701_v57  ;;  %v7717_v57 = vpack.c.bf16 %v1652_v26, %v1648_v1  ;;  %v1669_v1 = vld [vmem:[#allocation7 + $0x840] sm:$0xff] }
 0x4bf   :  { %v1673_v26 = vld [vmem:[#allocation7 + $0x860] sm:$0xff] }
 0x4c0   :  { %7320 = vmatpush1.bf16.msra.mxu0 %v7319_v0  ;;  %v7335_v0 = vpack.c.bf16 %v1649_v10, %v1645_v41  ;;  %v1675_v41 = vld [vmem:[#allocation7 + $0x870] sm:$0xff]  ;;  %v1678_v10 = vld [vmem:[#allocation7 + $0x888] sm:$0xff] }
 0x4c1   :  { %7704 = vmatpush1.bf16.msra.mxu1 %v7703_v28  ;;  %7322 = vmatprep.subr.bf16.mxu0 %v7321_v48  ;;  %v7719_v28 = vpack.c.bf16 %v1651_v54, %v1647_v40  ;;  %v7337_v48 = vpack.c.bf16 %v1658_v52, %v1654_v14  ;;  %v1680_v40 = vld [vmem:[#allocation7 + $0x898] sm:$0xff]  ;;  %v7347_v52 = vpack.c.bf16 %v1673_v26, %v1669_v1  ;;  %v1706_v1 = vld [vmem:[#allocation7 + $0x968] sm:$0xff] }
 0x4c2   :  { %7706 = vmatprep.subr.bf16.mxu1 %v7705_v16  ;;  %v7721_v16 = vpack.c.bf16 %v1660_v17, %v1656_v33  ;;  %v1677_v17 = vld [vmem:[#allocation7 + $0x880] sm:$0xff]  ;;  %v1704_v26 = vld [vmem:[#allocation7 + $0x958] sm:$0xff] }
 0x4c4   :  { %7324 = vmatpush1.bf16.msra.mxu0 %v7323_v58  ;;  %v7339_v58 = vpack.c.bf16 %v1657_v44, %v1653_v30  ;;  %v1679_v44 = vld [vmem:[#allocation7 + $0x890] sm:$0xff] }
 0x4c5   :  { %7708 = vmatpush1.bf16.msra.mxu1 %v7707_v51  ;;  %7326 = vmatprep.subr.bf16.mxu0 %v7325_v3  ;;  %v7723_v51 = vpack.c.bf16 %v1659_v38, %v1655_v12  ;;  %v7341_v3 = vpack.c.bf16 %v1666_v56, %v1662_v11  ;;  %v1683_v12 = vld [vmem:[#allocation7 + $0x8b0] sm:$0xff]  ;;  %v1690_v38 = vld [vmem:[#allocation7 + $0x8e8] sm:$0xff]  ;;  %v1688_v11 = vld [vmem:[#allocation7 + $0x8d8] sm:$0xff] }
 0x4c6   :  { %7710 = vmatprep.subr.bf16.mxu1 %v7709_v39  ;;  %v1665_v39 = vld [vmem:[#allocation7 + $0x820] sm:$0xff]  ;;  %v1692_v56 = vld [vmem:[#allocation7 + $0x8f8] sm:$0xff]  ;;  %v7735_v5 = vpack.c.bf16 %v1683_v12, %v1679_v44 }
 0x4c7   :  { %v7343_v36 = vpack.c.bf16 %v1665_v39, %v1661_v19  ;;  %v1687_v19 = vld [vmem:[#allocation7 + $0x8d0] sm:$0xff] }
 0x4c8   :  { %7328 = vmatpush1.bf16.msra.mxu0 %v7327_v53  ;;  %v1674_v53 = vld [vmem:[#allocation7 + $0x868] sm:$0xff]  ;;  %v1691_v39 = vld [vmem:[#allocation7 + $0x8f0] sm:$0xff] }
 0x4c9   :  { %7712 = vmatpush1.bf16.msra.mxu1 %v7711_v7  ;;  %7330 = vmatprep.subr.bf16.mxu0 %v7329_v45  ;;  %v1672_v7 = vld [vmem:[#allocation7 + $0x858] sm:$0xff] }
 0x4ca   :  { %7714 = vmatprep.subr.bf16.mxu1 %v7713_v31  ;;  %v1676_v45 = vld [vmem:[#allocation7 + $0x878] sm:$0xff] }
 0x4cc   :  { %7332 = vmatpush1.bf16.msra.mxu0 %v7331_v9 }
 0x4cd   :  { %7716 = vmatpush1.bf16.msra.mxu1 %v7715_v27  ;;  %7334 = vmatprep.subr.bf16.mxu0 %v7333_v59  ;;  %v7345_v27 = vpack.c.bf16 %v1674_v53, %v1670_v15  ;;  %v1671_v59 = vld [vmem:[#allocation7 + $0x850] sm:$0xff]  ;;  %v1700_v15 = vld [vmem:[#allocation7 + $0x938] sm:$0xff] }
 0x4ce   :  { %7718 = vmatprep.subr.bf16.mxu1 %v7717_v57  ;;  %v1684_v57 = vld [vmem:[#allocation7 + $0x8b8] sm:$0xff]  ;;  %v7731_v33 = vpack.c.bf16 %v1675_v41, %v1671_v59  ;;  %v1701_v59 = vld [vmem:[#allocation7 + $0x940] sm:$0xff] }
 0x4cf   :  { %v7733_v30 = vpack.c.bf16 %v1684_v57, %v1680_v40  ;;  %v1705_v41 = vld [vmem:[#allocation7 + $0x960] sm:$0xff]  ;;  %v1703_v40 = vld [vmem:[#allocation7 + $0x950] sm:$0xff] }
 0x4d0   :  { %7336 = vmatpush1.bf16.msra.mxu0 %v7335_v0  ;;  %v1681_v0 = vld [vmem:[#allocation7 + $0x8a0] sm:$0xff]  ;;  %v1707_v57 = vld [vmem:[#allocation7 + $0x970] sm:$0xff] }
 0x4d1   :  { %7720 = vmatpush1.bf16.msra.mxu1 %v7719_v28  ;;  %7338 = vmatprep.subr.bf16.mxu0 %v7337_v48  ;;  %v7351_v49 = vpack.c.bf16 %v1681_v0, %v1677_v17  ;;  %v7363_v17 = vpack.c.bf16 %v1705_v41, %v1701_v59  ;;  %v7747_v0 = vpack.c.bf16 %v1707_v57, %v1703_v40 }
 0x4d2   :  { %7722 = vmatprep.subr.bf16.mxu1 %v7721_v16  ;;  %v1686_v16 = vld [vmem:[#allocation7 + $0x8c8] sm:$0xff] }
 0x4d4   :  { %7340 = vmatpush1.bf16.msra.mxu0 %v7339_v58  ;;  %v1685_v58 = vld [vmem:[#allocation7 + $0x8c0] sm:$0xff] }
 0x4d5   :  { %7724 = vmatpush1.bf16.msra.mxu1 %v7723_v51  ;;  %7342 = vmatprep.subr.bf16.mxu0 %v7341_v3  ;;  %v1689_v51 = vld [vmem:[#allocation7 + $0x8e0] sm:$0xff]  ;;  %v7353_v3 = vpack.c.bf16 %v1690_v38, %v1686_v16  ;;  %v1711_v16 = vld [vmem:[#allocation7 + $0x990] sm:$0xff] }
 0x4d6   :  { %7726 = vmatprep.subr.bf16.mxu1 %v7725_v47  ;;  %v7737_v47 = vpack.c.bf16 %v1692_v56, %v1688_v11  ;;  %v7355_v53 = vpack.c.bf16 %v1689_v51, %v1685_v58  ;;  %v1715_v38 = vld [vmem:[#allocation7 + $0x9b0] sm:$0xff]  ;;  %v1718_v11 = vld [vmem:[#allocation7 + $0x9c8] sm:$0xff] }
 0x4d7   :  { %v1722_v56 = vld [vmem:[#allocation7 + $0x9e8] sm:$0xff]  ;;  %v7751_v51 = vpack.c.bf16 %v1715_v38, %v1711_v16 }
 0x50e   :  { %v9953_v62 = vpop.permute.xlu0 %8271 }
 0x50f   :  { %v8274_v25 = vunpack.i.h.bf16 %v9953_v62  ;;  %v8273_v42 = vunpack.i.l.bf16 %v9953_v62 }
 0x511   :  { %v1369_v8 = vsel %vm478_vm2, %v8264_v18, %v8273_v42  ;;  %v1370_v37 = vsel %vm478_vm2, %v8273_v42, %v8274_v25  ;;  %v7729_v18 = vpack.c.bf16 %v1676_v45, %v1672_v7  ;;  %v1694_v42 = vld [vmem:[#allocation7 + $0x908] sm:$0xff]  ;;  %v7739_v7 = vpack.c.bf16 %v1691_v39, %v1687_v19  ;;  %v1693_v45 = vld [vmem:[#allocation7 + $0x900] sm:$0xff] }
 0x512   :  { %v1394_v20 = vmax.f32 %v9853_v13, %v1369_v8  ;;  %v9964_v31 = vpop.permute.xlu0 %8281  ;;  %v1395_v29 = vmax.f32 %v9893_v24, %v1370_v37  ;;  %v1682_v13 = vld [vmem:[#allocation7 + $0x8a8] sm:$0xff]  ;;  %v1697_v8 = vld [vmem:[#allocation7 + $0x920] sm:$0xff]  ;;  %v7357_v37 = vpack.c.bf16 %v1698_v23, %v1694_v42  ;;  %v7369_v19 = vpack.c.bf16 %v1722_v56, %v1718_v11  ;;  %v1719_v42 = vld [vmem:[#allocation7 + $0x9d0] sm:$0xff] }
 0x513   :  { %v8284_v9 = vunpack.i.h.bf16 %v9964_v31  ;;  %v8283_v63 = vunpack.i.l.bf16 %v9964_v31  ;;  %v7349_v48 = vpack.c.bf16 %v1682_v13, %v1678_v10  ;;  %v1723_v23 = vld [vmem:[#allocation7 + $0x9f0] sm:$0xff] }
 0x514   :  { %2329 = vmatprep.mubr.f32.mxu0 %v1395_v29  ;;  %2826 = vmatprep.mubr.f32.mxu1 %v1395_v29  ;;  %v1695_v29 = vld [vmem:[#allocation7 + $0x910] sm:$0xff] }
 0x515   :  { %2330 = vmatmul.mubr.f32.vlgmr.msra.gmra.mrb[0].mxu0 %v1394_v20  ;;  %2827 = vmatmul.mubr.f32.vlgmr.msra.gmra.mrb[0].mxu1 %v1394_v20  ;;  %v1372_v24 = vsel %vm478_vm2, %v8283_v63, %v8284_v9  ;;  %v7741_v20 = vpack.c.bf16 %v1700_v15, %v1696_v2  ;;  %v1726_v2 = vld [vmem:[#allocation7 + $0xa08] sm:$0xff]  ;;  %v1743_v11 = vld [vmem:[#allocation7 + $0xa90] sm:$0xff] }
 0x516   :  { %7344 = vmatpush1.bf16.msra.mxu0 %v7343_v36  ;;  %7728 = vmatpush1.bf16.msra.mxu1 %v7727_v55  ;;  %v9972_v54 = vpop.permute.xlu0 %8291  ;;  %v1397_v14 = vmax.f32 %v9905_v61, %v1372_v24  ;;  %v1699_v36 = vld [vmem:[#allocation7 + $0x930] sm:$0xff]  ;;  %v1702_v55 = vld [vmem:[#allocation7 + $0x948] sm:$0xff] }
 0x517   :  { %v8293_v28 = vunpack.i.l.bf16 %v9972_v54  ;;  %7346 = vmatprep.subr.bf16.mxu0 %v7345_v27  ;;  %7730 = vmatprep.subr.bf16.mxu1 %v7729_v18  ;;  %v7359_v27 = vpack.c.bf16 %v1697_v8, %v1693_v45  ;;  %v7743_v18 = vpack.c.bf16 %v1699_v36, %v1695_v29  ;;  %v7361_v10 = vpack.c.bf16 %v1706_v1, %v1702_v55  ;;  %v1710_v24 = vld [vmem:[#allocation7 + $0x988] sm:$0xff]  ;;  %v1727_v55 = vld [vmem:[#allocation7 + $0xa10] sm:$0xff] }
 0x518   :  { %2400 = vmatprep.mubr.f32.mxu0 %v1397_v14  ;;  %2897 = vmatprep.mubr.f32.mxu1 %v1397_v14  ;;  %v1714_v14 = vld [vmem:[#allocation7 + $0x9a8] sm:$0xff]  ;;  %v7755_v8 = vpack.c.bf16 %v1723_v23, %v1719_v42  ;;  %v1731_v1 = vld [vmem:[#allocation7 + $0xa30] sm:$0xff] }
 0x519   :  { %v9979_v61 = vsel %vm478_vm2, %v8284_v9, %v8293_v28  ;;  %v1708_v9 = vld [vmem:[#allocation7 + $0x978] sm:$0xff]  ;;  %v7365_v44 = vpack.c.bf16 %v1714_v14, %v1710_v24  ;;  %v1730_v15 = vld [vmem:[#allocation7 + $0xa28] sm:$0xff]  ;;  %v7759_v41 = vpack.c.bf16 %v1731_v1, %v1727_v55  ;;  %v1735_v24 = vld [vmem:[#allocation7 + $0xa50] sm:$0xff] }
 0x51a   :  { %7348 = vmatpush1.bf16.msra.mxu0 %v7347_v52  ;;  %7732 = vmatpush1.bf16.msra.mxu1 %v7731_v33  ;;  %v7745_v13 = vpack.c.bf16 %v1708_v9, %v1704_v26  ;;  %v1712_v52 = vld [vmem:[#allocation7 + $0x998] sm:$0xff]  ;;  %v7373_v29 = vpack.c.bf16 %v1730_v15, %v1726_v2  ;;  %v1734_v26 = vld [vmem:[#allocation7 + $0xa48] sm:$0xff]  ;;  %v1739_v14 = vld [vmem:[#allocation7 + $0xa70] sm:$0xff] }
 0x51b   :  { %7350 = vmatprep.subr.bf16.mxu0 %v7349_v48  ;;  %7734 = vmatprep.subr.bf16.mxu1 %v7733_v30  ;;  %v1716_v33 = vld [vmem:[#allocation7 + $0x9b8] sm:$0xff]  ;;  %v1709_v48 = vld [vmem:[#allocation7 + $0x980] sm:$0xff]  ;;  %v1738_v9 = vld [vmem:[#allocation7 + $0xa68] sm:$0xff] }
 0x51c   :  { %v1713_v30 = vld [vmem:[#allocation7 + $0x9a0] sm:$0xff]  ;;  %v7749_v12 = vpack.c.bf16 %v1716_v33, %v1712_v52  ;;  %v7377_v40 = vpack.c.bf16 %v1738_v9, %v1734_v26  ;;  %v1742_v52 = vld [vmem:[#allocation7 + $0xa88] sm:$0xff]  ;;  %v1747_v56 = vld [vmem:[#allocation7 + $0xab0] sm:$0xff] }
 0x51d   :  { %v7367_v58 = vpack.c.bf16 %v1713_v30, %v1709_v48  ;;  %v1746_v33 = vld [vmem:[#allocation7 + $0xaa8] sm:$0xff]  ;;  %v7763_v30 = vpack.c.bf16 %v1739_v14, %v1735_v24  ;;  %v1751_v2 = vld [vmem:[#allocation7 + $0xad0] sm:$0xff] }
 0x51e   :  { %7352 = vmatpush1.bf16.msra.mxu0 %v7351_v49  ;;  %7736 = vmatpush1.bf16.msra.mxu1 %v7735_v5  ;;  %v1720_v49 = vld [vmem:[#allocation7 + $0x9d8] sm:$0xff]  ;;  %v7381_v16 = vpack.c.bf16 %v1746_v33, %v1742_v52  ;;  %v1755_v15 = vld [vmem:[#allocation7 + $0xaf0] sm:$0xff] }
 0x51f   :  { %7354 = vmatprep.subr.bf16.mxu0 %v7353_v3  ;;  %7738 = vmatprep.subr.bf16.mxu1 %v7737_v47  ;;  %v1724_v5 = vld [vmem:[#allocation7 + $0x9f8] sm:$0xff]  ;;  %v1717_v3 = vld [vmem:[#allocation7 + $0x9c0] sm:$0xff]  ;;  %v1759_v26 = vld [vmem:[#allocation7 + $0xb10] sm:$0xff] }
 0x520   :  { %v1721_v47 = vld [vmem:[#allocation7 + $0x9e0] sm:$0xff]  ;;  %v7753_v39 = vpack.c.bf16 %v1724_v5, %v1720_v49  ;;  %v1750_v49 = vld [vmem:[#allocation7 + $0xac8] sm:$0xff]  ;;  %v1763_v9 = vld [vmem:[#allocation7 + $0xb30] sm:$0xff] }
 0x521   :  { %v7371_v45 = vpack.c.bf16 %v1721_v47, %v1717_v3  ;;  %v1754_v5 = vld [vmem:[#allocation7 + $0xae8] sm:$0xff]  ;;  %v7767_v47 = vpack.c.bf16 %v1747_v56, %v1743_v11  ;;  %v1767_v52 = vld [vmem:[#allocation7 + $0xb50] sm:$0xff] }
 0x522   :  { %7356 = vmatpush1.bf16.msra.mxu0 %v7355_v53  ;;  %7740 = vmatpush1.bf16.msra.mxu1 %v7739_v7  ;;  %v1728_v53 = vld [vmem:[#allocation7 + $0xa18] sm:$0xff]  ;;  %v7385_v42 = vpack.c.bf16 %v1754_v5, %v1750_v49  ;;  %v1771_v33 = vld [vmem:[#allocation7 + $0xb70] sm:$0xff] }
 0x523   :  { %7358 = vmatprep.subr.bf16.mxu0 %v7357_v37  ;;  %7742 = vmatprep.subr.bf16.mxu1 %v7741_v20  ;;  %v1732_v7 = vld [vmem:[#allocation7 + $0xa38] sm:$0xff]  ;;  %v1725_v37 = vld [vmem:[#allocation7 + $0xa00] sm:$0xff]  ;;  %v1775_v49 = vld [vmem:[#allocation7 + $0xb90] sm:$0xff] }
 0x524   :  { %v1729_v20 = vld [vmem:[#allocation7 + $0xa20] sm:$0xff]  ;;  %v7757_v36 = vpack.c.bf16 %v1732_v7, %v1728_v53  ;;  %v1758_v53 = vld [vmem:[#allocation7 + $0xb08] sm:$0xff]  ;;  %v1779_v5 = vld [vmem:[#allocation7 + $0xbb0] sm:$0xff] }
 0x525   :  { %v7375_v59 = vpack.c.bf16 %v1729_v20, %v1725_v37  ;;  %v1762_v7 = vld [vmem:[#allocation7 + $0xb28] sm:$0xff]  ;;  %v7771_v20 = vpack.c.bf16 %v1755_v15, %v1751_v2 }
 0x526   :  { %7360 = vmatpush1.bf16.msra.mxu0 %v7359_v27  ;;  %7744 = vmatpush1.bf16.msra.mxu1 %v7743_v18  ;;  %v1736_v27 = vld [vmem:[#allocation7 + $0xa58] sm:$0xff]  ;;  %v7389_v55 = vpack.c.bf16 %v1762_v7, %v1758_v53  ;;  %v1783_v53 = vld [vmem:[#allocation7 + $0xbd0] sm:$0xff] }
 0x527   :  { %7362 = vmatprep.subr.bf16.mxu0 %v7361_v10  ;;  %7746 = vmatprep.subr.bf16.mxu1 %v7745_v13  ;;  %v1740_v18 = vld [vmem:[#allocation7 + $0xa78] sm:$0xff]  ;;  %v1733_v10 = vld [vmem:[#allocation7 + $0xa40] sm:$0xff]  ;;  %v1787_v7 = vld [vmem:[#allocation7 + $0xbf0] sm:$0xff] }
 0x528   :  { %v1737_v13 = vld [vmem:[#allocation7 + $0xa60] sm:$0xff]  ;;  %v7761_v57 = vpack.c.bf16 %v1740_v18, %v1736_v27  ;;  %v1766_v27 = vld [vmem:[#allocation7 + $0xb48] sm:$0xff] }
 0x529   :  { %v7379_v48 = vpack.c.bf16 %v1737_v13, %v1733_v10  ;;  %v1770_v18 = vld [vmem:[#allocation7 + $0xb68] sm:$0xff]  ;;  %v7775_v13 = vpack.c.bf16 %v1763_v9, %v1759_v26  ;;  %v1789_v9 = vld [vmem:[#allocation7 + $0xc00] sm:$0xff] }
 0x52a   :  { %7364 = vmatpush1.bf16.msra.mxu0 %v7363_v17  ;;  %7748 = vmatpush1.bf16.msra.mxu1 %v7747_v0  ;;  %v1744_v17 = vld [vmem:[#allocation7 + $0xa98] sm:$0xff]  ;;  %v7393_v24 = vpack.c.bf16 %v1770_v18, %v1766_v27  ;;  %v1793_v27 = vld [vmem:[#allocation7 + $0xc20] sm:$0xff]  ;;  %v1371_v18 = vsel %vm478_vm2, %v8274_v25, %v8283_v63 }
 0x52b   :  { %7366 = vmatprep.subr.bf16.mxu0 %v7365_v44  ;;  %7750 = vmatprep.subr.bf16.mxu1 %v7749_v12  ;;  %v1748_v0 = vld [vmem:[#allocation7 + $0xab8] sm:$0xff]  ;;  %v1741_v44 = vld [vmem:[#allocation7 + $0xa80] sm:$0xff]  ;;  %v1396_v31 = vmax.f32 %v9897_v50, %v1371_v18 }
 0x52c   :  { %v1745_v12 = vld [vmem:[#allocation7 + $0xaa0] sm:$0xff]  ;;  %v7765_v38 = vpack.c.bf16 %v1748_v0, %v1744_v17  ;;  %v1774_v17 = vld [vmem:[#allocation7 + $0xb88] sm:$0xff] }
 0x52d   :  { %v7383_v3 = vpack.c.bf16 %v1745_v12, %v1741_v44  ;;  %v1778_v0 = vld [vmem:[#allocation7 + $0xba8] sm:$0xff]  ;;  %v7779_v12 = vpack.c.bf16 %v1771_v33, %v1767_v52  ;;  %v1797_v25 = vld [vmem:[#allocation7 + $0xc40] sm:$0xff]  ;;  %v1799_v52 = vld [vmem:[#allocation7 + $0xc50] sm:$0xff] }
 0x52e   :  { %7368 = vmatpush1.bf16.msra.mxu0 %v7367_v58  ;;  %7752 = vmatpush1.bf16.msra.mxu1 %v7751_v51  ;;  %v1752_v58 = vld [vmem:[#allocation7 + $0xad8] sm:$0xff]  ;;  %v7397_v11 = vpack.c.bf16 %v1778_v0, %v1774_v17  ;;  %v1801_v63 = vld [vmem:[#allocation7 + $0xc60] sm:$0xff] }
 0x52f   :  { %7370 = vmatprep.subr.bf16.mxu0 %v7369_v19  ;;  %7754 = vmatprep.subr.bf16.mxu1 %v7753_v39  ;;  %v1756_v51 = vld [vmem:[#allocation7 + $0xaf8] sm:$0xff]  ;;  %v1749_v19 = vld [vmem:[#allocation7 + $0xac0] sm:$0xff]  ;;  %v7411_v50 = vpack.c.bf16 %v1801_v63, %v1797_v25  ;;  %v1831_v25 = vld [vmem:[#allocation7 + $0xd50] sm:$0xff] }
 0x530   :  { %v1753_v39 = vld [vmem:[#allocation7 + $0xae0] sm:$0xff]  ;;  %v7769_v23 = vpack.c.bf16 %v1756_v51, %v1752_v58  ;;  %v1782_v58 = vld [vmem:[#allocation7 + $0xbc8] sm:$0xff] }
 0x531   :  { %v7387_v37 = vpack.c.bf16 %v1753_v39, %v1749_v19  ;;  %v1786_v51 = vld [vmem:[#allocation7 + $0xbe8] sm:$0xff]  ;;  %v7783_v39 = vpack.c.bf16 %v1779_v5, %v1775_v49  ;;  %v1807_v49 = vld [vmem:[#allocation7 + $0xc90] sm:$0xff] }
 0x532   :  { %7372 = vmatpush1.bf16.msra.mxu0 %v7371_v45  ;;  %7756 = vmatpush1.bf16.msra.mxu1 %v7755_v8  ;;  %v1760_v45 = vld [vmem:[#allocation7 + $0xb18] sm:$0xff]  ;;  %v7401_v2 = vpack.c.bf16 %v1786_v51, %v1782_v58  ;;  %v1811_v5 = vld [vmem:[#allocation7 + $0xcb0] sm:$0xff]  ;;  %v1814_v58 = vld [vmem:[#allocation7 + $0xcc8] sm:$0xff] }
 0x533   :  { %7374 = vmatprep.subr.bf16.mxu0 %v7373_v29  ;;  %7758 = vmatprep.subr.bf16.mxu1 %v7757_v36  ;;  %v1764_v8 = vld [vmem:[#allocation7 + $0xb38] sm:$0xff]  ;;  %v1757_v29 = vld [vmem:[#allocation7 + $0xb00] sm:$0xff]  ;;  %v1818_v51 = vld [vmem:[#allocation7 + $0xce8] sm:$0xff] }
 0x534   :  { %v1761_v36 = vld [vmem:[#allocation7 + $0xb20] sm:$0xff]  ;;  %v7773_v1 = vpack.c.bf16 %v1764_v8, %v1760_v45  ;;  %v1790_v45 = vld [vmem:[#allocation7 + $0xc08] sm:$0xff] }
 0x535   :  { %v7391_v10 = vpack.c.bf16 %v1761_v36, %v1757_v29  ;;  %v1794_v8 = vld [vmem:[#allocation7 + $0xc28] sm:$0xff]  ;;  %v8294_v29 = vunpack.i.h.bf16 %v9972_v54 }
 0x536   :  { %7376 = vmatpush1.bf16.msra.mxu0 %v7375_v59  ;;  %7760 = vmatpush1.bf16.msra.mxu1 %v7759_v41  ;;  %v1768_v59 = vld [vmem:[#allocation7 + $0xb58] sm:$0xff] }
 0x537   :  { %7378 = vmatprep.subr.bf16.mxu0 %v7377_v40  ;;  %7762 = vmatprep.subr.bf16.mxu1 %v7761_v57  ;;  %v1772_v41 = vld [vmem:[#allocation7 + $0xb78] sm:$0xff]  ;;  %v1765_v40 = vld [vmem:[#allocation7 + $0xb40] sm:$0xff] }
 0x538   :  { %v1769_v57 = vld [vmem:[#allocation7 + $0xb60] sm:$0xff]  ;;  %v7777_v14 = vpack.c.bf16 %v1772_v41, %v1768_v59  ;;  %v1791_v59 = vld [vmem:[#allocation7 + $0xc10] sm:$0xff] }
 0x539   :  { %v7395_v44 = vpack.c.bf16 %v1769_v57, %v1765_v40  ;;  %v1795_v41 = vld [vmem:[#allocation7 + $0xc30] sm:$0xff]  ;;  %v1802_v40 = vld [vmem:[#allocation7 + $0xc68] sm:$0xff]  ;;  %v1800_v57 = vld [vmem:[#allocation7 + $0xc58] sm:$0xff] }
 0x53a   :  { %7380 = vmatpush1.bf16.msra.mxu0 %v7379_v48  ;;  %7764 = vmatpush1.bf16.msra.mxu1 %v7763_v30  ;;  %v1776_v48 = vld [vmem:[#allocation7 + $0xb98] sm:$0xff]  ;;  %v7791_v62 = vpack.c.bf16 %v1795_v41, %v1791_v59  ;;  %v1827_v59 = vld [vmem:[#allocation7 + $0xd30] sm:$0xff]  ;;  %v1830_v41 = vld [vmem:[#allocation7 + $0xd48] sm:$0xff] }
 0x53b   :  { %7382 = vmatprep.subr.bf16.mxu0 %v7381_v16  ;;  %7766 = vmatprep.subr.bf16.mxu1 %v7765_v38  ;;  %v1780_v30 = vld [vmem:[#allocation7 + $0xbb8] sm:$0xff]  ;;  %v1773_v16 = vld [vmem:[#allocation7 + $0xb80] sm:$0xff] }
 0x53c   :  { %v1777_v38 = vld [vmem:[#allocation7 + $0xba0] sm:$0xff]  ;;  %v7781_v56 = vpack.c.bf16 %v1780_v30, %v1776_v48  ;;  %v1803_v48 = vld [vmem:[#allocation7 + $0xc70] sm:$0xff]  ;;  %v1810_v30 = vld [vmem:[#allocation7 + $0xca8] sm:$0xff] }
 0x53d   :  { %v7399_v19 = vpack.c.bf16 %v1777_v38, %v1773_v16  ;;  %v7795_v16 = vpack.c.bf16 %v1803_v48, %v1799_v52  ;;  %v1835_v52 = vld [vmem:[#allocation7 + $0xd70] sm:$0xff]  ;;  %v1844_v48 = vld [vmem:[#allocation7 + $0xdb8] sm:$0xff] }
 0x53e   :  { %7384 = vmatpush1.bf16.msra.mxu0 %v7383_v3  ;;  %7768 = vmatpush1.bf16.msra.mxu1 %v7767_v47  ;;  %v1784_v3 = vld [vmem:[#allocation7 + $0xbd8] sm:$0xff] }
 0x53f   :  { %7386 = vmatprep.subr.bf16.mxu0 %v7385_v42  ;;  %7770 = vmatprep.subr.bf16.mxu1 %v7769_v23  ;;  %v1788_v47 = vld [vmem:[#allocation7 + $0xbf8] sm:$0xff]  ;;  %v1781_v42 = vld [vmem:[#allocation7 + $0xbc0] sm:$0xff] }
 0x540   :  { %v1785_v23 = vld [vmem:[#allocation7 + $0xbe0] sm:$0xff]  ;;  %v7785_v15 = vpack.c.bf16 %v1788_v47, %v1784_v3  ;;  %v1816_v3 = vld [vmem:[#allocation7 + $0xcd8] sm:$0xff] }
 0x541   :  { %v7403_v36 = vpack.c.bf16 %v1785_v23, %v1781_v42  ;;  %v1820_v47 = vld [vmem:[#allocation7 + $0xcf8] sm:$0xff]  ;;  %v7417_v42 = vpack.c.bf16 %v1818_v51, %v1814_v58  ;;  %v1813_v23 = vld [vmem:[#allocation7 + $0xcc0] sm:$0xff] }
 0x542   :  { %7388 = vmatpush1.bf16.msra.mxu0 %v7387_v37  ;;  %7772 = vmatpush1.bf16.msra.mxu1 %v7771_v20  ;;  %v1792_v37 = vld [vmem:[#allocation7 + $0xc18] sm:$0xff] }
 0x543   :  { %7390 = vmatprep.subr.bf16.mxu0 %v7389_v55  ;;  %7774 = vmatprep.subr.bf16.mxu1 %v7773_v1  ;;  %v1796_v20 = vld [vmem:[#allocation7 + $0xc38] sm:$0xff]  ;;  %v7787_v55 = vpack.c.bf16 %v1787_v7, %v1783_v53  ;;  %v7405_v1 = vpack.c.bf16 %v1794_v8, %v1790_v45  ;;  %v7801_v53 = vpack.c.bf16 %v1820_v47, %v1816_v3  ;;  %v1819_v7 = vld [vmem:[#allocation7 + $0xcf0] sm:$0xff]  ;;  %v1822_v45 = vld [vmem:[#allocation7 + $0xd08] sm:$0xff] }
 0x544   :  { %v7789_v26 = vpack.c.bf16 %v1796_v20, %v1792_v37  ;;  %v1826_v8 = vld [vmem:[#allocation7 + $0xd28] sm:$0xff]  ;;  %v1824_v37 = vld [vmem:[#allocation7 + $0xd18] sm:$0xff]  ;;  %v1845_v47 = vld [vmem:[#allocation7 + $0xdc0] sm:$0xff] }
 0x545   :  { %v1828_v20 = vld [vmem:[#allocation7 + $0xd38] sm:$0xff] }
 0x546   :  { %7392 = vmatpush1.bf16.msra.mxu0 %v7391_v10  ;;  %7776 = vmatpush1.bf16.msra.mxu1 %v7775_v13  ;;  %v1798_v10 = vld [vmem:[#allocation7 + $0xc48] sm:$0xff]  ;;  %v1374_v13 = vsel %vm478_vm2, %v8293_v28, %v8294_v29  ;;  %v7805_v18 = vpack.c.bf16 %v1828_v20, %v1824_v37  ;;  %v1853_v20 = vld [vmem:[#allocation7 + $0xe00] sm:$0xff] }
 0x547   :  { %7394 = vmatprep.subr.bf16.mxu0 %v7393_v24  ;;  %7778 = vmatprep.subr.bf16.mxu1 %v7777_v14  ;;  %v1804_v24 = vld [vmem:[#allocation7 + $0xc78] sm:$0xff]  ;;  %v7407_v14 = vpack.c.bf16 %v1793_v27, %v1789_v9  ;;  %v1399_v33 = vmax.f32 %v9918_v60, %v1374_v13  ;;  %v7409_v17 = vpack.c.bf16 %v1802_v40, %v1798_v10  ;;  %v1806_v28 = vld [vmem:[#allocation7 + $0xc88] sm:$0xff]  ;;  %v1825_v9 = vld [vmem:[#allocation7 + $0xd20] sm:$0xff] }
 0x548   :  { %v7793_v0 = vpack.c.bf16 %v1804_v24, %v1800_v57  ;;  %v7413_v38 = vpack.c.bf16 %v1810_v30, %v1806_v28  ;;  %v1823_v27 = vld [vmem:[#allocation7 + $0xd10] sm:$0xff]  ;;  %v1834_v10 = vld [vmem:[#allocation7 + $0xd68] sm:$0xff]  ;;  %v1832_v13 = vld [vmem:[#allocation7 + $0xd58] sm:$0xff]  ;;  %v7811_v30 = vpack.c.bf16 %v1835_v52, %v1831_v25 }
 0x549   :  { %v1836_v40 = vld [vmem:[#allocation7 + $0xd78] sm:$0xff]  ;;  %v7807_v24 = vpack.c.bf16 %v1827_v59, %v1823_v27  ;;  %v1866_v27 = vld [vmem:[#allocation7 + $0xe68] sm:$0xff] }
 0x54a   :  { %7396 = vmatpush1.bf16.msra.mxu0 %v7395_v44  ;;  %7780 = vmatpush1.bf16.msra.mxu1 %v7779_v12  ;;  %v1808_v44 = vld [vmem:[#allocation7 + $0xc98] sm:$0xff]  ;;  %v7809_v63 = vpack.c.bf16 %v1836_v40, %v1832_v13  ;;  %v1861_v40 = vld [vmem:[#allocation7 + $0xe40] sm:$0xff]  ;;  %v1874_v25 = vld [vmem:[#allocation7 + $0xea8] sm:$0xff] }
 0x54b   :  { %7398 = vmatprep.subr.bf16.mxu0 %v7397_v11  ;;  %7782 = vmatprep.subr.bf16.mxu1 %v7781_v56  ;;  %v1812_v12 = vld [vmem:[#allocation7 + $0xcb8] sm:$0xff]  ;;  %v1805_v11 = vld [vmem:[#allocation7 + $0xc80] sm:$0xff] }
 0x54c   :  { %v1809_v56 = vld [vmem:[#allocation7 + $0xca0] sm:$0xff]  ;;  %v7797_v60 = vpack.c.bf16 %v1812_v12, %v1808_v44  ;;  %v1868_v59 = vld [vmem:[#allocation7 + $0xe78] sm:$0xff] }
 0x54d   :  { %v1837_v12 = vld [vmem:[#allocation7 + $0xd80] sm:$0xff]  ;;  %v1876_v52 = vld [vmem:[#allocation7 + $0xeb8] sm:$0xff] }
 0x54e   :  { %7400 = vmatpush1.bf16.msra.mxu0 %v7399_v19  ;;  %7784 = vmatpush1.bf16.msra.mxu1 %v7783_v39  ;;  %v7415_v19 = vpack.c.bf16 %v1809_v56, %v1805_v11  ;;  %v7799_v39 = vpack.c.bf16 %v1811_v5, %v1807_v49  ;;  %v1843_v11 = vld [vmem:[#allocation7 + $0xdb0] sm:$0xff]  ;;  %v1846_v56 = vld [vmem:[#allocation7 + $0xdc8] sm:$0xff]  ;;  %v1852_v5 = vld [vmem:[#allocation7 + $0xdf8] sm:$0xff] }
 0x54f   :  { %7402 = vmatprep.subr.bf16.mxu0 %v7401_v2  ;;  %7786 = vmatprep.subr.bf16.mxu1 %v7785_v15  ;;  %v1817_v2 = vld [vmem:[#allocation7 + $0xce0] sm:$0xff]  ;;  %v1815_v15 = vld [vmem:[#allocation7 + $0xcd0] sm:$0xff]  ;;  %v1850_v49 = vld [vmem:[#allocation7 + $0xde8] sm:$0xff] }
 0x550   :  { %v7433_v3 = vpack.c.bf16 %v1850_v49, %v1846_v56 }
 0x552   :  { %7404 = vmatpush1.bf16.msra.mxu0 %v7403_v36  ;;  %7788 = vmatpush1.bf16.msra.mxu1 %v7787_v55  ;;  %v7419_v36 = vpack.c.bf16 %v1817_v2, %v1813_v23  ;;  %v7803_v55 = vpack.c.bf16 %v1819_v7, %v1815_v15  ;;  %v1851_v23 = vld [vmem:[#allocation7 + $0xdf0] sm:$0xff]  ;;  %v1854_v2 = vld [vmem:[#allocation7 + $0xe08] sm:$0xff]  ;;  %v1860_v7 = vld [vmem:[#allocation7 + $0xe38] sm:$0xff] }
 0x553   :  { %7406 = vmatprep.subr.bf16.mxu0 %v7405_v1  ;;  %7790 = vmatprep.subr.bf16.mxu1 %v7789_v26  ;;  %v7421_v1 = vpack.c.bf16 %v1826_v8, %v1822_v45  ;;  %v1821_v26 = vld [vmem:[#allocation7 + $0xd00] sm:$0xff]  ;;  %v1858_v15 = vld [vmem:[#allocation7 + $0xe28] sm:$0xff] }
 0x554   :  { %v7423_v57 = vpack.c.bf16 %v1825_v9, %v1821_v26  ;;  %v7437_v37 = vpack.c.bf16 %v1858_v15, %v1854_v2  ;;  %v1859_v26 = vld [vmem:[#allocation7 + $0xe30] sm:$0xff]  ;;  %v1862_v9 = vld [vmem:[#allocation7 + $0xe48] sm:$0xff] }
 0x555   :  { %2401 = vmatmul.mubr.f32.vlgmr.msra.gmra.mrb[0].mxu0 %v1396_v31  ;;  %2898 = vmatmul.mubr.f32.vlgmr.msra.gmra.mrb[0].mxu1 %v1396_v31  ;;  %v1829_v31 = vld [vmem:[#allocation7 + $0xd40] sm:$0xff]  ;;  %v7441_v13 = vpack.c.bf16 %v1866_v27, %v1862_v9 }
 0x556   :  { %7408 = vmatpush1.bf16.msra.mxu0 %v7407_v14  ;;  %2471 = vmatprep.mubr.f32.mxu0 %v1399_v33  ;;  %v7425_v14 = vpack.c.bf16 %v1834_v10, %v1830_v41 }
 0x557   :  { %7792 = vmatpush1.bf16.msra.mxu1 %v7791_v62  ;;  %2968 = vmatprep.mubr.f32.mxu1 %v1399_v33  ;;  %v1833_v62 = vld [vmem:[#allocation7 + $0xd60] sm:$0xff]  ;;  %v1838_v33 = vld [vmem:[#allocation7 + $0xd88] sm:$0xff] }
 0x558   :  { %7410 = vmatprep.subr.bf16.mxu0 %v7409_v17  ;;  %7794 = vmatprep.subr.bf16.mxu1 %v7793_v0  ;;  %v1842_v17 = vld [vmem:[#allocation7 + $0xda8] sm:$0xff]  ;;  %v1840_v0 = vld [vmem:[#allocation7 + $0xd98] sm:$0xff]  ;;  %v7427_v28 = vpack.c.bf16 %v1833_v62, %v1829_v31  ;;  %v1867_v31 = vld [vmem:[#allocation7 + $0xe70] sm:$0xff] }
 0x559   :  { %v7429_v44 = vpack.c.bf16 %v1842_v17, %v1838_v33  ;;  %v1870_v62 = vld [vmem:[#allocation7 + $0xe88] sm:$0xff] }
 0x55a   :  { %7412 = vmatpush1.bf16.msra.mxu0 %v7411_v50  ;;  %v1841_v50 = vld [vmem:[#allocation7 + $0xda0] sm:$0xff] }
 0x55b   :  { %7796 = vmatpush1.bf16.msra.mxu1 %v7795_v16  ;;  %7414 = vmatprep.subr.bf16.mxu0 %v7413_v38  ;;  %v1839_v16 = vld [vmem:[#allocation7 + $0xd90] sm:$0xff]  ;;  %v7813_v38 = vpack.c.bf16 %v1844_v48, %v1840_v0  ;;  %v7431_v58 = vpack.c.bf16 %v1841_v50, %v1837_v12  ;;  %v7445_v0 = vpack.c.bf16 %v1874_v25, %v1870_v62  ;;  %v1869_v48 = vld [vmem:[#allocation7 + $0xe80] sm:$0xff]  ;;  %v1878_v50 = vld [vmem:[#allocation7 + $0xec8] sm:$0xff] }
 0x55c   :  { %7798 = vmatprep.subr.bf16.mxu1 %v7797_v60  ;;  %v1848_v60 = vld [vmem:[#allocation7 + $0xdd8] sm:$0xff]  ;;  %v7815_v51 = vpack.c.bf16 %v1843_v11, %v1839_v16  ;;  %v1875_v12 = vld [vmem:[#allocation7 + $0xeb0] sm:$0xff]  ;;  %v1882_v16 = vld [vmem:[#allocation7 + $0xee8] sm:$0xff] }
 0x55d   :  { %v1884_v11 = vld [vmem:[#allocation7 + $0xef8] sm:$0xff] }
 0x55e   :  { %7416 = vmatpush1.bf16.msra.mxu0 %v7415_v19  ;;  %v1849_v19 = vld [vmem:[#allocation7 + $0xde0] sm:$0xff] }
 0x55f   :  { %7800 = vmatpush1.bf16.msra.mxu1 %v7799_v39  ;;  %7418 = vmatprep.subr.bf16.mxu0 %v7417_v42  ;;  %v1847_v39 = vld [vmem:[#allocation7 + $0xdd0] sm:$0xff]  ;;  %v7817_v42 = vpack.c.bf16 %v1852_v5, %v1848_v60  ;;  %v7435_v45 = vpack.c.bf16 %v1849_v19, %v1845_v47  ;;  %v7449_v60 = vpack.c.bf16 %v1882_v16, %v1878_v50  ;;  %v1877_v5 = vld [vmem:[#allocation7 + $0xec0] sm:$0xff]  ;;  %v1886_v19 = vld [vmem:[#allocation7 + $0xf08] sm:$0xff]  ;;  %v9994_v16 = vpop.permute.xlu0 %8301 }
 0x560   :  { %7802 = vmatprep.subr.bf16.mxu1 %v7801_v53  ;;  %v1856_v53 = vld [vmem:[#allocation7 + $0xe18] sm:$0xff]  ;;  %v7819_v8 = vpack.c.bf16 %v1851_v23, %v1847_v39  ;;  %v1883_v47 = vld [vmem:[#allocation7 + $0xef0] sm:$0xff]  ;;  %v1890_v39 = vld [vmem:[#allocation7 + $0xf28] sm:$0xff] }
 0x561   :  { %v1892_v23 = vld [vmem:[#allocation7 + $0xf38] sm:$0xff] }
 0x562   :  { %7420 = vmatpush1.bf16.msra.mxu0 %v7419_v36  ;;  %v1857_v36 = vld [vmem:[#allocation7 + $0xe20] sm:$0xff] }
 0x563   :  { %7804 = vmatpush1.bf16.msra.mxu1 %v7803_v55  ;;  %7422 = vmatprep.subr.bf16.mxu0 %v7421_v1  ;;  %v1855_v55 = vld [vmem:[#allocation7 + $0xe10] sm:$0xff]  ;;  %v7821_v1 = vpack.c.bf16 %v1860_v7, %v1856_v53  ;;  %v7439_v41 = vpack.c.bf16 %v1857_v36, %v1853_v20  ;;  %v7453_v53 = vpack.c.bf16 %v1890_v39, %v1886_v19  ;;  %v1885_v7 = vld [vmem:[#allocation7 + $0xf00] sm:$0xff]  ;;  %v1894_v36 = vld [vmem:[#allocation7 + $0xf48] sm:$0xff]  ;;  %v8304_v39 = vunpack.i.h.bf16 %v9994_v16 }
 0x564   :  { %7806 = vmatprep.subr.bf16.mxu1 %v7805_v18  ;;  %v1864_v18 = vld [vmem:[#allocation7 + $0xe58] sm:$0xff]  ;;  %v7823_v10 = vpack.c.bf16 %v1859_v26, %v1855_v55  ;;  %v1891_v20 = vld [vmem:[#allocation7 + $0xf30] sm:$0xff]  ;;  %v1898_v55 = vld [vmem:[#allocation7 + $0xf68] sm:$0xff] }
 0x565   :  { %v1900_v26 = vld [vmem:[#allocation7 + $0xf78] sm:$0xff] }
 0x566   :  { %7424 = vmatpush1.bf16.msra.mxu0 %v7423_v57  ;;  %v1865_v57 = vld [vmem:[#allocation7 + $0xe60] sm:$0xff]  ;;  %v1924_v19 = vld [vmem:[#allocation7 + $0x1038] sm:$0xff] }
 0x567   :  { %7808 = vmatpush1.bf16.msra.mxu1 %v7807_v24  ;;  %7426 = vmatprep.subr.bf16.mxu0 %v7425_v14  ;;  %v1863_v24 = vld [vmem:[#allocation7 + $0xe50] sm:$0xff]  ;;  %v7825_v14 = vpack.c.bf16 %v1868_v59, %v1864_v18  ;;  %v7443_v33 = vpack.c.bf16 %v1865_v57, %v1861_v40  ;;  %v7457_v18 = vpack.c.bf16 %v1898_v55, %v1894_v36  ;;  %v1893_v59 = vld [vmem:[#allocation7 + $0xf40] sm:$0xff]  ;;  %v1902_v57 = vld [vmem:[#allocation7 + $0xf88] sm:$0xff] }
 0x568   :  { %7810 = vmatprep.subr.bf16.mxu1 %v7809_v63  ;;  %v1872_v63 = vld [vmem:[#allocation7 + $0xe98] sm:$0xff]  ;;  %v7827_v17 = vpack.c.bf16 %v1867_v31, %v1863_v24  ;;  %v1899_v40 = vld [vmem:[#allocation7 + $0xf70] sm:$0xff]  ;;  %v1906_v24 = vld [vmem:[#allocation7 + $0xfa8] sm:$0xff] }
 0x569   :  { %v1908_v31 = vld [vmem:[#allocation7 + $0xfb8] sm:$0xff]  ;;  %v1930_v36 = vld [vmem:[#allocation7 + $0x1068] sm:$0xff] }
 0x56a   :  { %7428 = vmatpush1.bf16.msra.mxu0 %v7427_v28  ;;  %v1873_v28 = vld [vmem:[#allocation7 + $0xea0] sm:$0xff] }
 0x56b   :  { %7812 = vmatpush1.bf16.msra.mxu1 %v7811_v30  ;;  %7430 = vmatprep.subr.bf16.mxu0 %v7429_v44  ;;  %v1871_v30 = vld [vmem:[#allocation7 + $0xe90] sm:$0xff]  ;;  %v7829_v44 = vpack.c.bf16 %v1876_v52, %v1872_v63  ;;  %v7447_v56 = vpack.c.bf16 %v1873_v28, %v1869_v48  ;;  %v7461_v63 = vpack.c.bf16 %v1906_v24, %v1902_v57  ;;  %v1901_v52 = vld [vmem:[#allocation7 + $0xf80] sm:$0xff]  ;;  %v1910_v28 = vld [vmem:[#allocation7 + $0xfc8] sm:$0xff] }
 0x56c   :  { %7814 = vmatprep.subr.bf16.mxu1 %v7813_v38  ;;  %v1880_v38 = vld [vmem:[#allocation7 + $0xed8] sm:$0xff]  ;;  %v7831_v49 = vpack.c.bf16 %v1875_v12, %v1871_v30  ;;  %v1907_v48 = vld [vmem:[#allocation7 + $0xfb0] sm:$0xff]  ;;  %v1914_v30 = vld [vmem:[#allocation7 + $0xfe8] sm:$0xff] }
 0x56d   :  { %v1916_v12 = vld [vmem:[#allocation7 + $0xff8] sm:$0xff]  ;;  %v1934_v57 = vld [vmem:[#allocation7 + $0x1088] sm:$0xff] }
 0x56e   :  { %7432 = vmatpush1.bf16.msra.mxu0 %v7431_v58  ;;  %v1881_v58 = vld [vmem:[#allocation7 + $0xee0] sm:$0xff]  ;;  %v1938_v24 = vld [vmem:[#allocation7 + $0x10a8] sm:$0xff] }
 0x56f   :  { %7816 = vmatpush1.bf16.msra.mxu1 %v7815_v51  ;;  %7434 = vmatprep.subr.bf16.mxu0 %v7433_v3  ;;  %v1879_v51 = vld [vmem:[#allocation7 + $0xed0] sm:$0xff]  ;;  %v7833_v3 = vpack.c.bf16 %v1884_v11, %v1880_v38  ;;  %v7451_v2 = vpack.c.bf16 %v1881_v58, %v1877_v5  ;;  %v7465_v11 = vpack.c.bf16 %v1914_v30, %v1910_v28  ;;  %v1942_v28 = vld [vmem:[#allocation7 + $0x10c8] sm:$0xff] }
 0x570   :  { %7818 = vmatprep.subr.bf16.mxu1 %v7817_v42  ;;  %v1888_v42 = vld [vmem:[#allocation7 + $0xf18] sm:$0xff]  ;;  %v7835_v15 = vpack.c.bf16 %v1883_v47, %v1879_v51  ;;  %v1915_v58 = vld [vmem:[#allocation7 + $0xff0] sm:$0xff]  ;;  %v1918_v51 = vld [vmem:[#allocation7 + $0x1008] sm:$0xff] }
 0x571   :  { %v1920_v47 = vld [vmem:[#allocation7 + $0x1018] sm:$0xff]  ;;  %v1946_v30 = vld [vmem:[#allocation7 + $0x10e8] sm:$0xff] }
 0x572   :  { %7436 = vmatpush1.bf16.msra.mxu0 %v7435_v45  ;;  %v1889_v45 = vld [vmem:[#allocation7 + $0xf20] sm:$0xff] }
 0x573   :  { %7820 = vmatpush1.bf16.msra.mxu1 %v7819_v8  ;;  %7438 = vmatprep.subr.bf16.mxu0 %v7437_v37  ;;  %v1887_v8 = vld [vmem:[#allocation7 + $0xf10] sm:$0xff]  ;;  %v7837_v37 = vpack.c.bf16 %v1892_v23, %v1888_v42  ;;  %v7455_v9 = vpack.c.bf16 %v1889_v45, %v1885_v7  ;;  %v8303_v42 = vunpack.i.l.bf16 %v9994_v16  ;;  %v1921_v7 = vld [vmem:[#allocation7 + $0x1020] sm:$0xff]  ;;  %v7853_v45 = vpack.c.bf16 %v1924_v19, %v1920_v47  ;;  %v1956_v47 = vld [vmem:[#allocation7 + $0x1138] sm:$0xff] }
 0x574   :  { %7822 = vmatprep.subr.bf16.mxu1 %v7821_v1  ;;  %v1896_v1 = vld [vmem:[#allocation7 + $0xf58] sm:$0xff]  ;;  %v7839_v27 = vpack.c.bf16 %v1891_v20, %v1887_v8  ;;  %v1919_v8 = vld [vmem:[#allocation7 + $0x1010] sm:$0xff]  ;;  %v1926_v20 = vld [vmem:[#allocation7 + $0x1048] sm:$0xff] }
 0x576   :  { %7440 = vmatpush1.bf16.msra.mxu0 %v7439_v41  ;;  %v1897_v41 = vld [vmem:[#allocation7 + $0xf60] sm:$0xff] }
 0x577   :  { %7824 = vmatpush1.bf16.msra.mxu1 %v7823_v10  ;;  %7442 = vmatprep.subr.bf16.mxu0 %v7441_v13  ;;  %v1895_v10 = vld [vmem:[#allocation7 + $0xf50] sm:$0xff]  ;;  %v7841_v13 = vpack.c.bf16 %v1900_v26, %v1896_v1  ;;  %v7459_v62 = vpack.c.bf16 %v1897_v41, %v1893_v59  ;;  %v1376_v1 = vsel %vm478_vm2, %v8303_v42, %v8304_v39  ;;  %v1928_v26 = vld [vmem:[#allocation7 + $0x1058] sm:$0xff]  ;;  %v1925_v59 = vld [vmem:[#allocation7 + $0x1040] sm:$0xff] }
 0x578   :  { %7826 = vmatprep.subr.bf16.mxu1 %v7825_v14  ;;  %v1904_v14 = vld [vmem:[#allocation7 + $0xf98] sm:$0xff]  ;;  %v7843_v25 = vpack.c.bf16 %v1899_v40, %v1895_v10  ;;  %v1929_v41 = vld [vmem:[#allocation7 + $0x1060] sm:$0xff]  ;;  %v1927_v10 = vld [vmem:[#allocation7 + $0x1050] sm:$0xff] }
 0x579   :  { %v1931_v40 = vld [vmem:[#allocation7 + $0x1070] sm:$0xff] }
 0x57a   :  { %7444 = vmatpush1.bf16.msra.mxu0 %v7443_v33  ;;  %v1905_v33 = vld [vmem:[#allocation7 + $0xfa0] sm:$0xff] }
 0x57b   :  { %7828 = vmatpush1.bf16.msra.mxu1 %v7827_v17  ;;  %7446 = vmatprep.subr.bf16.mxu0 %v7445_v0  ;;  %v1903_v17 = vld [vmem:[#allocation7 + $0xf90] sm:$0xff]  ;;  %v7845_v0 = vpack.c.bf16 %v1908_v31, %v1904_v14  ;;  %v7463_v50 = vpack.c.bf16 %v1905_v33, %v1901_v52  ;;  %v1401_v14 = vmax.f32 %v9931_v34, %v1376_v1  ;;  %v1933_v52 = vld [vmem:[#allocation7 + $0x1080] sm:$0xff]  ;;  %v1944_v34 = vld [vmem:[#allocation7 + $0x10d8] sm:$0xff] }
 0x57c   :  { %7830 = vmatprep.subr.bf16.mxu1 %v7829_v44  ;;  %v1912_v44 = vld [vmem:[#allocation7 + $0xfd8] sm:$0xff]  ;;  %v7847_v38 = vpack.c.bf16 %v1907_v48, %v1903_v17  ;;  %v1937_v33 = vld [vmem:[#allocation7 + $0x10a0] sm:$0xff]  ;;  %v1935_v17 = vld [vmem:[#allocation7 + $0x1090] sm:$0xff] }
 0x57d   :  { %v7849_v5 = vpack.c.bf16 %v1916_v12, %v1912_v44  ;;  %v1939_v48 = vld [vmem:[#allocation7 + $0x10b0] sm:$0xff]  ;;  %v1948_v44 = vld [vmem:[#allocation7 + $0x10f8] sm:$0xff]  ;;  %v7479_v12 = vpack.c.bf16 %v1937_v33, %v1933_v52  ;;  %v1974_v33 = vld [vmem:[#allocation7 + $0x11c8] sm:$0xff] }
 0x57e   :  { %7448 = vmatpush1.bf16.msra.mxu0 %v7447_v56  ;;  %v1909_v56 = vld [vmem:[#allocation7 + $0xfc0] sm:$0xff]  ;;  %v1971_v52 = vld [vmem:[#allocation7 + $0x11b0] sm:$0xff] }
 0x57f   :  { %7832 = vmatpush1.bf16.msra.mxu1 %v7831_v49  ;;  %7450 = vmatprep.subr.bf16.mxu0 %v7449_v60  ;;  %v1913_v49 = vld [vmem:[#allocation7 + $0xfe0] sm:$0xff]  ;;  %v1911_v60 = vld [vmem:[#allocation7 + $0xfd0] sm:$0xff] }
 0x580   :  { %7834 = vmatprep.subr.bf16.mxu1 %v7833_v3  ;;  %v1922_v3 = vld [vmem:[#allocation7 + $0x1028] sm:$0xff]  ;;  %v7467_v23 = vpack.c.bf16 %v1913_v49, %v1909_v56  ;;  %v1945_v56 = vld [vmem:[#allocation7 + $0x10e0] sm:$0xff]  ;;  %v1943_v49 = vld [vmem:[#allocation7 + $0x10d0] sm:$0xff] }
 0x582   :  { %7452 = vmatpush1.bf16.msra.mxu0 %v7451_v2  ;;  %v7851_v2 = vpack.c.bf16 %v1915_v58, %v1911_v60  ;;  %v7865_v60 = vpack.c.bf16 %v1948_v44, %v1944_v34  ;;  %v1950_v58 = vld [vmem:[#allocation7 + $0x1108] sm:$0xff]  ;;  %v1973_v44 = vld [vmem:[#allocation7 + $0x11c0] sm:$0xff] }
 0x583   :  { %7836 = vmatpush1.bf16.msra.mxu1 %v7835_v15  ;;  %7454 = vmatprep.subr.bf16.mxu0 %v7453_v53  ;;  %v7469_v15 = vpack.c.bf16 %v1922_v3, %v1918_v51  ;;  %v1917_v53 = vld [vmem:[#allocation7 + $0x1000] sm:$0xff]  ;;  %v1954_v51 = vld [vmem:[#allocation7 + $0x1128] sm:$0xff]  ;;  %v1952_v3 = vld [vmem:[#allocation7 + $0x1118] sm:$0xff] }
 0x584   :  { %7838 = vmatprep.subr.bf16.mxu1 %v7837_v37  ;;  %v1923_v37 = vld [vmem:[#allocation7 + $0x1030] sm:$0xff]  ;;  %v7471_v55 = vpack.c.bf16 %v1921_v7, %v1917_v53  ;;  %v1953_v53 = vld [vmem:[#allocation7 + $0x1120] sm:$0xff] }
 0x585   :  { %v1951_v7 = vld [vmem:[#allocation7 + $0x1110] sm:$0xff] }
 0x586   :  { %7456 = vmatpush1.bf16.msra.mxu0 %v7455_v9  ;;  %v1932_v9 = vld [vmem:[#allocation7 + $0x1078] sm:$0xff] }
 0x587   :  { %7840 = vmatpush1.bf16.msra.mxu1 %v7839_v27  ;;  %7458 = vmatprep.subr.bf16.mxu0 %v7457_v18  ;;  %v1398_v27 = vmax.f32 %v9909_v32, %v9979_v61  ;;  %v7855_v18 = vpack.c.bf16 %v1923_v37, %v1919_v8  ;;  %v7857_v31 = vpack.c.bf16 %v1932_v9, %v1928_v26  ;;  %v1955_v8 = vld [vmem:[#allocation7 + $0x1130] sm:$0xff]  ;;  %v1958_v37 = vld [vmem:[#allocation7 + $0x1148] sm:$0xff] }
 0x588   :  { %7842 = vmatprep.subr.bf16.mxu1 %v7841_v13  ;;  %v7473_v13 = vpack.c.bf16 %v1930_v36, %v1926_v20  ;;  %v7475_v32 = vpack.c.bf16 %v1929_v41, %v1925_v59  ;;  %v7859_v61 = vpack.c.bf16 %v1931_v40, %v1927_v10  ;;  %v1962_v20 = vld [vmem:[#allocation7 + $0x1168] sm:$0xff]  ;;  %v1960_v36 = vld [vmem:[#allocation7 + $0x1158] sm:$0xff]  ;;  %v7871_v26 = vpack.c.bf16 %v1955_v8, %v1951_v7  ;;  %v1959_v59 = vld [vmem:[#allocation7 + $0x1150] sm:$0xff] }
 0x589   :  { %v7489_v9 = vpack.c.bf16 %v1962_v20, %v1958_v37  ;;  %v1963_v10 = vld [vmem:[#allocation7 + $0x1170] sm:$0xff]  ;;  %v1970_v40 = vld [vmem:[#allocation7 + $0x11a8] sm:$0xff]  ;;  %v1996_v8 = vld [vmem:[#allocation7 + $0x1278] sm:$0xff] }
 0x58a   :  { %7460 = vmatpush1.bf16.msra.mxu0 %v7459_v62  ;;  %v1936_v62 = vld [vmem:[#allocation7 + $0x1098] sm:$0xff]  ;;  %v1994_v7 = vld [vmem:[#allocation7 + $0x1268] sm:$0xff] }
 0x58b   :  { %7844 = vmatpush1.bf16.msra.mxu1 %v7843_v25  ;;  %7462 = vmatprep.subr.bf16.mxu0 %v7461_v63  ;;  %v1940_v25 = vld [vmem:[#allocation7 + $0x10b8] sm:$0xff]  ;;  %v7477_v63 = vpack.c.bf16 %v1938_v24, %v1934_v57 }
 0x58c   :  { %7846 = vmatprep.subr.bf16.mxu1 %v7845_v0  ;;  %v7861_v0 = vpack.c.bf16 %v1940_v25, %v1936_v62  ;;  %v1968_v57 = vld [vmem:[#allocation7 + $0x1198] sm:$0xff]  ;;  %v1965_v25 = vld [vmem:[#allocation7 + $0x1180] sm:$0xff] }
 0x58d   :  { %v1972_v24 = vld [vmem:[#allocation7 + $0x11b8] sm:$0xff] }
 0x58e   :  { %7464 = vmatpush1.bf16.msra.mxu0 %v7463_v50  ;;  %v7863_v50 = vpack.c.bf16 %v1939_v48, %v1935_v17  ;;  %v1978_v17 = vld [vmem:[#allocation7 + $0x11e8] sm:$0xff]  ;;  %v1980_v48 = vld [vmem:[#allocation7 + $0x11f8] sm:$0xff] }
 0x58f   :  { %7848 = vmatpush1.bf16.msra.mxu1 %v7847_v38  ;;  %7466 = vmatprep.subr.bf16.mxu0 %v7465_v11  ;;  %v7481_v38 = vpack.c.bf16 %v1946_v30, %v1942_v28  ;;  %v1941_v11 = vld [vmem:[#allocation7 + $0x10c0] sm:$0xff]  ;;  %v7497_v34 = vpack.c.bf16 %v1978_v17, %v1974_v33 }
 0x590   :  { %7850 = vmatprep.subr.bf16.mxu1 %v7849_v5  ;;  %v1947_v5 = vld [vmem:[#allocation7 + $0x10f0] sm:$0xff]  ;;  %v7483_v19 = vpack.c.bf16 %v1945_v56, %v1941_v11  ;;  %v1982_v56 = vld [vmem:[#allocation7 + $0x1208] sm:$0xff] }
 0x591   :  { %v1979_v11 = vld [vmem:[#allocation7 + $0x11f0] sm:$0xff] }
 0x592   :  { %7468 = vmatpush1.bf16.msra.mxu0 %v7467_v23  ;;  %v7867_v23 = vpack.c.bf16 %v1947_v5, %v1943_v49  ;;  %v1986_v49 = vld [vmem:[#allocation7 + $0x1228] sm:$0xff]  ;;  %v1988_v5 = vld [vmem:[#allocation7 + $0x1238] sm:$0xff] }
 0x593   :  { %7852 = vmatpush1.bf16.msra.mxu1 %v7851_v2  ;;  %7470 = vmatprep.subr.bf16.mxu0 %v7469_v15  ;;  %v7485_v2 = vpack.c.bf16 %v1954_v51, %v1950_v58  ;;  %v1949_v15 = vld [vmem:[#allocation7 + $0x1100] sm:$0xff] }
 0x594   :  { %7854 = vmatprep.subr.bf16.mxu1 %v7853_v45  ;;  %v7869_v45 = vpack.c.bf16 %v1956_v47, %v1952_v3  ;;  %v7487_v1 = vpack.c.bf16 %v1953_v53, %v1949_v15  ;;  %v7501_v3 = vpack.c.bf16 %v1986_v49, %v1982_v56  ;;  %v1981_v47 = vld [vmem:[#allocation7 + $0x1200] sm:$0xff]  ;;  %v1987_v15 = vld [vmem:[#allocation7 + $0x1230] sm:$0xff]  ;;  %v1990_v53 = vld [vmem:[#allocation7 + $0x1248] sm:$0xff] }
 0x595   :  { %2472 = vmatmul.mubr.f32.vlgmr.msra.gmra.mrb[0].mxu0 %v1398_v27 }
 0x596   :  { %2969 = vmatmul.mubr.f32.vlgmr.msra.gmra.mrb[0].mxu1 %v1398_v27  ;;  %7472 = vmatpush1.bf16.msra.mxu0 %v7471_v55  ;;  %v1964_v55 = vld [vmem:[#allocation7 + $0x1178] sm:$0xff]  ;;  %v1957_v27 = vld [vmem:[#allocation7 + $0x1140] sm:$0xff] }
 0x597   :  { %2542 = vmatprep.mubr.f32.mxu0 %v1401_v14  ;;  %7856 = vmatpush1.bf16.msra.mxu1 %v7855_v18  ;;  %v1961_v18 = vld [vmem:[#allocation7 + $0x1160] sm:$0xff]  ;;  %v7873_v41 = vpack.c.bf16 %v1964_v55, %v1960_v36  ;;  %v7505_v36 = vpack.c.bf16 %v1994_v7, %v1990_v53 }
 0x598   :  { %3039 = vmatprep.mubr.f32.mxu1 %v1401_v14  ;;  %7474 = vmatprep.subr.bf16.mxu0 %v7473_v13  ;;  %v1966_v13 = vld [vmem:[#allocation7 + $0x1188] sm:$0xff]  ;;  %v7491_v14 = vpack.c.bf16 %v1961_v18, %v1957_v27  ;;  %v1989_v55 = vld [vmem:[#allocation7 + $0x1240] sm:$0xff]  ;;  %v1995_v27 = vld [vmem:[#allocation7 + $0x1270] sm:$0xff] }
 0x599   :  { %7858 = vmatprep.subr.bf16.mxu1 %v7857_v31  ;;  %v7875_v31 = vpack.c.bf16 %v1963_v10, %v1959_v59  ;;  %v7493_v62 = vpack.c.bf16 %v1970_v40, %v1966_v13  ;;  %v1998_v18 = vld [vmem:[#allocation7 + $0x1288] sm:$0xff]  ;;  %v2004_v10 = vld [vmem:[#allocation7 + $0x12b8] sm:$0xff] }
 0x59a   :  { %7476 = vmatpush1.bf16.msra.mxu0 %v7475_v32  ;;  %v1969_v32 = vld [vmem:[#allocation7 + $0x11a0] sm:$0xff]  ;;  %v2002_v59 = vld [vmem:[#allocation7 + $0x12a8] sm:$0xff] }
 0x59b   :  { %7860 = vmatpush1.bf16.msra.mxu1 %v7859_v61  ;;  %7478 = vmatprep.subr.bf16.mxu0 %v7477_v63  ;;  %v1967_v61 = vld [vmem:[#allocation7 + $0x1190] sm:$0xff]  ;;  %v7877_v63 = vpack.c.bf16 %v1972_v24, %v1968_v57  ;;  %v7495_v28 = vpack.c.bf16 %v1969_v32, %v1965_v25  ;;  %v7509_v57 = vpack.c.bf16 %v2002_v59, %v1998_v18  ;;  %v1997_v24 = vld [vmem:[#allocation7 + $0x1280] sm:$0xff]  ;;  %v2006_v32 = vld [vmem:[#allocation7 + $0x12c8] sm:$0xff] }
 0x59c   :  { %7862 = vmatprep.subr.bf16.mxu1 %v7861_v0  ;;  %v1976_v0 = vld [vmem:[#allocation7 + $0x11d8] sm:$0xff]  ;;  %v7879_v30 = vpack.c.bf16 %v1971_v52, %v1967_v61  ;;  %v2003_v25 = vld [vmem:[#allocation7 + $0x12b0] sm:$0xff]  ;;  %v2010_v61 = vld [vmem:[#allocation7 + $0x12e8] sm:$0xff] }
 0x59d   :  { %v2012_v52 = vld [vmem:[#allocation7 + $0x12f8] sm:$0xff] }
 0x59e   :  { %7480 = vmatpush1.bf16.msra.mxu0 %v7479_v12  ;;  %v1977_v12 = vld [vmem:[#allocation7 + $0x11e0] sm:$0xff] }
 0x59f   :  { %7864 = vmatpush1.bf16.msra.mxu1 %v7863_v50  ;;  %7482 = vmatprep.subr.bf16.mxu0 %v7481_v38  ;;  %v1975_v50 = vld [vmem:[#allocation7 + $0x11d0] sm:$0xff]  ;;  %v7881_v38 = vpack.c.bf16 %v1980_v48, %v1976_v0  ;;  %v7499_v58 = vpack.c.bf16 %v1977_v12, %v1973_v44  ;;  %v7513_v0 = vpack.c.bf16 %v2010_v61, %v2006_v32  ;;  %v2005_v48 = vld [vmem:[#allocation7 + $0x12c0] sm:$0xff]  ;;  %v2014_v12 = vld [vmem:[#allocation7 + $0x1308] sm:$0xff] }
 0x5a0   :  { %7866 = vmatprep.subr.bf16.mxu1 %v7865_v60  ;;  %v1984_v60 = vld [vmem:[#allocation7 + $0x1218] sm:$0xff]  ;;  %v7883_v51 = vpack.c.bf16 %v1979_v11, %v1975_v50  ;;  %v2011_v44 = vld [vmem:[#allocation7 + $0x12f0] sm:$0xff]  ;;  %v2018_v50 = vld [vmem:[#allocation7 + $0x1328] sm:$0xff] }
 0x5a1   :  { %v2020_v11 = vld [vmem:[#allocation7 + $0x1338] sm:$0xff] }
 0x5a2   :  { %7484 = vmatpush1.bf16.msra.mxu0 %v7483_v19  ;;  %v1985_v19 = vld [vmem:[#allocation7 + $0x1220] sm:$0xff] }
 0x5a3   :  { %7868 = vmatpush1.bf16.msra.mxu1 %v7867_v23  ;;  %7486 = vmatprep.subr.bf16.mxu0 %v7485_v2  ;;  %v1983_v23 = vld [vmem:[#allocation7 + $0x1210] sm:$0xff]  ;;  %v7885_v2 = vpack.c.bf16 %v1988_v5, %v1984_v60  ;;  %v7503_v37 = vpack.c.bf16 %v1985_v19, %v1981_v47  ;;  %v7517_v60 = vpack.c.bf16 %v2018_v50, %v2014_v12  ;;  %v2013_v5 = vld [vmem:[#allocation7 + $0x1300] sm:$0xff]  ;;  %v2022_v19 = vld [vmem:[#allocation7 + $0x1348] sm:$0xff]  ;;  %v10006_v50 = vpop.permute.xlu0 %1363 }
 0x5a4   :  { %7870 = vmatprep.subr.bf16.mxu1 %v7869_v45  ;;  %v1992_v45 = vld [vmem:[#allocation7 + $0x1258] sm:$0xff]  ;;  %v7887_v20 = vpack.c.bf16 %v1987_v15, %v1983_v23  ;;  %v2019_v47 = vld [vmem:[#allocation7 + $0x1330] sm:$0xff]  ;;  %v2026_v23 = vld [vmem:[#allocation7 + $0x1368] sm:$0xff] }
 0x5a5   :  { %v2028_v15 = vld [vmem:[#allocation7 + $0x1378] sm:$0xff] }
 0x5a6   :  { %7488 = vmatpush1.bf16.msra.mxu0 %v7487_v1  ;;  %v1993_v1 = vld [vmem:[#allocation7 + $0x1260] sm:$0xff] }
 0x5a7   :  { %7872 = vmatpush1.bf16.msra.mxu1 %v7871_v26  ;;  %7490 = vmatprep.subr.bf16.mxu0 %v7489_v9  ;;  %v1991_v26 = vld [vmem:[#allocation7 + $0x1250] sm:$0xff]  ;;  %v7889_v9 = vpack.c.bf16 %v1996_v8, %v1992_v45  ;;  %v7507_v13 = vpack.c.bf16 %v1993_v1, %v1989_v55  ;;  %v7521_v45 = vpack.c.bf16 %v2026_v23, %v2022_v19  ;;  %v2021_v8 = vld [vmem:[#allocation7 + $0x1340] sm:$0xff]  ;;  %v2030_v1 = vld [vmem:[#allocation7 + $0x1388] sm:$0xff] }
 0x5a8   :  { %7874 = vmatprep.subr.bf16.mxu1 %v7873_v41  ;;  %v2000_v41 = vld [vmem:[#allocation7 + $0x1298] sm:$0xff]  ;;  %v7891_v40 = vpack.c.bf16 %v1995_v27, %v1991_v26  ;;  %v2027_v55 = vld [vmem:[#allocation7 + $0x1370] sm:$0xff]  ;;  %v2034_v26 = vld [vmem:[#allocation7 + $0x13a8] sm:$0xff] }
 0x5a9   :  { %v2036_v27 = vld [vmem:[#allocation7 + $0x13b8] sm:$0xff]  ;;  %v2058_v19 = vld [vmem:[#allocation7 + $0x1468] sm:$0xff] }
 0x5aa   :  { %7492 = vmatpush1.bf16.msra.mxu0 %v7491_v14  ;;  %v2001_v14 = vld [vmem:[#allocation7 + $0x12a0] sm:$0xff] }
 0x5ab   :  { %7876 = vmatpush1.bf16.msra.mxu1 %v7875_v31  ;;  %7494 = vmatprep.subr.bf16.mxu0 %v7493_v62  ;;  %v1999_v31 = vld [vmem:[#allocation7 + $0x1290] sm:$0xff]  ;;  %v7893_v62 = vpack.c.bf16 %v2004_v10, %v2000_v41  ;;  %v7511_v33 = vpack.c.bf16 %v2001_v14, %v1997_v24  ;;  %v7525_v41 = vpack.c.bf16 %v2034_v26, %v2030_v1  ;;  %v2029_v10 = vld [vmem:[#allocation7 + $0x1380] sm:$0xff]  ;;  %v2038_v14 = vld [vmem:[#allocation7 + $0x13c8] sm:$0xff] }
 0x5ac   :  { %7878 = vmatprep.subr.bf16.mxu1 %v7877_v63  ;;  %v2008_v63 = vld [vmem:[#allocation7 + $0x12d8] sm:$0xff]  ;;  %v7895_v17 = vpack.c.bf16 %v2003_v25, %v1999_v31  ;;  %v2035_v24 = vld [vmem:[#allocation7 + $0x13b0] sm:$0xff]  ;;  %v2042_v31 = vld [vmem:[#allocation7 + $0x13e8] sm:$0xff] }
 0x5ad   :  { %v2044_v25 = vld [vmem:[#allocation7 + $0x13f8] sm:$0xff] }
 0x5ae   :  { %7496 = vmatpush1.bf16.msra.mxu0 %v7495_v28  ;;  %v2009_v28 = vld [vmem:[#allocation7 + $0x12e0] sm:$0xff]  ;;  %v2064_v26 = vld [vmem:[#allocation7 + $0x1498] sm:$0xff] }
 0x5af   :  { %7880 = vmatpush1.bf16.msra.mxu1 %v7879_v30  ;;  %7498 = vmatprep.subr.bf16.mxu0 %v7497_v34  ;;  %v2007_v30 = vld [vmem:[#allocation7 + $0x12d0] sm:$0xff]  ;;  %v7897_v34 = vpack.c.bf16 %v2012_v52, %v2008_v63  ;;  %v7515_v56 = vpack.c.bf16 %v2009_v28, %v2005_v48  ;;  %v7529_v63 = vpack.c.bf16 %v2042_v31, %v2038_v14  ;;  %v2037_v52 = vld [vmem:[#allocation7 + $0x13c0] sm:$0xff]  ;;  %v2046_v28 = vld [vmem:[#allocation7 + $0x1408] sm:$0xff] }
 0x5b0   :  { %7882 = vmatprep.subr.bf16.mxu1 %v7881_v38  ;;  %v2016_v38 = vld [vmem:[#allocation7 + $0x1318] sm:$0xff]  ;;  %v7899_v49 = vpack.c.bf16 %v2011_v44, %v2007_v30  ;;  %v2043_v48 = vld [vmem:[#allocation7 + $0x13f0] sm:$0xff]  ;;  %v2050_v30 = vld [vmem:[#allocation7 + $0x1428] sm:$0xff] }
 0x5b1   :  { %v2052_v44 = vld [vmem:[#allocation7 + $0x1438] sm:$0xff] }
 0x5b2   :  { %7500 = vmatpush1.bf16.msra.mxu0 %v7499_v58  ;;  %v2017_v58 = vld [vmem:[#allocation7 + $0x1320] sm:$0xff]  ;;  %v2076_v14 = vld [vmem:[#allocation7 + $0x14f8] sm:$0xff] }
 0x5b3   :  { %7884 = vmatpush1.bf16.msra.mxu1 %v7883_v51  ;;  %7502 = vmatprep.subr.bf16.mxu0 %v7501_v3  ;;  %v2015_v51 = vld [vmem:[#allocation7 + $0x1310] sm:$0xff]  ;;  %v7901_v3 = vpack.c.bf16 %v2020_v11, %v2016_v38  ;;  %v7519_v53 = vpack.c.bf16 %v2017_v58, %v2013_v5  ;;  %v7533_v11 = vpack.c.bf16 %v2050_v30, %v2046_v28  ;;  %v2084_v28 = vld [vmem:[#allocation7 + $0x1538] sm:$0xff] }
 0x5b4   :  { %7886 = vmatprep.subr.bf16.mxu1 %v7885_v2  ;;  %v2024_v2 = vld [vmem:[#allocation7 + $0x1358] sm:$0xff]  ;;  %v7903_v7 = vpack.c.bf16 %v2019_v47, %v2015_v51  ;;  %v2047_v58 = vld [vmem:[#allocation7 + $0x1410] sm:$0xff]  ;;  %v2054_v47 = vld [vmem:[#allocation7 + $0x1448] sm:$0xff] }
 0x5b5   :  { %v2051_v51 = vld [vmem:[#allocation7 + $0x1430] sm:$0xff] }
 0x5b6   :  { %7504 = vmatpush1.bf16.msra.mxu0 %v7503_v37  ;;  %v2025_v37 = vld [vmem:[#allocation7 + $0x1360] sm:$0xff] }
 0x5b7   :  { %7888 = vmatpush1.bf16.msra.mxu1 %v7887_v20  ;;  %7506 = vmatprep.subr.bf16.mxu0 %v7505_v36  ;;  %v2023_v20 = vld [vmem:[#allocation7 + $0x1350] sm:$0xff]  ;;  %v7905_v36 = vpack.c.bf16 %v2028_v15, %v2024_v2  ;;  %v7523_v18 = vpack.c.bf16 %v2025_v37, %v2021_v8  ;;  %v2056_v15 = vld [vmem:[#allocation7 + $0x1458] sm:$0xff]  ;;  %v7537_v8 = vpack.c.bf16 %v2058_v19, %v2054_v47 }
 0x5b8   :  { %7890 = vmatprep.subr.bf16.mxu1 %v7889_v9  ;;  %v2032_v9 = vld [vmem:[#allocation7 + $0x1398] sm:$0xff]  ;;  %v7907_v59 = vpack.c.bf16 %v2027_v55, %v2023_v20  ;;  %v2059_v37 = vld [vmem:[#allocation7 + $0x1470] sm:$0xff]  ;;  %v2062_v20 = vld [vmem:[#allocation7 + $0x1488] sm:$0xff] }
 0x5ba   :  { %7508 = vmatpush1.bf16.msra.mxu0 %v7507_v13  ;;  %v2033_v13 = vld [vmem:[#allocation7 + $0x13a0] sm:$0xff] }
 0x5bb   :  { %7892 = vmatpush1.bf16.msra.mxu1 %v7891_v40  ;;  %7510 = vmatprep.subr.bf16.mxu0 %v7509_v57  ;;  %v2031_v40 = vld [vmem:[#allocation7 + $0x1390] sm:$0xff]  ;;  %v7909_v57 = vpack.c.bf16 %v2036_v27, %v2032_v9  ;;  %v7527_v32 = vpack.c.bf16 %v2033_v13, %v2029_v10  ;;  %v2068_v9 = vld [vmem:[#allocation7 + $0x14b8] sm:$0xff] }
 0x5bc   :  { %7894 = vmatprep.subr.bf16.mxu1 %v7893_v62  ;;  %v2040_v62 = vld [vmem:[#allocation7 + $0x13d8] sm:$0xff]  ;;  %v7911_v61 = vpack.c.bf16 %v2035_v24, %v2031_v40  ;;  %v2063_v10 = vld [vmem:[#allocation7 + $0x1490] sm:$0xff]  ;;  %v7925_v13 = vpack.c.bf16 %v2068_v9, %v2064_v26 }
 0x5bd   :  { %v2067_v40 = vld [vmem:[#allocation7 + $0x14b0] sm:$0xff]  ;;  %v2072_v24 = vld [vmem:[#allocation7 + $0x14d8] sm:$0xff] }
 0x5be   :  { %7512 = vmatpush1.bf16.msra.mxu0 %v7511_v33  ;;  %v2041_v33 = vld [vmem:[#allocation7 + $0x13e0] sm:$0xff]  ;;  %v2095_v26 = vld [vmem:[#allocation7 + $0x1590] sm:$0xff] }
 0x5bf   :  { %7896 = vmatpush1.bf16.msra.mxu1 %v7895_v17  ;;  %7514 = vmatprep.subr.bf16.mxu0 %v7513_v0  ;;  %v2039_v17 = vld [vmem:[#allocation7 + $0x13d0] sm:$0xff]  ;;  %v7913_v0 = vpack.c.bf16 %v2044_v25, %v2040_v62  ;;  %v7531_v12 = vpack.c.bf16 %v2041_v33, %v2037_v52  ;;  %v7927_v62 = vpack.c.bf16 %v2067_v40, %v2063_v10 }
 0x5c0   :  { %7898 = vmatprep.subr.bf16.mxu1 %v7897_v34  ;;  %v2048_v34 = vld [vmem:[#allocation7 + $0x1418] sm:$0xff]  ;;  %v7915_v38 = vpack.c.bf16 %v2043_v48, %v2039_v17  ;;  %v7929_v52 = vpack.c.bf16 %v2076_v14, %v2072_v24  ;;  %v2075_v33 = vld [vmem:[#allocation7 + $0x14f0] sm:$0xff]  ;;  %v2078_v17 = vld [vmem:[#allocation7 + $0x1508] sm:$0xff] }
 0x5c1   :  { %v7917_v5 = vpack.c.bf16 %v2052_v44, %v2048_v34  ;;  %v2080_v48 = vld [vmem:[#allocation7 + $0x1518] sm:$0xff]  ;;  %v2103_v24 = vld [vmem:[#allocation7 + $0x15d0] sm:$0xff] }
 0x5c2   :  { %7516 = vmatpush1.bf16.msra.mxu0 %v7515_v56  ;;  %v2045_v56 = vld [vmem:[#allocation7 + $0x1400] sm:$0xff] }
 0x5c3   :  { %7900 = vmatpush1.bf16.msra.mxu1 %v7899_v49  ;;  %7518 = vmatprep.subr.bf16.mxu0 %v7517_v60  ;;  %v2049_v49 = vld [vmem:[#allocation7 + $0x1420] sm:$0xff]  ;;  %v1375_v60 = vsel %vm478_vm2, %v8294_v29, %v8303_v42  ;;  %v7919_v29 = vpack.c.bf16 %v2051_v51, %v2047_v58  ;;  %v2088_v58 = vld [vmem:[#allocation7 + $0x1558] sm:$0xff] }
 0x5c4   :  { %7902 = vmatprep.subr.bf16.mxu1 %v7901_v3  ;;  %v10013_v3 = vpop.permute.xlu1 %1365  ;;  %v7535_v2 = vpack.c.bf16 %v2049_v49, %v2045_v56  ;;  %v1400_v54 = vmax.f32 %v9922_v21, %v1375_v60  ;;  %v2053_v42 = vld [vmem:[#allocation7 + $0x1440] sm:$0xff]  ;;  %v7933_v56 = vpack.c.bf16 %v2084_v28, %v2080_v48  ;;  %v2083_v49 = vld [vmem:[#allocation7 + $0x1530] sm:$0xff]  ;;  %v2086_v60 = vld [vmem:[#allocation7 + $0x1548] sm:$0xff] }
 0x5c5   :  { %v1378_v23 = vsel %vm478_vm2, %v10006_v50, %v10013_v3  ;;  %v2092_v51 = vld [vmem:[#allocation7 + $0x1578] sm:$0xff]  ;;  %v2111_v48 = vld [vmem:[#allocation7 + $0x1610] sm:$0xff]  ;;  %v1404_v16 = vmax.f32 %v9939_v6, %v10013_v3 }
 0x5c6   :  { %7520 = vmatpush1.bf16.msra.mxu0 %v7519_v53  ;;  %v2060_v53 = vld [vmem:[#allocation7 + $0x1478] sm:$0xff]  ;;  %v1403_v55 = vmax.f32 %v9949_v4, %v1378_v23  ;;  %v2074_v4 = vld [vmem:[#allocation7 + $0x14e8] sm:$0xff] }
 0x5c7   :  { %7904 = vmatpush1.bf16.msra.mxu1 %v7903_v7  ;;  %7522 = vmatprep.subr.bf16.mxu0 %v7521_v45  ;;  %v2057_v7 = vld [vmem:[#allocation7 + $0x1460] sm:$0xff]  ;;  %v2055_v45 = vld [vmem:[#allocation7 + $0x1450] sm:$0xff]  ;;  %v7921_v1 = vpack.c.bf16 %v2060_v53, %v2056_v15 }
 0x5c8   :  { %7906 = vmatprep.subr.bf16.mxu1 %v7905_v36  ;;  %v2066_v36 = vld [vmem:[#allocation7 + $0x14a8] sm:$0xff]  ;;  %v7539_v21 = vpack.c.bf16 %v2057_v7, %v2053_v42  ;;  %v7923_v27 = vpack.c.bf16 %v2059_v37, %v2055_v45  ;;  %v2089_v15 = vld [vmem:[#allocation7 + $0x1560] sm:$0xff]  ;;  %v2087_v53 = vld [vmem:[#allocation7 + $0x1550] sm:$0xff] }
 0x5c9   :  { %v2094_v42 = vld [vmem:[#allocation7 + $0x1588] sm:$0xff]  ;;  %v2096_v45 = vld [vmem:[#allocation7 + $0x1598] sm:$0xff] }
 0x5ca   :  { %7524 = vmatpush1.bf16.msra.mxu0 %v7523_v18  ;;  %v7541_v18 = vpack.c.bf16 %v2066_v36, %v2062_v20  ;;  %v2098_v7 = vld [vmem:[#allocation7 + $0x15a8] sm:$0xff] }
 0x5cb   :  { %7908 = vmatpush1.bf16.msra.mxu1 %v7907_v59  ;;  %7526 = vmatprep.subr.bf16.mxu0 %v7525_v41  ;;  %v2061_v59 = vld [vmem:[#allocation7 + $0x1480] sm:$0xff]  ;;  %v7557_v36 = vpack.c.bf16 %v2098_v7, %v2094_v42 }
 0x5cc   :  { %7910 = vmatprep.subr.bf16.mxu1 %v7909_v57  ;;  %v2065_v41 = vld [vmem:[#allocation7 + $0x14a0] sm:$0xff]  ;;  %v2070_v57 = vld [vmem:[#allocation7 + $0x14c8] sm:$0xff] }
 0x5cd   :  { %v7543_v31 = vpack.c.bf16 %v2065_v41, %v2061_v59  ;;  %v7545_v25 = vpack.c.bf16 %v2074_v4, %v2070_v57  ;;  %v2104_v59 = vld [vmem:[#allocation7 + $0x15d8] sm:$0xff]  ;;  %v2101_v57 = vld [vmem:[#allocation7 + $0x15c0] sm:$0xff] }
 0x5ce   :  { %7528 = vmatpush1.bf16.msra.mxu0 %v7527_v32  ;;  %v2069_v32 = vld [vmem:[#allocation7 + $0x14c0] sm:$0xff]  ;;  %v2108_v41 = vld [vmem:[#allocation7 + $0x15f8] sm:$0xff] }
 0x5cf   :  { %7912 = vmatpush1.bf16.msra.mxu1 %v7911_v61  ;;  %7530 = vmatprep.subr.bf16.mxu0 %v7529_v63  ;;  %v2073_v61 = vld [vmem:[#allocation7 + $0x14e0] sm:$0xff]  ;;  %v2071_v63 = vld [vmem:[#allocation7 + $0x14d0] sm:$0xff]  ;;  %v7945_v14 = vpack.c.bf16 %v2108_v41, %v2104_v59 }
 0x5d0   :  { %7914 = vmatprep.subr.bf16.mxu1 %v7913_v0  ;;  %v2082_v0 = vld [vmem:[#allocation7 + $0x1528] sm:$0xff]  ;;  %v7547_v30 = vpack.c.bf16 %v2073_v61, %v2069_v32  ;;  %v7931_v34 = vpack.c.bf16 %v2075_v33, %v2071_v63  ;;  %v2105_v4 = vld [vmem:[#allocation7 + $0x15e0] sm:$0xff]  ;;  %v2112_v32 = vld [vmem:[#allocation7 + $0x1618] sm:$0xff] }
 0x5d1   :  { %v7549_v44 = vpack.c.bf16 %v2082_v0, %v2078_v17  ;;  %v2116_v61 = vld [vmem:[#allocation7 + $0x1638] sm:$0xff]  ;;  %v7563_v63 = vpack.c.bf16 %v2105_v4, %v2101_v57  ;;  %v2109_v17 = vld [vmem:[#allocation7 + $0x1600] sm:$0xff]  ;;  %v2135_v59 = vld [vmem:[#allocation7 + $0x16d0] sm:$0xff] }
 0x5d2   :  { %7532 = vmatpush1.bf16.msra.mxu0 %v7531_v12  ;;  %v2077_v12 = vld [vmem:[#allocation7 + $0x1500] sm:$0xff]  ;;  %v7949_v28 = vpack.c.bf16 %v2116_v61, %v2112_v32  ;;  %v2144_v57 = vld [vmem:[#allocation7 + $0x1718] sm:$0xff]  ;;  %v2143_v32 = vld [vmem:[#allocation7 + $0x1710] sm:$0xff] }
 0x5d3   :  { %7916 = vmatpush1.bf16.msra.mxu1 %v7915_v38  ;;  %7534 = vmatprep.subr.bf16.mxu0 %v7533_v11  ;;  %v2081_v38 = vld [vmem:[#allocation7 + $0x1520] sm:$0xff]  ;;  %v2079_v11 = vld [vmem:[#allocation7 + $0x1510] sm:$0xff]  ;;  %v2148_v4 = vld [vmem:[#allocation7 + $0x1738] sm:$0xff] }
 0x5d4   :  { %7918 = vmatprep.subr.bf16.mxu1 %v7917_v5  ;;  %v2090_v5 = vld [vmem:[#allocation7 + $0x1568] sm:$0xff]  ;;  %v7551_v47 = vpack.c.bf16 %v2081_v38, %v2077_v12  ;;  %v7935_v19 = vpack.c.bf16 %v2083_v49, %v2079_v11  ;;  %v2113_v0 = vld [vmem:[#allocation7 + $0x1620] sm:$0xff]  ;;  %v2120_v12 = vld [vmem:[#allocation7 + $0x1658] sm:$0xff]  ;;  %v7965_v61 = vpack.c.bf16 %v2148_v4, %v2144_v57 }
 0x5d5   :  { %2543 = vmatmul.mubr.f32.vlgmr.msra.gmra.mrb[0].mxu0 %v1400_v54  ;;  %v7553_v23 = vpack.c.bf16 %v2090_v5, %v2086_v60  ;;  %v2124_v38 = vld [vmem:[#allocation7 + $0x1678] sm:$0xff]  ;;  %v7567_v11 = vpack.c.bf16 %v2113_v0, %v2109_v17  ;;  %v2117_v60 = vld [vmem:[#allocation7 + $0x1640] sm:$0xff] }
 0x5d6   :  { %3040 = vmatmul.mubr.f32.vlgmr.msra.gmra.mrb[0].mxu1 %v1400_v54  ;;  %7536 = vmatpush1.bf16.msra.mxu0 %v7535_v2  ;;  %v2085_v2 = vld [vmem:[#allocation7 + $0x1540] sm:$0xff]  ;;  %v7937_v54 = vpack.c.bf16 %v2092_v51, %v2088_v58  ;;  %v2119_v58 = vld [vmem:[#allocation7 + $0x1650] sm:$0xff]  ;;  %v7953_v51 = vpack.c.bf16 %v2124_v38, %v2120_v12  ;;  %v2152_v17 = vld [vmem:[#allocation7 + $0x1758] sm:$0xff] }
 0x5d7   :  { %2613 = vmatprep.mubr.f32.mxu0 %v1403_v55  ;;  %7920 = vmatpush1.bf16.msra.mxu1 %v7919_v29  ;;  %v2091_v29 = vld [vmem:[#allocation7 + $0x1570] sm:$0xff]  ;;  %v7555_v37 = vpack.c.bf16 %v2089_v15, %v2085_v2  ;;  %v2121_v5 = vld [vmem:[#allocation7 + $0x1660] sm:$0xff]  ;;  %v2128_v2 = vld [vmem:[#allocation7 + $0x1698] sm:$0xff] }
 0x5d8   :  { %3110 = vmatprep.mubr.f32.mxu1 %v1403_v55  ;;  %7538 = vmatprep.subr.bf16.mxu0 %v7537_v8  ;;  %v2100_v8 = vld [vmem:[#allocation7 + $0x15b8] sm:$0xff]  ;;  %v7939_v20 = vpack.c.bf16 %v2091_v29, %v2087_v53  ;;  %v2093_v55 = vld [vmem:[#allocation7 + $0x1580] sm:$0xff]  ;;  %v7571_v53 = vpack.c.bf16 %v2121_v5, %v2117_v60  ;;  %v2151_v12 = vld [vmem:[#allocation7 + $0x1750] sm:$0xff] }
 0x5d9   :  { %7922 = vmatprep.subr.bf16.mxu1 %v7921_v1  ;;  %v2097_v1 = vld [vmem:[#allocation7 + $0x15a0] sm:$0xff]  ;;  %v7941_v9 = vpack.c.bf16 %v2100_v8, %v2096_v45  ;;  %v2132_v15 = vld [vmem:[#allocation7 + $0x16b8] sm:$0xff]  ;;  %v2127_v45 = vld [vmem:[#allocation7 + $0x1690] sm:$0xff] }
 0x5da   :  { %7540 = vmatpush1.bf16.msra.mxu0 %v7539_v21  ;;  %v2099_v21 = vld [vmem:[#allocation7 + $0x15b0] sm:$0xff]  ;;  %v7559_v10 = vpack.c.bf16 %v2097_v1, %v2093_v55  ;;  %v2125_v42 = vld [vmem:[#allocation7 + $0x1680] sm:$0xff]  ;;  %v7957_v8 = vpack.c.bf16 %v2132_v15, %v2128_v2  ;;  %v2136_v55 = vld [vmem:[#allocation7 + $0x16d8] sm:$0xff] }
 0x5db   :  { %7924 = vmatpush1.bf16.msra.mxu1 %v7923_v27  ;;  %7542 = vmatprep.subr.bf16.mxu0 %v7541_v18  ;;  %v2102_v27 = vld [vmem:[#allocation7 + $0x15c8] sm:$0xff]  ;;  %v2129_v7 = vld [vmem:[#allocation7 + $0x16a0] sm:$0xff]  ;;  %v2140_v1 = vld [vmem:[#allocation7 + $0x16f8] sm:$0xff] }
 0x5dc   :  { %7926 = vmatprep.subr.bf16.mxu1 %v7925_v13  ;;  %v2106_v18 = vld [vmem:[#allocation7 + $0x15e8] sm:$0xff]  ;;  %v7943_v13 = vpack.c.bf16 %v2099_v21, %v2095_v26  ;;  %v7575_v26 = vpack.c.bf16 %v2129_v7, %v2125_v42  ;;  %v7961_v41 = vpack.c.bf16 %v2140_v1, %v2136_v55  ;;  %v2156_v0 = vld [vmem:[#allocation7 + $0x1778] sm:$0xff]  ;;  %v2159_v2 = vld [vmem:[#allocation7 + $0x1790] sm:$0xff] }
 0x5dd   :  { %v7561_v40 = vpack.c.bf16 %v2106_v18, %v2102_v27  ;;  %v2133_v27 = vld [vmem:[#allocation7 + $0x16c0] sm:$0xff]  ;;  %v7969_v38 = vpack.c.bf16 %v2156_v0, %v2152_v17  ;;  %v2160_v60 = vld [vmem:[#allocation7 + $0x1798] sm:$0xff]  ;;  %v2167_v1 = vld [vmem:[#allocation7 + $0x17d0] sm:$0xff] }
 0x5de   :  { %7544 = vmatpush1.bf16.msra.mxu0 %v7543_v31  ;;  %v2107_v31 = vld [vmem:[#allocation7 + $0x15f0] sm:$0xff]  ;;  %v2137_v18 = vld [vmem:[#allocation7 + $0x16e0] sm:$0xff]  ;;  %v2164_v5 = vld [vmem:[#allocation7 + $0x17b8] sm:$0xff] }
 0x5df   :  { %7928 = vmatpush1.bf16.msra.mxu1 %v7927_v62  ;;  %7546 = vmatprep.subr.bf16.mxu0 %v7545_v25  ;;  %v2110_v62 = vld [vmem:[#allocation7 + $0x1608] sm:$0xff]  ;;  %v7973_v15 = vpack.c.bf16 %v2164_v5, %v2160_v60  ;;  %v2168_v42 = vld [vmem:[#allocation7 + $0x17d8] sm:$0xff] }
 0x5e0   :  { %7930 = vmatprep.subr.bf16.mxu1 %v7929_v52  ;;  %v2114_v25 = vld [vmem:[#allocation7 + $0x1628] sm:$0xff]  ;;  %v7947_v52 = vpack.c.bf16 %v2107_v31, %v2103_v24  ;;  %v7579_v24 = vpack.c.bf16 %v2137_v18, %v2133_v27  ;;  %v2172_v7 = vld [vmem:[#allocation7 + $0x17f8] sm:$0xff]  ;;  %v1377_v27 = vsel %vm478_vm2, %v8304_v39, %v10006_v50  ;;  %vm4519_vm2 = vcmask 785408  }
 0x5e1   :  { %v7565_v33 = vpack.c.bf16 %v2114_v25, %v2110_v62  ;;  %v2141_v62 = vld [vmem:[#allocation7 + $0x1700] sm:$0xff]  ;;  %v7977_v55 = vpack.c.bf16 %v2172_v7, %v2168_v42  ;;  %v2174_v18 = vld [vmem:[#allocation7 + $0x1808] sm:$0x7] }
 0x5e2   :  { %7548 = vmatpush1.bf16.msra.mxu0 %v7547_v30  ;;  %v2115_v30 = vld [vmem:[#allocation7 + $0x1630] sm:$0xff]  ;;  %v2145_v25 = vld [vmem:[#allocation7 + $0x1720] sm:$0xff] }
 0x5e3   :  { %7932 = vmatpush1.bf16.msra.mxu1 %v7931_v34  ;;  %7550 = vmatprep.subr.bf16.mxu0 %v7549_v44  ;;  %v2118_v34 = vld [vmem:[#allocation7 + $0x1648] sm:$0xff] }
 0x5e4   :  { %7934 = vmatprep.subr.bf16.mxu1 %v7933_v56  ;;  %v2122_v44 = vld [vmem:[#allocation7 + $0x1668] sm:$0xff]  ;;  %v7951_v56 = vpack.c.bf16 %v2115_v30, %v2111_v48  ;;  %v7583_v48 = vpack.c.bf16 %v2145_v25, %v2141_v62 }
 0x5e5   :  { %v7569_v49 = vpack.c.bf16 %v2122_v44, %v2118_v34  ;;  %v2149_v34 = vld [vmem:[#allocation7 + $0x1740] sm:$0xff] }
 0x5e6   :  { %7552 = vmatpush1.bf16.msra.mxu0 %v7551_v47  ;;  %v2123_v47 = vld [vmem:[#allocation7 + $0x1670] sm:$0xff]  ;;  %v2153_v44 = vld [vmem:[#allocation7 + $0x1760] sm:$0xff] }
 0x5e7   :  { %7936 = vmatpush1.bf16.msra.mxu1 %v7935_v19  ;;  %7554 = vmatprep.subr.bf16.mxu0 %v7553_v23  ;;  %v2126_v19 = vld [vmem:[#allocation7 + $0x1688] sm:$0xff] }
 0x5e8   :  { %7938 = vmatprep.subr.bf16.mxu1 %v7937_v54  ;;  %v2130_v23 = vld [vmem:[#allocation7 + $0x16a8] sm:$0xff]  ;;  %v7955_v54 = vpack.c.bf16 %v2123_v47, %v2119_v58  ;;  %v7587_v58 = vpack.c.bf16 %v2153_v44, %v2149_v34  ;;  %v6943_v44 = vld [vmem:[%s10804_s5 + $0x10] sm:$0xff] }
 0x5e9   :  { %v7573_v29 = vpack.c.bf16 %v2130_v23, %v2126_v19  ;;  %v2157_v19 = vld [vmem:[#allocation7 + $0x1780] sm:$0xff] }
 0x5ea   :  { %7556 = vmatpush1.bf16.msra.mxu0 %v7555_v37  ;;  %v2131_v37 = vld [vmem:[#allocation7 + $0x16b0] sm:$0xff]  ;;  %v2161_v23 = vld [vmem:[#allocation7 + $0x17a0] sm:$0xff] }
 0x5eb   :  { %7940 = vmatpush1.bf16.msra.mxu1 %v7939_v20  ;;  %7558 = vmatprep.subr.bf16.mxu0 %v7557_v36  ;;  %v2134_v20 = vld [vmem:[#allocation7 + $0x16c8] sm:$0xff] }
 0x5ec   :  { %7942 = vmatprep.subr.bf16.mxu1 %v7941_v9  ;;  %v2138_v36 = vld [vmem:[#allocation7 + $0x16e8] sm:$0xff]  ;;  %v7959_v9 = vpack.c.bf16 %v2131_v37, %v2127_v45  ;;  %v7591_v45 = vpack.c.bf16 %v2161_v23, %v2157_v19 }
 0x5ed   :  { %v7577_v21 = vpack.c.bf16 %v2138_v36, %v2134_v20  ;;  %v2165_v20 = vld [vmem:[#allocation7 + $0x17c0] sm:$0xff] }
 0x5ee   :  { %7560 = vmatpush1.bf16.msra.mxu0 %v7559_v10  ;;  %v2139_v10 = vld [vmem:[#allocation7 + $0x16f0] sm:$0xff]  ;;  %v2169_v36 = vld [vmem:[#allocation7 + $0x17e0] sm:$0xff] }
 0x5ef   :  { %7944 = vmatpush1.bf16.msra.mxu1 %v7943_v13  ;;  %7562 = vmatprep.subr.bf16.mxu0 %v7561_v40  ;;  %v2142_v13 = vld [vmem:[#allocation7 + $0x1708] sm:$0xff] }
 0x5f0   :  { %7946 = vmatprep.subr.bf16.mxu1 %v7945_v14  ;;  %v2146_v40 = vld [vmem:[#allocation7 + $0x1728] sm:$0xff]  ;;  %v7963_v14 = vpack.c.bf16 %v2139_v10, %v2135_v59  ;;  %v2176_v59 = vld [vmem:[#allocation7 + $0x1818] sm:$0x7]  ;;  %v2173_v10 = vld [vmem:[#allocation7 + $0x1800] sm:$0x7] }
 0x5f1   :  { %v7581_v31 = vpack.c.bf16 %v2146_v40, %v2142_v13  ;;  %v2175_v13 = vld [vmem:[#allocation7 + $0x1810] sm:$0x7]  ;;  %v8506_v40 = vmov 0.0  }
 0x5f2   :  { %7564 = vmatpush1.bf16.msra.mxu0 %v7563_v63  ;;  %v2147_v63 = vld [vmem:[#allocation7 + $0x1730] sm:$0xff] }
 0x5f3   :  { %7948 = vmatpush1.bf16.msra.mxu1 %v7947_v52  ;;  %7566 = vmatprep.subr.bf16.mxu0 %v7565_v33  ;;  %v2150_v52 = vld [vmem:[#allocation7 + $0x1748] sm:$0xff] }
 0x5f4   :  { %7950 = vmatprep.subr.bf16.mxu1 %v7949_v28  ;;  %v2154_v33 = vld [vmem:[#allocation7 + $0x1768] sm:$0xff]  ;;  %v7967_v28 = vpack.c.bf16 %v2147_v63, %v2143_v32 }
 0x5f5   :  { %v7585_v30 = vpack.c.bf16 %v2154_v33, %v2150_v52  ;;  %v3196_v52 = vld [vmem:[%s10804_s5] sm:$0xff] }
 0x5f6   :  { %7568 = vmatpush1.bf16.msra.mxu0 %v7567_v11  ;;  %v2155_v11 = vld [vmem:[#allocation7 + $0x1770] sm:$0xff] }
 0x5f7   :  { %7952 = vmatpush1.bf16.msra.mxu1 %v7951_v56  ;;  %7570 = vmatprep.subr.bf16.mxu0 %v7569_v49  ;;  %v2158_v56 = vld [vmem:[#allocation7 + $0x1788] sm:$0xff] }
 0x5f8   :  { %7954 = vmatprep.subr.bf16.mxu1 %v7953_v51  ;;  %v2162_v49 = vld [vmem:[#allocation7 + $0x17a8] sm:$0xff]  ;;  %v7971_v51 = vpack.c.bf16 %v2155_v11, %v2151_v12 }
 0x5f9   :  { %v7589_v47 = vpack.c.bf16 %v2162_v49, %v2158_v56 }
 0x5fa   :  { %7572 = vmatpush1.bf16.msra.mxu0 %v7571_v53  ;;  %v2163_v53 = vld [vmem:[#allocation7 + $0x17b0] sm:$0xff] }
 0x5fb   :  { %7956 = vmatpush1.bf16.msra.mxu1 %v7955_v54  ;;  %7574 = vmatprep.subr.bf16.mxu0 %v7573_v29  ;;  %v2166_v54 = vld [vmem:[#allocation7 + $0x17c8] sm:$0xff] }
 0x5fc   :  { %7958 = vmatprep.subr.bf16.mxu1 %v7957_v8  ;;  %v2170_v29 = vld [vmem:[#allocation7 + $0x17e8] sm:$0xff]  ;;  %v7975_v8 = vpack.c.bf16 %v2163_v53, %v2159_v2 }
 0x5fd   :  { %v7593_v37 = vpack.c.bf16 %v2170_v29, %v2166_v54  ;;  %v6949_v54 = vld [vmem:[%s10804_s5 + $0x20] sm:$0xff] }
 0x5fe   :  { %7576 = vmatpush1.bf16.msra.mxu0 %v7575_v26  ;;  %v2171_v26 = vld [vmem:[#allocation7 + $0x17f0] sm:$0xff] }
 0x5ff   :  { %7960 = vmatpush1.bf16.msra.mxu1 %v7959_v9  ;;  %7578 = vmatprep.subr.bf16.mxu0 %v7577_v21  ;;  %v7595_v9 = vpack.c.bf16 %v2169_v36, %v2165_v20  ;;  %v7979_v21 = vpack.c.bf16 %v2171_v26, %v2167_v1  ;;  %v6952_v36 = vld [vmem:[%s10804_s5 + $0x28] sm:$0xff] }
 0x600   :  { %7962 = vmatprep.subr.bf16.mxu1 %v7961_v41  ;;  %v1402_v41 = vmax.f32 %v9935_v46, %v1377_v27 }
 0x602   :  { %7580 = vmatpush1.bf16.msra.mxu0 %v7579_v24 }
 0x603   :  { %7964 = vmatpush1.bf16.msra.mxu1 %v7963_v14  ;;  %7582 = vmatprep.subr.bf16.mxu0 %v7581_v31  ;;  %v6938_v31 = vld [vmem:[%s10804_s5 + $0x8] sm:$0xff] }
 0x604   :  { %7966 = vmatprep.subr.bf16.mxu1 %v7965_v61 }
 0x606   :  { %7584 = vmatpush1.bf16.msra.mxu0 %v7583_v48 }
 0x607   :  { %7968 = vmatpush1.bf16.msra.mxu1 %v7967_v28  ;;  %7586 = vmatprep.subr.bf16.mxu0 %v7585_v30 }
 0x608   :  { %7970 = vmatprep.subr.bf16.mxu1 %v7969_v38 }
 0x60a   :  { %7588 = vmatpush1.bf16.msra.mxu0 %v7587_v58  ;;  %v6946_v58 = vld [vmem:[%s10804_s5 + $0x18] sm:$0xff] }
 0x60b   :  { %7972 = vmatpush1.bf16.msra.mxu1 %v7971_v51  ;;  %7590 = vmatprep.subr.bf16.mxu0 %v7589_v47 }
 0x60c   :  { %7974 = vmatprep.subr.bf16.mxu1 %v7973_v15 }
 0x60e   :  { %7592 = vmatpush1.bf16.msra.mxu0 %v7591_v45 }
 0x60f   :  { %7976 = vmatpush1.bf16.msra.mxu1 %v7975_v8  ;;  %7594 = vmatprep.subr.bf16.mxu0 %v7593_v37 }
 0x610   :  { %7978 = vmatprep.subr.bf16.mxu1 %v7977_v55 }
 0x612   :  { %7596 = vmatpush1.bf16.msra.mxu0 %v7595_v9 }
 0x613   :  { %7980 = vmatpush1.bf16.msra.mxu1 %v7979_v21  ;;  %6932 = vmatprep.subr.msk.mxu0 %vm2181_vm9, %v2174_v18 }
 0x614   :  { %6935 = vmatprep.subr.msk.mxu1 %vm2181_vm9, %v2176_v59  ;;  %v6955_v59 = vld [vmem:[%s10804_s5 + $0x30] sm:$0xff] }
 0x615   :  { %2614 = vmatmul.mubr.f32.vlgmr.msra.gmra.mrb[0].mxu0 %v1402_v41 }
 0x616   :  { %3111 = vmatmul.mubr.f32.vlgmr.msra.gmra.mrb[0].mxu1 %v1402_v41  ;;  %6933 = vmatpush1.msk.msra.mxu0 %vm2181_vm9, %v2173_v10 }
 0x617   :  { %2684 = vmatprep.mubr.f32.mxu0 %v8506_v40  ;;  %6936 = vmatpush1.msk.msra.mxu1 %vm2181_vm9, %v2175_v13  ;;  %vm5737_vm9 = vcmask 900096  }
 0x618   :  { %3181 = vmatprep.mubr.f32.mxu1 %v8506_v40 }
 0x61d   :  { %6934 = vmatmul.mubr.msk.f32.vlgmr.msra.gmra.mrb[0].mxu0 %vm2177_vm10, %v1404_v16 }
 0x61e   :  { %6937 = vmatmul.mubr.msk.f32.vlgmr.msra.gmra.mrb[0].mxu1 %vm2177_vm10, %v1404_v16  ;;  %3286 = vmatprep.mubr.f32.mxu0 %v8506_v40  ;;  %vm5877_vm10 = vcmask 1046528  }
 0x61f   :  { %3357 = vmatprep.mubr.f32.mxu1 %v8506_v40 }
 0x6f0   :  { %v2686_v46 = vpop.f32.mrb[0].mxu0 }
 0x6f1   :  { %v10031_v39 = vpop.f32.mrb[0].mxu1  ;;  %v2688_v50 = vpop.f32.mrb[1].mxu0 }
 0x6f2   :  { %3189 = vst [vmem:[#allocation2 + $0x8] sm:$0xff] %v2688_v50  ;;  %v3185_v57 = vpop.f32.mrb[1].mxu1  ;;  %3207 = vrot.lane.b32.xlu1 %v10031_v39, %s8497_s30  ;;  %3205 = vrot.lane.b32.xlu0 %v2688_v50, %s8497_s30 }
 0x6f3   :  { %3191 = vst.msk [vmem:[#allocation2 + $0x18] sm:$0xff] %vm674_vm4, %v3185_v57  ;;  %v6958_v57 = vld [vmem:[%s10804_s5 + $0x38] sm:$0xff] }
 0x6f6   :  { %3203 = vrot.lane.b32.xlu0 %v2686_v46, %s8497_s30 }
 0x6fa   :  { %v3195_v6 = vld [vmem:[#allocation2 + $0x18] sm:$0xff]  ;;  %3513 = vrot.lane.b32.xlu0 %v2688_v50, %s8498_s26 }
 0x6fb   :  { %3209 = vrot.lane.b32.xlu1 %v3195_v6, %s8497_s30 }
 0x6fe   :  { %3511 = vrot.lane.b32.xlu0 %v2686_v46, %s8498_s26 }
 0x6ff   :  { %3515 = vrot.lane.b32.xlu1 %v10031_v39, %s8498_s26 }
 0x702   :  { %3679 = vrot.lane.b32.xlu0 %v2688_v50, %s8507_s2 }
 0x703   :  { %3517 = vrot.lane.b32.xlu1 %v3195_v6, %s8498_s26 }
 0x706   :  { %3677 = vrot.lane.b32.xlu0 %v2686_v46, %s8507_s2 }
 0x707   :  { %3681 = vrot.lane.b32.xlu1 %v10031_v39, %s8507_s2 }
 0x70a   :  { %3846 = vrot.lane.b32.xlu0 %v2688_v50, %s8508_s23 }
 0x70b   :  { %3683 = vrot.lane.b32.xlu1 %v3195_v6, %s8507_s2 }
 0x70e   :  { %3844 = vrot.lane.b32.xlu0 %v2686_v46, %s8508_s23 }
 0x70f   :  { %3848 = vrot.lane.b32.xlu1 %v10031_v39, %s8508_s23 }
 0x712   :  { %4013 = vrot.lane.b32.xlu0 %v2688_v50, %s8509_s24 }
 0x713   :  { %3850 = vrot.lane.b32.xlu1 %v3195_v6, %s8508_s23 }
 0x716   :  { %4011 = vrot.lane.b32.xlu0 %v2686_v46, %s8509_s24 }
 0x717   :  { %4015 = vrot.lane.b32.xlu1 %v10031_v39, %s8509_s24 }
 0x71a   :  { %4180 = vrot.lane.b32.xlu0 %v2688_v50, %s8501_s18 }
 0x71b   :  { %4017 = vrot.lane.b32.xlu1 %v3195_v6, %s8509_s24 }
 0x71e   :  { %4178 = vrot.lane.b32.xlu0 %v2686_v46, %s8501_s18 }
 0x71f   :  { %4182 = vrot.lane.b32.xlu1 %v10031_v39, %s8501_s18 }
 0x722   :  { %4346 = vrot.lane.b32.xlu0 %v2688_v50, %s8510_s11 }
 0x723   :  { %4184 = vrot.lane.b32.xlu1 %v3195_v6, %s8501_s18 }
 0x726   :  { %4344 = vrot.lane.b32.xlu0 %v2686_v46, %s8510_s11 }
 0x727   :  { %4348 = vrot.lane.b32.xlu1 %v10031_v39, %s8510_s11 }
 0x72a   :  { %4513 = vrot.lane.b32.xlu0 %v2688_v50, %s8511_s15 }
 0x72b   :  { %4350 = vrot.lane.b32.xlu1 %v3195_v6, %s8510_s11 }
 0x72e   :  { %4511 = vrot.lane.b32.xlu0 %v2686_v46, %s8511_s15 }
 0x72f   :  { %4515 = vrot.lane.b32.xlu1 %v10031_v39, %s8511_s15 }
 0x733   :  { %4517 = vrot.lane.b32.xlu1 %v3195_v6, %s8511_s15 }
 0x764   :  { %v3208_v3 = vpop.permute.xlu1 %3207  ;;  %v3206_v4 = vpop.permute.xlu0 %3205 }
 0x765   :  { %v3212_v24 = vsel %vm282_vm0, %v3206_v4, %v3208_v3 }
 0x766   :  { %3222 = vmatprep.subr.mxu0 %v3212_v24 }
 0x768   :  { %v3204_v14 = vpop.permute.xlu0 %3203 }
 0x769   :  { %v3211_v62 = vsel %vm282_vm0, %v3204_v14, %v3206_v4 }
 0x76a   :  { %3223 = vmatpush1.msra.mxu0 %v3211_v62  ;;  %v4676_v62 = vld [vmem:[#allocation9] sm:$0xf] }
 0x76b   :  { %6939 = vmatmul.mubr.msk.f32.vlgmr.msra.gmra.mrb[2].mxu0 %vm3218_vm11, %v6938_v31  ;;  %3367 = vmatprep.subr.mxu0 %v2688_v50 }
 0x76c   :  { %3368 = vmatpush1.msra.mxu0 %v2686_v46  ;;  %v3514_v25 = vpop.permute.xlu0 %3513  ;;  %3431 = vmatprep.mubr.f32.mxu0 %v8506_v40 }
 0x76d   :  { %v3210_v32 = vpop.permute.xlu1 %3209 }
 0x76e   :  { %v3213_v61 = vsel %vm282_vm0, %v3208_v3, %v3210_v32  ;;  %3293 = vmatprep.subr.mxu1 %v3210_v32 }
 0x76f   :  { %3294 = vmatpush1.msra.mxu1 %v3213_v61  ;;  %v10991_v61 = vld [vmem:[#allocation21_spill] sm:$0xff] }
 0x770   :  { %6940 = vmatmul.mubr.msk.f32.vlgmr.msra.gmra.mrb[2].mxu1 %vm3218_vm11, %v6938_v31  ;;  %3438 = vmatprep.subr.mxu1 %v3195_v6  ;;  %v3512_v63 = vpop.permute.xlu0 %3511  ;;  %v6961_v31 = vld [vmem:[%s10804_s5 + $0x40] sm:$0xff] }
 0x771   :  { %3439 = vmatpush1.msra.mxu1 %v10031_v39  ;;  %v3516_v33 = vpop.permute.xlu1 %3515  ;;  %v3519_v17 = vsel %vm380_vm1, %v3512_v63, %v3514_v25  ;;  %3502 = vmatprep.mubr.f32.mxu1 %v8506_v40  ;;  %v4685_v63 = vrot.slane %v4676_v62, %v10991_v61  ;;  %v4813_v61 = vld [vmem:[%s10807_s8 + $0x10] sm:$0xff] }
 0x772   :  { %v3520_v0 = vsel %vm380_vm1, %v3514_v25, %v3516_v33  ;;  %v10990_v25 = vld [vmem:[#allocation22_spill] sm:$0xff] }
 0x773   :  { %3529 = vmatprep.subr.mxu0 %v3520_v0  ;;  %6941 = vmatmul.mubr.msk.f32.vlgmr.msra.gmra.mrb[2].mxu0 %vm3218_vm11, %v3196_v52  ;;  %v4681_v32 = vrot.slane %v4676_v62, %v10990_v25  ;;  %v4689_v0 = vrot.slane %v4676_v62, %v10981_v22  ;;  %v4811_v25 = vld [vmem:[%s10807_s8] sm:$0xff] }
 0x774   :  { %3530 = vmatpush1.msra.mxu0 %v3519_v17  ;;  %v3680_v48 = vpop.permute.xlu0 %3679  ;;  %3593 = vmatprep.mubr.f32.mxu0 %v8506_v40 }
 0x775   :  { %v3518_v28 = vpop.permute.xlu1 %3517 }
 0x776   :  { %v3521_v30 = vsel %vm380_vm1, %v3516_v33, %v3518_v28  ;;  %3600 = vmatprep.subr.mxu1 %v3518_v28  ;;  %v4693_v28 = vrot.slane %v4676_v62, %v10983_v43  ;;  %v4814_v62 = vld [vmem:[%s10807_s8 + $0x18] sm:$0xff] }
 0x778   :  { %6942 = vmatmul.mubr.msk.f32.vlgmr.msra.gmra.mrb[2].mxu1 %vm3218_vm11, %v3196_v52  ;;  %v3678_v34 = vpop.permute.xlu0 %3677 }
 0x779   :  { %3601 = vmatpush1.msra.mxu1 %v3521_v30  ;;  %v3682_v12 = vpop.permute.xlu1 %3681  ;;  %v3686_v38 = vsel %vm3685_vm12, %v3678_v34, %v3680_v48  ;;  %3664 = vmatprep.mubr.f32.mxu1 %v8506_v40 }
 0x77a   :  { %v3687_v11 = vsel %vm3685_vm12, %v3680_v48, %v3682_v12 }
 0x77b   :  { %3696 = vmatprep.subr.mxu0 %v3687_v11  ;;  %6944 = vmatmul.mubr.msk.f32.vlgmr.msra.gmra.mrb[2].mxu0 %vm3218_vm11, %v6943_v44 }
 0x77c   :  { %3697 = vmatpush1.msra.mxu0 %v3686_v38  ;;  %v3847_v56 = vpop.permute.xlu0 %3846  ;;  %3760 = vmatprep.mubr.f32.mxu0 %v8506_v40 }
 0x77d   :  { %v3684_v49 = vpop.permute.xlu1 %3683 }
 0x77e   :  { %v3688_v60 = vsel %vm3685_vm12, %v3682_v12, %v3684_v49  ;;  %3767 = vmatprep.subr.mxu1 %v3684_v49 }
 0x780   :  { %6945 = vmatmul.mubr.msk.f32.vlgmr.msra.gmra.mrb[2].mxu1 %vm3218_vm11, %v6943_v44  ;;  %v3845_v5 = vpop.permute.xlu0 %3844 }
 0x781   :  { %3768 = vmatpush1.msra.mxu1 %v3688_v60  ;;  %v3849_v51 = vpop.permute.xlu1 %3848  ;;  %v3853_v47 = vsel %vm3852_vm13, %v3845_v5, %v3847_v56  ;;  %3831 = vmatprep.mubr.f32.mxu1 %v8506_v40  ;;  %v4729_v60 = vld [vmem:[%s10805_s6] sm:$0xff]  ;;  %s8515_s6 = smov 118  }
 0x782   :  { %v3854_v19 = vsel %vm3852_vm13, %v3847_v56, %v3849_v51 }
 0x783   :  { %3863 = vmatprep.subr.mxu0 %v3854_v19  ;;  %6947 = vmatmul.mubr.msk.f32.vlgmr.msra.gmra.mrb[2].mxu0 %vm3218_vm11, %v6946_v58 }
 0x784   :  { %3864 = vmatpush1.msra.mxu0 %v3853_v47  ;;  %v4014_v23 = vpop.permute.xlu0 %4013  ;;  %3927 = vmatprep.mubr.f32.mxu0 %v8506_v40 }
 0x785   :  { %v3851_v2 = vpop.permute.xlu1 %3850 }
 0x786   :  { %v3855_v15 = vsel %vm3852_vm13, %v3849_v51, %v3851_v2  ;;  %3934 = vmatprep.subr.mxu1 %v3851_v2 }
 0x788   :  { %6948 = vmatmul.mubr.msk.f32.vlgmr.msra.gmra.mrb[2].mxu1 %vm3218_vm11, %v6946_v58  ;;  %v4012_v53 = vpop.permute.xlu0 %4011 }
 0x789   :  { %3935 = vmatpush1.msra.mxu1 %v3855_v15  ;;  %v4016_v29 = vpop.permute.xlu1 %4015  ;;  %v4020_v42 = vsel %vm4019_vm14, %v4012_v53, %v4014_v23  ;;  %3998 = vmatprep.mubr.f32.mxu1 %v8506_v40 }
 0x78a   :  { %v4021_v7 = vsel %vm4019_vm14, %v4014_v23, %v4016_v29 }
 0x78b   :  { %4030 = vmatprep.subr.mxu0 %v4021_v7  ;;  %6950 = vmatmul.mubr.msk.f32.vlgmr.msra.gmra.mrb[2].mxu0 %vm3218_vm11, %v6949_v54 }
 0x78c   :  { %4031 = vmatpush1.msra.mxu0 %v4020_v42  ;;  %v4181_v45 = vpop.permute.xlu0 %4180  ;;  %4094 = vmatprep.mubr.f32.mxu0 %v8506_v40 }
 0x78d   :  { %v4018_v8 = vpop.permute.xlu1 %4017 }
 0x78e   :  { %v4022_v37 = vsel %vm4019_vm14, %v4016_v29, %v4018_v8  ;;  %4101 = vmatprep.subr.mxu1 %v4018_v8 }
 0x790   :  { %6951 = vmatmul.mubr.msk.f32.vlgmr.msra.gmra.mrb[2].mxu1 %vm3218_vm11, %v6949_v54  ;;  %v4179_v20 = vpop.permute.xlu0 %4178 }
 0x791   :  { %4102 = vmatpush1.msra.mxu1 %v4022_v37  ;;  %v4183_v55 = vpop.permute.xlu1 %4182  ;;  %v4186_v1 = vsel %vm674_vm4, %v4179_v20, %v4181_v45  ;;  %4165 = vmatprep.mubr.f32.mxu1 %v8506_v40 }
 0x792   :  { %v4187_v26 = vsel %vm674_vm4, %v4181_v45, %v4183_v55 }
 0x793   :  { %4196 = vmatprep.subr.mxu0 %v4187_v26  ;;  %6953 = vmatmul.mubr.msk.f32.vlgmr.msra.gmra.mrb[2].mxu0 %vm3218_vm11, %v6952_v36 }
 0x794   :  { %4197 = vmatpush1.msra.mxu0 %v4186_v1  ;;  %v4347_v9 = vpop.permute.xlu0 %4346  ;;  %4260 = vmatprep.mubr.f32.mxu0 %v8506_v40 }
 0x795   :  { %v4185_v21 = vpop.permute.xlu1 %4184 }
 0x796   :  { %v4188_v27 = vsel %vm674_vm4, %v4183_v55, %v4185_v21  ;;  %4267 = vmatprep.subr.mxu1 %v4185_v21  ;;  %vm4921_vm4 = vcmask 408576  }
 0x798   :  { %6954 = vmatmul.mubr.msk.f32.vlgmr.msra.gmra.mrb[2].mxu1 %vm3218_vm11, %v6952_v36  ;;  %v4345_v18 = vpop.permute.xlu0 %4344 }
 0x799   :  { %4268 = vmatpush1.msra.mxu1 %v4188_v27  ;;  %v4349_v41 = vpop.permute.xlu1 %4348  ;;  %v4353_v10 = vsel %vm4352_vm15, %v4345_v18, %v4347_v9  ;;  %4331 = vmatprep.mubr.f32.mxu1 %v8506_v40 }
 0x79a   :  { %v4354_v13 = vsel %vm4352_vm15, %v4347_v9, %v4349_v41 }
 0x79b   :  { %4363 = vmatprep.subr.mxu0 %v4354_v13  ;;  %6956 = vmatmul.mubr.msk.f32.vlgmr.msra.gmra.mrb[2].mxu0 %vm3218_vm11, %v6955_v59 }
 0x79c   :  { %4364 = vmatpush1.msra.mxu0 %v4353_v10  ;;  %v4514_v16 = vpop.permute.xlu0 %4513  ;;  %4427 = vmatprep.mubr.f32.mxu0 %v8506_v40 }
 0x79d   :  { %v4351_v46 = vpop.permute.xlu1 %4350 }
 0x79e   :  { %v4355_v39 = vsel %vm4352_vm15, %v4349_v41, %v4351_v46  ;;  %4434 = vmatprep.subr.mxu1 %v4351_v46 }
 0x7a0   :  { %6957 = vmatmul.mubr.msk.f32.vlgmr.msra.gmra.mrb[2].mxu1 %vm3218_vm11, %v6955_v59  ;;  %v4512_v50 = vpop.permute.xlu0 %4511 }
 0x7a1   :  { %4435 = vmatpush1.msra.mxu1 %v4355_v39  ;;  %v4516_v6 = vpop.permute.xlu1 %4515  ;;  %v4520_v3 = vsel %vm4519_vm2, %v4512_v50, %v4514_v16  ;;  %4498 = vmatprep.mubr.f32.mxu1 %v8506_v40 }
 0x7a2   :  { %v4521_v4 = vsel %vm4519_vm2, %v4514_v16, %v4516_v6 }
 0x7a3   :  { %4530 = vmatprep.subr.mxu0 %v4521_v4  ;;  %6959 = vmatmul.mubr.msk.f32.vlgmr.msra.gmra.mrb[2].mxu0 %vm3218_vm11, %v6958_v57 }
 0x7a4   :  { %4531 = vmatpush1.msra.mxu0 %v4520_v3  ;;  %4594 = vmatprep.mubr.f32.mxu0 %v8506_v40 }
 0x7a5   :  { %v4518_v24 = vpop.permute.xlu1 %4517 }
 0x7a6   :  { %v4522_v14 = vsel %vm4519_vm2, %v4516_v6, %v4518_v24  ;;  %4601 = vmatprep.subr.mxu1 %v4518_v24  ;;  %vm6713_vm2 = vcmask 359424  }
 0x7a8   :  { %6960 = vmatmul.mubr.msk.f32.vlgmr.msra.gmra.mrb[2].mxu1 %vm3218_vm11, %v6958_v57 }
 0x7a9   :  { %4602 = vmatpush1.msra.mxu1 %v4522_v14  ;;  %4665 = vmatprep.mubr.f32.mxu1 %v8506_v40 }
 0x7aa   :  { %7070 = vmatprep.subr.mxu1 %v8506_v40 }
 0x7ab   :  { %6962 = vmatmul.mubr.msk.f32.vlgmr.msra.gmra.mrb[2].mxu0 %vm3218_vm11, %v6961_v31 }
 0x7b0   :  { %6963 = vmatmul.mubr.msk.f32.vlgmr.msra.gmra.mrb[2].mxu1 %vm3218_vm11, %v6961_v31  ;;  %v4812_v31 = vld [vmem:[%s10807_s8 + $0x8] sm:$0xff] }
 0x7b1   :  { %7072 = vmatprep.mubr.msk.f32.mxu1 %vm8512_vm7, %v8506_v40 }
 0x87e   :  { %v4596_v52 = vpop.f32.mrb[2].mxu0 }
 0x87f   :  { %v4698_v33 = vmul.f32 %v4681_v32, %v4596_v52  ;;  %v4598_v17 = vpop.f32.mrb[3].mxu0 }
 0x880   :  { %v4699_v48 = vmul.f32 %v4685_v63, %v4598_v17 }
 0x882   :  { %v4702_v30 = vadd.f32 %v4699_v48, %v4698_v33  ;;  %v7983_v33 = vpack.c.bf16 %v4813_v61, %v4811_v25  ;;  %v4817_v48 = vld [vmem:[%s10807_s8 + $0x30] sm:$0xff]  ;;  %v4847_v25 = vld [vmem:[%s10807_s8 + $0x120] sm:$0xff]  ;;  %v4852_v61 = vld [vmem:[%s10807_s8 + $0x148] sm:$0xff] }
 0x883   :  { %v4667_v34 = vpop.f32.mrb[2].mxu1 }
 0x884   :  { %v4700_v44 = vmul.f32 %v4689_v0, %v4667_v34  ;;  %v4669_v12 = vpop.f32.mrb[3].mxu1 }
 0x885   :  { %v4701_v38 = vmul.f32 %v4693_v28, %v4669_v12 }
 0x886   :  { %v4703_v11 = vadd.f32 %v4702_v30, %v4700_v44 }
 0x887   :  { %v4705_v56 = vsel %vm4704_vm3, %v4701_v38, 0.0  ;;  %v4819_v38 = vld [vmem:[%s10807_s8 + $0x40] sm:$0xff] }
 0x888   :  { %v4706_v49 = vadd.f32 %v4705_v56, %v4703_v11  ;;  %v4821_v11 = vld [vmem:[%s10807_s8 + $0x50] sm:$0xff]  ;;  %v4824_v56 = vld [vmem:[%s10807_s8 + $0x68] sm:$0xff] }
 0x88a   :  { %4707 = vadd.xlane.f32.xlu0 %v4706_v49  ;;  %v4826_v49 = vld [vmem:[%s10807_s8 + $0x78] sm:$0xff] }
 0x8a0   :  { %4738 = vperm.xlu0 %8247, %v4729_v60  }
 0x917   :  { %v4708_v22 = vpop.xlane.xlu0 %4707 }
 0x918   :  { %v4709_v5 = vmul.f32 0.00295858, %v4708_v22  ;;  %v7993_v22 = vpack.c.bf16 %v4826_v49, %v4824_v56  ;;  %v4862_v56 = vld [vmem:[%s10807_s8 + $0x198] sm:$0xff] }
 0x91a   :  { %v4710_v58 = vsub.f32 %v4596_v52, %v4709_v5  ;;  %v4711_v43 = vsub.f32 %v4598_v17, %v4709_v5  ;;  %v4712_v51 = vsub.f32 %v4667_v34, %v4709_v5  ;;  %v4713_v47 = vsub.f32 %v4669_v12, %v4709_v5  ;;  %v4818_v52 = vld [vmem:[%s10807_s8 + $0x38] sm:$0xff]  ;;  %v4823_v5 = vld [vmem:[%s10807_s8 + $0x60] sm:$0xff] }
 0x91b   :  { %v4822_v34 = vld [vmem:[%s10807_s8 + $0x58] sm:$0xff] }
 0x91c   :  { %v4714_v19 = vmul.f32 %v4710_v58, %v4710_v58  ;;  %v4715_v23 = vmul.f32 %v4711_v43, %v4711_v43  ;;  %v4716_v2 = vmul.f32 %v4712_v51, %v4712_v51  ;;  %v4717_v15 = vmul.f32 %v4713_v47, %v4713_v47 }
 0x91e   :  { %v4718_v53 = vmul.f32 %v4714_v19, %v4681_v32  ;;  %v4719_v54 = vmul.f32 %v4715_v23, %v4685_v63  ;;  %v4721_v29 = vmul.f32 %v4717_v15, %v4693_v28  ;;  %v4720_v42 = vmul.f32 %v4716_v2, %v4689_v0  ;;  %v4816_v63 = vld [vmem:[%s10807_s8 + $0x28] sm:$0xff]  ;;  %v4815_v0 = vld [vmem:[%s10807_s8 + $0x20] sm:$0xff]  ;;  %v4829_v2 = vld [vmem:[%s10807_s8 + $0x90] sm:$0xff] }
 0x91f   :  { %v4739_v18 = vpop.permute.xlu0 %4738  ;;  %v7981_v32 = vpack.c.bf16 %v4814_v62, %v4812_v31  ;;  %v7985_v17 = vpack.c.bf16 %v4818_v52, %v4816_v63  ;;  %v4820_v28 = vld [vmem:[%s10807_s8 + $0x48] sm:$0xff]  ;;  %v7987_v44 = vpack.c.bf16 %v4817_v48, %v4815_v0  ;;  %v4827_v23 = vld [vmem:[%s10807_s8 + $0x80] sm:$0xff]  ;;  %v4854_v63 = vld [vmem:[%s10807_s8 + $0x158] sm:$0xff] }
 0x920   :  { %v4722_v7 = vadd.f32 %v4719_v54, %v4718_v53  ;;  %v4724_v8 = vsel %vm4704_vm3, %v4721_v29, 0.0  ;;  %v7989_v12 = vpack.c.bf16 %v4822_v34, %v4820_v28  ;;  %v4832_v15 = vld [vmem:[%s10807_s8 + $0xa8] sm:$0xff]  ;;  %v4834_v53 = vld [vmem:[%s10807_s8 + $0xb8] sm:$0xff]  ;;  %v7999_v54 = vpack.c.bf16 %v4829_v2, %v4827_v23  ;;  %v4853_v0 = vld [vmem:[%s10807_s8 + $0x150] sm:$0xff] }
 0x921   :  { %7982 = vmatprep.subr.bf16.mxu0 %v7981_v32  ;;  %v8001_v29 = vpack.c.bf16 %v4834_v53, %v4832_v15  ;;  %v4849_v32 = vld [vmem:[%s10807_s8 + $0x130] sm:$0xff]  ;;  %v4856_v48 = vld [vmem:[%s10807_s8 + $0x168] sm:$0xff]  ;;  %v4858_v28 = vld [vmem:[%s10807_s8 + $0x178] sm:$0xff] }
 0x922   :  { %v4723_v45 = vadd.f32 %v4722_v7, %v4720_v42  ;;  %7984 = vmatpush1.bf16.msra.mxu0 %v7983_v33  ;;  %v4831_v42 = vld [vmem:[%s10807_s8 + $0xa0] sm:$0xff]  ;;  %v4833_v7 = vld [vmem:[%s10807_s8 + $0xb0] sm:$0xff]  ;;  %v8019_v52 = vpack.c.bf16 %v4849_v32, %v4847_v25  ;;  %v8021_v33 = vpack.c.bf16 %v4854_v63, %v4852_v61  ;;  %v4868_v2 = vld [vmem:[%s10807_s8 + $0x1c8] sm:$0xff] }
 0x923   :  { %7986 = vmatprep.subr.bf16.mxu0 %v7985_v17  ;;  %v4851_v17 = vld [vmem:[%s10807_s8 + $0x140] sm:$0xff]  ;;  %v4865_v23 = vld [vmem:[%s10807_s8 + $0x1b0] sm:$0xff]  ;;  %v4870_v15 = vld [vmem:[%s10807_s8 + $0x1d8] sm:$0xff] }
 0x924   :  { %v4725_v37 = vadd.f32 %v4724_v8, %v4723_v45  ;;  %v4836_v45 = vld [vmem:[%s10807_s8 + $0xc8] sm:$0xff]  ;;  %v4838_v8 = vld [vmem:[%s10807_s8 + $0xd8] sm:$0xff]  ;;  %v8023_v34 = vpack.c.bf16 %v4853_v0, %v4851_v17 }
 0x925   :  { %v4882_v25 = vld [vmem:[%s10807_s8 + $0x238] sm:$0xff] }
 0x926   :  { %4726 = vadd.xlane.f32.xlu1 %v4725_v37  ;;  %7988 = vmatpush1.bf16.msra.mxu0 %v7987_v44  ;;  %v8003_v37 = vpack.c.bf16 %v4833_v7, %v4831_v42  ;;  %v8025_v44 = vpack.c.bf16 %v4858_v28, %v4856_v48  ;;  %v4869_v42 = vld [vmem:[%s10807_s8 + $0x1d0] sm:$0xff]  ;;  %v4879_v28 = vld [vmem:[%s10807_s8 + $0x220] sm:$0xff] }
 0x927   :  { %7990 = vmatprep.subr.bf16.mxu0 %v7989_v12  ;;  %v4855_v12 = vld [vmem:[%s10807_s8 + $0x160] sm:$0xff] }
 0x937   :  { %4746 = vperm.xlu1 %8249, %v4729_v60   ;;  %v7991_v60 = vpack.c.bf16 %v4821_v11, %v4819_v38  ;;  %v4857_v38 = vld [vmem:[%s10807_s8 + $0x170] sm:$0xff]  ;;  %v4860_v11 = vld [vmem:[%s10807_s8 + $0x188] sm:$0xff] }
 0x938   :  { %v8027_v49 = vpack.c.bf16 %v4857_v38, %v4855_v12  ;;  %v4886_v12 = vld [vmem:[%s10807_s8 + $0x258] sm:$0xff] }
 0x939   :  { %7992 = vmatpush1.bf16.msra.mxu0 %v7991_v60  ;;  %v8029_v60 = vpack.c.bf16 %v4862_v56, %v4860_v11  ;;  %v4883_v56 = vld [vmem:[%s10807_s8 + $0x240] sm:$0xff] }
 0x93a   :  { %7994 = vmatprep.subr.bf16.mxu0 %v7993_v22  ;;  %v4859_v22 = vld [vmem:[%s10807_s8 + $0x180] sm:$0xff] }
 0x9b3   :  { %v4727_v20 = vpop.xlane.xlu1 %4726 }
 0x9b4   :  { %v4728_v36 = vmul.f32 0.00295858, %v4727_v20  ;;  %v8005_v20 = vpack.c.bf16 %v4838_v8, %v4836_v45 }
 0x9b6   :  { %v4730_v55 = vadd.f32 1e-05, %v4728_v36  ;;  %v4835_v36 = vld [vmem:[%s10807_s8 + $0xc0] sm:$0xff] }
 0x9b7   :  { %v4747_v13 = vpop.permute.xlu1 %4746 }
 0x9b8   :  { %8318 = vrsqrt.f32 %v4730_v55  ;;  %v4837_v55 = vld [vmem:[%s10807_s8 + $0xd0] sm:$0xff] }
 0x9c2   :  { %v8319_v1 = vpop.eup %8318 }
 0x9c3   :  { %v4732_v26 = vmul.f32 %v8319_v1, %v4710_v58  ;;  %v4733_v9 = vmul.f32 %v8319_v1, %v4711_v43  ;;  %v4734_v21 = vmul.f32 %v8319_v1, %v4712_v51  ;;  %v4735_v27 = vmul.f32 %v8319_v1, %v4713_v47  ;;  %v4825_v58 = vld [vmem:[%s10807_s8 + $0x70] sm:$0xff]  ;;  %v4828_v43 = vld [vmem:[%s10807_s8 + $0x88] sm:$0xff]  ;;  %v4830_v51 = vld [vmem:[%s10807_s8 + $0x98] sm:$0xff] }
 0x9c4   :  { %v7995_v47 = vpack.c.bf16 %v4825_v58, %v4823_v5  ;;  %v7997_v19 = vpack.c.bf16 %v4830_v51, %v4828_v43  ;;  %v4840_v1 = vld [vmem:[%s10807_s8 + $0xe8] sm:$0xff]  ;;  %v4861_v5 = vld [vmem:[%s10807_s8 + $0x190] sm:$0xff]  ;;  %v4866_v43 = vld [vmem:[%s10807_s8 + $0x1b8] sm:$0xff] }
 0x9c5   :  { %v4742_v59 = vmul.f32 %v4739_v18, %v4733_v9  ;;  %v4743_v41 = vmul.f32 %v4739_v18, %v4734_v21  ;;  %v4744_v10 = vmul.f32 %v4739_v18, %v4735_v27  ;;  %v4741_v16 = vmul.f32 %v4739_v18, %v4732_v26  ;;  %v4842_v26 = vld [vmem:[%s10807_s8 + $0xf8] sm:$0xff]  ;;  %v4839_v27 = vld [vmem:[%s10807_s8 + $0xe0] sm:$0xff]  ;;  %v4841_v18 = vld [vmem:[%s10807_s8 + $0xf0] sm:$0xff] }
 0x9c6   :  { %7996 = vmatpush1.bf16.msra.mxu0 %v7995_v47  ;;  %v8007_v9 = vpack.c.bf16 %v4837_v55, %v4835_v36  ;;  %v8009_v21 = vpack.c.bf16 %v4842_v26, %v4840_v1  ;;  %v4864_v58 = vld [vmem:[%s10807_s8 + $0x1a8] sm:$0xff]  ;;  %v8031_v51 = vpack.c.bf16 %v4861_v5, %v4859_v22  ;;  %v4874_v36 = vld [vmem:[%s10807_s8 + $0x1f8] sm:$0xff]  ;;  %v4871_v55 = vld [vmem:[%s10807_s8 + $0x1e0] sm:$0xff] }
 0x9c7   :  { %v10156_v46 = vadd.f32 %v4747_v13, %v4742_v59  ;;  %v10158_v39 = vadd.f32 %v4747_v13, %v4743_v41  ;;  %v4752_v50 = vadd.f32 %v4747_v13, %v4744_v10  ;;  %v10162_v4 = vadd.f32 %v4747_v13, %v4741_v16  ;;  %7998 = vmatprep.subr.bf16.mxu0 %v7997_v19  ;;  %v4844_v59 = vld [vmem:[%s10807_s8 + $0x108] sm:$0xff]  ;;  %v4846_v41 = vld [vmem:[%s10807_s8 + $0x118] sm:$0xff]  ;;  %v4843_v16 = vld [vmem:[%s10807_s8 + $0x100] sm:$0xff] }
 0x9c8   :  { %v8011_v10 = vpack.c.bf16 %v4841_v18, %v4839_v27  ;;  %v8013_v13 = vpack.c.bf16 %v4846_v41, %v4844_v59  ;;  %v8033_v47 = vpack.c.bf16 %v4866_v43, %v4864_v58  ;;  %v4863_v19 = vld [vmem:[%s10807_s8 + $0x1a0] sm:$0xff]  ;;  %v4873_v26 = vld [vmem:[%s10807_s8 + $0x1f0] sm:$0xff]  ;;  %v4876_v27 = vld [vmem:[%s10807_s8 + $0x208] sm:$0xff] }
 0x9c9   :  { %v4754_v57 = vmax.f32 %v10156_v46, 0.0  ;;  %v4755_v6 = vmax.f32 %v10158_v39, 0.0  ;;  %v4756_v3 = vmax.f32 %v4752_v50, 0.0  ;;  %v4753_v14 = vmax.f32 %v10162_v4, 0.0  ;;  %v4845_v50 = vld [vmem:[%s10807_s8 + $0x110] sm:$0xff]  ;;  %v4878_v18 = vld [vmem:[%s10807_s8 + $0x218] sm:$0xff] }
 0x9ca   :  { %8000 = vmatpush1.bf16.msra.mxu0 %v7999_v54  ;;  %v8015_v31 = vpack.c.bf16 %v4845_v50, %v4843_v16  ;;  %v8035_v53 = vpack.c.bf16 %v4865_v23, %v4863_v19  ;;  %v8037_v54 = vpack.c.bf16 %v4870_v15, %v4868_v2  ;;  %v4875_v46 = vld [vmem:[%s10807_s8 + $0x200] sm:$0xff]  ;;  %v4890_v22 = vld [vmem:[%s10807_s8 + $0x278] sm:$0xff] }
 0x9cb   :  { %4760 = vst.msk [vmem:[#allocation3 + $0x18] sm:$0xff] %vm4704_vm3, %v4756_v3  ;;  %v8305_v24 = vpack.i.bf16 %v4755_v6, %v4754_v57  ;;  %8002 = vmatprep.subr.bf16.mxu0 %v8001_v29  ;;  %v4848_v3 = vld [vmem:[%s10807_s8 + $0x128] sm:$0xff]  ;;  %v4867_v29 = vld [vmem:[%s10807_s8 + $0x1c0] sm:$0xff]  ;;  %v4894_v19 = vld [vmem:[%s10807_s8 + $0x298] sm:$0xff]  ;;  %vm6904_vm3 = vcmask 33792  }
 0x9cc   :  { %v8039_v7 = vpack.c.bf16 %v4869_v42, %v4867_v29  ;;  %v4887_v43 = vld [vmem:[%s10807_s8 + $0x260] sm:$0xff]  ;;  %v4898_v29 = vld [vmem:[%s10807_s8 + $0x2b8] sm:$0xff] }
 0x9cd   :  { %8306 = vrot.lane.b32.xlu0 %v8305_v24, %s8497_s30  ;;  %v4850_v24 = vld [vmem:[%s10807_s8 + $0x138] sm:$0xff]  ;;  %v4891_v15 = vld [vmem:[%s10807_s8 + $0x280] sm:$0xff] }
 0x9ce   :  { %8004 = vmatpush1.bf16.msra.mxu0 %v8003_v37  ;;  %v8017_v62 = vpack.c.bf16 %v4850_v24, %v4848_v3 }
 0x9cf   :  { %8006 = vmatprep.subr.bf16.mxu0 %v8005_v20  ;;  %v4872_v20 = vld [vmem:[%s10807_s8 + $0x1e8] sm:$0xff] }
 0x9d0   :  { %v8041_v1 = vpack.c.bf16 %v4874_v36, %v4872_v20  ;;  %v4902_v20 = vld [vmem:[%s10807_s8 + $0x2d8] sm:$0xff] }
 0x9d1   :  { %4769 = vrot.lane.b32.xlu0 %v4753_v14, %s8497_s30 }
 0x9d2   :  { %v10201_v30 = vld [vmem:[#allocation3 + $0x18] sm:$0xff]  ;;  %8008 = vmatpush1.bf16.msra.mxu0 %v8007_v9 }
 0x9d3   :  { %4775 = vrot.lane.b32.xlu1 %v10201_v30, %s8497_s30  ;;  %8010 = vmatprep.subr.bf16.mxu0 %v8009_v21  ;;  %v8043_v21 = vpack.c.bf16 %v4873_v26, %v4871_v55  ;;  %v4901_v26 = vld [vmem:[%s10807_s8 + $0x2d0] sm:$0xff] }
 0x9d6   :  { %8012 = vmatpush1.bf16.msra.mxu0 %v8011_v10  ;;  %v8045_v10 = vpack.c.bf16 %v4878_v18, %v4876_v27 }
 0x9d7   :  { %8014 = vmatprep.subr.bf16.mxu0 %v8013_v13 }
 0x9da   :  { %8016 = vmatpush1.bf16.msra.mxu0 %v8015_v31 }
 0x9db   :  { %8018 = vmatprep.subr.bf16.mxu0 %v8017_v62 }
 0x9de   :  { %8020 = vmatpush1.bf16.msra.mxu0 %v8019_v52 }
 0x9df   :  { %8022 = vmatprep.subr.bf16.mxu0 %v8021_v33 }
 0x9e2   :  { %8024 = vmatpush1.bf16.msra.mxu0 %v8023_v34  ;;  %v4881_v34 = vld [vmem:[%s10807_s8 + $0x230] sm:$0xff] }
 0x9e3   :  { %8026 = vmatprep.subr.bf16.mxu0 %v8025_v44  ;;  %v4884_v44 = vld [vmem:[%s10807_s8 + $0x248] sm:$0xff]  ;;  %v8051_v38 = vpack.c.bf16 %v4881_v34, %v4879_v28  ;;  %v4919_v34 = vld [vmem:[%s10807_s8 + $0x360] sm:$0x3] }
 0x9e4   :  { %v8053_v11 = vpack.c.bf16 %v4886_v12, %v4884_v44 }
 0x9e6   :  { %8028 = vmatpush1.bf16.msra.mxu0 %v8027_v49  ;;  %v4885_v49 = vld [vmem:[%s10807_s8 + $0x250] sm:$0xff] }
 0x9e7   :  { %8030 = vmatprep.subr.bf16.mxu0 %v8029_v60  ;;  %v4888_v60 = vld [vmem:[%s10807_s8 + $0x268] sm:$0xff]  ;;  %v8055_v5 = vpack.c.bf16 %v4885_v49, %v4883_v56  ;;  %v5078_v49 = vld [vmem:[%s10808_s9] sm:$0xff] }
 0x9e8   :  { %v8057_v58 = vpack.c.bf16 %v4890_v22, %v4888_v60 }
 0x9ea   :  { %8032 = vmatpush1.bf16.msra.mxu0 %v8031_v51  ;;  %v4889_v51 = vld [vmem:[%s10807_s8 + $0x270] sm:$0xff] }
 0x9eb   :  { %8034 = vmatprep.subr.bf16.mxu0 %v8033_v47  ;;  %v4892_v47 = vld [vmem:[%s10807_s8 + $0x288] sm:$0xff]  ;;  %v8059_v23 = vpack.c.bf16 %v4889_v51, %v4887_v43 }
 0x9ec   :  { %v8061_v2 = vpack.c.bf16 %v4894_v19, %v4892_v47  ;;  %v6972_v19 = vld [vmem:[%s10808_s9 + $0x18] sm:$0xff] }
 0x9ee   :  { %8036 = vmatpush1.bf16.msra.mxu0 %v8035_v53  ;;  %v4893_v53 = vld [vmem:[%s10807_s8 + $0x290] sm:$0xff] }
 0x9ef   :  { %8038 = vmatprep.subr.bf16.mxu0 %v8037_v54  ;;  %v4896_v54 = vld [vmem:[%s10807_s8 + $0x2a8] sm:$0xff]  ;;  %v8063_v42 = vpack.c.bf16 %v4893_v53, %v4891_v15  ;;  %v6974_v53 = vld [vmem:[%s10808_s9 + $0x20] sm:$0xff] }
 0x9f2   :  { %8040 = vmatpush1.bf16.msra.mxu0 %v8039_v7  ;;  %v8065_v7 = vpack.c.bf16 %v4898_v29, %v4896_v54 }
 0x9f3   :  { %8042 = vmatprep.subr.bf16.mxu0 %v8041_v1  ;;  %v4899_v1 = vld [vmem:[%s10807_s8 + $0x2c0] sm:$0xff] }
 0x9f4   :  { %v8071_v27 = vpack.c.bf16 %v4901_v26, %v4899_v1  ;;  %v6980_v26 = vld [vmem:[%s10808_s9 + $0x38] sm:$0xff] }
 0x9f6   :  { %8044 = vmatpush1.bf16.msra.mxu0 %v8043_v21  ;;  %v4906_v21 = vld [vmem:[%s10807_s8 + $0x2f8] sm:$0xff] }
 0x9f7   :  { %8046 = vmatprep.subr.bf16.mxu0 %v8045_v10  ;;  %v4908_v10 = vld [vmem:[%s10807_s8 + $0x308] sm:$0xff] }
 0xa3f   :  { %v8307_v45 = vpop.permute.xlu0 %8306 }
 0xa40   :  { %v8309_v8 = vunpack.i.h.bf16 %v8307_v45  ;;  %v8308_v37 = vunpack.i.l.bf16 %v8307_v45  ;;  %v4895_v45 = vld [vmem:[%s10807_s8 + $0x2a0] sm:$0xff] }
 0xa42   :  { %v4778_v59 = vsel %vm282_vm0, %v8308_v37, %v8309_v8 }
 0xa43   :  { %v4770_v9 = vpop.permute.xlu0 %4769  ;;  %v4785_v24 = vmax.f32 %v4754_v57, %v4778_v59  ;;  %v4877_v57 = vld [vmem:[%s10807_s8 + $0x210] sm:$0xff]  ;;  %v4903_v59 = vld [vmem:[%s10807_s8 + $0x2e0] sm:$0xff] }
 0xa44   :  { %v4777_v41 = vsel %vm282_vm0, %v4770_v9, %v8308_v37  ;;  %v8047_v17 = vpack.c.bf16 %v4877_v57, %v4875_v46  ;;  %v4900_v37 = vld [vmem:[%s10807_s8 + $0x2c8] sm:$0xff] }
 0xa45   :  { %v4776_v13 = vpop.permute.xlu1 %4775  ;;  %v4784_v16 = vmax.f32 %v4753_v14, %v4777_v41  ;;  %v8069_v55 = vpack.c.bf16 %v4902_v20, %v4900_v37  ;;  %v4904_v9 = vld [vmem:[%s10807_s8 + $0x2e8] sm:$0xff]  ;;  %v4905_v41 = vld [vmem:[%s10807_s8 + $0x2f0] sm:$0xff] }
 0xa46   :  { %v4779_v50 = vsel %vm282_vm0, %v8309_v8, %v4776_v13  ;;  %v4787_v4 = vmax.f32 %v10201_v30, %v4776_v13  ;;  %v4880_v30 = vld [vmem:[%s10807_s8 + $0x228] sm:$0xff]  ;;  %v4897_v8 = vld [vmem:[%s10807_s8 + $0x2b0] sm:$0xff]  ;;  %v8073_v18 = vpack.c.bf16 %v4906_v21, %v4904_v9  ;;  %v4910_v13 = vld [vmem:[%s10807_s8 + $0x318] sm:$0xff] }
 0xa47   :  { %v10383_v3 = vmax.f32 %v4755_v6, %v4779_v50  ;;  %4792 = vrot.lane.b32.xlu0 %v4784_v16, %s8507_s2  ;;  %v8049_v48 = vpack.c.bf16 %v4882_v25, %v4880_v30  ;;  %v8067_v36 = vpack.c.bf16 %v4897_v8, %v4895_v45  ;;  %v8077_v50 = vpack.c.bf16 %v4910_v13, %v4908_v10  ;;  %v4913_v30 = vld [vmem:[%s10807_s8 + $0x330] sm:$0xff]  ;;  %v4916_v25 = vld [vmem:[%s10807_s8 + $0x348] sm:$0xff]  ;;  %v5831_v13 = vld [vmem:[%s10809_s10] sm:$0xff] }
 0xa48   :  { %v6978_v20 = vld [vmem:[%s10808_s9 + $0x30] sm:$0xff] }
 0xa49   :  { %v8310_v31 = vpack.i.bf16 %v10383_v3, %v4785_v24 }
 0xa4b   :  { %8311 = vrot.lane.b32.xlu1 %v8310_v31, %s8507_s2  ;;  %v4909_v31 = vld [vmem:[%s10807_s8 + $0x310] sm:$0xff] }
 0xa4f   :  { %4798 = vrot.lane.b32.xlu1 %v4787_v4, %s8507_s2 }
 0xab9   :  { %v4793_v6 = vpop.permute.xlu0 %4792 }
 0xabd   :  { %v10392_v14 = vpop.permute.xlu1 %8311 }
 0xabe   :  { %v8314_v62 = vunpack.i.h.bf16 %v10392_v14  ;;  %v8313_v39 = vunpack.i.l.bf16 %v10392_v14 }
 0xac0   :  { %v4800_v32 = vsel %vm3685_vm12, %v4793_v6, %v8313_v39  ;;  %v4801_v61 = vsel %vm3685_vm12, %v8313_v39, %v8314_v62  ;;  %v4914_v39 = vld [vmem:[%s10807_s8 + $0x338] sm:$0xff]  ;;  %v4911_v6 = vld [vmem:[%s10807_s8 + $0x320] sm:$0xff] }
 0xac1   :  { %v4807_v63 = vmax.f32 %v4784_v16, %v4800_v32  ;;  %v10412_v52 = vpop.permute.xlu1 %4798  ;;  %v4808_v33 = vmax.f32 %v4785_v24, %v4801_v61  ;;  %v8075_v16 = vpack.c.bf16 %v4905_v41, %v4903_v59  ;;  %v4907_v24 = vld [vmem:[%s10807_s8 + $0x300] sm:$0xff]  ;;  %v4918_v32 = vld [vmem:[%s10807_s8 + $0x358] sm:$0xff]  ;;  %v8083_v61 = vpack.c.bf16 %v4913_v30, %v4911_v6  ;;  %v5860_v30 = vld [vmem:[%s10811_s12 + $0x8] sm:$0xff] }
 0xac2   :  { %v4810_v0 = vmax.f32 %v4787_v4, %v10412_v52  ;;  %v4912_v4 = vld [vmem:[%s10807_s8 + $0x328] sm:$0xff]  ;;  %v8079_v46 = vpack.c.bf16 %v4909_v31, %v4907_v24  ;;  %v4802_v28 = vsel %vm3685_vm12, %v8314_v62, %v10412_v52  ;;  %v5859_v6 = vld [vmem:[%s10811_s12] sm:$0xff]  ;;  %vm5951_vm12 = vcmask 506880  }
 0xac3   :  { %4996 = vmatprep.mubr.f32.mxu0 %v4808_v33  ;;  %v8081_v57 = vpack.c.bf16 %v4914_v39, %v4912_v4  ;;  %v4915_v33 = vld [vmem:[%s10807_s8 + $0x340] sm:$0xff]  ;;  %v4809_v44 = vmax.f32 %v10383_v3, %v4802_v28 }
 0xac4   :  { %4997 = vmatmul.mubr.f32.vlgmr.msra.gmra.mrb[4].mxu0 %v4807_v63  ;;  %v8085_v63 = vpack.c.bf16 %v4918_v32, %v4916_v25  ;;  %v5861_v25 = vld [vmem:[%s10811_s12 + $0x10] sm:$0xff]  ;;  %v8517_v32 = vmov 0.0|0.0   ;;  %v5863_v28 = vld [vmem:[%s10811_s12 + $0x20] sm:$0xff] }
 0xac5   :  { %8048 = vmatpush1.bf16.msra.mxu0 %v8047_v17  ;;  %6966 = vmatprep.mubr.msk.f32.mxu0 %vm4921_vm4, %v4810_v0  ;;  %v4917_v17 = vld [vmem:[%s10807_s8 + $0x350] sm:$0xff] }
 0xac6   :  { %8050 = vmatprep.subr.bf16.mxu0 %v8049_v48  ;;  %v8087_v0 = vpack.c.bf16 %v4917_v17, %v4915_v33  ;;  %v4920_v48 = vld [vmem:[%s10807_s8 + $0x368] sm:$0x3]  ;;  %s8513_s8 = smov 120  }
 0xac9   :  { %8052 = vmatpush1.bf16.msra.mxu0 %v8051_v38  ;;  %v6967_v38 = vld [vmem:[%s10808_s9 + $0x8] sm:$0xff] }
 0xaca   :  { %8054 = vmatprep.subr.bf16.mxu0 %v8053_v11 }
 0xacd   :  { %8056 = vmatpush1.bf16.msra.mxu0 %v8055_v5 }
 0xace   :  { %8058 = vmatprep.subr.bf16.mxu0 %v8057_v58  ;;  %v6970_v58 = vld [vmem:[%s10808_s9 + $0x10] sm:$0xff] }
 0xad1   :  { %8060 = vmatpush1.bf16.msra.mxu0 %v8059_v23 }
 0xad2   :  { %8062 = vmatprep.subr.bf16.mxu0 %v8061_v2 }
 0xad5   :  { %8064 = vmatpush1.bf16.msra.mxu0 %v8063_v42 }
 0xad6   :  { %8066 = vmatprep.subr.bf16.mxu0 %v8065_v7  ;;  %v6976_v7 = vld [vmem:[%s10808_s9 + $0x28] sm:$0xff] }
 0xad9   :  { %8068 = vmatpush1.bf16.msra.mxu0 %v8067_v36 }
 0xada   :  { %8070 = vmatprep.subr.bf16.mxu0 %v8069_v55 }
 0xadd   :  { %8072 = vmatpush1.bf16.msra.mxu0 %v8071_v27  ;;  %v6982_v27 = vld [vmem:[%s10808_s9 + $0x40] sm:$0xff] }
 0xade   :  { %8074 = vmatprep.subr.bf16.mxu0 %v8073_v18  ;;  %v6984_v18 = vld [vmem:[#allocation10] ss:$0 sm:$0xff] }
 0xae1   :  { %8076 = vmatpush1.bf16.msra.mxu0 %v8075_v16 }
 0xae2   :  { %8078 = vmatprep.subr.bf16.mxu0 %v8077_v50 }
 0xae5   :  { %8080 = vmatpush1.bf16.msra.mxu0 %v8079_v46 }
 0xae6   :  { %8082 = vmatprep.subr.bf16.mxu0 %v8081_v57 }
 0xae9   :  { %8084 = vmatpush1.bf16.msra.mxu0 %v8083_v61  ;;  %v8090_v61 = vpack.c.bf16 %v5860_v30, %v5859_v6 }
 0xaea   :  { %8086 = vmatprep.subr.bf16.mxu0 %v8085_v63  ;;  %v5862_v63 = vld [vmem:[%s10811_s12 + $0x18] sm:$0xff] }
 0xaed   :  { %8088 = vmatpush1.bf16.msra.mxu0 %v8087_v0  ;;  %v8093_v0 = vpack.c.bf16 %v5862_v63, %v5861_v25 }
 0xaee   :  { %6964 = vmatprep.subr.msk.mxu0 %vm4925_vm5, %v4920_v48 }
 0xaf1   :  { %6965 = vmatpush1.msk.msra.mxu0 %vm4925_vm5, %v4919_v34  ;;  %v5864_v34 = vld [vmem:[%s10811_s12 + $0x28] sm:$0xff] }
 0xaf2   :  { %5068 = vmatmul.mubr.f32.vlgmr.msra.gmra.mrb[4].mxu0 %v4809_v44  ;;  %7208 = vmatprep.subr.mxu0 %v8506_v40 }
 0xaf3   :  { %7210 = vmatprep.mubr.msk.f32.mxu0 %vm8512_vm7, %v8506_v40 }
 0xbc5   :  { %v5069_v14 = vpop.f32.mrb[4].mxu0 }
 0xbc6   :  { %5074 = vst [vmem:[#allocation2] sm:$0xff] %v5069_v14  ;;  %v5071_v62 = vpop.f32.mrb[5].mxu0  ;;  %5084 = vrot.lane.b32.xlu0 %v5069_v14, %s8497_s30 }
 0xbc7   :  { %5076 = vst.msk [vmem:[#allocation2 + $0x8] sm:$0xff] %vm5075_vm6, %v5071_v62 }
 0xbca   :  { %5238 = vrot.lane.b32.xlu0 %v5069_v14, %s8498_s26 }
 0xbce   :  { %v5079_v3 = vld [vmem:[#allocation2 + $0x8] sm:$0xff]  ;;  %5320 = vrot.lane.b32.xlu0 %v5069_v14, %s8513_s8 }
 0xbcf   :  { %5086 = vrot.lane.b32.xlu1 %v5079_v3, %s8497_s30 }
 0xbd2   :  { %5403 = vrot.lane.b32.xlu0 %v5069_v14, %s8514_s25 }
 0xbd3   :  { %5240 = vrot.lane.b32.xlu1 %v5079_v3, %s8498_s26 }
 0xbd6   :  { %5486 = vrot.lane.b32.xlu0 %v5069_v14, %s8515_s6 }
 0xbd7   :  { %5322 = vrot.lane.b32.xlu1 %v5079_v3, %s8513_s8 }
 0xbda   :  { %5569 = vrot.lane.b32.xlu0 %v5069_v14, %s8508_s23 }
 0xbdb   :  { %5405 = vrot.lane.b32.xlu1 %v5079_v3, %s8514_s25 }
 0xbde   :  { %5651 = vrot.lane.b32.xlu0 %v5069_v14, %s8509_s24 }
 0xbdf   :  { %5488 = vrot.lane.b32.xlu1 %v5079_v3, %s8515_s6 }
 0xbe2   :  { %5733 = vrot.lane.b32.xlu0 %v5069_v14, %s8516_s27 }
 0xbe3   :  { %5571 = vrot.lane.b32.xlu1 %v5079_v3, %s8508_s23 }
 0xbe7   :  { %5653 = vrot.lane.b32.xlu1 %v5079_v3, %s8509_s24 }
 0xbeb   :  { %5735 = vrot.lane.b32.xlu1 %v5079_v3, %s8516_s27  ;;  %v8096_v3 = vpack.c.bf16 %v5864_v34, %v5863_v28 }
 0xc38   :  { %v5085_v52 = vpop.permute.xlu0 %5084 }
 0xc3c   :  { %v5239_v60 = vpop.permute.xlu0 %5238 }
 0xc40   :  { %v5321_v43 = vpop.permute.xlu0 %5320 }
 0xc41   :  { %v5087_v12 = vpop.permute.xlu1 %5086 }
 0xc42   :  { %v5088_v11 = vsel %vm282_vm0, %v5085_v52, %v5087_v12  ;;  %vm5324_vm0 = vcmask 982016   ;;  %v5865_v52 = vld [vmem:[%s10811_s12 + $0x30] sm:$0xff]  ;;  %v5866_v12 = vld [vmem:[%s10811_s12 + $0x38] sm:$0xff] }
 0xc43   :  { %7071 = vmatpush3.msra.mxu1 %v5088_v11  ;;  %v8099_v11 = vpack.c.bf16 %v5866_v12, %v5865_v52 }
 0xc44   :  { %7073 = vmatmul.mubr.msk.f32.vlgmr.msra.gmra.mrb[4].mxu1 %vm3218_vm11, %v6967_v38  ;;  %7075 = vmatprep.subr.mxu1 %v8506_v40  ;;  %v5404_v23 = vpop.permute.xlu0 %5403 }
 0xc45   :  { %7076 = vmatpush3.msra.mxu1 %v5069_v14  ;;  %7077 = vmatprep.mubr.msk.f32.mxu1 %vm8512_vm7, %v8506_v40  ;;  %v5241_v56 = vpop.permute.xlu1 %5240 }
 0xc46   :  { %7080 = vmatprep.subr.mxu1 %v8506_v40  ;;  %v5242_v22 = vsel %vm380_vm1, %v5239_v60, %v5241_v56  ;;  %vm5407_vm1 = vcmask 973824   ;;  %v5867_v56 = vld [vmem:[%s10811_s12 + $0x40] sm:$0xff] }
 0xc48   :  { %v5487_v54 = vpop.permute.xlu0 %5486 }
 0xc49   :  { %v5323_v5 = vpop.permute.xlu1 %5322 }
 0xc4a   :  { %v5325_v51 = vsel %vm5324_vm0, %v5321_v43, %v5323_v5  ;;  %v5870_v5 = vld [vmem:[%s10811_s12 + $0x58] sm:$0xff]  ;;  %v5871_v43 = vld [vmem:[%s10811_s12 + $0x60] sm:$0xff] }
 0xc4c   :  { %7078 = vmatmul.mubr.msk.f32.vlgmr.msra.gmra.mrb[4].mxu1 %vm3218_vm11, %v5078_v49  ;;  %v5570_v45 = vpop.permute.xlu0 %5569  ;;  %v5868_v49 = vld [vmem:[%s10811_s12 + $0x48] sm:$0xff] }
 0xc4d   :  { %7081 = vmatpush3.msra.mxu1 %v5242_v22  ;;  %7082 = vmatprep.mubr.msk.f32.mxu1 %vm8512_vm7, %v8506_v40  ;;  %v5406_v47 = vpop.permute.xlu1 %5405  ;;  %v8102_v60 = vpack.c.bf16 %v5868_v49, %v5867_v56  ;;  %v5869_v22 = vld [vmem:[%s10811_s12 + $0x50] sm:$0xff]  ;;  %v6711_v56 = vld [vmem:[%s10815_s16 + $0x20] sm:$0xff]  ;;  %v6712_v49 = vld [vmem:[%s10815_s16 + $0x28] sm:$0xf] }
 0xc4e   :  { %7085 = vmatprep.subr.mxu1 %v8506_v40  ;;  %v5408_v2 = vsel %vm5407_vm1, %v5404_v23, %v5406_v47 }
 0xc50   :  { %v5652_v36 = vpop.permute.xlu0 %5651 }
 0xc51   :  { %v5489_v15 = vpop.permute.xlu1 %5488 }
 0xc52   :  { %v5491_v29 = vsel %vm5490_vm8, %v5487_v54, %v5489_v15 }
 0xc54   :  { %7083 = vmatmul.mubr.msk.f32.vlgmr.msra.gmra.mrb[4].mxu1 %vm3218_vm11, %v6970_v58  ;;  %v5734_v9 = vpop.permute.xlu0 %5733  ;;  %v8105_v58 = vpack.c.bf16 %v5870_v5, %v5869_v22 }
 0xc55   :  { %7086 = vmatpush3.msra.mxu1 %v5325_v51  ;;  %7087 = vmatprep.mubr.msk.f32.mxu1 %vm8512_vm7, %v8506_v40  ;;  %v5572_v42 = vpop.permute.xlu1 %5571  ;;  %v5872_v51 = vld [vmem:[%s10811_s12 + $0x68] sm:$0xff] }
 0xc56   :  { %7090 = vmatprep.subr.mxu1 %v8506_v40  ;;  %v5573_v8 = vsel %vm3852_vm13, %v5570_v45, %v5572_v42  ;;  %v8108_v47 = vpack.c.bf16 %v5872_v51, %v5871_v43  ;;  %vm6717_vm13 = vcmask 1043456  }
 0xc59   :  { %v5654_v37 = vpop.permute.xlu1 %5653 }
 0xc5a   :  { %v5655_v55 = vsel %vm4019_vm14, %v5652_v36, %v5654_v37  ;;  %vm8523_vm14 = vmmov 1  }
 0xc5b   :  { %vm8118_vm15 = vmpackc.low %vm6717_vm13, %vm8523_vm14 }
 0xc5c   :  { %7088 = vmatmul.mubr.msk.f32.vlgmr.msra.gmra.mrb[4].mxu1 %vm3218_vm11, %v6972_v19  ;;  %v5873_v19 = vld [vmem:[%s10811_s12 + $0x70] sm:$0x7f]  ;;  %s8518_s12 = smov 122  }
 0xc5d   :  { %7091 = vmatpush3.msra.mxu1 %v5408_v2  ;;  %7092 = vmatprep.mubr.msk.f32.mxu1 %vm8512_vm7, %v8506_v40  ;;  %v5736_v1 = vpop.permute.xlu1 %5735 }
 0xc5e   :  { %7095 = vmatprep.subr.mxu1 %v8506_v40  ;;  %v5738_v21 = vsel %vm5737_vm9, %v5734_v9, %v5736_v1 }
 0xc64   :  { %7093 = vmatmul.mubr.msk.f32.vlgmr.msra.gmra.mrb[4].mxu1 %vm3218_vm11, %v6974_v53 }
 0xc65   :  { %7096 = vmatpush3.msra.mxu1 %v5491_v29  ;;  %7097 = vmatprep.mubr.msk.f32.mxu1 %vm8512_vm7, %v8506_v40 }
 0xc66   :  { %7100 = vmatprep.subr.mxu1 %v8506_v40 }
 0xc6c   :  { %7098 = vmatmul.mubr.msk.f32.vlgmr.msra.gmra.mrb[4].mxu1 %vm3218_vm11, %v6976_v7  ;;  %v6987_v7 = vld [vmem:[%s10812_s13 + $0x8] sm:$0xff] }
 0xc6d   :  { %7101 = vmatpush3.msra.mxu1 %v5573_v8  ;;  %7102 = vmatprep.mubr.msk.f32.mxu1 %vm8512_vm7, %v8506_v40  ;;  %v5954_v8 = vld [vmem:[%s10812_s13] sm:$0xff] }
 0xc6e   :  { %7105 = vmatprep.subr.mxu1 %v8506_v40 }
 0xc74   :  { %7103 = vmatmul.mubr.msk.f32.vlgmr.msra.gmra.mrb[4].mxu1 %vm3218_vm11, %v6978_v20  ;;  %v6990_v20 = vld [vmem:[%s10812_s13 + $0x10] sm:$0xff] }
 0xc75   :  { %7106 = vmatpush3.msra.mxu1 %v5655_v55  ;;  %7107 = vmatprep.mubr.msk.f32.mxu1 %vm8512_vm7, %v8506_v40  ;;  %v6992_v55 = vld [vmem:[%s10812_s13 + $0x18] sm:$0xff] }
 0xc76   :  { %7110 = vmatprep.subr.mxu1 %v8506_v40 }
 0xc7c   :  { %7108 = vmatmul.mubr.msk.f32.vlgmr.msra.gmra.mrb[4].mxu1 %vm3218_vm11, %v6980_v26  ;;  %v6994_v26 = vld [vmem:[%s10812_s13 + $0x20] sm:$0xff] }
 0xc7d   :  { %7111 = vmatpush3.msra.mxu1 %v5738_v21  ;;  %7112 = vmatprep.mubr.msk.f32.mxu1 %vm8512_vm7, %v8506_v40  ;;  %v6996_v21 = vld [vmem:[%s10812_s13 + $0x28] sm:$0xff] }
 0xc7e   :  { %8089 = vmatprep.subr.bf16.mxu1 %v8517_v32 }
 0xc84   :  { %7113 = vmatmul.mubr.msk.f32.vlgmr.msra.gmra.mrb[4].mxu1 %vm3218_vm11, %v6982_v27 }
 0xc85   :  { %7145 = vmatprep.mubr.msk.f32.mxu1 %vm8512_vm7, %v8506_v40  ;;  %8091 = vmatpush3.bf16.msra.mxu1 %v8090_v61 }
 0xc86   :  { %8092 = vmatprep.subr.bf16.mxu1 %v8517_v32 }
 0xc89   :  { %8094 = vmatpush3.bf16.msra.mxu1 %v8093_v0 }
 0xc8a   :  { %8095 = vmatprep.subr.bf16.mxu1 %v8517_v32 }
 0xc8d   :  { %8097 = vmatpush3.bf16.msra.mxu1 %v8096_v3  ;;  %v6709_v3 = vld [vmem:[%s10815_s16 + $0x10] sm:$0xff] }
 0xc8e   :  { %8098 = vmatprep.subr.bf16.mxu1 %v8517_v32 }
 0xc91   :  { %8100 = vmatpush3.bf16.msra.mxu1 %v8099_v11 }
 0xc92   :  { %8101 = vmatprep.subr.bf16.mxu1 %v8517_v32 }
 0xc95   :  { %8103 = vmatpush3.bf16.msra.mxu1 %v8102_v60  ;;  %v8117_v60 = vpack.c.bf16 %v6712_v49, %v6711_v56 }
 0xc96   :  { %8104 = vmatprep.subr.bf16.mxu1 %v8517_v32 }
 0xc99   :  { %8106 = vmatpush3.bf16.msra.mxu1 %v8105_v58 }
 0xc9a   :  { %8107 = vmatprep.subr.bf16.mxu1 %v8517_v32 }
 0xc9d   :  { %8109 = vmatpush3.bf16.msra.mxu1 %v8108_v47  ;;  %v6791_v47 = vld [vmem:[%s10816_s17] sm:$0xff] }
 0xc9e   :  { %7143 = vmatprep.subr.mxu1 %v8506_v40  ;;  %7209 = vmatpush3.msra.mxu0 %v6791_v47 }
 0xca1   :  { %7144 = vmatpush3.msk.msra.mxu1 %vm5877_vm10, %v5873_v19 }
 0xca2   :  { %7148 = vmatprep.subr.mxu1 %v8506_v40 }
 0xd57   :  { %v5809_v59 = vpop.f32.mrb[4].mxu1 }
 0xd58   :  { %v5821_v41 = vmul.f32 %v6984_v18, %v5809_v59  ;;  %v7114_v10 = vpop.f32.mrb[5].mxu1 }
 0xd5a   :  { %5822 = vadd.xlane.f32.xlu0 %v5821_v41  ;;  %v7000_v41 = vld [vmem:[%s10812_s13 + $0x38] sm:$0xff] }
 0xd70   :  { %5837 = vperm.xlu0 %8247, %v5831_v13  }
 0xde7   :  { %v5823_v16 = vpop.xlane.xlu0 %5822 }
 0xde8   :  { %v5824_v50 = vmul.f32 0.013888889, %v5823_v16  ;;  %v7004_v16 = vld [vmem:[#allocation12] ss:$0 sm:$0xff] }
 0xdea   :  { %v5825_v24 = vsub.f32 %v5809_v59, %v5824_v50 }
 0xdec   :  { %v5826_v31 = vmul.f32 %v5825_v24, %v5825_v24 }
 0xdee   :  { %v5827_v4 = vmul.f32 %v6984_v18, %v5826_v31  ;;  %v6998_v18 = vld [vmem:[%s10812_s13 + $0x30] sm:$0xff] }
 0xdef   :  { %v5838_v48 = vpop.permute.xlu0 %5837 }
 0xdf0   :  { %5828 = vadd.xlane.f32.xlu1 %v5827_v4 }
 0xe01   :  { %5842 = vperm.xlu1 %8249, %v5831_v13   ;;  %v7002_v13 = vld [vmem:[%s10812_s13 + $0x40] sm:$0xff] }
 0xe7d   :  { %v5829_v39 = vpop.xlane.xlu1 %5828 }
 0xe7e   :  { %v5830_v46 = vmul.f32 0.013888889, %v5829_v39  ;;  %v6679_v39 = vld [vmem:[%s10813_s14] sm:$0xff] }
 0xe80   :  { %v5832_v57 = vadd.f32 1e-05, %v5830_v46 }
 0xe81   :  { %v5843_v14 = vpop.permute.xlu1 %5842 }
 0xe82   :  { %8320 = vrsqrt.f32 %v5832_v57 }
 0xe8c   :  { %v8321_v33 = vpop.eup %8320 }
 0xe8d   :  { %v5834_v17 = vmul.f32 %v8321_v33, %v5825_v24 }
 0xe8f   :  { %v5840_v44 = vmul.f32 %v5838_v48, %v5834_v17 }
 0xe91   :  { %v5845_v62 = vadd.f32 %v5843_v14, %v5840_v44  ;;  %v6707_v14 = vld [vmem:[%s10815_s16] sm:$0xff] }
 0xe93   :  { %v5846_v38 = vmax.f32 %v5845_v62, 0.0  ;;  %v6708_v62 = vld [vmem:[%s10815_s16 + $0x8] sm:$0xff] }
 0xe94   :  { %v8111_v12 = vpack.c.bf16 %v6708_v62, %v6707_v14 }
 0xe95   :  { %5847 = vst [vmem:[#allocation3] sm:$0xff] %v5846_v38  ;;  %5850 = vrot.lane.b32.xlu0 %v5846_v38, %s8497_s30 }
 0xf07   :  { %v5851_v23 = vpop.permute.xlu0 %5850 }
 0xf08   :  { %v5853_v2 = vmax.f32 %v5846_v38, %v5851_v23  ;;  %v6710_v38 = vld [vmem:[%s10815_s16 + $0x18] sm:$0xff] }
 0xf09   :  { %v8114_v11 = vpack.c.bf16 %v6710_v38, %v6709_v3 }
 0xf0a   :  { %5855 = vrot.lane.b32.xlu1 %v5853_v2, %s8513_s8  ;;  %s8520_s8 = smov 121  }
 0xf7c   :  { %v5856_v15 = vpop.permute.xlu1 %5855 }
 0xf7d   :  { %v5858_v53 = vmax.f32 %v5853_v2, %v5856_v15  ;;  %v7007_v2 = vld [vmem:[#allocation13] ss:$0 sm:$0xff] }
 0xf7f   :  { %7146 = vmatmul.mubr.msk.f32.vlgmr.msra.gmra.mrb[6].mxu1 %vm5407_vm1, %v5858_v53 }
 0xf80   :  { %7150 = vmatprep.mubr.msk.f32.mxu1 %vm8512_vm7, %v8506_v40 }
0x1052   :  { %v5947_v54 = vpop.f32.mrb[6].mxu1 }
0x1053   :  { %5952 = vst.msk [vmem:[#allocation2] sm:$0xff] %vm5951_vm12, %v5947_v54  ;;  %v7147_v29 = vpop.f32.mrb[7].mxu1 }
0x105a   :  { %v5953_v42 = vld [vmem:[#allocation2] sm:$0xff] }
0x105b   :  { %6109 = vrot.lane.b32.xlu1 %v5953_v42, %s8498_s26  ;;  %5958 = vrot.lane.b32.xlu0 %v5953_v42, %s8497_s30 }
0x105f   :  { %6267 = vrot.lane.b32.xlu1 %v5953_v42, %s8518_s12  ;;  %6188 = vrot.lane.b32.xlu0 %v5953_v42, %s8519_s19 }
0x1063   :  { %6425 = vrot.lane.b32.xlu1 %v5953_v42, %s8515_s6  ;;  %6346 = vrot.lane.b32.xlu0 %v5953_v42, %s8520_s8 }
0x1067   :  { %6583 = vrot.lane.b32.xlu1 %v5953_v42, %s8521_s20  ;;  %6504 = vrot.lane.b32.xlu0 %v5953_v42, %s8522_s1 }
0x10cd   :  { %v5959_v45 = vpop.permute.xlu0 %5958  ;;  %v6110_v37 = vpop.permute.xlu1 %6109 }
0x10ce   :  { %7149 = vmatpush3.msra.mxu1 %v5959_v45 }
0x10cf   :  { %7151 = vmatmul.mubr.msk.f32.vlgmr.msra.gmra.mrb[8].mxu1 %vm3218_vm11, %v6987_v7  ;;  %7153 = vmatprep.subr.mxu1 %v8506_v40 }
0x10d0   :  { %7154 = vmatpush3.msra.mxu1 %v5953_v42  ;;  %7155 = vmatprep.mubr.msk.f32.mxu1 %vm8512_vm7, %v8506_v40 }
0x10d1   :  { %7158 = vmatprep.subr.mxu1 %v8506_v40  ;;  %v6189_v36 = vpop.permute.xlu0 %6188  ;;  %v6268_v1 = vpop.permute.xlu1 %6267 }
0x10d5   :  { %v6347_v9 = vpop.permute.xlu0 %6346  ;;  %v6426_v27 = vpop.permute.xlu1 %6425 }
0x10d7   :  { %7156 = vmatmul.mubr.msk.f32.vlgmr.msra.gmra.mrb[8].mxu1 %vm3218_vm11, %v5954_v8 }
0x10d8   :  { %7159 = vmatpush3.msra.mxu1 %v6110_v37  ;;  %7160 = vmatprep.mubr.msk.f32.mxu1 %vm8512_vm7, %v8506_v40 }
0x10d9   :  { %7163 = vmatprep.subr.mxu1 %v8506_v40  ;;  %v6505_v59 = vpop.permute.xlu0 %6504  ;;  %v6584_v10 = vpop.permute.xlu1 %6583 }
0x10df   :  { %7161 = vmatmul.mubr.msk.f32.vlgmr.msra.gmra.mrb[8].mxu1 %vm3218_vm11, %v6990_v20 }
0x10e0   :  { %7164 = vmatpush3.msra.mxu1 %v6189_v36  ;;  %7165 = vmatprep.mubr.msk.f32.mxu1 %vm8512_vm7, %v8506_v40 }
0x10e1   :  { %7168 = vmatprep.subr.mxu1 %v8506_v40 }
0x10e7   :  { %7166 = vmatmul.mubr.msk.f32.vlgmr.msra.gmra.mrb[8].mxu1 %vm3218_vm11, %v6992_v55 }
0x10e8   :  { %7169 = vmatpush3.msra.mxu1 %v6268_v1  ;;  %7170 = vmatprep.mubr.msk.f32.mxu1 %vm8512_vm7, %v8506_v40 }
0x10e9   :  { %7173 = vmatprep.subr.mxu1 %v8506_v40 }
0x10ef   :  { %7171 = vmatmul.mubr.msk.f32.vlgmr.msra.gmra.mrb[8].mxu1 %vm3218_vm11, %v6994_v26 }
0x10f0   :  { %7174 = vmatpush3.msra.mxu1 %v6347_v9  ;;  %7175 = vmatprep.mubr.msk.f32.mxu1 %vm8512_vm7, %v8506_v40 }
0x10f1   :  { %7178 = vmatprep.subr.mxu1 %v8506_v40 }
0x10f7   :  { %7176 = vmatmul.mubr.msk.f32.vlgmr.msra.gmra.mrb[8].mxu1 %vm3218_vm11, %v6996_v21 }
0x10f8   :  { %7179 = vmatpush3.msra.mxu1 %v6426_v27  ;;  %7180 = vmatprep.mubr.msk.f32.mxu1 %vm8512_vm7, %v8506_v40 }
0x10f9   :  { %7183 = vmatprep.subr.mxu1 %v8506_v40 }
0x10ff   :  { %7181 = vmatmul.mubr.msk.f32.vlgmr.msra.gmra.mrb[8].mxu1 %vm3218_vm11, %v6998_v18 }
0x1100   :  { %7184 = vmatpush3.msra.mxu1 %v6505_v59  ;;  %7185 = vmatprep.mubr.msk.f32.mxu1 %vm8512_vm7, %v8506_v40 }
0x1101   :  { %7188 = vmatprep.subr.mxu1 %v8506_v40 }
0x1107   :  { %7186 = vmatmul.mubr.msk.f32.vlgmr.msra.gmra.mrb[8].mxu1 %vm3218_vm11, %v7000_v41 }
0x1108   :  { %7189 = vmatpush3.msra.mxu1 %v6584_v10  ;;  %7190 = vmatprep.mubr.msk.f32.mxu1 %vm8512_vm7, %v8506_v40 }
0x1109   :  { %8110 = vmatprep.subr.bf16.mxu1 %v8517_v32 }
0x110f   :  { %7191 = vmatmul.mubr.msk.f32.vlgmr.msra.gmra.mrb[8].mxu1 %vm3218_vm11, %v7002_v13 }
0x1110   :  { %7205 = vmatprep.mubr.msk.f32.mxu1 %vm8512_vm7, %v8506_v40  ;;  %8112 = vmatpush3.bf16.msra.mxu1 %v8111_v12 }
0x1111   :  { %8113 = vmatprep.subr.bf16.mxu1 %v8517_v32 }
0x1114   :  { %8115 = vmatpush3.bf16.msra.mxu1 %v8114_v11 }
0x1115   :  { %8116 = vmatprep.subr.bf16.mxu1 %v8517_v32 }
0x1118   :  { %8119 = vmatpush3.bf16.msk.msra.mxu1 %vm8118_vm15, %v8117_v60 }
0x11e2   :  { %v6655_v50 = vpop.f32.mrb[8].mxu1 }
0x11e3   :  { %v6667_v24 = vmul.f32 %v7004_v16, %v6655_v50  ;;  %v7192_v31 = vpop.f32.mrb[9].mxu1 }
0x11e5   :  { %v6668_v4 = vsel %vm4921_vm4, %v6667_v24, 0.0 }
0x11e6   :  { %6669 = vadd.xlane.f32.xlu0 %v6668_v4 }
0x11fc   :  { %6685 = vperm.xlu0 %8247, %v6679_v39  }
0x1273   :  { %v6670_v46 = vpop.xlane.xlu0 %6669 }
0x1274   :  { %v6671_v57 = vmul.f32 0.055555556, %v6670_v46 }
0x1276   :  { %v6672_v6 = vsub.f32 %v6655_v50, %v6671_v57 }
0x1278   :  { %v6673_v30 = vmul.f32 %v6672_v6, %v6672_v6 }
0x127a   :  { %v6674_v25 = vmul.f32 %v7004_v16, %v6673_v30 }
0x127b   :  { %v6686_v48 = vpop.permute.xlu0 %6685 }
0x127c   :  { %v6675_v61 = vsel %vm4921_vm4, %v6674_v25, 0.0 }
0x127d   :  { %6676 = vadd.xlane.f32.xlu1 %v6675_v61 }
0x128e   :  { %6690 = vperm.xlu1 %8249, %v6679_v39  }
0x130a   :  { %v6677_v40 = vpop.xlane.xlu1 %6676 }
0x130b   :  { %v6678_v63 = vmul.f32 0.055555556, %v6677_v40 }
0x130d   :  { %v6680_v33 = vadd.f32 1e-05, %v6678_v63 }
0x130e   :  { %v6691_v34 = vpop.permute.xlu1 %6690 }
0x130f   :  { %8322 = vrsqrt.f32 %v6680_v33 }
0x1319   :  { %v8323_v17 = vpop.eup %8322 }
0x131a   :  { %v6682_v0 = vmul.f32 %v8323_v17, %v6672_v6 }
0x131c   :  { %v6688_v28 = vmul.f32 %v6686_v48, %v6682_v0 }
0x131e   :  { %v6693_v44 = vadd.f32 %v6691_v34, %v6688_v28 }
0x1320   :  { %v6694_v52 = vmax.f32 %v6693_v44, 0.0 }
0x1322   :  { %6695 = vst.msk [vmem:[#allocation3] sm:$0xff] %vm4921_vm4, %v6694_v52 }
0x1329   :  { %v6696_v22 = vld [vmem:[#allocation3] sm:$0xff] }
0x132a   :  { %6698 = vrot.lane.b32.xlu0 %v6696_v22, %s8497_s30  ;;  %s8524_s30 = smov [#allocation15]  }
0x139c   :  { %v6699_v5 = vpop.permute.xlu0 %6698 }
0x139d   :  { %v6701_v58 = vmax.f32 %v6696_v22, %v6699_v5 }
0x139f   :  { %6703 = vrot.lane.b32.xlu1 %v6701_v58, %s8519_s19  ;;  %s6912_s19 = sshll.u32 %s8524_s30, 4  ;;  %s6913_s19 = int_to_ptr.vmem [resolvable:$true] %s6912_s19 }
0x13a0   :  { %s8456_s11 = scalar_lea.vmem %s6913_s19, 32  ;;  %p8461_p7 = scmp.lt.s32.totalorder %s6913_s19, %s6913_s19 }
0x13a1   :  { %p8457_p6 = scmp.ne.s32.totalorder %s6913_s19, %s8456_s11  ;;  %p8462_p8 = scmp.lt.s32.totalorder %s8456_s11, %s8456_s11 }
0x13a3   :  { %p8463_p9 = por %p8462_p8, %p8461_p7 }
0x13a5   :  { %p8464_p10 = pnand %p8463_p9, %p8457_p6 }
0x1411   :  { %v6704_v43 = vpop.permute.xlu1 %6703 }
0x1412   :  { %v6706_v51 = vmax.f32 %v6701_v58, %v6704_v43 }
0x1414   :  { %7206 = vmatmul.mubr.msk.f32.vlgmr.msra.gmra.mrb[10].mxu1 %vm6713_vm2, %v6706_v51 }
0x14e7   :  { %v6787_v32 = vpop.f32.mrb[10].mxu1 }
0x14e8   :  { %6799 = vxpose.xlu0.b32.start.end [1/1] (short) (narrow) %v6787_v32, 8  ;;  %v7207_v19 = vpop.f32.mrb[11].mxu1 }
0x1511   :  { %8315 = vset.pattern.permute.xlu0 %v8505_v35 }
0x1568   :  { %v6815_v23 = vpop.trf.xlu0 }
0x1569   :  { %7211 = vmatmul.mubr.msk.f32.vlgmr.msra.gmra.mrb[6].mxu0 %vm3218_vm11, %v6815_v23 }
0x163c   :  { %v6900_v15 = vpop.f32.mrb[6].mxu0 }
0x163d   :  { %v6901_v53 = vadd.f32 %v7007_v2, %v6900_v15  ;;  %v7212_v54 = vpop.f32.mrb[7].mxu0 }
0x163f   :  { %6905 = vst.msk [vmem:[#allocation15] sm:$0x3] %vm6904_vm3, %v6901_v53 }
0x1640   :  { %8467 = shalt.err (!%p8464_p10)
}
0x1641   :  { %s10992_s3 = sld [smem:[#allocation75_spill]] }
0x1647   :  { %s8468_s0 = scalar_lea.hbm %s10992_s3, 32 }
0x1648   :  { %p8469_p11 = scmp.ne.s32.totalorder %s10992_s3, %s8468_s0  ;;  %p8472_p12 = scmp.lt.u32.totalorder %s8468_s0, %s10992_s3 }
0x164a   :  { %p8474_p13 = pnand %p8472_p12, %p8469_p11 }
0x164c   :  { %8477 = shalt.err (!%p8474_p13)
}
0x164d   :  { %6915 = dma.vmem_to_hbm [thread:$0]  %s6913_s19, 32, %s10992_s3, [#allocation6]  }
0x164e   :  { %8486 = dma.done.wait [#allocation6], 32  }
0x164f   :  { %8487 = vsyncadd [#allocation6], 4294967264 }
0x1650   :  { %6919 = vsyncpa [#allocation5], 1 }
0x1651   :  { %6920 = vsyncpa [#allocation8], 1 }
0x1652   :  { %6921 = vsyncpa [#allocation11], 1 }
0x1653   :  { %6922 = vsyncpa [#allocation14], 1 }
0x1654   :  { %6923 = vsyncpa [#allocation6], 1 }

</bundles_post_ra>
